<compile_context>
chip_gen: v7x
topology: tpu7x:2x2x1
jax: 0.10.0
libtpu: 0.0.40
codegen_flags: <defaults>
</compile_context>

<pallas_src>
import functools
import math

import numpy as np
import jax
import jax.numpy as jnp
from jax import lax
from jax.experimental import pallas as pl
from jax.experimental.pallas import tpu as pltpu

# ----------------------------------------------------------------------------
# Config (mirrors the PyTorch module's __init__)
# ----------------------------------------------------------------------------
HIDDEN_SIZE = 32
NUM_HEADS = 4
HEAD_DIM = HIDDEN_SIZE // NUM_HEADS
WINDOW_SIZE = (2, 2, 2)
NUM_BRANCHES = 3          # h-attention, v-attention, window-attention
NEG_INF = -1e9


# ----------------------------------------------------------------------------
# Fused Pallas kernel: all three attention branches, all heads, both batches
# ----------------------------------------------------------------------------
def fused_multi_attention_kernel(x_cm_ref, x_tm_ref, w_ref, bias_ref, bo_ref,
                                 o_ref, proj_ref, *, num_heads, head_dim, num_branches):
    C = num_heads * head_dim
    n_hb = num_branches * num_heads
    vo_base = n_hb * C
    r_base = 2 * n_hb * C
    M = x_cm_ref.shape[1]

    # One packed, lane-dense projection of x for every branch/head (all folds done offline):
    #   rows [0      , 12C)    : A_h  @ x_cm   (C, M) per head
    #   rows [12C    , 24C)    : VO_h^T @ x_cm (C, M) per head
    #   rows [24C    , 24C+12) : r_h = rb_h @ x_cm, one (1, M) row per head
    # Written to a VMEM scratch so the ~390 KiB intermediate never lives in vregs.
    proj_ref[...] = jnp.dot(w_ref[...], x_cm_ref[...],
                            preferred_element_type=jnp.float32)

    acc = jnp.zeros((C, M), jnp.float32)          # channels-major accumulator (lane dense)

    for br in range(num_branches):
        for h in range(num_heads):
            idx = br * num_heads + h
            # All slices are sublane-aligned row slices of lane-dense (., 128) buffers.
            ax = proj_ref[idx * C:(idx + 1) * C, :]                          # (C, M)
            vo = proj_ref[vo_base + idx * C:vo_base + (idx + 1) * C, :]      # (C, M)
            r = proj_ref[r_base + idx:r_base + idx + 1, :]                   # (1, M)

            # s[i, j] = x_i^T A_h x_j + r_h[j] + mask / rel-pos bias   (scale folded into A, r)
            s = jnp.dot(x_tm_ref[...], ax, preferred_element_type=jnp.float32)
            s = s + r + bias_ref[br]
            s = s - jnp.max(s, axis=-1, keepdims=True)
            p = jnp.exp(s)
            p = p * pl.reciprocal(jnp.sum(p, axis=-1, keepdims=True), approx=False)

            # acc[c, i] += sum_j vo[c, j] * p[i, j]    ("NT" matmul, no transposes anywhere)
            acc = acc + lax.dot_general(p_rhs := p, vo if False else vo, (((1,), (1,)), ((), ()))) \
                if False else acc + lax.dot_general(vo, p, (((1,), (1,)), ((), ())),
                                                    preferred_element_type=jnp.float32)

    # Branch output biases + folded bv.Wo biases were pre-summed on the host.
    o_ref[...] = (acc + bo_ref[...]).astype(o_ref.dtype)


# ----------------------------------------------------------------------------
# pallas_call wrapper: one kernel call for the whole MultiAttention forward
# ----------------------------------------------------------------------------
def multi_attention_forward(x, fused):
    B, C, D, W, H = x.shape
    T = D * W * H
    M = B * T
    # Layout plumbing only (tiny XLA transposes): channels-major and token-major views.
    x_bct = x.reshape(B, C, T)
    x_cm = x_bct.transpose(1, 0, 2).reshape(C, M)       # (C, M)
    x_tm = x_bct.transpose(0, 2, 1).reshape(M, C)       # (M, C)

    w_big, bias, b_out = fused["w_big"], fused["bias"], fused["b_out"]
    R = w_big.shape[0]
    n_hb = NUM_BRANCHES * NUM_HEADS

    kern = functools.partial(fused_multi_attention_kernel, num_heads=NUM_HEADS,
                             head_dim=HEAD_DIM, num_branches=NUM_BRANCHES)

    flops = 2 * R * C * M + n_hb * (2 * M * M * C + 2 * M * M * C)
    bytes_accessed = 4 * (C * M + M * C + R * C + NUM_BRANCHES * M * M + C + C * M)

    out_cm = pl.pallas_call(
        kern,
        out_shape=jax.ShapeDtypeStruct((C, M), x.dtype),
        grid=(1,),
        in_specs=[
            pl.BlockSpec((C, M), lambda i: (0, 0)),                     # x channels-major
            pl.BlockSpec((M, C), lambda i: (0, 0)),                     # x token-major
            pl.BlockSpec((R, C), lambda i: (0, 0)),                     # packed folded weights
            pl.BlockSpec((NUM_BRANCHES, M, M), lambda i: (0, 0, 0)),    # additive bias tables
            pl.BlockSpec((C, 1), lambda i: (0, 0)),                     # pre-summed out bias
        ],
        out_specs=pl.BlockSpec((C, M), lambda i: (0, 0)),
        scratch_shapes=[pltpu.VMEM((R, M), jnp.float32)],               # packed projection
        compiler_params=pltpu.CompilerParams(dimension_semantics=("arbitrary",)),
        cost_estimate=pl.CostEstimate(flops=flops,
                                      transcendentals=n_hb * M * M,
                                      bytes_accessed=bytes_accessed),
    )(x_cm, x_tm, w_big, bias, b_out)

    return out_cm.reshape(C, B, T).transpose(1, 0, 2).reshape(B, C, D, W, H)


# ----------------------------------------------------------------------------
# One-time parameter packing / folding (hoisted out of the forward path)
# ----------------------------------------------------------------------------
def prepare_fused_params(params, spatial_shape, batch):
    """Fold Wq^T.Wk (with the 1/sqrt(hd) scale), Wv.Wo and all biases offline, pack them
    into one (784, C) projection weight, and precompute the (3, M, M) additive attention
    bias tables (batch-block-diagonal masks + window relative-position embedding)."""
    D, W, H = spatial_shape
    C, NH, hd = HIDDEN_SIZE, NUM_HEADS, HEAD_DIM
    T = D * W * H
    M = batch * T
    scale = 1.0 / math.sqrt(hd)
    h_p, v_p, w_p = params["h_attention"], params["v_attention"], params["window"]

    def branch_weights(p, has_qkv_bias):
        if has_qkv_bias:                                   # torch nn.Linear layout (out, in)
            return p["wq"], p["bq"], p["wk"], p["bk"], p["wv"], p["bv"], p["wo"], p["bo"]
        wqkv = p["w_qkv"]                                  # window: to_qkv (3C, C), no bias
        z = jnp.zeros((C,), jnp.float32)
        return wqkv[:C], z, wqkv[C:2 * C], z, wqkv[2 * C:3 * C], z, p["w_out"], p["b_out"]

    branches = [branch_weights(h_p, True), branch_weights(v_p, True),
                branch_weights(w_p, False)]

    a_blocks, vo_blocks, r_rows = [], [], []
    b_total = jnp.zeros((C,), jnp.float32)
    for (wq, bq, wk, bk, wv, bv, wo, bo) in branches:
        b_total = b_total + bo
        for h in range(NH):
            lo, hi = h * hd, (h + 1) * hd
            wq_h, wk_h, wv_h = wq[lo:hi, :], wk[lo:hi, :], wv[lo:hi, :]   # (hd, C)
            wo_h = wo[:, lo:hi]                                           # (C, hd)
            a_blocks.append((wq_h.T @ wk_h) * scale)       # A_h = Wq_h^T Wk_h / sqrt(hd)
            vo_blocks.append(wo_h @ wv_h)                  # VO_h^T = Wo[:,h] Wv_h
            r_rows.append((bq[lo:hi] @ wk_h) * scale)      # rb_h = bq_h^T Wk_h / sqrt(hd)
            b_total = b_total + wo_h @ bv[lo:hi]           # bvo_h (softmax rows sum to 1)

    w_big = jnp.concatenate([jnp.concatenate(a_blocks, axis=0),
                             jnp.concatenate(vo_blocks, axis=0),
                             jnp.stack(r_rows, axis=0)], axis=0)          # (2*12C + 12, C)
    pad = (-w_big.shape[0]) % 8                                           # sublane-align rows
    if pad:
        w_big = jnp.concatenate([w_big, jnp.zeros((pad, C), jnp.float32)], axis=0)

    # ---- additive bias tables, block-diagonal over batch, token order m = b*T + d*W*H + w*H + h
    coords = np.stack(np.meshgrid(np.arange(D), np.arange(W), np.arange(H),
                                  indexing="ij"), axis=-1).reshape(T, 3)
    coords = np.tile(coords, (batch, 1))                                  # (M, 3)
    bidx = np.repeat(np.arange(batch), T)                                 # (M,)
    same_batch = bidx[:, None] == bidx[None, :]
    d, wi, hi_ = coords[:, 0], coords[:, 1], coords[:, 2]
    same_slice = same_batch & (d[:, None] == d[None, :])                  # "h" branch
    same_column = same_batch & (wi[:, None] == wi[None, :]) & (hi_[:, None] == hi_[None, :])
    ws = np.asarray(WINDOW_SIZE)
    win_id = coords // ws
    same_window = same_batch & np.all(win_id[:, None, :] == win_id[None, :, :], axis=-1)

    bias_h = np.where(same_slice, 0.0, NEG_INF).astype(np.float32)
    bias_v = np.where(same_column, 0.0, NEG_INF).astype(np.float32)

    pos = np.asarray(w_p["pos_embedding"])
    tbl = pos.shape[0]
    local = coords % ws
    rel = local[None, :, :] - local[:, None, :] + (int(ws.max()) - 1)
    rel = np.clip(rel, 0, tbl - 1)                    # cross-window pairs are masked anyway
    pe = pos[rel[:, :, 0], rel[:, :, 1], rel[:, :, 2]]                    # (M, M)
    bias_w = np.where(same_window, pe, NEG_INF).astype(np.float32)

    bias = jnp.asarray(np.stack([bias_h, bias_v, bias_w], axis=0))        # (3, M, M)

    return dict(w_big=w_big, bias=bias, b_out=b_total[:, None])


# ----------------------------------------------------------------------------
# Deterministic parameter init (shapes follow the PyTorch __init__)
# ----------------------------------------------------------------------------
def init_params(key):
    ks = iter(jax.random.split(key, 32))

    def linear(out_f, in_f, bias=True):
        w = jax.random.normal(next(ks), (out_f, in_f), jnp.float32) * 0.02
        b = (jax.random.normal(next(ks), (out_f,), jnp.float32) * 0.02
             if bias else None)
        return w, b

    def attn_params():
        wq, bq = linear(HIDDEN_SIZE, HIDDEN_SIZE)
        wk, bk = linear(HIDDEN_SIZE, HIDDEN_SIZE)
        wv, bv = linear(HIDDEN_SIZE, HIDDEN_SIZE)
        wo, bo = linear(HIDDEN_SIZE, HIDDEN_SIZE)
        return dict(wq=wq, bq=bq, wk=wk, bk=bk, wv=wv, bv=bv, wo=wo, bo=bo)

    inner = NUM_HEADS * HEAD_DIM
    w_qkv, _ = linear(3 * inner, HIDDEN_SIZE, bias=False)                 # to_qkv (no bias)
    w_out, b_out = linear(HIDDEN_SIZE, inner)                              # to_out
    w0, w1, w2 = WINDOW_SIZE
    idx = np.array([[a, b, c] for a in range(w0) for b in range(w1) for c in range(w2)])
    rel = idx[None, :, :] - idx[:, None, :]
    max_ind = int((rel - rel.min()).max())
    pos_embedding = jax.random.normal(next(ks), (max_ind + 1,) * 3, jnp.float32)

    return {
        "v_attention": attn_params(),
        "h_attention": attn_params(),
        "window": dict(w_qkv=w_qkv, w_out=w_out, b_out=b_out,
                       pos_embedding=pos_embedding),
    }


# ----------------------------------------------------------------------------
if __name__ == "__main__":
    key = jax.random.PRNGKey(0)
    kx, kp = jax.random.split(key)
    B, D, W, H = 2, 4, 4, 4
    # x: (batch, hidden_size, D, W, H)
    x = jax.random.normal(kx, (B, HIDDEN_SIZE, D, W, H), jnp.float32)
    params = init_params(kp)
    fused = prepare_fused_params(params, (D, W, H), B)    # one-time folding, outside forward

    fwd = jax.jit(multi_attention_forward)
    out = fwd(x, fused)
    jax.block_until_ready(out)
    assert out.shape == x.shape and out.dtype == jnp.float32
    assert bool(jnp.isfinite(out).all())
    print("KERNEL_OK")
</pallas_src>

<mosaic_0001>
module attributes {stable_mosaic.version = 11 : i64} {
  func.func @fused_multi_attention_kernel(%arg0: i32, %arg1: memref<32x128xf32, #tpu.memory_space<vmem>>, %arg2: memref<128x32xf32, #tpu.memory_space<vmem>>, %arg3: memref<784x32xf32, #tpu.memory_space<vmem>>, %arg4: memref<3x128x128xf32, #tpu.memory_space<vmem>>, %arg5: memref<32x1xf32, #tpu.memory_space<vmem>>, %arg6: memref<32x128xf32, #tpu.memory_space<vmem>>, %arg7: memref<784x128xf32, #tpu.memory_space<vmem>>) attributes {dimension_semantics = [#tpu.dimension_semantics<arbitrary>], iteration_bounds = array<i64: 1>, scalar_prefetch = 0 : i64, scratch_operands = 1 : i64, tpu.core_type = #tpu.core_type<tc>, window_params = [{pipeline_mode = #tpu.pipeline_mode<synchronous>, transform_indices = @transform_0, window_bounds = array<i64: 32, 128>}, {pipeline_mode = #tpu.pipeline_mode<synchronous>, transform_indices = @transform_1, window_bounds = array<i64: 128, 32>}, {pipeline_mode = #tpu.pipeline_mode<synchronous>, transform_indices = @transform_2, window_bounds = array<i64: 784, 32>}, {pipeline_mode = #tpu.pipeline_mode<synchronous>, transform_indices = @transform_3, window_bounds = array<i64: 3, 128, 128>}, {pipeline_mode = #tpu.pipeline_mode<synchronous>, transform_indices = @transform_4, window_bounds = array<i64: 32, 1>}, {pipeline_mode = #tpu.pipeline_mode<synchronous>, transform_indices = @transform_5, window_bounds = array<i64: 32, 128>}]} {
    %c0 = arith.constant 0 : index
    %c0_0 = arith.constant 0 : index
    %0 = vector.load %arg3[%c0, %c0_0] : memref<784x32xf32, #tpu.memory_space<vmem>>, vector<784x32xf32>
    %c0_1 = arith.constant 0 : index
    %c0_2 = arith.constant 0 : index
    %1 = vector.load %arg1[%c0_1, %c0_2] : memref<32x128xf32, #tpu.memory_space<vmem>>, vector<32x128xf32>
    %cst = arith.constant dense<0.000000e+00> : vector<784x128xf32>
    %2 = tpu.matmul %0, %1, %cst {dimension_numbers = #tpu.dot_dimension_numbers<[1], [0], [0], [1], [0, 0, 1, 1], [], []>} : vector<784x32xf32>, vector<32x128xf32>, vector<784x128xf32> -> vector<784x128xf32>
    %c0_3 = arith.constant 0 : index
    %c0_4 = arith.constant 0 : index
    %3 = vector.load %arg7[%c0_3, %c0_4] : memref<784x128xf32, #tpu.memory_space<vmem>>, vector<784x128xf32>
    tpu.vector_store %arg7[%c0_3, %c0_4], %2 {strides = array<i32>} : memref<784x128xf32, #tpu.memory_space<vmem>>, vector<784x128xf32>,
    %cst_5 = arith.constant 0.000000e+00 : f32
    %4 = vector.broadcast %cst_5 : f32 to vector<32x128xf32>
    %c0_6 = arith.constant 0 : index
    %c0_7 = arith.constant 0 : index
    %5 = vector.load %arg7[%c0_6, %c0_7] : memref<784x128xf32, #tpu.memory_space<vmem>>, vector<32x128xf32>
    %c384 = arith.constant 384 : index
    %c0_8 = arith.constant 0 : index
    %6 = vector.load %arg7[%c384, %c0_8] : memref<784x128xf32, #tpu.memory_space<vmem>>, vector<32x128xf32>
    %c768 = arith.constant 768 : index
    %c0_9 = arith.constant 0 : index
    %7 = vector.load %arg7[%c768, %c0_9] : memref<784x128xf32, #tpu.memory_space<vmem>>, vector<1x128xf32>
    %c0_10 = arith.constant 0 : index
    %c0_11 = arith.constant 0 : index
    %8 = vector.load %arg2[%c0_10, %c0_11] : memref<128x32xf32, #tpu.memory_space<vmem>>, vector<128x32xf32>
    %cst_12 = arith.constant dense<0.000000e+00> : vector<128x128xf32>
    %9 = tpu.matmul %8, %5, %cst_12 {dimension_numbers = #tpu.dot_dimension_numbers<[1], [0], [0], [1], [0, 0, 1, 1], [], []>} : vector<128x32xf32>, vector<32x128xf32>, vector<128x128xf32> -> vector<128x128xf32>
    %10 = vector.broadcast %7 : vector<1x128xf32> to vector<128x128xf32>
    %11 = arith.addf %9, %10 : vector<128x128xf32>
    %c0_13 = arith.constant 0 : index
    %c0_14 = arith.constant 0 : index
    %c0_15 = arith.constant 0 : index
    %12 = vector.load %arg4[%c0_13, %c0_14, %c0_15] : memref<3x128x128xf32, #tpu.memory_space<vmem>>, vector<1x128x128xf32>
    %13 = vector.shape_cast %12 : vector<1x128x128xf32> to vector<128x128xf32>
    %14 = arith.addf %11, %13 : vector<128x128xf32>
    %cst_16 = arith.constant dense<0xFF800000> : vector<128xf32>
    %15 = vector.multi_reduction <maximumf>, %14, %cst_16 [1] : vector<128x128xf32> to vector<128xf32>
    %16 = vector.shape_cast %15 : vector<128xf32> to vector<128x1xf32>
    %17 = vector.broadcast %16 : vector<128x1xf32> to vector<128x128xf32>
    %18 = arith.subf %14, %17 : vector<128x128xf32>
    %19 = math.exp %18 : vector<128x128xf32>
    %cst_17 = arith.constant dense<0.000000e+00> : vector<128xf32>
    %20 = vector.multi_reduction <add>, %19, %cst_17 [1] : vector<128x128xf32> to vector<128xf32>
    %21 = vector.shape_cast %20 : vector<128xf32> to vector<128x1xf32>
    %22 = tpu.reciprocal %21 : vector<128x1xf32> -> vector<128x1xf32>
    %23 = vector.broadcast %22 : vector<128x1xf32> to vector<128x128xf32>
    %24 = arith.mulf %19, %23 : vector<128x128xf32>
    %cst_18 = arith.constant dense<0.000000e+00> : vector<32x128xf32>
    %25 = tpu.matmul %6, %24, %cst_18 {dimension_numbers = #tpu.dot_dimension_numbers<[1], [1], [0], [0], [0, 0, 1, 0], [], []>} : vector<32x128xf32>, vector<128x128xf32>, vector<32x128xf32> -> vector<32x128xf32>
    %26 = arith.addf %4, %25 : vector<32x128xf32>
    %c32 = arith.constant 32 : index
    %c0_19 = arith.constant 0 : index
    %27 = vector.load %arg7[%c32, %c0_19] : memref<784x128xf32, #tpu.memory_space<vmem>>, vector<32x128xf32>
    %c416 = arith.constant 416 : index
    %c0_20 = arith.constant 0 : index
    %28 = vector.load %arg7[%c416, %c0_20] : memref<784x128xf32, #tpu.memory_space<vmem>>, vector<32x128xf32>
    %c769 = arith.constant 769 : index
    %c0_21 = arith.constant 0 : index
    %29 = vector.load %arg7[%c769, %c0_21] : memref<784x128xf32, #tpu.memory_space<vmem>>, vector<1x128xf32>
    %c0_22 = arith.constant 0 : index
    %c0_23 = arith.constant 0 : index
    %30 = vector.load %arg2[%c0_22, %c0_23] : memref<128x32xf32, #tpu.memory_space<vmem>>, vector<128x32xf32>
    %cst_24 = arith.constant dense<0.000000e+00> : vector<128x128xf32>
    %31 = tpu.matmul %30, %27, %cst_24 {dimension_numbers = #tpu.dot_dimension_numbers<[1], [0], [0], [1], [0, 0, 1, 1], [], []>} : vector<128x32xf32>, vector<32x128xf32>, vector<128x128xf32> -> vector<128x128xf32>
    %32 = vector.broadcast %29 : vector<1x128xf32> to vector<128x128xf32>
    %33 = arith.addf %31, %32 : vector<128x128xf32>
    %c0_25 = arith.constant 0 : index
    %c0_26 = arith.constant 0 : index
    %c0_27 = arith.constant 0 : index
    %34 = vector.load %arg4[%c0_25, %c0_26, %c0_27] : memref<3x128x128xf32, #tpu.memory_space<vmem>>, vector<1x128x128xf32>
    %35 = vector.shape_cast %34 : vector<1x128x128xf32> to vector<128x128xf32>
    %36 = arith.addf %33, %35 : vector<128x128xf32>
    %cst_28 = arith.constant dense<0xFF800000> : vector<128xf32>
    %37 = vector.multi_reduction <maximumf>, %36, %cst_28 [1] : vector<128x128xf32> to vector<128xf32>
    %38 = vector.shape_cast %37 : vector<128xf32> to vector<128x1xf32>
    %39 = vector.broadcast %38 : vector<128x1xf32> to vector<128x128xf32>
    %40 = arith.subf %36, %39 : vector<128x128xf32>
    %41 = math.exp %40 : vector<128x128xf32>
    %cst_29 = arith.constant dense<0.000000e+00> : vector<128xf32>
    %42 = vector.multi_reduction <add>, %41, %cst_29 [1] : vector<128x128xf32> to vector<128xf32>
    %43 = vector.shape_cast %42 : vector<128xf32> to vector<128x1xf32>
    %44 = tpu.reciprocal %43 : vector<128x1xf32> -> vector<128x1xf32>
    %45 = vector.broadcast %44 : vector<128x1xf32> to vector<128x128xf32>
    %46 = arith.mulf %41, %45 : vector<128x128xf32>
    %cst_30 = arith.constant dense<0.000000e+00> : vector<32x128xf32>
    %47 = tpu.matmul %28, %46, %cst_30 {dimension_numbers = #tpu.dot_dimension_numbers<[1], [1], [0], [0], [0, 0, 1, 0], [], []>} : vector<32x128xf32>, vector<128x128xf32>, vector<32x128xf32> -> vector<32x128xf32>
    %48 = arith.addf %26, %47 : vector<32x128xf32>
    %c64 = arith.constant 64 : index
    %c0_31 = arith.constant 0 : index
    %49 = vector.load %arg7[%c64, %c0_31] : memref<784x128xf32, #tpu.memory_space<vmem>>, vector<32x128xf32>
    %c448 = arith.constant 448 : index
    %c0_32 = arith.constant 0 : index
    %50 = vector.load %arg7[%c448, %c0_32] : memref<784x128xf32, #tpu.memory_space<vmem>>, vector<32x128xf32>
    %c770 = arith.constant 770 : index
    %c0_33 = arith.constant 0 : index
    %51 = vector.load %arg7[%c770, %c0_33] : memref<784x128xf32, #tpu.memory_space<vmem>>, vector<1x128xf32>
    %c0_34 = arith.constant 0 : index
    %c0_35 = arith.constant 0 : index
    %52 = vector.load %arg2[%c0_34, %c0_35] : memref<128x32xf32, #tpu.memory_space<vmem>>, vector<128x32xf32>
    %cst_36 = arith.constant dense<0.000000e+00> : vector<128x128xf32>
    %53 = tpu.matmul %52, %49, %cst_36 {dimension_numbers = #tpu.dot_dimension_numbers<[1], [0], [0], [1], [0, 0, 1, 1], [], []>} : vector<128x32xf32>, vector<32x128xf32>, vector<128x128xf32> -> vector<128x128xf32>
    %54 = vector.broadcast %51 : vector<1x128xf32> to vector<128x128xf32>
    %55 = arith.addf %53, %54 : vector<128x128xf32>
    %c0_37 = arith.constant 0 : index
    %c0_38 = arith.constant 0 : index
    %c0_39 = arith.constant 0 : index
    %56 = vector.load %arg4[%c0_37, %c0_38, %c0_39] : memref<3x128x128xf32, #tpu.memory_space<vmem>>, vector<1x128x128xf32>
    %57 = vector.shape_cast %56 : vector<1x128x128xf32> to vector<128x128xf32>
    %58 = arith.addf %55, %57 : vector<128x128xf32>
    %cst_40 = arith.constant dense<0xFF800000> : vector<128xf32>
    %59 = vector.multi_reduction <maximumf>, %58, %cst_40 [1] : vector<128x128xf32> to vector<128xf32>
    %60 = vector.shape_cast %59 : vector<128xf32> to vector<128x1xf32>
    %61 = vector.broadcast %60 : vector<128x1xf32> to vector<128x128xf32>
    %62 = arith.subf %58, %61 : vector<128x128xf32>
    %63 = math.exp %62 : vector<128x128xf32>
    %cst_41 = arith.constant dense<0.000000e+00> : vector<128xf32>
    %64 = vector.multi_reduction <add>, %63, %cst_41 [1] : vector<128x128xf32> to vector<128xf32>
    %65 = vector.shape_cast %64 : vector<128xf32> to vector<128x1xf32>
    %66 = tpu.reciprocal %65 : vector<128x1xf32> -> vector<128x1xf32>
    %67 = vector.broadcast %66 : vector<128x1xf32> to vector<128x128xf32>
    %68 = arith.mulf %63, %67 : vector<128x128xf32>
    %cst_42 = arith.constant dense<0.000000e+00> : vector<32x128xf32>
    %69 = tpu.matmul %50, %68, %cst_42 {dimension_numbers = #tpu.dot_dimension_numbers<[1], [1], [0], [0], [0, 0, 1, 0], [], []>} : vector<32x128xf32>, vector<128x128xf32>, vector<32x128xf32> -> vector<32x128xf32>
    %70 = arith.addf %48, %69 : vector<32x128xf32>
    %c96 = arith.constant 96 : index
    %c0_43 = arith.constant 0 : index
    %71 = vector.load %arg7[%c96, %c0_43] : memref<784x128xf32, #tpu.memory_space<vmem>>, vector<32x128xf32>
    %c480 = arith.constant 480 : index
    %c0_44 = arith.constant 0 : index
    %72 = vector.load %arg7[%c480, %c0_44] : memref<784x128xf32, #tpu.memory_space<vmem>>, vector<32x128xf32>
    %c771 = arith.constant 771 : index
    %c0_45 = arith.constant 0 : index
    %73 = vector.load %arg7[%c771, %c0_45] : memref<784x128xf32, #tpu.memory_space<vmem>>, vector<1x128xf32>
    %c0_46 = arith.constant 0 : index
    %c0_47 = arith.constant 0 : index
    %74 = vector.load %arg2[%c0_46, %c0_47] : memref<128x32xf32, #tpu.memory_space<vmem>>, vector<128x32xf32>
    %cst_48 = arith.constant dense<0.000000e+00> : vector<128x128xf32>
    %75 = tpu.matmul %74, %71, %cst_48 {dimension_numbers = #tpu.dot_dimension_numbers<[1], [0], [0], [1], [0, 0, 1, 1], [], []>} : vector<128x32xf32>, vector<32x128xf32>, vector<128x128xf32> -> vector<128x128xf32>
    %76 = vector.broadcast %73 : vector<1x128xf32> to vector<128x128xf32>
    %77 = arith.addf %75, %76 : vector<128x128xf32>
    %c0_49 = arith.constant 0 : index
    %c0_50 = arith.constant 0 : index
    %c0_51 = arith.constant 0 : index
    %78 = vector.load %arg4[%c0_49, %c0_50, %c0_51] : memref<3x128x128xf32, #tpu.memory_space<vmem>>, vector<1x128x128xf32>
    %79 = vector.shape_cast %78 : vector<1x128x128xf32> to vector<128x128xf32>
    %80 = arith.addf %77, %79 : vector<128x128xf32>
    %cst_52 = arith.constant dense<0xFF800000> : vector<128xf32>
    %81 = vector.multi_reduction <maximumf>, %80, %cst_52 [1] : vector<128x128xf32> to vector<128xf32>
    %82 = vector.shape_cast %81 : vector<128xf32> to vector<128x1xf32>
    %83 = vector.broadcast %82 : vector<128x1xf32> to vector<128x128xf32>
    %84 = arith.subf %80, %83 : vector<128x128xf32>
    %85 = math.exp %84 : vector<128x128xf32>
    %cst_53 = arith.constant dense<0.000000e+00> : vector<128xf32>
    %86 = vector.multi_reduction <add>, %85, %cst_53 [1] : vector<128x128xf32> to vector<128xf32>
    %87 = vector.shape_cast %86 : vector<128xf32> to vector<128x1xf32>
    %88 = tpu.reciprocal %87 : vector<128x1xf32> -> vector<128x1xf32>
    %89 = vector.broadcast %88 : vector<128x1xf32> to vector<128x128xf32>
    %90 = arith.mulf %85, %89 : vector<128x128xf32>
    %cst_54 = arith.constant dense<0.000000e+00> : vector<32x128xf32>
    %91 = tpu.matmul %72, %90, %cst_54 {dimension_numbers = #tpu.dot_dimension_numbers<[1], [1], [0], [0], [0, 0, 1, 0], [], []>} : vector<32x128xf32>, vector<128x128xf32>, vector<32x128xf32> -> vector<32x128xf32>
    %92 = arith.addf %70, %91 : vector<32x128xf32>
    %c128 = arith.constant 128 : index
    %c0_55 = arith.constant 0 : index
    %93 = vector.load %arg7[%c128, %c0_55] : memref<784x128xf32, #tpu.memory_space<vmem>>, vector<32x128xf32>
    %c512 = arith.constant 512 : index
    %c0_56 = arith.constant 0 : index
    %94 = vector.load %arg7[%c512, %c0_56] : memref<784x128xf32, #tpu.memory_space<vmem>>, vector<32x128xf32>
    %c772 = arith.constant 772 : index
    %c0_57 = arith.constant 0 : index
    %95 = vector.load %arg7[%c772, %c0_57] : memref<784x128xf32, #tpu.memory_space<vmem>>, vector<1x128xf32>
    %c0_58 = arith.constant 0 : index
    %c0_59 = arith.constant 0 : index
    %96 = vector.load %arg2[%c0_58, %c0_59] : memref<128x32xf32, #tpu.memory_space<vmem>>, vector<128x32xf32>
    %cst_60 = arith.constant dense<0.000000e+00> : vector<128x128xf32>
    %97 = tpu.matmul %96, %93, %cst_60 {dimension_numbers = #tpu.dot_dimension_numbers<[1], [0], [0], [1], [0, 0, 1, 1], [], []>} : vector<128x32xf32>, vector<32x128xf32>, vector<128x128xf32> -> vector<128x128xf32>
    %98 = vector.broadcast %95 : vector<1x128xf32> to vector<128x128xf32>
    %99 = arith.addf %97, %98 : vector<128x128xf32>
    %c1 = arith.constant 1 : index
    %c0_61 = arith.constant 0 : index
    %c0_62 = arith.constant 0 : index
    %100 = vector.load %arg4[%c1, %c0_61, %c0_62] : memref<3x128x128xf32, #tpu.memory_space<vmem>>, vector<1x128x128xf32>
    %101 = vector.shape_cast %100 : vector<1x128x128xf32> to vector<128x128xf32>
    %102 = arith.addf %99, %101 : vector<128x128xf32>
    %cst_63 = arith.constant dense<0xFF800000> : vector<128xf32>
    %103 = vector.multi_reduction <maximumf>, %102, %cst_63 [1] : vector<128x128xf32> to vector<128xf32>
    %104 = vector.shape_cast %103 : vector<128xf32> to vector<128x1xf32>
    %105 = vector.broadcast %104 : vector<128x1xf32> to vector<128x128xf32>
    %106 = arith.subf %102, %105 : vector<128x128xf32>
    %107 = math.exp %106 : vector<128x128xf32>
    %cst_64 = arith.constant dense<0.000000e+00> : vector<128xf32>
    %108 = vector.multi_reduction <add>, %107, %cst_64 [1] : vector<128x128xf32> to vector<128xf32>
    %109 = vector.shape_cast %108 : vector<128xf32> to vector<128x1xf32>
    %110 = tpu.reciprocal %109 : vector<128x1xf32> -> vector<128x1xf32>
    %111 = vector.broadcast %110 : vector<128x1xf32> to vector<128x128xf32>
    %112 = arith.mulf %107, %111 : vector<128x128xf32>
    %cst_65 = arith.constant dense<0.000000e+00> : vector<32x128xf32>
    %113 = tpu.matmul %94, %112, %cst_65 {dimension_numbers = #tpu.dot_dimension_numbers<[1], [1], [0], [0], [0, 0, 1, 0], [], []>} : vector<32x128xf32>, vector<128x128xf32>, vector<32x128xf32> -> vector<32x128xf32>
    %114 = arith.addf %92, %113 : vector<32x128xf32>
    %c160 = arith.constant 160 : index
    %c0_66 = arith.constant 0 : index
    %115 = vector.load %arg7[%c160, %c0_66] : memref<784x128xf32, #tpu.memory_space<vmem>>, vector<32x128xf32>
    %c544 = arith.constant 544 : index
    %c0_67 = arith.constant 0 : index
    %116 = vector.load %arg7[%c544, %c0_67] : memref<784x128xf32, #tpu.memory_space<vmem>>, vector<32x128xf32>
    %c773 = arith.constant 773 : index
    %c0_68 = arith.constant 0 : index
    %117 = vector.load %arg7[%c773, %c0_68] : memref<784x128xf32, #tpu.memory_space<vmem>>, vector<1x128xf32>
    %c0_69 = arith.constant 0 : index
    %c0_70 = arith.constant 0 : index
    %118 = vector.load %arg2[%c0_69, %c0_70] : memref<128x32xf32, #tpu.memory_space<vmem>>, vector<128x32xf32>
    %cst_71 = arith.constant dense<0.000000e+00> : vector<128x128xf32>
    %119 = tpu.matmul %118, %115, %cst_71 {dimension_numbers = #tpu.dot_dimension_numbers<[1], [0], [0], [1], [0, 0, 1, 1], [], []>} : vector<128x32xf32>, vector<32x128xf32>, vector<128x128xf32> -> vector<128x128xf32>
    %120 = vector.broadcast %117 : vector<1x128xf32> to vector<128x128xf32>
    %121 = arith.addf %119, %120 : vector<128x128xf32>
    %c1_72 = arith.constant 1 : index
    %c0_73 = arith.constant 0 : index
    %c0_74 = arith.constant 0 : index
    %122 = vector.load %arg4[%c1_72, %c0_73, %c0_74] : memref<3x128x128xf32, #tpu.memory_space<vmem>>, vector<1x128x128xf32>
    %123 = vector.shape_cast %122 : vector<1x128x128xf32> to vector<128x128xf32>
    %124 = arith.addf %121, %123 : vector<128x128xf32>
    %cst_75 = arith.constant dense<0xFF800000> : vector<128xf32>
    %125 = vector.multi_reduction <maximumf>, %124, %cst_75 [1] : vector<128x128xf32> to vector<128xf32>
    %126 = vector.shape_cast %125 : vector<128xf32> to vector<128x1xf32>
    %127 = vector.broadcast %126 : vector<128x1xf32> to vector<128x128xf32>
    %128 = arith.subf %124, %127 : vector<128x128xf32>
    %129 = math.exp %128 : vector<128x128xf32>
    %cst_76 = arith.constant dense<0.000000e+00> : vector<128xf32>
    %130 = vector.multi_reduction <add>, %129, %cst_76 [1] : vector<128x128xf32> to vector<128xf32>
    %131 = vector.shape_cast %130 : vector<128xf32> to vector<128x1xf32>
    %132 = tpu.reciprocal %131 : vector<128x1xf32> -> vector<128x1xf32>
    %133 = vector.broadcast %132 : vector<128x1xf32> to vector<128x128xf32>
    %134 = arith.mulf %129, %133 : vector<128x128xf32>
    %cst_77 = arith.constant dense<0.000000e+00> : vector<32x128xf32>
    %135 = tpu.matmul %116, %134, %cst_77 {dimension_numbers = #tpu.dot_dimension_numbers<[1], [1], [0], [0], [0, 0, 1, 0], [], []>} : vector<32x128xf32>, vector<128x128xf32>, vector<32x128xf32> -> vector<32x128xf32>
    %136 = arith.addf %114, %135 : vector<32x128xf32>
    %c192 = arith.constant 192 : index
    %c0_78 = arith.constant 0 : index
    %137 = vector.load %arg7[%c192, %c0_78] : memref<784x128xf32, #tpu.memory_space<vmem>>, vector<32x128xf32>
    %c576 = arith.constant 576 : index
    %c0_79 = arith.constant 0 : index
    %138 = vector.load %arg7[%c576, %c0_79] : memref<784x128xf32, #tpu.memory_space<vmem>>, vector<32x128xf32>
    %c774 = arith.constant 774 : index
    %c0_80 = arith.constant 0 : index
    %139 = vector.load %arg7[%c774, %c0_80] : memref<784x128xf32, #tpu.memory_space<vmem>>, vector<1x128xf32>
    %c0_81 = arith.constant 0 : index
    %c0_82 = arith.constant 0 : index
    %140 = vector.load %arg2[%c0_81, %c0_82] : memref<128x32xf32, #tpu.memory_space<vmem>>, vector<128x32xf32>
    %cst_83 = arith.constant dense<0.000000e+00> : vector<128x128xf32>
    %141 = tpu.matmul %140, %137, %cst_83 {dimension_numbers = #tpu.dot_dimension_numbers<[1], [0], [0], [1], [0, 0, 1, 1], [], []>} : vector<128x32xf32>, vector<32x128xf32>, vector<128x128xf32> -> vector<128x128xf32>
    %142 = vector.broadcast %139 : vector<1x128xf32> to vector<128x128xf32>
    %143 = arith.addf %141, %142 : vector<128x128xf32>
    %c1_84 = arith.constant 1 : index
    %c0_85 = arith.constant 0 : index
    %c0_86 = arith.constant 0 : index
    %144 = vector.load %arg4[%c1_84, %c0_85, %c0_86] : memref<3x128x128xf32, #tpu.memory_space<vmem>>, vector<1x128x128xf32>
    %145 = vector.shape_cast %144 : vector<1x128x128xf32> to vector<128x128xf32>
    %146 = arith.addf %143, %145 : vector<128x128xf32>
    %cst_87 = arith.constant dense<0xFF800000> : vector<128xf32>
    %147 = vector.multi_reduction <maximumf>, %146, %cst_87 [1] : vector<128x128xf32> to vector<128xf32>
    %148 = vector.shape_cast %147 : vector<128xf32> to vector<128x1xf32>
    %149 = vector.broadcast %148 : vector<128x1xf32> to vector<128x128xf32>
    %150 = arith.subf %146, %149 : vector<128x128xf32>
    %151 = math.exp %150 : vector<128x128xf32>
    %cst_88 = arith.constant dense<0.000000e+00> : vector<128xf32>
    %152 = vector.multi_reduction <add>, %151, %cst_88 [1] : vector<128x128xf32> to vector<128xf32>
    %153 = vector.shape_cast %152 : vector<128xf32> to vector<128x1xf32>
    %154 = tpu.reciprocal %153 : vector<128x1xf32> -> vector<128x1xf32>
    %155 = vector.broadcast %154 : vector<128x1xf32> to vector<128x128xf32>
    %156 = arith.mulf %151, %155 : vector<128x128xf32>
    %cst_89 = arith.constant dense<0.000000e+00> : vector<32x128xf32>
    %157 = tpu.matmul %138, %156, %cst_89 {dimension_numbers = #tpu.dot_dimension_numbers<[1], [1], [0], [0], [0, 0, 1, 0], [], []>} : vector<32x128xf32>, vector<128x128xf32>, vector<32x128xf32> -> vector<32x128xf32>
    %158 = arith.addf %136, %157 : vector<32x128xf32>
    %c224 = arith.constant 224 : index
    %c0_90 = arith.constant 0 : index
    %159 = vector.load %arg7[%c224, %c0_90] : memref<784x128xf32, #tpu.memory_space<vmem>>, vector<32x128xf32>
    %c608 = arith.constant 608 : index
    %c0_91 = arith.constant 0 : index
    %160 = vector.load %arg7[%c608, %c0_91] : memref<784x128xf32, #tpu.memory_space<vmem>>, vector<32x128xf32>
    %c775 = arith.constant 775 : index
    %c0_92 = arith.constant 0 : index
    %161 = vector.load %arg7[%c775, %c0_92] : memref<784x128xf32, #tpu.memory_space<vmem>>, vector<1x128xf32>
    %c0_93 = arith.constant 0 : index
    %c0_94 = arith.constant 0 : index
    %162 = vector.load %arg2[%c0_93, %c0_94] : memref<128x32xf32, #tpu.memory_space<vmem>>, vector<128x32xf32>
    %cst_95 = arith.constant dense<0.000000e+00> : vector<128x128xf32>
    %163 = tpu.matmul %162, %159, %cst_95 {dimension_numbers = #tpu.dot_dimension_numbers<[1], [0], [0], [1], [0, 0, 1, 1], [], []>} : vector<128x32xf32>, vector<32x128xf32>, vector<128x128xf32> -> vector<128x128xf32>
    %164 = vector.broadcast %161 : vector<1x128xf32> to vector<128x128xf32>
    %165 = arith.addf %163, %164 : vector<128x128xf32>
    %c1_96 = arith.constant 1 : index
    %c0_97 = arith.constant 0 : index
    %c0_98 = arith.constant 0 : index
    %166 = vector.load %arg4[%c1_96, %c0_97, %c0_98] : memref<3x128x128xf32, #tpu.memory_space<vmem>>, vector<1x128x128xf32>
    %167 = vector.shape_cast %166 : vector<1x128x128xf32> to vector<128x128xf32>
    %168 = arith.addf %165, %167 : vector<128x128xf32>
    %cst_99 = arith.constant dense<0xFF800000> : vector<128xf32>
    %169 = vector.multi_reduction <maximumf>, %168, %cst_99 [1] : vector<128x128xf32> to vector<128xf32>
    %170 = vector.shape_cast %169 : vector<128xf32> to vector<128x1xf32>
    %171 = vector.broadcast %170 : vector<128x1xf32> to vector<128x128xf32>
    %172 = arith.subf %168, %171 : vector<128x128xf32>
    %173 = math.exp %172 : vector<128x128xf32>
    %cst_100 = arith.constant dense<0.000000e+00> : vector<128xf32>
    %174 = vector.multi_reduction <add>, %173, %cst_100 [1] : vector<128x128xf32> to vector<128xf32>
    %175 = vector.shape_cast %174 : vector<128xf32> to vector<128x1xf32>
    %176 = tpu.reciprocal %175 : vector<128x1xf32> -> vector<128x1xf32>
    %177 = vector.broadcast %176 : vector<128x1xf32> to vector<128x128xf32>
    %178 = arith.mulf %173, %177 : vector<128x128xf32>
    %cst_101 = arith.constant dense<0.000000e+00> : vector<32x128xf32>
    %179 = tpu.matmul %160, %178, %cst_101 {dimension_numbers = #tpu.dot_dimension_numbers<[1], [1], [0], [0], [0, 0, 1, 0], [], []>} : vector<32x128xf32>, vector<128x128xf32>, vector<32x128xf32> -> vector<32x128xf32>
    %180 = arith.addf %158, %179 : vector<32x128xf32>
    %c256 = arith.constant 256 : index
    %c0_102 = arith.constant 0 : index
    %181 = vector.load %arg7[%c256, %c0_102] : memref<784x128xf32, #tpu.memory_space<vmem>>, vector<32x128xf32>
    %c640 = arith.constant 640 : index
    %c0_103 = arith.constant 0 : index
    %182 = vector.load %arg7[%c640, %c0_103] : memref<784x128xf32, #tpu.memory_space<vmem>>, vector<32x128xf32>
    %c776 = arith.constant 776 : index
    %c0_104 = arith.constant 0 : index
    %183 = vector.load %arg7[%c776, %c0_104] : memref<784x128xf32, #tpu.memory_space<vmem>>, vector<1x128xf32>
    %c0_105 = arith.constant 0 : index
    %c0_106 = arith.constant 0 : index
    %184 = vector.load %arg2[%c0_105, %c0_106] : memref<128x32xf32, #tpu.memory_space<vmem>>, vector<128x32xf32>
    %cst_107 = arith.constant dense<0.000000e+00> : vector<128x128xf32>
    %185 = tpu.matmul %184, %181, %cst_107 {dimension_numbers = #tpu.dot_dimension_numbers<[1], [0], [0], [1], [0, 0, 1, 1], [], []>} : vector<128x32xf32>, vector<32x128xf32>, vector<128x128xf32> -> vector<128x128xf32>
    %186 = vector.broadcast %183 : vector<1x128xf32> to vector<128x128xf32>
    %187 = arith.addf %185, %186 : vector<128x128xf32>
    %c2 = arith.constant 2 : index
    %c0_108 = arith.constant 0 : index
    %c0_109 = arith.constant 0 : index
    %188 = vector.load %arg4[%c2, %c0_108, %c0_109] : memref<3x128x128xf32, #tpu.memory_space<vmem>>, vector<1x128x128xf32>
    %189 = vector.shape_cast %188 : vector<1x128x128xf32> to vector<128x128xf32>
    %190 = arith.addf %187, %189 : vector<128x128xf32>
    %cst_110 = arith.constant dense<0xFF800000> : vector<128xf32>
    %191 = vector.multi_reduction <maximumf>, %190, %cst_110 [1] : vector<128x128xf32> to vector<128xf32>
    %192 = vector.shape_cast %191 : vector<128xf32> to vector<128x1xf32>
    %193 = vector.broadcast %192 : vector<128x1xf32> to vector<128x128xf32>
    %194 = arith.subf %190, %193 : vector<128x128xf32>
    %195 = math.exp %194 : vector<128x128xf32>
    %cst_111 = arith.constant dense<0.000000e+00> : vector<128xf32>
    %196 = vector.multi_reduction <add>, %195, %cst_111 [1] : vector<128x128xf32> to vector<128xf32>
    %197 = vector.shape_cast %196 : vector<128xf32> to vector<128x1xf32>
    %198 = tpu.reciprocal %197 : vector<128x1xf32> -> vector<128x1xf32>
    %199 = vector.broadcast %198 : vector<128x1xf32> to vector<128x128xf32>
    %200 = arith.mulf %195, %199 : vector<128x128xf32>
    %cst_112 = arith.constant dense<0.000000e+00> : vector<32x128xf32>
    %201 = tpu.matmul %182, %200, %cst_112 {dimension_numbers = #tpu.dot_dimension_numbers<[1], [1], [0], [0], [0, 0, 1, 0], [], []>} : vector<32x128xf32>, vector<128x128xf32>, vector<32x128xf32> -> vector<32x128xf32>
    %202 = arith.addf %180, %201 : vector<32x128xf32>
    %c288 = arith.constant 288 : index
    %c0_113 = arith.constant 0 : index
    %203 = vector.load %arg7[%c288, %c0_113] : memref<784x128xf32, #tpu.memory_space<vmem>>, vector<32x128xf32>
    %c672 = arith.constant 672 : index
    %c0_114 = arith.constant 0 : index
    %204 = vector.load %arg7[%c672, %c0_114] : memref<784x128xf32, #tpu.memory_space<vmem>>, vector<32x128xf32>
    %c777 = arith.constant 777 : index
    %c0_115 = arith.constant 0 : index
    %205 = vector.load %arg7[%c777, %c0_115] : memref<784x128xf32, #tpu.memory_space<vmem>>, vector<1x128xf32>
    %c0_116 = arith.constant 0 : index
    %c0_117 = arith.constant 0 : index
    %206 = vector.load %arg2[%c0_116, %c0_117] : memref<128x32xf32, #tpu.memory_space<vmem>>, vector<128x32xf32>
    %cst_118 = arith.constant dense<0.000000e+00> : vector<128x128xf32>
    %207 = tpu.matmul %206, %203, %cst_118 {dimension_numbers = #tpu.dot_dimension_numbers<[1], [0], [0], [1], [0, 0, 1, 1], [], []>} : vector<128x32xf32>, vector<32x128xf32>, vector<128x128xf32> -> vector<128x128xf32>
    %208 = vector.broadcast %205 : vector<1x128xf32> to vector<128x128xf32>
    %209 = arith.addf %207, %208 : vector<128x128xf32>
    %c2_119 = arith.constant 2 : index
    %c0_120 = arith.constant 0 : index
    %c0_121 = arith.constant 0 : index
    %210 = vector.load %arg4[%c2_119, %c0_120, %c0_121] : memref<3x128x128xf32, #tpu.memory_space<vmem>>, vector<1x128x128xf32>
    %211 = vector.shape_cast %210 : vector<1x128x128xf32> to vector<128x128xf32>
    %212 = arith.addf %209, %211 : vector<128x128xf32>
    %cst_122 = arith.constant dense<0xFF800000> : vector<128xf32>
    %213 = vector.multi_reduction <maximumf>, %212, %cst_122 [1] : vector<128x128xf32> to vector<128xf32>
    %214 = vector.shape_cast %213 : vector<128xf32> to vector<128x1xf32>
    %215 = vector.broadcast %214 : vector<128x1xf32> to vector<128x128xf32>
    %216 = arith.subf %212, %215 : vector<128x128xf32>
    %217 = math.exp %216 : vector<128x128xf32>
    %cst_123 = arith.constant dense<0.000000e+00> : vector<128xf32>
    %218 = vector.multi_reduction <add>, %217, %cst_123 [1] : vector<128x128xf32> to vector<128xf32>
    %219 = vector.shape_cast %218 : vector<128xf32> to vector<128x1xf32>
    %220 = tpu.reciprocal %219 : vector<128x1xf32> -> vector<128x1xf32>
    %221 = vector.broadcast %220 : vector<128x1xf32> to vector<128x128xf32>
    %222 = arith.mulf %217, %221 : vector<128x128xf32>
    %cst_124 = arith.constant dense<0.000000e+00> : vector<32x128xf32>
    %223 = tpu.matmul %204, %222, %cst_124 {dimension_numbers = #tpu.dot_dimension_numbers<[1], [1], [0], [0], [0, 0, 1, 0], [], []>} : vector<32x128xf32>, vector<128x128xf32>, vector<32x128xf32> -> vector<32x128xf32>
    %224 = arith.addf %202, %223 : vector<32x128xf32>
    %c320 = arith.constant 320 : index
    %c0_125 = arith.constant 0 : index
    %225 = vector.load %arg7[%c320, %c0_125] : memref<784x128xf32, #tpu.memory_space<vmem>>, vector<32x128xf32>
    %c704 = arith.constant 704 : index
    %c0_126 = arith.constant 0 : index
    %226 = vector.load %arg7[%c704, %c0_126] : memref<784x128xf32, #tpu.memory_space<vmem>>, vector<32x128xf32>
    %c778 = arith.constant 778 : index
    %c0_127 = arith.constant 0 : index
    %227 = vector.load %arg7[%c778, %c0_127] : memref<784x128xf32, #tpu.memory_space<vmem>>, vector<1x128xf32>
    %c0_128 = arith.constant 0 : index
    %c0_129 = arith.constant 0 : index
    %228 = vector.load %arg2[%c0_128, %c0_129] : memref<128x32xf32, #tpu.memory_space<vmem>>, vector<128x32xf32>
    %cst_130 = arith.constant dense<0.000000e+00> : vector<128x128xf32>
    %229 = tpu.matmul %228, %225, %cst_130 {dimension_numbers = #tpu.dot_dimension_numbers<[1], [0], [0], [1], [0, 0, 1, 1], [], []>} : vector<128x32xf32>, vector<32x128xf32>, vector<128x128xf32> -> vector<128x128xf32>
    %230 = vector.broadcast %227 : vector<1x128xf32> to vector<128x128xf32>
    %231 = arith.addf %229, %230 : vector<128x128xf32>
    %c2_131 = arith.constant 2 : index
    %c0_132 = arith.constant 0 : index
    %c0_133 = arith.constant 0 : index
    %232 = vector.load %arg4[%c2_131, %c0_132, %c0_133] : memref<3x128x128xf32, #tpu.memory_space<vmem>>, vector<1x128x128xf32>
    %233 = vector.shape_cast %232 : vector<1x128x128xf32> to vector<128x128xf32>
    %234 = arith.addf %231, %233 : vector<128x128xf32>
    %cst_134 = arith.constant dense<0xFF800000> : vector<128xf32>
    %235 = vector.multi_reduction <maximumf>, %234, %cst_134 [1] : vector<128x128xf32> to vector<128xf32>
    %236 = vector.shape_cast %235 : vector<128xf32> to vector<128x1xf32>
    %237 = vector.broadcast %236 : vector<128x1xf32> to vector<128x128xf32>
    %238 = arith.subf %234, %237 : vector<128x128xf32>
    %239 = math.exp %238 : vector<128x128xf32>
    %cst_135 = arith.constant dense<0.000000e+00> : vector<128xf32>
    %240 = vector.multi_reduction <add>, %239, %cst_135 [1] : vector<128x128xf32> to vector<128xf32>
    %241 = vector.shape_cast %240 : vector<128xf32> to vector<128x1xf32>
    %242 = tpu.reciprocal %241 : vector<128x1xf32> -> vector<128x1xf32>
    %243 = vector.broadcast %242 : vector<128x1xf32> to vector<128x128xf32>
    %244 = arith.mulf %239, %243 : vector<128x128xf32>
    %cst_136 = arith.constant dense<0.000000e+00> : vector<32x128xf32>
    %245 = tpu.matmul %226, %244, %cst_136 {dimension_numbers = #tpu.dot_dimension_numbers<[1], [1], [0], [0], [0, 0, 1, 0], [], []>} : vector<32x128xf32>, vector<128x128xf32>, vector<32x128xf32> -> vector<32x128xf32>
    %246 = arith.addf %224, %245 : vector<32x128xf32>
    %c352 = arith.constant 352 : index
    %c0_137 = arith.constant 0 : index
    %247 = vector.load %arg7[%c352, %c0_137] : memref<784x128xf32, #tpu.memory_space<vmem>>, vector<32x128xf32>
    %c736 = arith.constant 736 : index
    %c0_138 = arith.constant 0 : index
    %248 = vector.load %arg7[%c736, %c0_138] : memref<784x128xf32, #tpu.memory_space<vmem>>, vector<32x128xf32>
    %c779 = arith.constant 779 : index
    %c0_139 = arith.constant 0 : index
    %249 = vector.load %arg7[%c779, %c0_139] : memref<784x128xf32, #tpu.memory_space<vmem>>, vector<1x128xf32>
    %c0_140 = arith.constant 0 : index
    %c0_141 = arith.constant 0 : index
    %250 = vector.load %arg2[%c0_140, %c0_141] : memref<128x32xf32, #tpu.memory_space<vmem>>, vector<128x32xf32>
    %cst_142 = arith.constant dense<0.000000e+00> : vector<128x128xf32>
    %251 = tpu.matmul %250, %247, %cst_142 {dimension_numbers = #tpu.dot_dimension_numbers<[1], [0], [0], [1], [0, 0, 1, 1], [], []>} : vector<128x32xf32>, vector<32x128xf32>, vector<128x128xf32> -> vector<128x128xf32>
    %252 = vector.broadcast %249 : vector<1x128xf32> to vector<128x128xf32>
    %253 = arith.addf %251, %252 : vector<128x128xf32>
    %c2_143 = arith.constant 2 : index
    %c0_144 = arith.constant 0 : index
    %c0_145 = arith.constant 0 : index
    %254 = vector.load %arg4[%c2_143, %c0_144, %c0_145] : memref<3x128x128xf32, #tpu.memory_space<vmem>>, vector<1x128x128xf32>
    %255 = vector.shape_cast %254 : vector<1x128x128xf32> to vector<128x128xf32>
    %256 = arith.addf %253, %255 : vector<128x128xf32>
    %cst_146 = arith.constant dense<0xFF800000> : vector<128xf32>
    %257 = vector.multi_reduction <maximumf>, %256, %cst_146 [1] : vector<128x128xf32> to vector<128xf32>
    %258 = vector.shape_cast %257 : vector<128xf32> to vector<128x1xf32>
    %259 = vector.broadcast %258 : vector<128x1xf32> to vector<128x128xf32>
    %260 = arith.subf %256, %259 : vector<128x128xf32>
    %261 = math.exp %260 : vector<128x128xf32>
    %cst_147 = arith.constant dense<0.000000e+00> : vector<128xf32>
    %262 = vector.multi_reduction <add>, %261, %cst_147 [1] : vector<128x128xf32> to vector<128xf32>
    %263 = vector.shape_cast %262 : vector<128xf32> to vector<128x1xf32>
    %264 = tpu.reciprocal %263 : vector<128x1xf32> -> vector<128x1xf32>
    %265 = vector.broadcast %264 : vector<128x1xf32> to vector<128x128xf32>
    %266 = arith.mulf %261, %265 : vector<128x128xf32>
    %cst_148 = arith.constant dense<0.000000e+00> : vector<32x128xf32>
    %267 = tpu.matmul %248, %266, %cst_148 {dimension_numbers = #tpu.dot_dimension_numbers<[1], [1], [0], [0], [0, 0, 1, 0], [], []>} : vector<32x128xf32>, vector<128x128xf32>, vector<32x128xf32> -> vector<32x128xf32>
    %268 = arith.addf %246, %267 : vector<32x128xf32>
    %c0_149 = arith.constant 0 : index
    %c0_150 = arith.constant 0 : index
    %269 = vector.load %arg5[%c0_149, %c0_150] : memref<32x1xf32, #tpu.memory_space<vmem>>, vector<32x1xf32>
    %270 = vector.broadcast %269 : vector<32x1xf32> to vector<32x128xf32>
    %271 = arith.addf %268, %270 : vector<32x128xf32>
    %c0_151 = arith.constant 0 : index
    %c0_152 = arith.constant 0 : index
    %272 = vector.load %arg6[%c0_151, %c0_152] : memref<32x128xf32, #tpu.memory_space<vmem>>, vector<32x128xf32>
    tpu.vector_store %arg6[%c0_151, %c0_152], %271 {strides = array<i32>} : memref<32x128xf32, #tpu.memory_space<vmem>>, vector<32x128xf32>,
    return
  }
  func.func @transform_0(%arg0: i32) -> (i32, i32) {
    %c0_i32 = arith.constant 0 : i32
    %c0_i32_0 = arith.constant 0 : i32
    %c0_i32_1 = arith.constant 0 : i32
    return %c0_i32, %c0_i32_0 : i32, i32
  }
  func.func @transform_1(%arg0: i32) -> (i32, i32) {
    %c0_i32 = arith.constant 0 : i32
    %c0_i32_0 = arith.constant 0 : i32
    %c0_i32_1 = arith.constant 0 : i32
    return %c0_i32, %c0_i32_0 : i32, i32
  }
  func.func @transform_2(%arg0: i32) -> (i32, i32) {
    %c0_i32 = arith.constant 0 : i32
    %c0_i32_0 = arith.constant 0 : i32
    %c0_i32_1 = arith.constant 0 : i32
    return %c0_i32, %c0_i32_0 : i32, i32
  }
  func.func @transform_3(%arg0: i32) -> (i32, i32, i32) {
    %c0_i32 = arith.constant 0 : i32
    %c0_i32_0 = arith.constant 0 : i32
    %c0_i32_1 = arith.constant 0 : i32
    %c0_i32_2 = arith.constant 0 : i32
    return %c0_i32, %c0_i32_0, %c0_i32_1 : i32, i32, i32
  }
  func.func @transform_4(%arg0: i32) -> (i32, i32) {
    %c0_i32 = arith.constant 0 : i32
    %c0_i32_0 = arith.constant 0 : i32
    %c0_i32_1 = arith.constant 0 : i32
    return %c0_i32, %c0_i32_0 : i32, i32
  }
  func.func @transform_5(%arg0: i32) -> (i32, i32) {
    %c0_i32 = arith.constant 0 : i32
    %c0_i32_0 = arith.constant 0 : i32
    %c0_i32_1 = arith.constant 0 : i32
    return %c0_i32, %c0_i32_0 : i32, i32
  }
}

</mosaic_0001>

<bundles_post_ra>
// kernel: multi_attention_forward.1
= control target key start
LH: loop header
LB: loop body
LE: loop exit
PB: predicated region body
PF: predicated region fallthrough
CT: control target
= control target key end

     0   :  { %vm122_vm0 = vcmask 261120   ;;  %s13224_s0 = inlined_call_operand.vmem [shape: f32[32,128], index: 0, kind: input, shape index: {}]   ;;  %s13225_s2 = inlined_call_operand.vmem [shape: f32[784,32], index: 2, kind: input, shape index: {}]   ;;  %s13226_s1 = inlined_call_operand.vmem [shape: f32[128,32], index: 1, kind: input, shape index: {}]   ;;  %s13227_s3 = inlined_call_operand.vmem [shape: f32[3,128,128], index: 3, kind: input, shape index: {}]   ;;  %s13228_s4 = inlined_call_operand.vmem [shape: f32[32,1], index: 4, kind: input, shape index: {}]   ;;  %s13229_s5 = inlined_call_operand.vmem [shape: f32[32,128], index: 5, kind: output, shape index: {}]  }
   0x1   :  { %v118_v0 = vld [vmem:[%s13224_s0] sm:$0xff]  ;;  %v119_v1 = vld [vmem:[%s13224_s0 + $0x8] sm:$0xff]  ;;  %v120_v2 = vld [vmem:[%s13224_s0 + $0x10] sm:$0xff] }
   0x2   :  { %v8007_v3 = vpack.c.bf16 %v119_v1, %v118_v0  ;;  %v121_v4 = vld [vmem:[%s13224_s0 + $0x18] sm:$0xff]  ;;  %v20_v5 = vld [vmem:[%s13225_s2] sm:$0xff]  ;;  %v21_v7 = vld [vmem:[%s13225_s2 + $0x8] sm:$0xff] }
   0x3   :  { %v8011_v6 = vpack.c.bf16 %v121_v4, %v120_v2  ;;  %7020 = vmatprep.mubr.msk.f32.mxu0 %vm122_vm0, %v20_v5  ;;  %v22_v8 = vld [vmem:[%s13225_s2 + $0x10] sm:$0xff]  ;;  %v23_v9 = vld [vmem:[%s13225_s2 + $0x18] sm:$0xff]  ;;  %v24_v10 = vld [vmem:[%s13225_s2 + $0x20] sm:$0xff] }
   0x4   :  { %8008 = vmatprep.subr.bf16.mxu0 %v8007_v3  ;;  %v25_v11 = vld [vmem:[%s13225_s2 + $0x28] sm:$0xff]  ;;  %v26_v12 = vld [vmem:[%s13225_s2 + $0x30] sm:$0xff]  ;;  %v27_v13 = vld [vmem:[%s13225_s2 + $0x38] sm:$0xff] }
   0x5   :  { %8010 = vmatpush3.bf16.msra.mxu0 %v8007_v3  ;;  %v28_v14 = vld [vmem:[%s13225_s2 + $0x40] sm:$0xff]  ;;  %v29_v15 = vld [vmem:[%s13225_s2 + $0x48] sm:$0xff]  ;;  %v30_v16 = vld [vmem:[%s13225_s2 + $0x50] sm:$0xff] }
   0x6   :  { %8012 = vmatprep.subr.bf16.mxu0 %v8011_v6  ;;  %v31_v17 = vld [vmem:[%s13225_s2 + $0x58] sm:$0xff]  ;;  %v32_v18 = vld [vmem:[%s13225_s2 + $0x60] sm:$0xff]  ;;  %v33_v19 = vld [vmem:[%s13225_s2 + $0x68] sm:$0xff] }
   0x7   :  { %v34_v20 = vld [vmem:[%s13225_s2 + $0x70] sm:$0xff]  ;;  %v35_v21 = vld [vmem:[%s13225_s2 + $0x78] sm:$0xff]  ;;  %v36_v22 = vld [vmem:[%s13225_s2 + $0x80] sm:$0xff] }
   0x8   :  { %v37_v23 = vld [vmem:[%s13225_s2 + $0x88] sm:$0xff]  ;;  %v38_v24 = vld [vmem:[%s13225_s2 + $0x90] sm:$0xff]  ;;  %v39_v25 = vld [vmem:[%s13225_s2 + $0x98] sm:$0xff] }
   0x9   :  { %8014 = vmatpush3.bf16.msra.mxu0 %v8011_v6  ;;  %v40_v26 = vld [vmem:[%s13225_s2 + $0xa0] sm:$0xff]  ;;  %v41_v27 = vld [vmem:[%s13225_s2 + $0xa8] sm:$0xff]  ;;  %v42_v28 = vld [vmem:[%s13225_s2 + $0xb0] sm:$0xff] }
   0xa   :  { %v43_v29 = vld [vmem:[%s13225_s2 + $0xb8] sm:$0xff]  ;;  %v44_v30 = vld [vmem:[%s13225_s2 + $0xc0] sm:$0xff]  ;;  %v45_v31 = vld [vmem:[%s13225_s2 + $0xc8] sm:$0xff] }
   0xb   :  { %v46_v32 = vld [vmem:[%s13225_s2 + $0xd0] sm:$0xff]  ;;  %v47_v33 = vld [vmem:[%s13225_s2 + $0xd8] sm:$0xff]  ;;  %v48_v34 = vld [vmem:[%s13225_s2 + $0xe0] sm:$0xff] }
   0xc   :  { %7021 = vmatmul.mubr.msk.f32.vlgmr.msra.gmra.mrb[0].mxu0 %vm122_vm0, %v21_v7  ;;  %v49_v35 = vld [vmem:[%s13225_s2 + $0xe8] sm:$0xff]  ;;  %v50_v36 = vld [vmem:[%s13225_s2 + $0xf0] sm:$0xff]  ;;  %v51_v37 = vld [vmem:[%s13225_s2 + $0xf8] sm:$0xff] }
   0xd   :  { %7023 = vmatprep.mubr.msk.f32.mxu0 %vm122_vm0, %v22_v8  ;;  %v52_v38 = vld [vmem:[%s13225_s2 + $0x100] sm:$0xff]  ;;  %v53_v39 = vld [vmem:[%s13225_s2 + $0x108] sm:$0xff]  ;;  %v54_v40 = vld [vmem:[%s13225_s2 + $0x110] sm:$0xff] }
   0xe   :  { %v55_v41 = vld [vmem:[%s13225_s2 + $0x118] sm:$0xff]  ;;  %v56_v42 = vld [vmem:[%s13225_s2 + $0x120] sm:$0xff]  ;;  %v57_v43 = vld [vmem:[%s13225_s2 + $0x128] sm:$0xff] }
   0xf   :  { %v58_v44 = vld [vmem:[%s13225_s2 + $0x130] sm:$0xff]  ;;  %v59_v45 = vld [vmem:[%s13225_s2 + $0x138] sm:$0xff]  ;;  %v60_v46 = vld [vmem:[%s13225_s2 + $0x140] sm:$0xff] }
  0x10   :  { %7024 = vmatmul.mubr.msk.f32.gmra.mrb[2].mxu0 %vm122_vm0, %v23_v9  ;;  %v61_v47 = vld [vmem:[%s13225_s2 + $0x148] sm:$0xff]  ;;  %v62_v48 = vld [vmem:[%s13225_s2 + $0x150] sm:$0xff]  ;;  %v63_v49 = vld [vmem:[%s13225_s2 + $0x158] sm:$0xff] }
  0x11   :  { %7026 = vmatprep.mubr.msk.f32.mxu0 %vm122_vm0, %v24_v10  ;;  %v64_v50 = vld [vmem:[%s13225_s2 + $0x160] sm:$0xff]  ;;  %v65_v51 = vld [vmem:[%s13225_s2 + $0x168] sm:$0xff]  ;;  %v66_v52 = vld [vmem:[%s13225_s2 + $0x170] sm:$0xff] }
  0x12   :  { %v67_v53 = vld [vmem:[%s13225_s2 + $0x178] sm:$0xff]  ;;  %v68_v54 = vld [vmem:[%s13225_s2 + $0x180] sm:$0xff]  ;;  %v69_v55 = vld [vmem:[%s13225_s2 + $0x188] sm:$0xff] }
  0x13   :  { %v9638_v56 = vld [vmem:[%s13226_s1] sm:$0xff]  ;;  %v70_v57 = vld [vmem:[%s13225_s2 + $0x190] sm:$0xff]  ;;  %v71_v58 = vld [vmem:[%s13225_s2 + $0x198] sm:$0xff] }
  0x14   :  { %7027 = vmatmul.mubr.msk.f32.gmra.mrb[4].mxu0 %vm122_vm0, %v25_v11  ;;  %7175 = vmatprep.mubr.msk.f32.mxu1 %vm122_vm0, %v9638_v56  ;;  %v72_v59 = vld [vmem:[%s13225_s2 + $0x1a0] sm:$0xff]  ;;  %v73_v60 = vld [vmem:[%s13225_s2 + $0x1a8] sm:$0xff]  ;;  %v74_v61 = vld [vmem:[%s13225_s2 + $0x1b0] sm:$0xff] }
  0x15   :  { %7029 = vmatprep.mubr.msk.f32.mxu0 %vm122_vm0, %v26_v12  ;;  %v75_v62 = vld [vmem:[%s13225_s2 + $0x1b8] sm:$0xff]  ;;  %v76_v63 = vld [vmem:[%s13225_s2 + $0x1c0] sm:$0xff]  ;;  %v77_v0 = vld [vmem:[%s13225_s2 + $0x1c8] sm:$0xff] }
  0x16   :  { %v78_v1 = vld [vmem:[%s13225_s2 + $0x1d0] sm:$0xff]  ;;  %v79_v2 = vld [vmem:[%s13225_s2 + $0x1d8] sm:$0xff]  ;;  %v80_v3 = vld [vmem:[%s13225_s2 + $0x1e0] sm:$0xff] }
  0x17   :  { %v81_v4 = vld [vmem:[%s13225_s2 + $0x1e8] sm:$0xff]  ;;  %v82_v5 = vld [vmem:[%s13225_s2 + $0x1f0] sm:$0xff]  ;;  %v83_v6 = vld [vmem:[%s13225_s2 + $0x1f8] sm:$0xff] }
  0x18   :  { %7030 = vmatmul.mubr.msk.f32.gmra.mrb[6].mxu0 %vm122_vm0, %v27_v13  ;;  %v84_v7 = vld [vmem:[%s13225_s2 + $0x200] sm:$0xff]  ;;  %v85_v8 = vld [vmem:[%s13225_s2 + $0x208] sm:$0xff]  ;;  %v86_v9 = vld [vmem:[%s13225_s2 + $0x210] sm:$0xff] }
  0x19   :  { %7032 = vmatprep.mubr.msk.f32.mxu0 %vm122_vm0, %v28_v14  ;;  %v87_v10 = vld [vmem:[%s13225_s2 + $0x218] sm:$0xff]  ;;  %v88_v11 = vld [vmem:[%s13225_s2 + $0x220] sm:$0xff]  ;;  %v89_v12 = vld [vmem:[%s13225_s2 + $0x228] sm:$0xff] }
  0x1a   :  { %v90_v13 = vld [vmem:[%s13225_s2 + $0x230] sm:$0xff]  ;;  %v91_v14 = vld [vmem:[%s13225_s2 + $0x238] sm:$0xff] }
  0x1c   :  { %7033 = vmatmul.mubr.msk.f32.gmra.mrb[8].mxu0 %vm122_vm0, %v29_v15  ;;  %v92_v15 = vld [vmem:[%s13225_s2 + $0x240] sm:$0xff] }
  0x1d   :  { %7035 = vmatprep.mubr.msk.f32.mxu0 %vm122_vm0, %v30_v16  ;;  %v93_v16 = vld [vmem:[%s13225_s2 + $0x248] sm:$0xff] }
  0x20   :  { %7036 = vmatmul.mubr.msk.f32.gmra.mrb[10].mxu0 %vm122_vm0, %v31_v17  ;;  %v94_v17 = vld [vmem:[%s13225_s2 + $0x250] sm:$0xff] }
  0x21   :  { %7038 = vmatprep.mubr.msk.f32.mxu0 %vm122_vm0, %v32_v18  ;;  %v95_v18 = vld [vmem:[%s13225_s2 + $0x258] sm:$0xff] }
  0x24   :  { %7039 = vmatmul.mubr.msk.f32.gmra.mrb[12].mxu0 %vm122_vm0, %v33_v19  ;;  %v96_v19 = vld [vmem:[%s13225_s2 + $0x260] sm:$0xff] }
  0x25   :  { %7041 = vmatprep.mubr.msk.f32.mxu0 %vm122_vm0, %v34_v20  ;;  %v97_v20 = vld [vmem:[%s13225_s2 + $0x268] sm:$0xff] }
  0x28   :  { %7042 = vmatmul.mubr.msk.f32.gmra.mrb[14].mxu0 %vm122_vm0, %v35_v21  ;;  %v98_v21 = vld [vmem:[%s13225_s2 + $0x270] sm:$0xff] }
  0x29   :  { %7044 = vmatprep.mubr.msk.f32.mxu0 %vm122_vm0, %v36_v22  ;;  %v99_v22 = vld [vmem:[%s13225_s2 + $0x278] sm:$0xff] }
  0x2c   :  { %7045 = vmatmul.mubr.msk.f32.gmra.mrb[16].mxu0 %vm122_vm0, %v37_v23  ;;  %v100_v23 = vld [vmem:[%s13225_s2 + $0x280] sm:$0xff] }
  0x2d   :  { %7047 = vmatprep.mubr.msk.f32.mxu0 %vm122_vm0, %v38_v24  ;;  %v101_v24 = vld [vmem:[%s13225_s2 + $0x288] sm:$0xff] }
  0x30   :  { %7048 = vmatmul.mubr.msk.f32.gmra.mrb[18].mxu0 %vm122_vm0, %v39_v25  ;;  %v102_v25 = vld [vmem:[%s13225_s2 + $0x290] sm:$0xff] }
  0x31   :  { %7050 = vmatprep.mubr.msk.f32.mxu0 %vm122_vm0, %v40_v26  ;;  %v103_v26 = vld [vmem:[%s13225_s2 + $0x298] sm:$0xff] }
  0x34   :  { %7051 = vmatmul.mubr.msk.f32.gmra.mrb[20].mxu0 %vm122_vm0, %v41_v27  ;;  %v104_v27 = vld [vmem:[%s13225_s2 + $0x2a0] sm:$0xff] }
  0x35   :  { %7053 = vmatprep.mubr.msk.f32.mxu0 %vm122_vm0, %v42_v28  ;;  %v105_v28 = vld [vmem:[%s13225_s2 + $0x2a8] sm:$0xff] }
  0x38   :  { %7054 = vmatmul.mubr.msk.f32.gmra.mrb[22].mxu0 %vm122_vm0, %v43_v29  ;;  %v106_v29 = vld [vmem:[%s13225_s2 + $0x2b0] sm:$0xff] }
  0x39   :  { %7056 = vmatprep.mubr.msk.f32.mxu0 %vm122_vm0, %v44_v30  ;;  %v107_v30 = vld [vmem:[%s13225_s2 + $0x2b8] sm:$0xff] }
  0x3c   :  { %7057 = vmatmul.mubr.msk.f32.gmra.mrb[24].mxu0 %vm122_vm0, %v45_v31  ;;  %v108_v31 = vld [vmem:[%s13225_s2 + $0x2c0] sm:$0xff] }
  0x3d   :  { %7059 = vmatprep.mubr.msk.f32.mxu0 %vm122_vm0, %v46_v32  ;;  %v109_v32 = vld [vmem:[%s13225_s2 + $0x2c8] sm:$0xff] }
  0x40   :  { %7060 = vmatmul.mubr.msk.f32.gmra.mrb[26].mxu0 %vm122_vm0, %v47_v33  ;;  %v110_v33 = vld [vmem:[%s13225_s2 + $0x2d0] sm:$0xff] }
  0x41   :  { %7062 = vmatprep.mubr.msk.f32.mxu0 %vm122_vm0, %v48_v34  ;;  %v111_v34 = vld [vmem:[%s13225_s2 + $0x2d8] sm:$0xff] }
  0x44   :  { %7063 = vmatmul.mubr.msk.f32.gmra.mrb[28].mxu0 %vm122_vm0, %v49_v35  ;;  %v112_v35 = vld [vmem:[%s13225_s2 + $0x2e0] sm:$0xff] }
  0x45   :  { %7065 = vmatprep.mubr.msk.f32.mxu0 %vm122_vm0, %v50_v36  ;;  %v113_v36 = vld [vmem:[%s13225_s2 + $0x2e8] sm:$0xff] }
  0x48   :  { %7066 = vmatmul.mubr.msk.f32.gmra.mrb[30].mxu0 %vm122_vm0, %v51_v37  ;;  %v114_v37 = vld [vmem:[%s13225_s2 + $0x2f0] sm:$0xff] }
  0x49   :  { %7068 = vmatprep.mubr.msk.f32.mxu0 %vm122_vm0, %v52_v38  ;;  %v115_v38 = vld [vmem:[%s13225_s2 + $0x2f8] sm:$0xff] }
  0x4c   :  { %7069 = vmatmul.mubr.msk.f32.gmra.mrb[32].mxu0 %vm122_vm0, %v53_v39  ;;  %v116_v39 = vld [vmem:[%s13225_s2 + $0x300] sm:$0xff] }
  0x4d   :  { %7071 = vmatprep.mubr.msk.f32.mxu0 %vm122_vm0, %v54_v40  ;;  %v117_v40 = vld [vmem:[%s13225_s2 + $0x308] sm:$0xff] }
  0x50   :  { %7072 = vmatmul.mubr.msk.f32.gmra.mrb[34].mxu0 %vm122_vm0, %v55_v41 }
  0x51   :  { %7074 = vmatprep.mubr.msk.f32.mxu0 %vm122_vm0, %v56_v42 }
  0x54   :  { %7075 = vmatmul.mubr.msk.f32.gmra.mrb[36].mxu0 %vm122_vm0, %v57_v43 }
  0x55   :  { %7077 = vmatprep.mubr.msk.f32.mxu0 %vm122_vm0, %v58_v44 }
  0x58   :  { %7078 = vmatmul.mubr.msk.f32.gmra.mrb[38].mxu0 %vm122_vm0, %v59_v45 }
  0x59   :  { %7080 = vmatprep.mubr.msk.f32.mxu0 %vm122_vm0, %v60_v46 }
  0x5c   :  { %7081 = vmatmul.mubr.msk.f32.gmra.mrb[40].mxu0 %vm122_vm0, %v61_v47 }
  0x5d   :  { %7083 = vmatprep.mubr.msk.f32.mxu0 %vm122_vm0, %v62_v48  ;;  %v9838_v48 = vld [vmem:[%s13226_s1 + $0x8] sm:$0xff] }
  0x60   :  { %7084 = vmatmul.mubr.msk.f32.gmra.mrb[42].mxu0 %vm122_vm0, %v63_v49 }
  0x61   :  { %7086 = vmatprep.mubr.msk.f32.mxu0 %vm122_vm0, %v64_v50  ;;  %v9843_v50 = vld [vmem:[%s13226_s1 + $0x10] sm:$0xff] }
  0x64   :  { %7087 = vmatmul.mubr.msk.f32.gmra.mrb[44].mxu0 %vm122_vm0, %v65_v51 }
  0x65   :  { %7089 = vmatprep.mubr.msk.f32.mxu0 %vm122_vm0, %v66_v52 }
  0x68   :  { %7090 = vmatmul.mubr.msk.f32.gmra.mrb[46].mxu0 %vm122_vm0, %v67_v53  ;;  %v9852_v53 = vld [vmem:[%s13226_s1 + $0x18] sm:$0xff] }
  0x69   :  { %7092 = vmatprep.mubr.msk.f32.mxu0 %vm122_vm0, %v68_v54 }
  0x6c   :  { %7093 = vmatmul.mubr.msk.f32.gmra.mrb[48].mxu0 %vm122_vm0, %v69_v55  ;;  %v9857_v55 = vld [vmem:[%s13226_s1 + $0x20] sm:$0xff] }
  0x6d   :  { %7095 = vmatprep.mubr.msk.f32.mxu0 %vm122_vm0, %v70_v57 }
  0x70   :  { %7096 = vmatmul.mubr.msk.f32.gmra.mrb[50].mxu0 %vm122_vm0, %v71_v58 }
  0x71   :  { %7098 = vmatprep.mubr.msk.f32.mxu0 %vm122_vm0, %v72_v59  ;;  %v1084_v59 = vld [vmem:[%s13226_s1 + $0x28] sm:$0xff] }
  0x74   :  { %7099 = vmatmul.mubr.msk.f32.gmra.mrb[52].mxu0 %vm122_vm0, %v73_v60 }
  0x75   :  { %7101 = vmatprep.mubr.msk.f32.mxu0 %vm122_vm0, %v74_v61  ;;  %v1085_v61 = vld [vmem:[%s13226_s1 + $0x30] sm:$0xff] }
  0x78   :  { %7102 = vmatmul.mubr.msk.f32.gmra.mrb[54].mxu0 %vm122_vm0, %v75_v62 }
  0x79   :  { %7104 = vmatprep.mubr.msk.f32.mxu0 %vm122_vm0, %v76_v63 }
  0x7c   :  { %7105 = vmatmul.mubr.msk.f32.gmra.mrb[56].mxu0 %vm122_vm0, %v77_v0  ;;  %v9876_v0 = vld [vmem:[%s13226_s1 + $0x38] sm:$0xff] }
  0x7d   :  { %7107 = vmatprep.mubr.msk.f32.mxu0 %vm122_vm0, %v78_v1 }
  0x80   :  { %7108 = vmatmul.mubr.msk.f32.gmra.mrb[58].mxu0 %vm122_vm0, %v79_v2  ;;  %v9881_v2 = vld [vmem:[%s13226_s1 + $0x40] sm:$0xff] }
  0x81   :  { %7110 = vmatprep.mubr.msk.f32.mxu0 %vm122_vm0, %v80_v3 }
  0x84   :  { %7111 = vmatmul.mubr.msk.f32.gmra.mrb[60].mxu0 %vm122_vm0, %v81_v4 }
  0x85   :  { %7113 = vmatprep.mubr.msk.f32.mxu0 %vm122_vm0, %v82_v5  ;;  %v9892_v5 = vld [vmem:[%s13226_s1 + $0x48] sm:$0xff] }
  0x88   :  { %7114 = vmatmul.mubr.msk.f32.gmra.mrb[62].mxu0 %vm122_vm0, %v83_v6 }
  0x89   :  { %7116 = vmatprep.mubr.msk.f32.mxu0 %vm122_vm0, %v84_v7  ;;  %v9897_v7 = vld [vmem:[%s13226_s1 + $0x50] sm:$0xff] }
  0x8c   :  { %7117 = vmatmul.mubr.msk.f32.gmra.mrb[64].mxu0 %vm122_vm0, %v85_v8 }
  0x8d   :  { %7119 = vmatprep.mubr.msk.f32.mxu0 %vm122_vm0, %v86_v9  ;;  %v9906_v9 = vld [vmem:[%s13226_s1 + $0x58] sm:$0xff] }
  0x90   :  { %7120 = vmatmul.mubr.msk.f32.gmra.mrb[66].mxu0 %vm122_vm0, %v87_v10 }
  0x91   :  { %7122 = vmatprep.mubr.msk.f32.mxu0 %vm122_vm0, %v88_v11  ;;  %v9911_v11 = vld [vmem:[%s13226_s1 + $0x60] sm:$0xff] }
  0x94   :  { %7123 = vmatmul.mubr.msk.f32.gmra.mrb[68].mxu0 %vm122_vm0, %v89_v12 }
  0x95   :  { %7125 = vmatprep.mubr.msk.f32.mxu0 %vm122_vm0, %v90_v13  ;;  %v9920_v13 = vld [vmem:[%s13226_s1 + $0x68] sm:$0xff] }
  0x98   :  { %7126 = vmatmul.mubr.msk.f32.gmra.mrb[70].mxu0 %vm122_vm0, %v91_v14 }
  0x99   :  { %7128 = vmatprep.mubr.msk.f32.mxu0 %vm122_vm0, %v92_v15  ;;  %v9925_v15 = vld [vmem:[%s13226_s1 + $0x70] sm:$0xff] }
  0x9c   :  { %7129 = vmatmul.mubr.msk.f32.gmra.mrb[72].mxu0 %vm122_vm0, %v93_v16 }
  0x9d   :  { %7131 = vmatprep.mubr.msk.f32.mxu0 %vm122_vm0, %v94_v17  ;;  %v9934_v17 = vld [vmem:[%s13226_s1 + $0x78] sm:$0xff] }
  0xa0   :  { %7132 = vmatmul.mubr.msk.f32.gmra.mrb[74].mxu0 %vm122_vm0, %v95_v18 }
  0xa1   :  { %7134 = vmatprep.mubr.msk.f32.mxu0 %vm122_vm0, %v96_v19 }
  0xa4   :  { %7135 = vmatmul.mubr.msk.f32.gmra.mrb[76].mxu0 %vm122_vm0, %v97_v20 }
  0xa5   :  { %7137 = vmatprep.mubr.msk.f32.mxu0 %vm122_vm0, %v98_v21 }
  0xa8   :  { %7138 = vmatmul.mubr.msk.f32.gmra.mrb[78].mxu0 %vm122_vm0, %v99_v22 }
  0xa9   :  { %7140 = vmatprep.mubr.msk.f32.mxu0 %vm122_vm0, %v100_v23 }
  0xac   :  { %7141 = vmatmul.mubr.msk.f32.gmra.mrb[80].mxu0 %vm122_vm0, %v101_v24 }
  0xad   :  { %7143 = vmatprep.mubr.msk.f32.mxu0 %vm122_vm0, %v102_v25 }
  0xb0   :  { %7144 = vmatmul.mubr.msk.f32.gmra.mrb[82].mxu0 %vm122_vm0, %v103_v26 }
  0xb1   :  { %7146 = vmatprep.mubr.msk.f32.mxu0 %vm122_vm0, %v104_v27 }
  0xb4   :  { %7147 = vmatmul.mubr.msk.f32.gmra.mrb[84].mxu0 %vm122_vm0, %v105_v28 }
  0xb5   :  { %7149 = vmatprep.mubr.msk.f32.mxu0 %vm122_vm0, %v106_v29 }
  0xb8   :  { %7150 = vmatmul.mubr.msk.f32.gmra.mrb[86].mxu0 %vm122_vm0, %v107_v30 }
  0xb9   :  { %7152 = vmatprep.mubr.msk.f32.mxu0 %vm122_vm0, %v108_v31 }
  0xbc   :  { %7153 = vmatmul.mubr.msk.f32.gmra.mrb[88].mxu0 %vm122_vm0, %v109_v32 }
  0xbd   :  { %7155 = vmatprep.mubr.msk.f32.mxu0 %vm122_vm0, %v110_v33 }
  0xc0   :  { %7156 = vmatmul.mubr.msk.f32.gmra.mrb[90].mxu0 %vm122_vm0, %v111_v34 }
  0xc1   :  { %7158 = vmatprep.mubr.msk.f32.mxu0 %vm122_vm0, %v112_v35 }
  0xc4   :  { %7159 = vmatmul.mubr.msk.f32.gmra.mrb[92].mxu0 %vm122_vm0, %v113_v36 }
  0xc5   :  { %7161 = vmatprep.mubr.msk.f32.mxu0 %vm122_vm0, %v114_v37 }
  0xc8   :  { %7162 = vmatmul.mubr.msk.f32.gmra.mrb[94].mxu0 %vm122_vm0, %v115_v38 }
  0xc9   :  { %7164 = vmatprep.mubr.msk.f32.mxu0 %vm122_vm0, %v116_v39 }
  0xcc   :  { %7165 = vmatmul.mubr.msk.f32.gmra.mrb[96].mxu0 %vm122_vm0, %v117_v40 }
  0xdf   :  { %v7022_v41 = vpop.f32.mrb[0].mxu0 }
  0xe0   :  { %v483_v42 = vpop.f32.mrb[1].mxu0 }
  0xe1   :  { %v8015_v43 = vpack.c.bf16 %v7022_v41, %v483_v42 }
  0xe3   :  { %v7025_v44 = vpop.f32.mrb[2].mxu0  ;;  %8016 = vmatprep.subr.bf16.mxu1 %v8015_v43 }
  0xe4   :  { %v493_v45 = vpop.f32.mrb[3].mxu0  ;;  %8018 = vmatpush3.bf16.msra.mxu1 %v8015_v43 }
  0xe5   :  { %v8019_v46 = vpack.c.bf16 %v7025_v44, %v493_v45 }
  0xe7   :  { %8020 = vmatprep.subr.bf16.mxu1 %v8019_v46  ;;  %v7028_v47 = vpop.f32.mrb[4].mxu0 }
  0xe8   :  { %8022 = vmatpush3.bf16.msra.mxu1 %v8019_v46  ;;  %v503_v49 = vpop.f32.mrb[5].mxu0 }
  0xe9   :  { %v8023_v51 = vpack.c.bf16 %v7028_v47, %v503_v49 }
  0xeb   :  { %7176 = vmatmul.mubr.msk.f32.vlgmr.msra.gmra.mrb[0].mxu1 %vm122_vm0, %v9838_v48  ;;  %v7031_v52 = vpop.f32.mrb[6].mxu0  ;;  %8024 = vmatprep.subr.bf16.mxu1 %v8023_v51 }
  0xec   :  { %7178 = vmatprep.mubr.msk.f32.mxu1 %vm122_vm0, %v9843_v50  ;;  %v513_v54 = vpop.f32.mrb[7].mxu0  ;;  %8026 = vmatpush3.bf16.msra.mxu1 %v8023_v51 }
  0xed   :  { %v8027_v57 = vpack.c.bf16 %v7031_v52, %v513_v54 }
  0xef   :  { %7179 = vmatmul.mubr.msk.f32.gmra.mrb[2].mxu1 %vm122_vm0, %v9852_v53  ;;  %8028 = vmatprep.subr.bf16.mxu1 %v8027_v57  ;;  %v7034_v58 = vpop.f32.mrb[8].mxu0 }
  0xf0   :  { %7181 = vmatprep.mubr.msk.f32.mxu1 %vm122_vm0, %v9857_v55  ;;  %8030 = vmatpush3.bf16.msra.mxu1 %v8027_v57  ;;  %v523_v60 = vpop.f32.mrb[9].mxu0 }
  0xf1   :  { %v9869_v62 = vpack.c.bf16 %v7034_v58, %v523_v60 }
  0xf3   :  { %7182 = vmatmul.mubr.msk.f32.gmra.mrb[4].mxu1 %vm122_vm0, %v1084_v59  ;;  %v7037_v63 = vpop.f32.mrb[10].mxu0 }
  0xf4   :  { %7184 = vmatprep.mubr.msk.f32.mxu1 %vm122_vm0, %v1085_v61  ;;  %v533_v1 = vpop.f32.mrb[11].mxu0 }
  0xf5   :  { %v9883_v3 = vpack.c.bf16 %v7037_v63, %v533_v1 }
  0xf7   :  { %7185 = vmatmul.mubr.msk.f32.gmra.mrb[6].mxu1 %vm122_vm0, %v9876_v0  ;;  %v7040_v4 = vpop.f32.mrb[12].mxu0 }
  0xf8   :  { %7187 = vmatprep.mubr.msk.f32.mxu1 %vm122_vm0, %v9881_v2  ;;  %985 = vst [vmem:[#allocation2 + $0x68] sm:$0xff] %v7040_v4  ;;  %v543_v6 = vpop.f32.mrb[13].mxu0 }
  0xf9   :  { %984 = vst [vmem:[#allocation2 + $0x60] sm:$0xff] %v543_v6 }
  0xfb   :  { %7188 = vmatmul.mubr.msk.f32.gmra.mrb[8].mxu1 %vm122_vm0, %v9892_v5  ;;  %v7043_v8 = vpop.f32.mrb[14].mxu0 }
  0xfc   :  { %7190 = vmatprep.mubr.msk.f32.mxu1 %vm122_vm0, %v9897_v7  ;;  %987 = vst [vmem:[#allocation2 + $0x78] sm:$0xff] %v7043_v8  ;;  %v553_v10 = vpop.f32.mrb[15].mxu0 }
  0xfd   :  { %986 = vst [vmem:[#allocation2 + $0x70] sm:$0xff] %v553_v10 }
  0xff   :  { %7191 = vmatmul.mubr.msk.f32.gmra.mrb[10].mxu1 %vm122_vm0, %v9906_v9  ;;  %v7046_v12 = vpop.f32.mrb[16].mxu0 }
 0x100   :  { %7193 = vmatprep.mubr.msk.f32.mxu1 %vm122_vm0, %v9911_v11  ;;  %989 = vst [vmem:[#allocation2 + $0x88] sm:$0xff] %v7046_v12  ;;  %v563_v14 = vpop.f32.mrb[17].mxu0 }
 0x101   :  { %988 = vst [vmem:[#allocation2 + $0x80] sm:$0xff] %v563_v14 }
 0x103   :  { %7194 = vmatmul.mubr.msk.f32.gmra.mrb[12].mxu1 %vm122_vm0, %v9920_v13  ;;  %v7049_v16 = vpop.f32.mrb[18].mxu0 }
 0x104   :  { %7196 = vmatprep.mubr.msk.f32.mxu1 %vm122_vm0, %v9925_v15  ;;  %991 = vst [vmem:[#allocation2 + $0x98] sm:$0xff] %v7049_v16  ;;  %v573_v18 = vpop.f32.mrb[19].mxu0 }
 0x105   :  { %990 = vst [vmem:[#allocation2 + $0x90] sm:$0xff] %v573_v18 }
 0x107   :  { %7197 = vmatmul.mubr.msk.f32.gmra.mrb[14].mxu1 %vm122_vm0, %v9934_v17  ;;  %v7052_v19 = vpop.f32.mrb[20].mxu0 }
 0x108   :  { %7207 = vmatprep.mubr.msk.f32.mxu1 %vm122_vm0, %v9638_v56  ;;  %993 = vst [vmem:[#allocation2 + $0xa8] sm:$0xff] %v7052_v19  ;;  %v583_v20 = vpop.f32.mrb[21].mxu0 }
 0x109   :  { %992 = vst [vmem:[#allocation2 + $0xa0] sm:$0xff] %v583_v20 }
 0x10b   :  { %7208 = vmatmul.mubr.msk.f32.vlgmr.msra.gmra.mrb[16].mxu1 %vm122_vm0, %v9838_v48  ;;  %v7055_v21 = vpop.f32.mrb[22].mxu0 }
 0x10c   :  { %7210 = vmatprep.mubr.msk.f32.mxu1 %vm122_vm0, %v9843_v50  ;;  %995 = vst [vmem:[#allocation2 + $0xb8] sm:$0xff] %v7055_v21  ;;  %v593_v22 = vpop.f32.mrb[23].mxu0 }
 0x10d   :  { %994 = vst [vmem:[#allocation2 + $0xb0] sm:$0xff] %v593_v22 }
 0x10f   :  { %7211 = vmatmul.mubr.msk.f32.gmra.mrb[18].mxu1 %vm122_vm0, %v9852_v53  ;;  %v7058_v23 = vpop.f32.mrb[24].mxu0 }
 0x110   :  { %7213 = vmatprep.mubr.msk.f32.mxu1 %vm122_vm0, %v9857_v55  ;;  %997 = vst [vmem:[#allocation2 + $0xc8] sm:$0xff] %v7058_v23  ;;  %v603_v56 = vpop.f32.mrb[25].mxu0 }
 0x111   :  { %996 = vst [vmem:[#allocation2 + $0xc0] sm:$0xff] %v603_v56 }
 0x113   :  { %7214 = vmatmul.mubr.msk.f32.gmra.mrb[20].mxu1 %vm122_vm0, %v1084_v59  ;;  %v7061_v24 = vpop.f32.mrb[26].mxu0 }
 0x114   :  { %7216 = vmatprep.mubr.msk.f32.mxu1 %vm122_vm0, %v1085_v61  ;;  %999 = vst [vmem:[#allocation2 + $0xd8] sm:$0xff] %v7061_v24  ;;  %v613_v25 = vpop.f32.mrb[27].mxu0 }
 0x115   :  { %998 = vst [vmem:[#allocation2 + $0xd0] sm:$0xff] %v613_v25 }
 0x117   :  { %7217 = vmatmul.mubr.msk.f32.gmra.mrb[22].mxu1 %vm122_vm0, %v9876_v0  ;;  %v7064_v26 = vpop.f32.mrb[28].mxu0 }
 0x118   :  { %7219 = vmatprep.mubr.msk.f32.mxu1 %vm122_vm0, %v9881_v2  ;;  %1001 = vst [vmem:[#allocation2 + $0xe8] sm:$0xff] %v7064_v26  ;;  %v623_v27 = vpop.f32.mrb[29].mxu0 }
 0x119   :  { %1000 = vst [vmem:[#allocation2 + $0xe0] sm:$0xff] %v623_v27 }
 0x11b   :  { %7220 = vmatmul.mubr.msk.f32.gmra.mrb[24].mxu1 %vm122_vm0, %v9892_v5  ;;  %v7067_v28 = vpop.f32.mrb[30].mxu0 }
 0x11c   :  { %7222 = vmatprep.mubr.msk.f32.mxu1 %vm122_vm0, %v9897_v7  ;;  %1003 = vst [vmem:[#allocation2 + $0xf8] sm:$0xff] %v7067_v28  ;;  %v633_v29 = vpop.f32.mrb[31].mxu0 }
 0x11d   :  { %1002 = vst [vmem:[#allocation2 + $0xf0] sm:$0xff] %v633_v29 }
 0x11f   :  { %7223 = vmatmul.mubr.msk.f32.gmra.mrb[26].mxu1 %vm122_vm0, %v9906_v9  ;;  %v7070_v30 = vpop.f32.mrb[32].mxu0 }
 0x120   :  { %7225 = vmatprep.mubr.msk.f32.mxu1 %vm122_vm0, %v9911_v11  ;;  %1005 = vst [vmem:[#allocation2 + $0x108] sm:$0xff] %v7070_v30  ;;  %v643_v31 = vpop.f32.mrb[33].mxu0 }
 0x121   :  { %1004 = vst [vmem:[#allocation2 + $0x100] sm:$0xff] %v643_v31 }
 0x123   :  { %7226 = vmatmul.mubr.msk.f32.gmra.mrb[28].mxu1 %vm122_vm0, %v9920_v13  ;;  %v7073_v32 = vpop.f32.mrb[34].mxu0 }
 0x124   :  { %7228 = vmatprep.mubr.msk.f32.mxu1 %vm122_vm0, %v9925_v15  ;;  %1007 = vst [vmem:[#allocation2 + $0x118] sm:$0xff] %v7073_v32  ;;  %v653_v33 = vpop.f32.mrb[35].mxu0 }
 0x125   :  { %1006 = vst [vmem:[#allocation2 + $0x110] sm:$0xff] %v653_v33 }
 0x127   :  { %7229 = vmatmul.mubr.msk.f32.gmra.mrb[30].mxu1 %vm122_vm0, %v9934_v17  ;;  %v7076_v34 = vpop.f32.mrb[36].mxu0 }
 0x128   :  { %1009 = vst [vmem:[#allocation2 + $0x128] sm:$0xff] %v7076_v34  ;;  %v663_v35 = vpop.f32.mrb[37].mxu0 }
 0x129   :  { %1008 = vst [vmem:[#allocation2 + $0x120] sm:$0xff] %v663_v35 }
 0x12b   :  { %v7079_v36 = vpop.f32.mrb[38].mxu0 }
 0x12c   :  { %1011 = vst [vmem:[#allocation2 + $0x138] sm:$0xff] %v7079_v36  ;;  %v673_v37 = vpop.f32.mrb[39].mxu0 }
 0x12d   :  { %1010 = vst [vmem:[#allocation2 + $0x130] sm:$0xff] %v673_v37 }
 0x12f   :  { %v7082_v38 = vpop.f32.mrb[40].mxu0 }
 0x130   :  { %1013 = vst [vmem:[#allocation2 + $0x148] sm:$0xff] %v7082_v38  ;;  %v683_v39 = vpop.f32.mrb[41].mxu0 }
 0x131   :  { %1012 = vst [vmem:[#allocation2 + $0x140] sm:$0xff] %v683_v39 }
 0x133   :  { %v7085_v40 = vpop.f32.mrb[42].mxu0 }
 0x134   :  { %1015 = vst [vmem:[#allocation2 + $0x158] sm:$0xff] %v7085_v40  ;;  %v693_v41 = vpop.f32.mrb[43].mxu0 }
 0x135   :  { %1014 = vst [vmem:[#allocation2 + $0x150] sm:$0xff] %v693_v41 }
 0x137   :  { %v7088_v42 = vpop.f32.mrb[44].mxu0 }
 0x138   :  { %1017 = vst [vmem:[#allocation2 + $0x168] sm:$0xff] %v7088_v42  ;;  %v703_v43 = vpop.f32.mrb[45].mxu0 }
 0x139   :  { %1016 = vst [vmem:[#allocation2 + $0x160] sm:$0xff] %v703_v43 }
 0x13b   :  { %v7091_v44 = vpop.f32.mrb[46].mxu0 }
 0x13c   :  { %1019 = vst [vmem:[#allocation2 + $0x178] sm:$0xff] %v7091_v44  ;;  %v713_v45 = vpop.f32.mrb[47].mxu0 }
 0x13d   :  { %1018 = vst [vmem:[#allocation2 + $0x170] sm:$0xff] %v713_v45 }
 0x13f   :  { %v7094_v46 = vpop.f32.mrb[48].mxu0 }
 0x140   :  { %1021 = vst [vmem:[#allocation2 + $0x188] sm:$0xff] %v7094_v46  ;;  %v723_v47 = vpop.f32.mrb[49].mxu0 }
 0x141   :  { %7301 = vmatprep.mubr.f32.mxu1 %v723_v47 }
 0x143   :  { %v7097_v48 = vpop.f32.mrb[50].mxu0 }
 0x144   :  { %1023 = vst [vmem:[#allocation2 + $0x198] sm:$0xff] %v7097_v48  ;;  %v733_v49 = vpop.f32.mrb[51].mxu0 }
 0x145   :  { %1022 = vst [vmem:[#allocation2 + $0x190] sm:$0xff] %v733_v49 }
 0x147   :  { %v9968_v50 = vpop.f32.mrb[52].mxu0 }
 0x148   :  { %v743_v51 = vpop.f32.mrb[53].mxu0 }
 0x149   :  { %7263 = vmatprep.mubr.f32.mxu0 %v743_v51 }
 0x14b   :  { %v9970_v52 = vpop.f32.mrb[54].mxu0 }
 0x14c   :  { %v9972_v53 = vpop.f32.mrb[55].mxu0 }
 0x14f   :  { %v7106_v54 = vpop.f32.mrb[56].mxu0 }
 0x150   :  { %1029 = vst [vmem:[#allocation2 + $0x1c8] sm:$0xff] %v7106_v54  ;;  %v9974_v55 = vpop.f32.mrb[57].mxu0 }
 0x153   :  { %v7109_v57 = vpop.f32.mrb[58].mxu0 }
 0x154   :  { %1031 = vst [vmem:[#allocation2 + $0x1d8] sm:$0xff] %v7109_v57  ;;  %v773_v58 = vpop.f32.mrb[59].mxu0 }
 0x155   :  { %1030 = vst [vmem:[#allocation2 + $0x1d0] sm:$0xff] %v773_v58 }
 0x157   :  { %v7112_v59 = vpop.f32.mrb[60].mxu0 }
 0x158   :  { %1033 = vst [vmem:[#allocation2 + $0x1e8] sm:$0xff] %v7112_v59  ;;  %v783_v60 = vpop.f32.mrb[61].mxu0 }
 0x159   :  { %1032 = vst [vmem:[#allocation2 + $0x1e0] sm:$0xff] %v783_v60 }
 0x15b   :  { %v7115_v61 = vpop.f32.mrb[62].mxu0 }
 0x15c   :  { %1035 = vst [vmem:[#allocation2 + $0x1f8] sm:$0xff] %v7115_v61  ;;  %v793_v63 = vpop.f32.mrb[63].mxu0 }
 0x15d   :  { %1034 = vst [vmem:[#allocation2 + $0x1f0] sm:$0xff] %v793_v63 }
 0x15f   :  { %v7118_v1 = vpop.f32.mrb[64].mxu0 }
 0x160   :  { %1037 = vst [vmem:[#allocation2 + $0x208] sm:$0xff] %v7118_v1  ;;  %v803_v4 = vpop.f32.mrb[65].mxu0 }
 0x161   :  { %1036 = vst [vmem:[#allocation2 + $0x200] sm:$0xff] %v803_v4 }
 0x163   :  { %v7121_v6 = vpop.f32.mrb[66].mxu0 }
 0x164   :  { %1039 = vst [vmem:[#allocation2 + $0x218] sm:$0xff] %v7121_v6  ;;  %v813_v8 = vpop.f32.mrb[67].mxu0 }
 0x165   :  { %1038 = vst [vmem:[#allocation2 + $0x210] sm:$0xff] %v813_v8 }
 0x167   :  { %v7124_v10 = vpop.f32.mrb[68].mxu0 }
 0x168   :  { %1041 = vst [vmem:[#allocation2 + $0x228] sm:$0xff] %v7124_v10  ;;  %v823_v12 = vpop.f32.mrb[69].mxu0 }
 0x169   :  { %1040 = vst [vmem:[#allocation2 + $0x220] sm:$0xff] %v823_v12  ;;  %v10014_v12 = vld [vmem:[%s13227_s3] sm:$0xff] }
 0x16b   :  { %v7127_v14 = vpop.f32.mrb[70].mxu0 }
 0x16c   :  { %1043 = vst [vmem:[#allocation2 + $0x238] sm:$0xff] %v7127_v14  ;;  %v833_v16 = vpop.f32.mrb[71].mxu0 }
 0x16d   :  { %1042 = vst [vmem:[#allocation2 + $0x230] sm:$0xff] %v833_v16 }
 0x16f   :  { %v7130_v18 = vpop.f32.mrb[72].mxu0 }
 0x170   :  { %1045 = vst [vmem:[#allocation2 + $0x248] sm:$0xff] %v7130_v18  ;;  %v843_v19 = vpop.f32.mrb[73].mxu0 }
 0x171   :  { %1044 = vst [vmem:[#allocation2 + $0x240] sm:$0xff] %v843_v19 }
 0x173   :  { %v7133_v20 = vpop.f32.mrb[74].mxu0 }
 0x174   :  { %1047 = vst [vmem:[#allocation2 + $0x258] sm:$0xff] %v7133_v20  ;;  %v853_v21 = vpop.f32.mrb[75].mxu0 }
 0x175   :  { %1046 = vst [vmem:[#allocation2 + $0x250] sm:$0xff] %v853_v21  ;;  %v10025_v21 = vld [vmem:[%s13227_s3 + $0x10] sm:$0xff] }
 0x177   :  { %v7136_v22 = vpop.f32.mrb[76].mxu0 }
 0x178   :  { %1049 = vst [vmem:[#allocation2 + $0x268] sm:$0xff] %v7136_v22  ;;  %v863_v23 = vpop.f32.mrb[77].mxu0  ;;  %v10030_v22 = vld [vmem:[%s13227_s3 + $0x8] sm:$0xff] }
 0x179   :  { %1048 = vst [vmem:[#allocation2 + $0x260] sm:$0xff] %v863_v23 }
 0x17b   :  { %v7139_v56 = vpop.f32.mrb[78].mxu0 }
 0x17c   :  { %1051 = vst [vmem:[#allocation2 + $0x278] sm:$0xff] %v7139_v56  ;;  %v873_v24 = vpop.f32.mrb[79].mxu0 }
 0x17d   :  { %1050 = vst [vmem:[#allocation2 + $0x270] sm:$0xff] %v873_v24 }
 0x17f   :  { %v7142_v25 = vpop.f32.mrb[80].mxu0 }
 0x180   :  { %1053 = vst [vmem:[#allocation2 + $0x288] sm:$0xff] %v7142_v25  ;;  %v883_v26 = vpop.f32.mrb[81].mxu0 }
 0x181   :  { %1052 = vst [vmem:[#allocation2 + $0x280] sm:$0xff] %v883_v26 }
 0x183   :  { %v7145_v27 = vpop.f32.mrb[82].mxu0 }
 0x184   :  { %1055 = vst [vmem:[#allocation2 + $0x298] sm:$0xff] %v7145_v27  ;;  %v893_v28 = vpop.f32.mrb[83].mxu0 }
 0x185   :  { %1054 = vst [vmem:[#allocation2 + $0x290] sm:$0xff] %v893_v28  ;;  %v10045_v28 = vld [vmem:[%s13227_s3 + $0x18] sm:$0xff] }
 0x187   :  { %v7148_v29 = vpop.f32.mrb[84].mxu0 }
 0x188   :  { %1057 = vst [vmem:[#allocation2 + $0x2a8] sm:$0xff] %v7148_v29  ;;  %v903_v30 = vpop.f32.mrb[85].mxu0  ;;  %v10050_v29 = vld [vmem:[%s13227_s3 + $0x20] sm:$0xff] }
 0x189   :  { %1056 = vst [vmem:[#allocation2 + $0x2a0] sm:$0xff] %v903_v30 }
 0x18b   :  { %v7151_v31 = vpop.f32.mrb[86].mxu0 }
 0x18c   :  { %1059 = vst [vmem:[#allocation2 + $0x2b8] sm:$0xff] %v7151_v31  ;;  %v913_v32 = vpop.f32.mrb[87].mxu0 }
 0x18d   :  { %1058 = vst [vmem:[#allocation2 + $0x2b0] sm:$0xff] %v913_v32 }
 0x18f   :  { %v7154_v33 = vpop.f32.mrb[88].mxu0 }
 0x190   :  { %1061 = vst [vmem:[#allocation2 + $0x2c8] sm:$0xff] %v7154_v33  ;;  %v923_v34 = vpop.f32.mrb[89].mxu0 }
 0x191   :  { %1060 = vst [vmem:[#allocation2 + $0x2c0] sm:$0xff] %v923_v34 }
 0x193   :  { %v7157_v35 = vpop.f32.mrb[90].mxu0 }
 0x194   :  { %1063 = vst [vmem:[#allocation2 + $0x2d8] sm:$0xff] %v7157_v35  ;;  %v933_v36 = vpop.f32.mrb[91].mxu0 }
 0x195   :  { %1062 = vst [vmem:[#allocation2 + $0x2d0] sm:$0xff] %v933_v36  ;;  %v10065_v36 = vld [vmem:[%s13227_s3 + $0x28] sm:$0xff] }
 0x197   :  { %v7160_v37 = vpop.f32.mrb[92].mxu0 }
 0x198   :  { %1065 = vst [vmem:[#allocation2 + $0x2e8] sm:$0xff] %v7160_v37  ;;  %v943_v38 = vpop.f32.mrb[93].mxu0  ;;  %v10070_v37 = vld [vmem:[%s13227_s3 + $0x30] sm:$0xff] }
 0x199   :  { %1064 = vst [vmem:[#allocation2 + $0x2e0] sm:$0xff] %v943_v38 }
 0x19b   :  { %v7163_v39 = vpop.f32.mrb[94].mxu0 }
 0x19c   :  { %1067 = vst [vmem:[#allocation2 + $0x2f8] sm:$0xff] %v7163_v39  ;;  %v953_v40 = vpop.f32.mrb[95].mxu0 }
 0x19d   :  { %1066 = vst [vmem:[#allocation2 + $0x2f0] sm:$0xff] %v953_v40 }
 0x19f   :  { %v7166_v41 = vpop.f32.mrb[96].mxu0 }
 0x1a0   :  { %1069 = vst [vmem:[#allocation2 + $0x308] sm:$0xff] %v7166_v41  ;;  %v963_v42 = vpop.f32.mrb[97].mxu0 }
 0x1a1   :  { %1068 = vst [vmem:[#allocation2 + $0x300] sm:$0xff] %v963_v42 }
 0x1a8   :  { %v10008_v4 = vld [vmem:[#allocation2 + $0x301] ss:$0 sm:$0xff] }
 0x1be   :  { %v9976_v43 = vpop.f32.mrb[0].mxu1 }
 0x1bf   :  { %v9978_v44 = vpop.f32.mrb[1].mxu1 }
 0x1c2   :  { %v9980_v45 = vpop.f32.mrb[2].mxu1 }
 0x1c3   :  { %13266 = vst [vmem:[#allocation3_spill] sm:$0xff] %v9980_v45  ;;  %v9982_v46 = vpop.f32.mrb[3].mxu1 }
 0x1c4   :  { %13267 = vst [vmem:[#allocation4_spill] sm:$0xff] %v9982_v46 }
 0x1c6   :  { %v9984_v47 = vpop.f32.mrb[4].mxu1 }
 0x1c7   :  { %13268 = vst [vmem:[#allocation5_spill] sm:$0xff] %v9984_v47  ;;  %v9986_v48 = vpop.f32.mrb[5].mxu1 }
 0x1c8   :  { %13269 = vst [vmem:[#allocation6_spill] sm:$0xff] %v9986_v48 }
 0x1ca   :  { %v9988_v49 = vpop.f32.mrb[6].mxu1 }
 0x1cb   :  { %13270 = vst [vmem:[#allocation7_spill] sm:$0xff] %v9988_v49  ;;  %v9990_v51 = vpop.f32.mrb[7].mxu1 }
 0x1cc   :  { %13271 = vst [vmem:[#allocation8_spill] sm:$0xff] %v9990_v51 }
 0x1ce   :  { %v9992_v54 = vpop.f32.mrb[8].mxu1 }
 0x1cf   :  { %13272 = vst [vmem:[#allocation9_spill] sm:$0xff] %v9992_v54  ;;  %v9994_v57 = vpop.f32.mrb[9].mxu1 }
 0x1d0   :  { %13273 = vst [vmem:[#allocation10_spill] sm:$0xff] %v9994_v57 }
 0x1d2   :  { %v9996_v58 = vpop.f32.mrb[10].mxu1 }
 0x1d3   :  { %13274 = vst [vmem:[#allocation11_spill] sm:$0xff] %v9996_v58  ;;  %v9998_v59 = vpop.f32.mrb[11].mxu1 }
 0x1d4   :  { %13275 = vst [vmem:[#allocation12_spill] sm:$0xff] %v9998_v59 }
 0x1d6   :  { %v10000_v60 = vpop.f32.mrb[12].mxu1 }
 0x1d7   :  { %13276 = vst [vmem:[#allocation13_spill] sm:$0xff] %v10000_v60  ;;  %v10002_v61 = vpop.f32.mrb[13].mxu1 }
 0x1d8   :  { %13277 = vst [vmem:[#allocation14_spill] sm:$0xff] %v10002_v61  ;;  %v10164_v61 = vld [vmem:[%s13227_s3 + $0x78] sm:$0xff] }
 0x1da   :  { %v10004_v63 = vpop.f32.mrb[14].mxu1 }
 0x1db   :  { %13278 = vst [vmem:[#allocation15_spill] sm:$0xff] %v10004_v63  ;;  %v10006_v1 = vpop.f32.mrb[15].mxu1  ;;  %v10145_v63 = vld [vmem:[%s13227_s3 + $0x68] sm:$0xff] }
 0x1dc   :  { %13279 = vst [vmem:[#allocation16_spill] sm:$0xff] %v10006_v1 }
 0x1de   :  { %v7209_v6 = vpop.f32.mrb[16].mxu1 }
 0x1df   :  { %v1547_v8 = vpop.f32.mrb[17].mxu1  ;;  %v1553_v14 = vadd.f32 %v7209_v6, %v10008_v4 }
 0x1e0   :  { %v1548_v10 = vadd.f32 %v10008_v4, %v1547_v8  ;;  %v10085_v8 = vld [vmem:[%s13227_s3 + $0x38] sm:$0xff] }
 0x1e1   :  { %v10037_v25 = vadd.f32 %v1553_v14, %v10030_v22 }
 0x1e2   :  { %v7212_v16 = vpop.f32.mrb[18].mxu1  ;;  %v10018_v18 = vadd.f32 %v1548_v10, %v10014_v12  ;;  %v10090_v10 = vld [vmem:[%s13227_s3 + $0x40] sm:$0xff] }
 0x1e3   :  { %v1557_v19 = vpop.f32.mrb[19].mxu1  ;;  %v1563_v23 = vadd.f32 %v7212_v16, %v10008_v4 }
 0x1e4   :  { %v1558_v20 = vadd.f32 %v10008_v4, %v1557_v19  ;;  %1642 = vmax.xlane.f32.xlu0 %v10018_v18 }
 0x1e5   :  { %v10054_v32 = vadd.f32 %v1563_v23, %v10045_v28 }
 0x1e6   :  { %v7215_v56 = vpop.f32.mrb[20].mxu1  ;;  %v10034_v24 = vadd.f32 %v1558_v20, %v10025_v21 }
 0x1e7   :  { %v1567_v26 = vpop.f32.mrb[21].mxu1  ;;  %v1573_v30 = vadd.f32 %v7215_v56, %v10008_v4 }
 0x1e8   :  { %v1568_v27 = vadd.f32 %v10008_v4, %v1567_v26  ;;  %1646 = vmax.xlane.f32.xlu1 %v10034_v24  ;;  %1644 = vmax.xlane.f32.xlu0 %v10037_v25  ;;  %v10105_v26 = vld [vmem:[%s13227_s3 + $0x48] sm:$0xff] }
 0x1e9   :  { %v10074_v40 = vadd.f32 %v1573_v30, %v10065_v36 }
 0x1ea   :  { %v7218_v31 = vpop.f32.mrb[22].mxu1  ;;  %v10057_v33 = vadd.f32 %v1568_v27, %v10050_v29  ;;  %v10110_v27 = vld [vmem:[%s13227_s3 + $0x50] sm:$0xff] }
 0x1eb   :  { %v1577_v34 = vpop.f32.mrb[23].mxu1  ;;  %v1583_v38 = vadd.f32 %v7218_v31, %v10008_v4 }
 0x1ec   :  { %v1578_v35 = vadd.f32 %v10008_v4, %v1577_v34  ;;  %1648 = vmax.xlane.f32.xlu1 %v10054_v32  ;;  %1650 = vmax.xlane.f32.xlu0 %v10057_v33 }
 0x1ed   :  { %v10094_v19 = vadd.f32 %v1583_v38, %v10085_v8 }
 0x1ee   :  { %v7221_v39 = vpop.f32.mrb[24].mxu1  ;;  %v10077_v41 = vadd.f32 %v1578_v35, %v10070_v37 }
 0x1ef   :  { %v1587_v42 = vpop.f32.mrb[25].mxu1  ;;  %v1593_v14 = vadd.f32 %v7221_v39, %v10008_v4 }
 0x1f0   :  { %v1588_v6 = vadd.f32 %v10008_v4, %v1587_v42  ;;  %1652 = vmax.xlane.f32.xlu1 %v10074_v40  ;;  %1654 = vmax.xlane.f32.xlu0 %v10077_v41  ;;  %v10125_v42 = vld [vmem:[%s13227_s3 + $0x58] sm:$0xff] }
 0x1f1   :  { %v10114_v34 = vadd.f32 %v1593_v14, %v10105_v26 }
 0x1f2   :  { %v7224_v16 = vpop.f32.mrb[26].mxu1  ;;  %v10097_v20 = vadd.f32 %v1588_v6, %v10090_v10  ;;  %v10130_v6 = vld [vmem:[%s13227_s3 + $0x60] sm:$0xff] }
 0x1f3   :  { %v1597_v23 = vpop.f32.mrb[27].mxu1  ;;  %v1603_v30 = vadd.f32 %v7224_v16, %v10008_v4 }
 0x1f4   :  { %v1598_v56 = vadd.f32 %v10008_v4, %v1597_v23  ;;  %1656 = vmax.xlane.f32.xlu1 %v10094_v19  ;;  %1658 = vmax.xlane.f32.xlu0 %v10097_v20 }
 0x1f5   :  { %v10134_v23 = vadd.f32 %v1603_v30, %v10125_v42  ;;  %v10150_v30 = vld [vmem:[%s13227_s3 + $0x70] sm:$0xff] }
 0x1f6   :  { %v7227_v31 = vpop.f32.mrb[28].mxu1  ;;  %v10117_v35 = vadd.f32 %v1598_v56, %v10110_v27 }
 0x1f7   :  { %v1607_v38 = vpop.f32.mrb[29].mxu1  ;;  %v1613_v14 = vadd.f32 %v7227_v31, %v10008_v4 }
 0x1f8   :  { %v1608_v39 = vadd.f32 %v10008_v4, %v1607_v38  ;;  %1660 = vmax.xlane.f32.xlu1 %v10114_v34  ;;  %1662 = vmax.xlane.f32.xlu0 %v10117_v35 }
 0x1fa   :  { %v7230_v16 = vpop.f32.mrb[30].mxu1  ;;  %v10137_v56 = vadd.f32 %v1608_v39, %v10130_v6  ;;  %v10154_v39 = vadd.f32 %v1613_v14, %v10145_v63 }
 0x1fb   :  { %v1617_v38 = vpop.f32.mrb[31].mxu1  ;;  %v1623_v31 = vadd.f32 %v7230_v16, %v10008_v4 }
 0x1fc   :  { %v1618_v1 = vadd.f32 %v10008_v4, %v1617_v38  ;;  %1664 = vmax.xlane.f32.xlu1 %v10134_v23  ;;  %1666 = vmax.xlane.f32.xlu0 %v10137_v56 }
 0x1fd   :  { %v10167_v60 = vadd.f32 %v1623_v31, %v10164_v61 }
 0x1fe   :  { %v10157_v38 = vadd.f32 %v1618_v1, %v10150_v30 }
 0x200   :  { %1668 = vmax.xlane.f32.xlu1 %v10154_v39  ;;  %1670 = vmax.xlane.f32.xlu0 %v10157_v38 }
 0x204   :  { %1672 = vmax.xlane.f32.xlu1 %v10167_v60 }
 0x271   :  { %v1643_v4 = vpop.xlane.xlu0 %1642 }
 0x272   :  { %v1674_v14 = vsub.f32 %v10018_v18, %v1643_v4 }
 0x274   :  { %v1690_v16 = vmul.f32 1.442695, %v1674_v14 }
 0x275   :  { %v1647_v1 = vpop.xlane.xlu1 %1646  ;;  %v1645_v59 = vpop.xlane.xlu0 %1644 }
 0x276   :  { %8542 = vpow2.f32 %v1690_v16  ;;  %v1676_v58 = vsub.f32 %v10034_v24, %v1647_v1  ;;  %v1675_v57 = vsub.f32 %v10037_v25, %v1645_v59 }
 0x278   :  { %v1694_v54 = vmul.f32 1.442695, %v1676_v58  ;;  %v1692_v51 = vmul.f32 1.442695, %v1675_v57 }
 0x279   :  { %v1649_v49 = vpop.xlane.xlu1 %1648  ;;  %v1651_v48 = vpop.xlane.xlu0 %1650 }
 0x27a   :  { %8544 = vpow2.f32 %v1694_v54  ;;  %v1677_v31 = vsub.f32 %v10054_v32, %v1649_v49  ;;  %v1678_v47 = vsub.f32 %v10057_v33, %v1651_v48 }
 0x27b   :  { %8546 = vpow2.f32 %v1692_v51 }
 0x27c   :  { %v1696_v46 = vmul.f32 1.442695, %v1677_v31  ;;  %v1698_v18 = vmul.f32 1.442695, %v1678_v47 }
 0x27d   :  { %v1653_v4 = vpop.xlane.xlu1 %1652  ;;  %v1655_v14 = vpop.xlane.xlu0 %1654 }
 0x27e   :  { %8548 = vpow2.f32 %v1696_v46  ;;  %v1679_v16 = vsub.f32 %v10074_v40, %v1653_v4  ;;  %v1680_v24 = vsub.f32 %v10077_v41, %v1655_v14 }
 0x27f   :  { %8550 = vpow2.f32 %v1698_v18 }
 0x280   :  { %v10177_v58 = vpop.eup %8542  ;;  %v1700_v57 = vmul.f32 1.442695, %v1679_v16  ;;  %v1702_v59 = vmul.f32 1.442695, %v1680_v24 }
 0x281   :  { %v1657_v54 = vpop.xlane.xlu1 %1656  ;;  %1722 = vadd.xlane.f32.xlu0 %v10177_v58  ;;  %v1659_v49 = vpop.xlane.xlu0 %1658 }
 0x282   :  { %8552 = vpow2.f32 %v1700_v57  ;;  %v1681_v48 = vsub.f32 %v10094_v19, %v1657_v54  ;;  %v1682_v47 = vsub.f32 %v10097_v20, %v1659_v49 }
 0x283   :  { %8554 = vpow2.f32 %v1702_v59 }
 0x284   :  { %v10182_v46 = vpop.eup %8544  ;;  %v1704_v51 = vmul.f32 1.442695, %v1681_v48  ;;  %v1706_v25 = vmul.f32 1.442695, %v1682_v47 }
 0x285   :  { %v10184_v32 = vpop.eup %8546  ;;  %v1661_v33 = vpop.xlane.xlu1 %1660  ;;  %1726 = vadd.xlane.f32.xlu0 %v10182_v46 }
 0x286   :  { %v1663_v40 = vpop.xlane.xlu0 %1662  ;;  %8556 = vpow2.f32 %v1704_v51  ;;  %v1683_v41 = vsub.f32 %v10114_v34, %v1661_v33  ;;  %1724 = vadd.xlane.f32.xlu1 %v10184_v32 }
 0x287   :  { %v1684_v19 = vsub.f32 %v10117_v35, %v1663_v40  ;;  %8558 = vpow2.f32 %v1706_v25 }
 0x288   :  { %v10190_v20 = vpop.eup %8548  ;;  %v1708_v1 = vmul.f32 1.442695, %v1683_v41 }
 0x289   :  { %v1710_v31 = vmul.f32 1.442695, %v1684_v19  ;;  %v10192_v18 = vpop.eup %8550  ;;  %v1665_v4 = vpop.xlane.xlu1 %1664 }
 0x28a   :  { %v1667_v14 = vpop.xlane.xlu0 %1666  ;;  %8560 = vpow2.f32 %v1708_v1  ;;  %v1685_v16 = vsub.f32 %v10134_v23, %v1665_v4  ;;  %1728 = vadd.xlane.f32.xlu1 %v10190_v20  ;;  %1730 = vadd.xlane.f32.xlu0 %v10192_v18 }
 0x28b   :  { %v1686_v34 = vsub.f32 %v10137_v56, %v1667_v14  ;;  %8562 = vpow2.f32 %v1710_v31 }
 0x28c   :  { %v10198_v35 = vpop.eup %8552  ;;  %v1712_v24 = vmul.f32 1.442695, %v1685_v16 }
 0x28d   :  { %v1714_v57 = vmul.f32 1.442695, %v1686_v34  ;;  %v10200_v59 = vpop.eup %8554  ;;  %v1669_v54 = vpop.xlane.xlu1 %1668 }
 0x28e   :  { %v1671_v49 = vpop.xlane.xlu0 %1670  ;;  %8564 = vpow2.f32 %v1712_v24  ;;  %v1687_v48 = vsub.f32 %v10154_v39, %v1669_v54  ;;  %1732 = vadd.xlane.f32.xlu1 %v10198_v35  ;;  %1734 = vadd.xlane.f32.xlu0 %v10200_v59 }
 0x28f   :  { %v1688_v23 = vsub.f32 %v10157_v38, %v1671_v49  ;;  %8566 = vpow2.f32 %v1714_v57 }
 0x290   :  { %v10206_v56 = vpop.eup %8556  ;;  %v1716_v47 = vmul.f32 1.442695, %v1687_v48 }
 0x291   :  { %v1718_v51 = vmul.f32 1.442695, %v1688_v23  ;;  %v10208_v25 = vpop.eup %8558  ;;  %v1673_v33 = vpop.xlane.xlu1 %1672 }
 0x292   :  { %8568 = vpow2.f32 %v1716_v47  ;;  %v1689_v40 = vsub.f32 %v10167_v60, %v1673_v33  ;;  %1736 = vadd.xlane.f32.xlu1 %v10206_v56  ;;  %1738 = vadd.xlane.f32.xlu0 %v10208_v25 }
 0x293   :  { %8570 = vpow2.f32 %v1718_v51 }
 0x294   :  { %v10213_v39 = vpop.eup %8560  ;;  %v1720_v41 = vmul.f32 1.442695, %v1689_v40 }
 0x295   :  { %v10215_v38 = vpop.eup %8562 }
 0x296   :  { %8572 = vpow2.f32 %v1720_v41  ;;  %1740 = vadd.xlane.f32.xlu1 %v10213_v39  ;;  %1742 = vadd.xlane.f32.xlu0 %v10215_v38 }
 0x298   :  { %v10219_v19 = vpop.eup %8564 }
 0x299   :  { %v10221_v1 = vpop.eup %8566 }
 0x29a   :  { %1744 = vadd.xlane.f32.xlu1 %v10219_v19  ;;  %1746 = vadd.xlane.f32.xlu0 %v10221_v1 }
 0x29c   :  { %v10225_v60 = vpop.eup %8568 }
 0x29d   :  { %v10227_v31 = vpop.eup %8570 }
 0x29e   :  { %1748 = vadd.xlane.f32.xlu1 %v10225_v60  ;;  %1750 = vadd.xlane.f32.xlu0 %v10227_v31 }
 0x2a0   :  { %v10231_v4 = vpop.eup %8572 }
 0x2a2   :  { %1752 = vadd.xlane.f32.xlu1 %v10231_v4 }
 0x30e   :  { %v1723_v14 = vpop.xlane.xlu0 %1722 }
 0x30f   :  { %8574 = vrcp.f32 %v1723_v14 }
 0x312   :  { %v1727_v16 = vpop.xlane.xlu0 %1726 }
 0x313   :  { %v1725_v34 = vpop.xlane.xlu1 %1724 }
 0x314   :  { %8576 = vrcp.f32 %v1725_v34 }
 0x315   :  { %8578 = vrcp.f32 %v1727_v16 }
 0x317   :  { %v1729_v24 = vpop.xlane.xlu1 %1728  ;;  %v1731_v57 = vpop.xlane.xlu0 %1730 }
 0x318   :  { %8580 = vrcp.f32 %v1729_v24 }
 0x319   :  { %8582 = vrcp.f32 %v1731_v57  ;;  %v8575_v49 = vpop.eup %8574 }
 0x31a   :  { %v1770_v47 = vmul.f32 %v8575_v49, %v10177_v58 }
 0x31b   :  { %v1733_v54 = vpop.xlane.xlu1 %1732  ;;  %v1735_v40 = vpop.xlane.xlu0 %1734 }
 0x31c   :  { %8584 = vrcp.f32 %v1733_v54 }
 0x31e   :  { %v8577_v48 = vpop.eup %8576 }
 0x31f   :  { %v1737_v23 = vpop.xlane.xlu1 %1736  ;;  %v1771_v51 = vmul.f32 %v8577_v48, %v10184_v32  ;;  %v8579_v33 = vpop.eup %8578 }
 0x320   :  { %8586 = vrcp.f32 %v1737_v23  ;;  %v1772_v16 = vmul.f32 %v8579_v33, %v10182_v46  ;;  %v1739_v32 = vpop.xlane.xlu0 %1738 }
 0x321   :  { %v8031_v41 = vpack.c.bf16 %v1771_v51, %v1770_v47  ;;  %8588 = vrcp.f32 %v1735_v40 }
 0x322   :  { %v8581_v14 = vpop.eup %8580 }
 0x323   :  { %8032 = vmatprep.subr.bf16.mxu0 %v8031_v41  ;;  %v1773_v34 = vmul.f32 %v8581_v14, %v10190_v20  ;;  %v8583_v24 = vpop.eup %8582  ;;  %v1741_v45 = vpop.xlane.xlu1 %1740 }
 0x324   :  { %8034 = vmatpush3.bf16.xpose.msra.mxu0 %v8031_v41  ;;  %v1774_v49 = vmul.f32 %v8583_v24, %v10192_v18  ;;  %8590 = vrcp.f32 %v1741_v45  ;;  %v1743_v51 = vpop.xlane.xlu0 %1742 }
 0x325   :  { %v8035_v57 = vpack.c.bf16 %v1773_v34, %v1772_v16  ;;  %8592 = vrcp.f32 %v1739_v32 }
 0x326   :  { %v8585_v54 = vpop.eup %8584 }
 0x327   :  { %8036 = vmatprep.subr.bf16.mxu0 %v8035_v57  ;;  %v1775_v58 = vmul.f32 %v8585_v54, %v10198_v35  ;;  %v1745_v20 = vpop.xlane.xlu1 %1744 }
 0x328   :  { %8594 = vrcp.f32 %v1745_v20  ;;  %v1747_v14 = vpop.xlane.xlu0 %1746 }
 0x329   :  { %v8039_v48 = vpack.c.bf16 %v1775_v58, %v1774_v49  ;;  %8596 = vrcp.f32 %v1743_v51 }
 0x32a   :  { %v8587_v23 = vpop.eup %8586 }
 0x32b   :  { %v8589_v46 = vpop.eup %8588  ;;  %v1777_v47 = vmul.f32 %v8587_v23, %v10206_v56  ;;  %v1749_v45 = vpop.xlane.xlu1 %1748 }
 0x32c   :  { %8038 = vmatpush3.bf16.xpose.msra.mxu0 %v8035_v57  ;;  %v1776_v33 = vmul.f32 %v8589_v46, %v10200_v59  ;;  %8598 = vrcp.f32 %v1749_v45  ;;  %v1751_v54 = vpop.xlane.xlu0 %1750 }
 0x32d   :  { %8040 = vmatprep.subr.bf16.mxu0 %v8039_v48  ;;  %8600 = vrcp.f32 %v1747_v14 }
 0x32e   :  { %v8043_v40 = vpack.c.bf16 %v1777_v47, %v1776_v33  ;;  %v8591_v41 = vpop.eup %8590 }
 0x32f   :  { %v8593_v18 = vpop.eup %8592  ;;  %v1779_v35 = vmul.f32 %v8591_v41, %v10213_v39  ;;  %v1753_v56 = vpop.xlane.xlu1 %1752 }
 0x330   :  { %v1778_v16 = vmul.f32 %v8593_v18, %v10208_v25  ;;  %8602 = vrcp.f32 %v1753_v56 }
 0x331   :  { %8604 = vrcp.f32 %v1751_v54 }
 0x332   :  { %v8047_v34 = vpack.c.bf16 %v1779_v35, %v1778_v16  ;;  %v8595_v24 = vpop.eup %8594 }
 0x333   :  { %v8597_v59 = vpop.eup %8596  ;;  %v1781_v57 = vmul.f32 %v8595_v24, %v10219_v19 }
 0x334   :  { %8042 = vmatpush3.bf16.xpose.msra.mxu0 %v8039_v48  ;;  %v1780_v58 = vmul.f32 %v8597_v59, %v10215_v38 }
 0x335   :  { %8044 = vmatprep.subr.bf16.mxu0 %v8043_v40 }
 0x336   :  { %v8051_v32 = vpack.c.bf16 %v1781_v57, %v1780_v58  ;;  %v8599_v49 = vpop.eup %8598 }
 0x337   :  { %v8601_v25 = vpop.eup %8600  ;;  %v1783_v39 = vmul.f32 %v8599_v49, %v10225_v60  ;;  %v10302_v60 = vld [vmem:[%s13226_s1 + $0x30] sm:$0xff] }
 0x338   :  { %v1782_v48 = vmul.f32 %v8601_v25, %v10221_v1  ;;  %v10260_v1 = vld [vmem:[%s13226_s1] sm:$0xff] }
 0x33a   :  { %v8055_v23 = vpack.c.bf16 %v1783_v39, %v1782_v48  ;;  %v8603_v46 = vpop.eup %8602 }
 0x33b   :  { %v8605_v20 = vpop.eup %8604  ;;  %v1785_v19 = vmul.f32 %v8603_v46, %v10231_v4 }
 0x33c   :  { %8046 = vmatpush3.bf16.xpose.msra.mxu0 %v8043_v40  ;;  %v1784_v38 = vmul.f32 %v8605_v20, %v10227_v31 }
 0x33d   :  { %8048 = vmatprep.subr.bf16.mxu0 %v8047_v34 }
 0x33e   :  { %v8059_v47 = vpack.c.bf16 %v1785_v19, %v1784_v38 }
 0x344   :  { %8050 = vmatpush3.bf16.xpose.msra.mxu0 %v8047_v34 }
 0x345   :  { %8052 = vmatprep.subr.bf16.mxu0 %v8051_v32 }
 0x34c   :  { %8054 = vmatpush3.bf16.xpose.msra.mxu0 %v8051_v32 }
 0x34d   :  { %8056 = vmatprep.subr.bf16.mxu0 %v8055_v23 }
 0x354   :  { %8058 = vmatpush3.bf16.xpose.msra.mxu0 %v8055_v23 }
 0x355   :  { %8060 = vmatprep.subr.bf16.mxu0 %v8059_v47 }
 0x35c   :  { %8062 = vmatpush3.bf16.xpose.msra.mxu0 %v8059_v47 }
 0x35d   :  { %8096 = vmatprep.subr.bf16.mxu0 %v9869_v62 }
 0x363   :  { %7264 = vmatmul.mubr.f32.vlgmr.msra.gmra.mrb[98].mxu0 %v9968_v50  ;;  %v10267_v50 = vld [vmem:[%s13226_s1 + $0x8] sm:$0xff] }
 0x364   :  { %7266 = vmatprep.mubr.f32.mxu0 %v9972_v53  ;;  %8098 = vmatpush3.bf16.msra.mxu0 %v9869_v62  ;;  %v10274_v62 = vld [vmem:[%s13226_s1 + $0x10] sm:$0xff]  ;;  %v10295_v53 = vld [vmem:[%s13226_s1 + $0x28] sm:$0xff] }
 0x365   :  { %8100 = vmatprep.subr.bf16.mxu0 %v9883_v3 }
 0x367   :  { %7267 = vmatmul.mubr.f32.gmra.mrb[100].mxu0 %v9970_v52  ;;  %v10288_v52 = vld [vmem:[%s13226_s1 + $0x20] sm:$0xff] }
 0x368   :  { %8102 = vmatpush3.bf16.msra.mxu0 %v9883_v3  ;;  %7315 = vmatprep.mubr.msk.f32.mxu0 %vm122_vm0, %v10260_v1  ;;  %v10281_v3 = vld [vmem:[%s13226_s1 + $0x18] sm:$0xff] }
 0x36b   :  { %7316 = vmatmul.mubr.msk.f32.vlgmr.msra.gmra.mrb[102].mxu0 %vm122_vm0, %v10267_v50 }
 0x36c   :  { %7318 = vmatprep.mubr.msk.f32.mxu0 %vm122_vm0, %v10274_v62 }
 0x36f   :  { %7319 = vmatmul.mubr.msk.f32.gmra.mrb[104].mxu0 %vm122_vm0, %v10281_v3 }
 0x370   :  { %7321 = vmatprep.mubr.msk.f32.mxu0 %vm122_vm0, %v10288_v52 }
 0x373   :  { %7322 = vmatmul.mubr.msk.f32.gmra.mrb[106].mxu0 %vm122_vm0, %v10295_v53 }
 0x374   :  { %7324 = vmatprep.mubr.msk.f32.mxu0 %vm122_vm0, %v10302_v60 }
 0x377   :  { %7325 = vmatmul.mubr.msk.f32.gmra.mrb[108].mxu0 %vm122_vm0, %v9876_v0 }
 0x378   :  { %7327 = vmatprep.mubr.msk.f32.mxu0 %vm122_vm0, %v9881_v2 }
 0x37b   :  { %7328 = vmatmul.mubr.msk.f32.gmra.mrb[110].mxu0 %vm122_vm0, %v9892_v5 }
 0x37c   :  { %7330 = vmatprep.mubr.msk.f32.mxu0 %vm122_vm0, %v9897_v7 }
 0x37f   :  { %7331 = vmatmul.mubr.msk.f32.gmra.mrb[112].mxu0 %vm122_vm0, %v9906_v9  ;;  %v6228_v9 = vld [vmem:[#allocation2 + $0x302] ss:$0 sm:$0xff] }
 0x380   :  { %7333 = vmatprep.mubr.msk.f32.mxu0 %vm122_vm0, %v9911_v11 }
 0x383   :  { %7334 = vmatmul.mubr.msk.f32.gmra.mrb[114].mxu0 %vm122_vm0, %v9920_v13 }
 0x384   :  { %7336 = vmatprep.mubr.msk.f32.mxu0 %vm122_vm0, %v9925_v15 }
 0x387   :  { %7337 = vmatmul.mubr.msk.f32.gmra.mrb[116].mxu0 %vm122_vm0, %v9934_v17 }
 0x388   :  { %7371 = vmatprep.mubr.f32.mxu0 %v9974_v55 }
 0x436   :  { %v10325_v0 = vpop.f32.mrb[98].mxu0 }
 0x437   :  { %13280 = vst [vmem:[#allocation17_spill] sm:$0xff] %v10325_v0  ;;  %v10327_v2 = vpop.f32.mrb[99].mxu0 }
 0x438   :  { %13281 = vst [vmem:[#allocation18_spill] sm:$0xff] %v10327_v2 }
 0x43a   :  { %v10329_v5 = vpop.f32.mrb[100].mxu0 }
 0x43b   :  { %13282 = vst [vmem:[#allocation19_spill] sm:$0xff] %v10329_v5  ;;  %v10331_v7 = vpop.f32.mrb[101].mxu0 }
 0x43c   :  { %13283 = vst [vmem:[#allocation20_spill] sm:$0xff] %v10331_v7 }
 0x43e   :  { %v7317_v11 = vpop.f32.mrb[102].mxu0 }
 0x43f   :  { %v2041_v31 = vadd.f32 %v7317_v11, %v6228_v9  ;;  %v2035_v13 = vpop.f32.mrb[103].mxu0 }
 0x440   :  { %v2036_v4 = vadd.f32 %v6228_v9, %v2035_v13 }
 0x441   :  { %v10334_v15 = vadd.f32 %v2041_v31, %v10030_v22 }
 0x442   :  { %v7320_v51 = vpop.f32.mrb[104].mxu0  ;;  %v10337_v17 = vadd.f32 %v2036_v4, %v10014_v12 }
 0x443   :  { %v2051_v55 = vadd.f32 %v7320_v51, %v6228_v9  ;;  %2132 = vmax.xlane.f32.xlu1 %v10334_v15  ;;  %v2045_v33 = vpop.f32.mrb[105].mxu0 }
 0x444   :  { %v2046_v40 = vadd.f32 %v6228_v9, %v2045_v33  ;;  %2130 = vmax.xlane.f32.xlu0 %v10337_v17 }
 0x445   :  { %v10342_v41 = vadd.f32 %v2051_v55, %v10045_v28 }
 0x446   :  { %v7323_v18 = vpop.f32.mrb[106].mxu0  ;;  %v10345_v45 = vadd.f32 %v2046_v40, %v10025_v21 }
 0x447   :  { %v2061_v22 = vadd.f32 %v7323_v18, %v6228_v9  ;;  %2136 = vmax.xlane.f32.xlu1 %v10342_v41  ;;  %v2055_v35 = vpop.f32.mrb[107].mxu0 }
 0x448   :  { %v2056_v12 = vadd.f32 %v6228_v9, %v2055_v35  ;;  %2134 = vmax.xlane.f32.xlu0 %v10345_v45 }
 0x449   :  { %v10350_v14 = vadd.f32 %v2061_v22, %v10065_v36 }
 0x44a   :  { %v7326_v16 = vpop.f32.mrb[108].mxu0  ;;  %v10353_v34 = vadd.f32 %v2056_v12, %v10050_v29 }
 0x44b   :  { %v2071_v28 = vadd.f32 %v7326_v16, %v6228_v9  ;;  %2140 = vmax.xlane.f32.xlu1 %v10350_v14  ;;  %v2065_v24 = vpop.f32.mrb[109].mxu0 }
 0x44c   :  { %v2066_v21 = vadd.f32 %v6228_v9, %v2065_v24  ;;  %2138 = vmax.xlane.f32.xlu0 %v10353_v34 }
 0x44d   :  { %v10358_v59 = vadd.f32 %v2071_v28, %v10085_v8 }
 0x44e   :  { %v7329_v56 = vpop.f32.mrb[110].mxu0  ;;  %v10361_v57 = vadd.f32 %v2066_v21, %v10070_v37 }
 0x44f   :  { %v2081_v36 = vadd.f32 %v7329_v56, %v6228_v9  ;;  %2144 = vmax.xlane.f32.xlu1 %v10358_v59  ;;  %v2075_v54 = vpop.f32.mrb[111].mxu0 }
 0x450   :  { %v2076_v29 = vadd.f32 %v6228_v9, %v2075_v54  ;;  %2142 = vmax.xlane.f32.xlu0 %v10361_v57 }
 0x451   :  { %v10366_v58 = vadd.f32 %v2081_v36, %v10105_v26 }
 0x452   :  { %v7332_v32 = vpop.f32.mrb[112].mxu0  ;;  %v10369_v49 = vadd.f32 %v2076_v29, %v10090_v10 }
 0x453   :  { %v2091_v8 = vadd.f32 %v7332_v32, %v6228_v9  ;;  %2148 = vmax.xlane.f32.xlu1 %v10366_v58  ;;  %v2085_v25 = vpop.f32.mrb[113].mxu0 }
 0x454   :  { %v2086_v37 = vadd.f32 %v6228_v9, %v2085_v25  ;;  %2146 = vmax.xlane.f32.xlu0 %v10369_v49 }
 0x455   :  { %v10374_v39 = vadd.f32 %v2091_v8, %v10125_v42 }
 0x456   :  { %v7335_v48 = vpop.f32.mrb[114].mxu0  ;;  %v10377_v23 = vadd.f32 %v2086_v37, %v10110_v27 }
 0x457   :  { %v2101_v26 = vadd.f32 %v7335_v48, %v6228_v9  ;;  %2152 = vmax.xlane.f32.xlu1 %v10374_v39  ;;  %v2095_v46 = vpop.f32.mrb[115].mxu0 }
 0x458   :  { %v2096_v10 = vadd.f32 %v6228_v9, %v2095_v46  ;;  %2150 = vmax.xlane.f32.xlu0 %v10377_v23 }
 0x459   :  { %v10382_v20 = vadd.f32 %v2101_v26, %v10145_v63 }
 0x45a   :  { %v7338_v19 = vpop.f32.mrb[116].mxu0  ;;  %v10385_v38 = vadd.f32 %v2096_v10, %v10130_v6 }
 0x45b   :  { %v2111_v42 = vadd.f32 %v7338_v19, %v6228_v9  ;;  %2156 = vmax.xlane.f32.xlu1 %v10382_v20  ;;  %v2105_v47 = vpop.f32.mrb[117].mxu0 }
 0x45c   :  { %v2106_v27 = vadd.f32 %v6228_v9, %v2105_v47  ;;  %2154 = vmax.xlane.f32.xlu0 %v10385_v38 }
 0x45d   :  { %v10390_v11 = vadd.f32 %v2111_v42, %v10164_v61 }
 0x45e   :  { %v10393_v31 = vadd.f32 %v2106_v27, %v10150_v30 }
 0x45f   :  { %2160 = vmax.xlane.f32.xlu1 %v10390_v11 }
 0x460   :  { %2158 = vmax.xlane.f32.xlu0 %v10393_v31 }
 0x4d0   :  { %v2133_v63 = vpop.xlane.xlu1 %2132 }
 0x4d1   :  { %v2163_v6 = vsub.f32 %v10334_v15, %v2133_v63  ;;  %v2131_v13 = vpop.xlane.xlu0 %2130 }
 0x4d2   :  { %v2162_v4 = vsub.f32 %v10337_v17, %v2131_v13 }
 0x4d3   :  { %v2180_v51 = vmul.f32 1.442695, %v2163_v6 }
 0x4d4   :  { %v2178_v9 = vmul.f32 1.442695, %v2162_v4  ;;  %v2137_v55 = vpop.xlane.xlu1 %2136 }
 0x4d5   :  { %8606 = vpow2.f32 %v2180_v51  ;;  %v2165_v61 = vsub.f32 %v10342_v41, %v2137_v55  ;;  %v2135_v33 = vpop.xlane.xlu0 %2134 }
 0x4d6   :  { %8608 = vpow2.f32 %v2178_v9  ;;  %v2164_v30 = vsub.f32 %v10345_v45, %v2135_v33 }
 0x4d7   :  { %v2184_v40 = vmul.f32 1.442695, %v2165_v61 }
 0x4d8   :  { %v2182_v18 = vmul.f32 1.442695, %v2164_v30  ;;  %v2141_v22 = vpop.xlane.xlu1 %2140 }
 0x4d9   :  { %8610 = vpow2.f32 %v2184_v40  ;;  %v2167_v35 = vsub.f32 %v10350_v14, %v2141_v22  ;;  %v2139_v15 = vpop.xlane.xlu0 %2138 }
 0x4da   :  { %8612 = vpow2.f32 %v2182_v18  ;;  %v2166_v17 = vsub.f32 %v10353_v34, %v2139_v15 }
 0x4db   :  { %v2188_v12 = vmul.f32 1.442695, %v2167_v35 }
 0x4dc   :  { %v2186_v16 = vmul.f32 1.442695, %v2166_v17  ;;  %v2145_v28 = vpop.xlane.xlu1 %2144 }
 0x4dd   :  { %8614 = vpow2.f32 %v2188_v12  ;;  %v2169_v41 = vsub.f32 %v10358_v59, %v2145_v28  ;;  %v2143_v24 = vpop.xlane.xlu0 %2142 }
 0x4de   :  { %8616 = vpow2.f32 %v2186_v16  ;;  %v2168_v45 = vsub.f32 %v10361_v57, %v2143_v24 }
 0x4df   :  { %v10405_v21 = vpop.eup %8606  ;;  %v2192_v56 = vmul.f32 1.442695, %v2169_v41 }
 0x4e0   :  { %v10407_v36 = vpop.eup %8608  ;;  %v2190_v14 = vmul.f32 1.442695, %v2168_v45  ;;  %v2149_v54 = vpop.xlane.xlu1 %2148  ;;  %2212 = vadd.xlane.f32.xlu1 %v10405_v21 }
 0x4e1   :  { %8618 = vpow2.f32 %v2192_v56  ;;  %v2171_v34 = vsub.f32 %v10366_v58, %v2149_v54  ;;  %2210 = vadd.xlane.f32.xlu0 %v10407_v36  ;;  %v2147_v29 = vpop.xlane.xlu0 %2146 }
 0x4e2   :  { %8620 = vpow2.f32 %v2190_v14  ;;  %v2170_v59 = vsub.f32 %v10369_v49, %v2147_v29 }
 0x4e3   :  { %v10413_v32 = vpop.eup %8610  ;;  %v2196_v57 = vmul.f32 1.442695, %v2171_v34 }
 0x4e4   :  { %v10415_v8 = vpop.eup %8612  ;;  %v2194_v25 = vmul.f32 1.442695, %v2170_v59  ;;  %v2153_v37 = vpop.xlane.xlu1 %2152  ;;  %2216 = vadd.xlane.f32.xlu1 %v10413_v32 }
 0x4e5   :  { %8622 = vpow2.f32 %v2196_v57  ;;  %v2173_v48 = vsub.f32 %v10374_v39, %v2153_v37  ;;  %2214 = vadd.xlane.f32.xlu0 %v10415_v8  ;;  %v2151_v58 = vpop.xlane.xlu0 %2150 }
 0x4e6   :  { %8624 = vpow2.f32 %v2194_v25  ;;  %v2172_v26 = vsub.f32 %v10377_v23, %v2151_v58 }
 0x4e7   :  { %v10421_v46 = vpop.eup %8614  ;;  %v2200_v49 = vmul.f32 1.442695, %v2173_v48 }
 0x4e8   :  { %v10423_v10 = vpop.eup %8616  ;;  %v2198_v19 = vmul.f32 1.442695, %v2172_v26  ;;  %v2157_v42 = vpop.xlane.xlu1 %2156  ;;  %2220 = vadd.xlane.f32.xlu1 %v10421_v46 }
 0x4e9   :  { %8626 = vpow2.f32 %v2200_v49  ;;  %v2175_v47 = vsub.f32 %v10382_v20, %v2157_v42  ;;  %2218 = vadd.xlane.f32.xlu0 %v10423_v10  ;;  %v2155_v39 = vpop.xlane.xlu0 %2154 }
 0x4ea   :  { %8628 = vpow2.f32 %v2198_v19  ;;  %v2174_v27 = vsub.f32 %v10385_v38, %v2155_v39 }
 0x4eb   :  { %v10429_v63 = vpop.eup %8618  ;;  %v2204_v23 = vmul.f32 1.442695, %v2175_v47 }
 0x4ec   :  { %v10431_v6 = vpop.eup %8620  ;;  %v2202_v13 = vmul.f32 1.442695, %v2174_v27  ;;  %2224 = vadd.xlane.f32.xlu1 %v10429_v63  ;;  %v2161_v4 = vpop.xlane.xlu1 %2160 }
 0x4ed   :  { %8630 = vpow2.f32 %v2204_v23  ;;  %v2177_v51 = vsub.f32 %v10390_v11, %v2161_v4  ;;  %2222 = vadd.xlane.f32.xlu0 %v10431_v6  ;;  %v2159_v20 = vpop.xlane.xlu0 %2158 }
 0x4ee   :  { %8632 = vpow2.f32 %v2202_v13  ;;  %v2176_v9 = vsub.f32 %v10393_v31, %v2159_v20 }
 0x4ef   :  { %v10437_v55 = vpop.eup %8622  ;;  %v2208_v38 = vmul.f32 1.442695, %v2177_v51 }
 0x4f0   :  { %v10439_v61 = vpop.eup %8624  ;;  %v2206_v33 = vmul.f32 1.442695, %v2176_v9  ;;  %2228 = vadd.xlane.f32.xlu1 %v10437_v55 }
 0x4f1   :  { %8634 = vpow2.f32 %v2208_v38  ;;  %2226 = vadd.xlane.f32.xlu0 %v10439_v61 }
 0x4f2   :  { %8636 = vpow2.f32 %v2206_v33 }
 0x4f3   :  { %v10443_v30 = vpop.eup %8626 }
 0x4f4   :  { %v10445_v11 = vpop.eup %8628  ;;  %2232 = vadd.xlane.f32.xlu1 %v10443_v30 }
 0x4f5   :  { %2230 = vadd.xlane.f32.xlu0 %v10445_v11 }
 0x4f7   :  { %v10449_v31 = vpop.eup %8630 }
 0x4f8   :  { %v10451_v40 = vpop.eup %8632  ;;  %2236 = vadd.xlane.f32.xlu1 %v10449_v31 }
 0x4f9   :  { %2234 = vadd.xlane.f32.xlu0 %v10451_v40 }
 0x4fb   :  { %v10455_v18 = vpop.eup %8634 }
 0x4fc   :  { %v10457_v22 = vpop.eup %8636  ;;  %2240 = vadd.xlane.f32.xlu1 %v10455_v18 }
 0x4fd   :  { %2238 = vadd.xlane.f32.xlu0 %v10457_v22 }
 0x56d   :  { %v2213_v35 = vpop.xlane.xlu1 %2212 }
 0x56e   :  { %8638 = vrcp.f32 %v2213_v35  ;;  %v2211_v15 = vpop.xlane.xlu0 %2210 }
 0x56f   :  { %8640 = vrcp.f32 %v2211_v15 }
 0x571   :  { %v2217_v17 = vpop.xlane.xlu1 %2216 }
 0x572   :  { %8642 = vrcp.f32 %v2217_v17  ;;  %v2215_v12 = vpop.xlane.xlu0 %2214 }
 0x573   :  { %8644 = vrcp.f32 %v2215_v12 }
 0x575   :  { %v2221_v16 = vpop.xlane.xlu1 %2220 }
 0x576   :  { %8646 = vrcp.f32 %v2221_v16  ;;  %v2219_v28 = vpop.xlane.xlu0 %2218 }
 0x577   :  { %8648 = vrcp.f32 %v2219_v28 }
 0x578   :  { %v8639_v41 = vpop.eup %8638 }
 0x579   :  { %v8641_v24 = vpop.eup %8640  ;;  %v2225_v45 = vpop.xlane.xlu1 %2224  ;;  %v2259_v56 = vmul.f32 %v8639_v41, %v10405_v21 }
 0x57a   :  { %v2223_v14 = vpop.xlane.xlu0 %2222  ;;  %v2258_v54 = vmul.f32 %v8641_v24, %v10407_v36  ;;  %8650 = vrcp.f32 %v2225_v45 }
 0x57b   :  { %8652 = vrcp.f32 %v2223_v14  ;;  %v2364_v14 = vld [vmem:[#allocation2 + $0x68] sm:$0xff] }
 0x57c   :  { %v8643_v34 = vpop.eup %8642  ;;  %v8103_v29 = vpack.c.bf16 %v2259_v56, %v2258_v54  ;;  %v2363_v56 = vld [vmem:[#allocation2 + $0x60] sm:$0xff] }
 0x57d   :  { %v8645_v59 = vpop.eup %8644  ;;  %v2261_v57 = vmul.f32 %v8643_v34, %v10413_v32  ;;  %v2229_v26 = vpop.xlane.xlu1 %2228  ;;  %v8135_v54 = vpack.c.bf16 %v2364_v14, %v2363_v56  ;;  %v2366_v34 = vld [vmem:[#allocation2 + $0x78] sm:$0xff]  ;;  %v10649_v14 = vld [vmem:[%s13227_s3 + $0x40] sm:$0xff] }
 0x57e   :  { %8104 = vmatprep.subr.bf16.mxu0 %v8103_v29  ;;  %v2260_v25 = vmul.f32 %v8645_v59, %v10415_v8  ;;  %v2227_v49 = vpop.xlane.xlu0 %2226  ;;  %8654 = vrcp.f32 %v2229_v26 }
 0x57f   :  { %8106 = vmatpush3.bf16.xpose.msra.mxu0 %v8103_v29  ;;  %8656 = vrcp.f32 %v2227_v49  ;;  %v1962_v29 = vld [vmem:[#allocation2 + $0x1d0] sm:$0xff] }
 0x580   :  { %v8647_v37 = vpop.eup %8646  ;;  %v8107_v48 = vpack.c.bf16 %v2261_v57, %v2260_v25  ;;  %v10550_v57 = vld [vmem:[%s13226_s1 + $0x78] sm:$0xff]  ;;  %v2367_v25 = vld [vmem:[#allocation2 + $0x1e0] sm:$0xff] }
 0x581   :  { %v8649_v58 = vpop.eup %8648  ;;  %v2263_v36 = vmul.f32 %v8647_v37, %v10421_v46  ;;  %v2233_v32 = vpop.xlane.xlu1 %2232  ;;  %v10554_v37 = vld [vmem:[#allocation2 + $0x303] ss:$0 sm:$0xff] }
 0x582   :  { %8108 = vmatprep.subr.bf16.mxu0 %v8107_v48  ;;  %v2262_v21 = vmul.f32 %v8649_v58, %v10423_v10  ;;  %v2231_v8 = vpop.xlane.xlu0 %2230  ;;  %8658 = vrcp.f32 %v2233_v32 }
 0x583   :  { %8660 = vrcp.f32 %v2231_v8 }
 0x584   :  { %v8651_v19 = vpop.eup %8650  ;;  %v8111_v42 = vpack.c.bf16 %v2263_v36, %v2262_v21  ;;  %v10561_v21 = vld [vmem:[%s13227_s3 + $0x8] sm:$0xff] }
 0x585   :  { %v8653_v47 = vpop.eup %8652  ;;  %v2265_v27 = vmul.f32 %v8651_v19, %v10429_v63  ;;  %v2237_v46 = vpop.xlane.xlu1 %2236 }
 0x586   :  { %v2264_v39 = vmul.f32 %v8653_v47, %v10431_v6  ;;  %v2235_v4 = vpop.xlane.xlu0 %2234  ;;  %8662 = vrcp.f32 %v2237_v46 }
 0x587   :  { %8110 = vmatpush3.bf16.xpose.msra.mxu0 %v8107_v48  ;;  %8664 = vrcp.f32 %v2235_v4 }
 0x588   :  { %8112 = vmatprep.subr.bf16.mxu0 %v8111_v42  ;;  %v8655_v23 = vpop.eup %8654  ;;  %v8115_v13 = vpack.c.bf16 %v2265_v27, %v2264_v39  ;;  %v10581_v27 = vld [vmem:[%s13227_s3 + $0x18] sm:$0xff] }
 0x589   :  { %v8657_v10 = vpop.eup %8656  ;;  %v2267_v20 = vmul.f32 %v8655_v23, %v10437_v55  ;;  %v2241_v63 = vpop.xlane.xlu1 %2240 }
 0x58a   :  { %v2266_v51 = vmul.f32 %v8657_v10, %v10439_v61  ;;  %v2239_v33 = vpop.xlane.xlu0 %2238  ;;  %8666 = vrcp.f32 %v2241_v63  ;;  %v10589_v10 = vld [vmem:[%s13227_s3 + $0x10] sm:$0xff]  ;;  %v10609_v63 = vld [vmem:[%s13227_s3 + $0x20] sm:$0xff] }
 0x58b   :  { %8668 = vrcp.f32 %v2239_v33 }
 0x58c   :  { %v8659_v9 = vpop.eup %8658  ;;  %v8119_v38 = vpack.c.bf16 %v2267_v20, %v2266_v51 }
 0x58d   :  { %v8661_v6 = vpop.eup %8660  ;;  %v2269_v15 = vmul.f32 %v8659_v9, %v10443_v30  ;;  %v10601_v9 = vld [vmem:[%s13227_s3 + $0x28] sm:$0xff] }
 0x58e   :  { %v2268_v35 = vmul.f32 %v8661_v6, %v10445_v11 }
 0x58f   :  { %8114 = vmatpush3.bf16.xpose.msra.mxu0 %v8111_v42  ;;  %v10569_v42 = vld [vmem:[%s13227_s3] sm:$0xff] }
 0x590   :  { %8116 = vmatprep.subr.bf16.mxu0 %v8115_v13  ;;  %v8663_v17 = vpop.eup %8662  ;;  %v8123_v12 = vpack.c.bf16 %v2269_v15, %v2268_v35 }
 0x591   :  { %v8665_v61 = vpop.eup %8664  ;;  %v2271_v16 = vmul.f32 %v8663_v17, %v10449_v31  ;;  %v1961_v31 = vld [vmem:[#allocation2 + $0x1c8] sm:$0xff] }
 0x592   :  { %v2270_v55 = vmul.f32 %v8665_v61, %v10451_v40  ;;  %v2365_v40 = vld [vmem:[#allocation2 + $0x70] sm:$0xff] }
 0x593   :  { %v8139_v59 = vpack.c.bf16 %v2366_v34, %v2365_v40 }
 0x594   :  { %v8667_v28 = vpop.eup %8666  ;;  %v8127_v41 = vpack.c.bf16 %v2271_v16, %v2270_v55  ;;  %v10629_v16 = vld [vmem:[%s13227_s3 + $0x30] sm:$0xff] }
 0x595   :  { %v8669_v24 = vpop.eup %8668  ;;  %v2273_v30 = vmul.f32 %v8667_v28, %v10455_v18  ;;  %v10543_v18 = vld [vmem:[%s13226_s1 + $0x70] sm:$0xff] }
 0x596   :  { %v2272_v11 = vmul.f32 %v8669_v24, %v10457_v22  ;;  %v1963_v22 = vld [vmem:[#allocation2 + $0x1d8] sm:$0xff] }
 0x597   :  { %8118 = vmatpush3.bf16.xpose.msra.mxu0 %v8115_v13 }
 0x598   :  { %8120 = vmatprep.subr.bf16.mxu0 %v8119_v38  ;;  %v8131_v45 = vpack.c.bf16 %v2273_v30, %v2272_v11  ;;  %v10641_v30 = vld [vmem:[%s13227_s3 + $0x48] sm:$0xff] }
 0x59f   :  { %8122 = vmatpush3.bf16.xpose.msra.mxu0 %v8119_v38 }
 0x5a0   :  { %8124 = vmatprep.subr.bf16.mxu0 %v8123_v12 }
 0x5a7   :  { %8126 = vmatpush3.bf16.xpose.msra.mxu0 %v8123_v12  ;;  %v10621_v12 = vld [vmem:[%s13227_s3 + $0x38] sm:$0xff] }
 0x5a8   :  { %8128 = vmatprep.subr.bf16.mxu0 %v8127_v41 }
 0x5af   :  { %8130 = vmatpush3.bf16.xpose.msra.mxu0 %v8127_v41 }
 0x5b0   :  { %8132 = vmatprep.subr.bf16.mxu0 %v8131_v45 }
 0x5b7   :  { %8134 = vmatpush3.bf16.xpose.msra.mxu0 %v8131_v45 }
 0x5b8   :  { %8136 = vmatprep.subr.bf16.mxu0 %v8135_v54 }
 0x5be   :  { %7372 = vmatmul.mubr.f32.vlgmr.msra.gmra.mrb[118].mxu0 %v1961_v31 }
 0x5bf   :  { %7374 = vmatprep.mubr.f32.mxu0 %v1962_v29  ;;  %8138 = vmatpush3.bf16.msra.mxu0 %v8135_v54  ;;  %v10661_v29 = vld [vmem:[%s13227_s3 + $0x58] sm:$0xff] }
 0x5c0   :  { %8140 = vmatprep.subr.bf16.mxu0 %v8139_v59 }
 0x5c2   :  { %7375 = vmatmul.mubr.f32.gmra.mrb[120].mxu0 %v1963_v22 }
 0x5c3   :  { %8142 = vmatpush3.bf16.msra.mxu0 %v8139_v59  ;;  %7385 = vmatprep.mubr.msk.f32.mxu0 %vm122_vm0, %v10260_v1  ;;  %v10494_v1 = vld [vmem:[%s13226_s1 + $0x38] sm:$0xff] }
 0x5c6   :  { %7386 = vmatmul.mubr.msk.f32.vlgmr.msra.gmra.mrb[122].mxu0 %vm122_vm0, %v10267_v50  ;;  %v10501_v50 = vld [vmem:[%s13226_s1 + $0x40] sm:$0xff] }
 0x5c7   :  { %7388 = vmatprep.mubr.msk.f32.mxu0 %vm122_vm0, %v10274_v62  ;;  %v10508_v62 = vld [vmem:[%s13226_s1 + $0x48] sm:$0xff] }
 0x5ca   :  { %7389 = vmatmul.mubr.msk.f32.gmra.mrb[124].mxu0 %vm122_vm0, %v10281_v3  ;;  %v10515_v3 = vld [vmem:[%s13226_s1 + $0x50] sm:$0xff] }
 0x5cb   :  { %7391 = vmatprep.mubr.msk.f32.mxu0 %vm122_vm0, %v10288_v52  ;;  %v10522_v52 = vld [vmem:[%s13226_s1 + $0x58] sm:$0xff] }
 0x5ce   :  { %7392 = vmatmul.mubr.msk.f32.gmra.mrb[126].mxu0 %vm122_vm0, %v10295_v53  ;;  %v10529_v53 = vld [vmem:[%s13226_s1 + $0x60] sm:$0xff] }
 0x5cf   :  { %7394 = vmatprep.mubr.msk.f32.mxu0 %vm122_vm0, %v10302_v60  ;;  %v10536_v60 = vld [vmem:[%s13226_s1 + $0x68] sm:$0xff] }
 0x5d2   :  { %7395 = vmatmul.mubr.msk.f32.gmra.mrb[128].mxu0 %vm122_vm0, %v10494_v1 }
 0x5d3   :  { %7397 = vmatprep.mubr.msk.f32.mxu0 %vm122_vm0, %v10501_v50 }
 0x5d6   :  { %7398 = vmatmul.mubr.msk.f32.gmra.mrb[130].mxu0 %vm122_vm0, %v10508_v62 }
 0x5d7   :  { %7400 = vmatprep.mubr.msk.f32.mxu0 %vm122_vm0, %v10515_v3 }
 0x5da   :  { %7401 = vmatmul.mubr.msk.f32.gmra.mrb[132].mxu0 %vm122_vm0, %v10522_v52 }
 0x5db   :  { %7403 = vmatprep.mubr.msk.f32.mxu0 %vm122_vm0, %v10529_v53 }
 0x5de   :  { %7404 = vmatmul.mubr.msk.f32.gmra.mrb[134].mxu0 %vm122_vm0, %v10536_v60 }
 0x5df   :  { %7406 = vmatprep.mubr.msk.f32.mxu0 %vm122_vm0, %v10543_v18 }
 0x5e2   :  { %7407 = vmatmul.mubr.msk.f32.gmra.mrb[136].mxu0 %vm122_vm0, %v10550_v57 }
 0x5e3   :  { %7441 = vmatprep.mubr.f32.mxu0 %v2367_v25  ;;  %v10669_v25 = vld [vmem:[%s13227_s3 + $0x50] sm:$0xff] }
 0x699   :  { %v7387_v48 = vpop.f32.mrb[122].mxu0 }
 0x69a   :  { %v2448_v58 = vadd.f32 %v7387_v48, %v10554_v37  ;;  %v2442_v26 = vpop.f32.mrb[123].mxu0 }
 0x69b   :  { %v2443_v49 = vadd.f32 %v10554_v37, %v2442_v26 }
 0x69c   :  { %v10564_v36 = vadd.f32 %v10561_v21, %v2448_v58 }
 0x69d   :  { %v7390_v19 = vpop.f32.mrb[124].mxu0  ;;  %v10572_v47 = vadd.f32 %v10569_v42, %v2443_v49 }
 0x69e   :  { %v2458_v32 = vadd.f32 %v7390_v19, %v10554_v37  ;;  %2539 = vmax.xlane.f32.xlu1 %v10564_v36  ;;  %v2452_v8 = vpop.f32.mrb[125].mxu0  ;;  %v10681_v19 = vld [vmem:[%s13227_s3 + $0x68] sm:$0xff] }
 0x69f   :  { %v2453_v39 = vadd.f32 %v10554_v37, %v2452_v8  ;;  %2537 = vmax.xlane.f32.xlu0 %v10572_v47 }
 0x6a0   :  { %v10584_v23 = vadd.f32 %v10581_v27, %v2458_v32 }
 0x6a1   :  { %v7393_v13 = vpop.f32.mrb[126].mxu0  ;;  %v10592_v46 = vadd.f32 %v10589_v10, %v2453_v39  ;;  %v10689_v39 = vld [vmem:[%s13227_s3 + $0x60] sm:$0xff] }
 0x6a2   :  { %v2468_v4 = vadd.f32 %v7393_v13, %v10554_v37  ;;  %2543 = vmax.xlane.f32.xlu1 %v10584_v23  ;;  %v2462_v51 = vpop.f32.mrb[127].mxu0 }
 0x6a3   :  { %v2463_v20 = vadd.f32 %v10554_v37, %v2462_v51  ;;  %2541 = vmax.xlane.f32.xlu0 %v10592_v46 }
 0x6a4   :  { %v10604_v38 = vadd.f32 %v10601_v9, %v2468_v4 }
 0x6a5   :  { %v7396_v6 = vpop.f32.mrb[128].mxu0  ;;  %v10612_v33 = vadd.f32 %v10609_v63, %v2463_v20 }
 0x6a6   :  { %v2478_v35 = vadd.f32 %v7396_v6, %v10554_v37  ;;  %2547 = vmax.xlane.f32.xlu1 %v10604_v38  ;;  %v2472_v15 = vpop.f32.mrb[129].mxu0  ;;  %v10701_v6 = vld [vmem:[%s13227_s3 + $0x78] sm:$0xff] }
 0x6a7   :  { %v2473_v17 = vadd.f32 %v10554_v37, %v2472_v15  ;;  %2545 = vmax.xlane.f32.xlu0 %v10612_v33  ;;  %v10709_v15 = vld [vmem:[%s13227_s3 + $0x70] sm:$0xff] }
 0x6a8   :  { %v10624_v61 = vadd.f32 %v10621_v12, %v2478_v35 }
 0x6a9   :  { %v7399_v55 = vpop.f32.mrb[130].mxu0  ;;  %v10632_v28 = vadd.f32 %v10629_v16, %v2473_v17 }
 0x6aa   :  { %v2488_v41 = vadd.f32 %v7399_v55, %v10554_v37  ;;  %2551 = vmax.xlane.f32.xlu1 %v10624_v61  ;;  %v2482_v24 = vpop.f32.mrb[131].mxu0 }
 0x6ab   :  { %v2483_v11 = vadd.f32 %v10554_v37, %v2482_v24  ;;  %2549 = vmax.xlane.f32.xlu0 %v10632_v28 }
 0x6ac   :  { %v10644_v45 = vadd.f32 %v10641_v30, %v2488_v41 }
 0x6ad   :  { %v7402_v56 = vpop.f32.mrb[132].mxu0  ;;  %v10652_v54 = vadd.f32 %v10649_v14, %v2483_v11 }
 0x6ae   :  { %v2498_v40 = vadd.f32 %v7402_v56, %v10554_v37  ;;  %2555 = vmax.xlane.f32.xlu1 %v10644_v45  ;;  %v2492_v34 = vpop.f32.mrb[133].mxu0 }
 0x6af   :  { %v2493_v31 = vadd.f32 %v10554_v37, %v2492_v34  ;;  %2553 = vmax.xlane.f32.xlu0 %v10652_v54 }
 0x6b0   :  { %v10664_v59 = vadd.f32 %v10661_v29, %v2498_v40 }
 0x6b1   :  { %v7405_v22 = vpop.f32.mrb[134].mxu0  ;;  %v10672_v48 = vadd.f32 %v10669_v25, %v2493_v31 }
 0x6b2   :  { %v2508_v58 = vadd.f32 %v7405_v22, %v10554_v37  ;;  %2559 = vmax.xlane.f32.xlu1 %v10664_v59  ;;  %v2502_v26 = vpop.f32.mrb[135].mxu0 }
 0x6b3   :  { %v2503_v49 = vadd.f32 %v10554_v37, %v2502_v26  ;;  %2557 = vmax.xlane.f32.xlu0 %v10672_v48 }
 0x6b4   :  { %v10684_v32 = vadd.f32 %v10681_v19, %v2508_v58 }
 0x6b5   :  { %v7408_v8 = vpop.f32.mrb[136].mxu0  ;;  %v10692_v13 = vadd.f32 %v10689_v39, %v2503_v49 }
 0x6b6   :  { %v2518_v4 = vadd.f32 %v7408_v8, %v10554_v37  ;;  %2563 = vmax.xlane.f32.xlu1 %v10684_v32  ;;  %v2512_v51 = vpop.f32.mrb[137].mxu0 }
 0x6b7   :  { %v2513_v20 = vadd.f32 %v10554_v37, %v2512_v51  ;;  %2561 = vmax.xlane.f32.xlu0 %v10692_v13 }
 0x6b8   :  { %v10704_v35 = vadd.f32 %v10701_v6, %v2518_v4 }
 0x6b9   :  { %v10712_v17 = vadd.f32 %v10709_v15, %v2513_v20 }
 0x6ba   :  { %2567 = vmax.xlane.f32.xlu1 %v10704_v35 }
 0x6bb   :  { %2565 = vmax.xlane.f32.xlu0 %v10712_v17 }
 0x72b   :  { %v2540_v37 = vpop.xlane.xlu1 %2539 }
 0x72c   :  { %v2570_v55 = vsub.f32 %v10564_v36, %v2540_v37  ;;  %v2538_v41 = vpop.xlane.xlu0 %2537 }
 0x72d   :  { %v2569_v24 = vsub.f32 %v10572_v47, %v2538_v41 }
 0x72e   :  { %v2587_v11 = vmul.f32 1.442695, %v2570_v55 }
 0x72f   :  { %v2585_v56 = vmul.f32 1.442695, %v2569_v24  ;;  %v2544_v40 = vpop.xlane.xlu1 %2543 }
 0x730   :  { %8670 = vpow2.f32 %v2587_v11  ;;  %v2572_v34 = vsub.f32 %v10584_v23, %v2544_v40  ;;  %v2542_v31 = vpop.xlane.xlu0 %2541 }
 0x731   :  { %8672 = vpow2.f32 %v2585_v56  ;;  %v2571_v22 = vsub.f32 %v10592_v46, %v2542_v31 }
 0x732   :  { %v2591_v58 = vmul.f32 1.442695, %v2572_v34 }
 0x733   :  { %v2589_v26 = vmul.f32 1.442695, %v2571_v22  ;;  %v2548_v49 = vpop.xlane.xlu1 %2547 }
 0x734   :  { %8674 = vpow2.f32 %v2591_v58  ;;  %v2574_v8 = vsub.f32 %v10604_v38, %v2548_v49  ;;  %v2546_v36 = vpop.xlane.xlu0 %2545 }
 0x735   :  { %8676 = vpow2.f32 %v2589_v26  ;;  %v2573_v47 = vsub.f32 %v10612_v33, %v2546_v36 }
 0x736   :  { %v2595_v4 = vmul.f32 1.442695, %v2574_v8 }
 0x737   :  { %v2593_v51 = vmul.f32 1.442695, %v2573_v47  ;;  %v2552_v20 = vpop.xlane.xlu1 %2551 }
 0x738   :  { %8678 = vpow2.f32 %v2595_v4  ;;  %v2576_v23 = vsub.f32 %v10624_v61, %v2552_v20  ;;  %v2550_v37 = vpop.xlane.xlu0 %2549 }
 0x739   :  { %8680 = vpow2.f32 %v2593_v51  ;;  %v2575_v46 = vsub.f32 %v10632_v28, %v2550_v37 }
 0x73a   :  { %v10724_v55 = vpop.eup %8670  ;;  %v2599_v41 = vmul.f32 1.442695, %v2576_v23 }
 0x73b   :  { %v10726_v24 = vpop.eup %8672  ;;  %v2597_v38 = vmul.f32 1.442695, %v2575_v46  ;;  %v2556_v11 = vpop.xlane.xlu1 %2555  ;;  %2619 = vadd.xlane.f32.xlu1 %v10724_v55 }
 0x73c   :  { %8682 = vpow2.f32 %v2599_v41  ;;  %v2578_v33 = vsub.f32 %v10644_v45, %v2556_v11  ;;  %2617 = vadd.xlane.f32.xlu0 %v10726_v24  ;;  %v2554_v56 = vpop.xlane.xlu0 %2553 }
 0x73d   :  { %8684 = vpow2.f32 %v2597_v38  ;;  %v2577_v61 = vsub.f32 %v10652_v54, %v2554_v56 }
 0x73e   :  { %v10732_v40 = vpop.eup %8674  ;;  %v2603_v28 = vmul.f32 1.442695, %v2578_v33 }
 0x73f   :  { %v10734_v34 = vpop.eup %8676  ;;  %v2601_v31 = vmul.f32 1.442695, %v2577_v61  ;;  %v2560_v22 = vpop.xlane.xlu1 %2559  ;;  %2623 = vadd.xlane.f32.xlu1 %v10732_v40 }
 0x740   :  { %8686 = vpow2.f32 %v2603_v28  ;;  %v2580_v58 = vsub.f32 %v10664_v59, %v2560_v22  ;;  %2621 = vadd.xlane.f32.xlu0 %v10734_v34  ;;  %v2558_v45 = vpop.xlane.xlu0 %2557  ;;  %v6194_v28 = vld [vmem:[#allocation2 + $0x300] ss:$0 sm:$0xff] }
 0x741   :  { %8688 = vpow2.f32 %v2601_v31  ;;  %v2579_v26 = vsub.f32 %v10672_v48, %v2558_v45  ;;  %v1219_v22 = vadd.f32 %v9976_v43, %v6194_v28  ;;  %v1214_v45 = vadd.f32 %v6194_v28, %v9978_v44  ;;  %v13286_v44 = vld [vmem:[#allocation5_spill] sm:$0xff] }
 0x742   :  { %v10740_v49 = vpop.eup %8678  ;;  %v2607_v54 = vmul.f32 1.442695, %v2580_v58 }
 0x743   :  { %v10742_v8 = vpop.eup %8680  ;;  %v2605_v36 = vmul.f32 1.442695, %v2579_v26  ;;  %v2564_v47 = vpop.xlane.xlu1 %2563  ;;  %2627 = vadd.xlane.f32.xlu1 %v10740_v49 }
 0x744   :  { %8690 = vpow2.f32 %v2607_v54  ;;  %v2582_v4 = vsub.f32 %v10684_v32, %v2564_v47  ;;  %2625 = vadd.xlane.f32.xlu0 %v10742_v8  ;;  %v2562_v59 = vpop.xlane.xlu0 %2561  ;;  %v13284_v54 = vld [vmem:[#allocation3_spill] sm:$0xff]  ;;  %v10784_v47 = vadd.f32 %v10561_v21, %v1219_v22 }
 0x745   :  { %8692 = vpow2.f32 %v2605_v36  ;;  %v2581_v51 = vsub.f32 %v10692_v13, %v2562_v59  ;;  %v1229_v36 = vadd.f32 %v13284_v54, %v6194_v28 }
 0x746   :  { %v10748_v20 = vpop.eup %8682  ;;  %v2611_v48 = vmul.f32 1.442695, %v2582_v4  ;;  %v13285_v4 = vld [vmem:[#allocation4_spill] sm:$0xff] }
 0x747   :  { %v10750_v23 = vpop.eup %8684  ;;  %v2609_v37 = vmul.f32 1.442695, %v2581_v51  ;;  %2631 = vadd.xlane.f32.xlu1 %v10748_v20  ;;  %v2568_v46 = vpop.xlane.xlu1 %2567  ;;  %v1224_v59 = vadd.f32 %v6194_v28, %v13285_v4  ;;  %v10788_v51 = vadd.f32 %v10569_v42, %v1214_v45  ;;  %v10793_v43 = vadd.f32 %v10581_v27, %v1229_v36  ;;  %v13289_v27 = vld [vmem:[#allocation8_spill] sm:$0xff]  ;;  %v13292_v36 = vld [vmem:[#allocation11_spill] sm:$0xff] }
 0x748   :  { %8694 = vpow2.f32 %v2611_v48  ;;  %v2584_v41 = vsub.f32 %v10704_v35, %v2568_v46  ;;  %2629 = vadd.xlane.f32.xlu0 %v10750_v23  ;;  %v2566_v32 = vpop.xlane.xlu0 %2565  ;;  %v1239_v48 = vadd.f32 %v13286_v44, %v6194_v28  ;;  %v13287_v46 = vld [vmem:[#allocation6_spill] sm:$0xff]  ;;  %v1269_v4 = vadd.f32 %v13292_v36, %v6194_v28 }
 0x749   :  { %8696 = vpow2.f32 %v2609_v37  ;;  %v2583_v38 = vsub.f32 %v10712_v17, %v2566_v32  ;;  %v10797_v37 = vadd.f32 %v10589_v10, %v1224_v59  ;;  %v1234_v21 = vadd.f32 %v6194_v28, %v13287_v46 }
 0x74a   :  { %v10756_v11 = vpop.eup %8686  ;;  %v2615_v13 = vmul.f32 1.442695, %v2584_v41  ;;  %v10803_v42 = vadd.f32 %v10601_v9, %v1239_v48  ;;  %v13288_v41 = vld [vmem:[#allocation7_spill] sm:$0xff]  ;;  %v13291_v9 = vld [vmem:[#allocation10_spill] sm:$0xff]  ;;  %v13294_v48 = vld [vmem:[#allocation13_spill] sm:$0xff] }
 0x74b   :  { %v10758_v33 = vpop.eup %8688  ;;  %v2613_v56 = vmul.f32 1.442695, %v2583_v38  ;;  %2635 = vadd.xlane.f32.xlu1 %v10756_v11  ;;  %v1249_v32 = vadd.f32 %v13288_v41, %v6194_v28  ;;  %v10807_v38 = vadd.f32 %v10609_v63, %v1234_v21  ;;  %v1254_v54 = vadd.f32 %v6194_v28, %v13291_v9 }
 0x74c   :  { %8698 = vpow2.f32 %v2615_v13  ;;  %2633 = vadd.xlane.f32.xlu0 %v10758_v33  ;;  %v1244_v13 = vadd.f32 %v6194_v28, %v13289_v27  ;;  %v1279_v46 = vadd.f32 %v13294_v48, %v6194_v28 }
 0x74d   :  { %8700 = vpow2.f32 %v2613_v56  ;;  %v10813_v10 = vadd.f32 %v10621_v12, %v1249_v32  ;;  %v13290_v56 = vld [vmem:[#allocation9_spill] sm:$0xff]  ;;  %v10827_v59 = vadd.f32 %v10649_v14, %v1254_v54  ;;  %v13293_v12 = vld [vmem:[#allocation12_spill] sm:$0xff]  ;;  %v13296_v32 = vld [vmem:[#allocation15_spill] sm:$0xff] }
 0x74e   :  { %v10762_v61 = vpop.eup %8690  ;;  %v1259_v22 = vadd.f32 %v13290_v56, %v6194_v28  ;;  %v10817_v45 = vadd.f32 %v10629_v16, %v1244_v13  ;;  %v1264_v44 = vadd.f32 %v6194_v28, %v13293_v12  ;;  %v10833_v16 = vadd.f32 %v10661_v29, %v1269_v4  ;;  %v13297_v29 = vld [vmem:[#allocation16_spill] sm:$0xff] }
 0x74f   :  { %v10764_v35 = vpop.eup %8692  ;;  %2639 = vadd.xlane.f32.xlu1 %v10762_v61  ;;  %v10843_v14 = vadd.f32 %v10681_v19, %v1279_v46  ;;  %v1289_v27 = vadd.f32 %v13296_v32, %v6194_v28  ;;  %v1284_v56 = vadd.f32 %v6194_v28, %v13297_v29 }
 0x750   :  { %2637 = vadd.xlane.f32.xlu0 %v10764_v35  ;;  %v10823_v63 = vadd.f32 %v10641_v30, %v1259_v22  ;;  %v10837_v21 = vadd.f32 %v10669_v25, %v1264_v44  ;;  %v13295_v30 = vld [vmem:[#allocation14_spill] sm:$0xff] }
 0x751   :  { %v1274_v41 = vadd.f32 %v6194_v28, %v13295_v30  ;;  %v10853_v25 = vadd.f32 %v10701_v6, %v1289_v27  ;;  %v10856_v22 = vadd.f32 %v10709_v15, %v1284_v56 }
 0x752   :  { %v10768_v17 = vpop.eup %8694 }
 0x753   :  { %v10770_v31 = vpop.eup %8696  ;;  %2643 = vadd.xlane.f32.xlu1 %v10768_v17  ;;  %v10847_v13 = vadd.f32 %v10689_v39, %v1274_v41 }
 0x754   :  { %2641 = vadd.xlane.f32.xlu0 %v10770_v31 }
 0x756   :  { %v10775_v58 = vpop.eup %8698 }
 0x757   :  { %v10778_v26 = vpop.eup %8700  ;;  %2647 = vadd.xlane.f32.xlu1 %v10775_v58 }
 0x758   :  { %2645 = vadd.xlane.f32.xlu0 %v10778_v26 }
 0x75b   :  { %1326 = vmax.xlane.f32.xlu1 %v10784_v47 }
 0x75c   :  { %1324 = vmax.xlane.f32.xlu0 %v10788_v51 }
 0x75f   :  { %1330 = vmax.xlane.f32.xlu1 %v10793_v43 }
 0x760   :  { %1328 = vmax.xlane.f32.xlu0 %v10797_v37 }
 0x763   :  { %1334 = vmax.xlane.f32.xlu1 %v10803_v42 }
 0x764   :  { %1332 = vmax.xlane.f32.xlu0 %v10807_v38 }
 0x767   :  { %1338 = vmax.xlane.f32.xlu1 %v10813_v10 }
 0x768   :  { %1336 = vmax.xlane.f32.xlu0 %v10817_v45 }
 0x76b   :  { %1342 = vmax.xlane.f32.xlu1 %v10823_v63 }
 0x76c   :  { %1340 = vmax.xlane.f32.xlu0 %v10827_v59 }
 0x76f   :  { %1346 = vmax.xlane.f32.xlu1 %v10833_v16 }
 0x770   :  { %1344 = vmax.xlane.f32.xlu0 %v10837_v21 }
 0x773   :  { %1350 = vmax.xlane.f32.xlu1 %v10843_v14 }
 0x774   :  { %1348 = vmax.xlane.f32.xlu0 %v10847_v13 }
 0x777   :  { %1354 = vmax.xlane.f32.xlu1 %v10853_v25 }
 0x778   :  { %1352 = vmax.xlane.f32.xlu0 %v10856_v22 }
 0x7c8   :  { %v2620_v19 = vpop.xlane.xlu1 %2619 }
 0x7c9   :  { %8702 = vrcp.f32 %v2620_v19  ;;  %v2618_v39 = vpop.xlane.xlu0 %2617 }
 0x7ca   :  { %8704 = vrcp.f32 %v2618_v39 }
 0x7cc   :  { %v2624_v9 = vpop.xlane.xlu1 %2623 }
 0x7cd   :  { %8706 = vrcp.f32 %v2624_v9  ;;  %v2622_v28 = vpop.xlane.xlu0 %2621 }
 0x7ce   :  { %8708 = vrcp.f32 %v2622_v28 }
 0x7d0   :  { %v2628_v54 = vpop.xlane.xlu1 %2627 }
 0x7d1   :  { %8710 = vrcp.f32 %v2628_v54  ;;  %v2626_v36 = vpop.xlane.xlu0 %2625 }
 0x7d2   :  { %8712 = vrcp.f32 %v2626_v36 }
 0x7d3   :  { %v8703_v6 = vpop.eup %8702 }
 0x7d4   :  { %v8705_v4 = vpop.eup %8704  ;;  %v2632_v15 = vpop.xlane.xlu1 %2631  ;;  %v2666_v12 = vmul.f32 %v8703_v6, %v10724_v55 }
 0x7d5   :  { %v2630_v44 = vpop.xlane.xlu0 %2629  ;;  %v2665_v48 = vmul.f32 %v8705_v4, %v10726_v24  ;;  %8714 = vrcp.f32 %v2632_v15 }
 0x7d6   :  { %8716 = vrcp.f32 %v2630_v44 }
 0x7d7   :  { %v8707_v46 = vpop.eup %8706  ;;  %v8143_v30 = vpack.c.bf16 %v2666_v12, %v2665_v48 }
 0x7d8   :  { %v8709_v41 = vpop.eup %8708  ;;  %v2668_v32 = vmul.f32 %v8707_v46, %v10732_v40  ;;  %v2636_v39 = vpop.xlane.xlu1 %2635 }
 0x7d9   :  { %8144 = vmatprep.subr.bf16.mxu0 %v8143_v30  ;;  %v2667_v27 = vmul.f32 %v8709_v41, %v10734_v34  ;;  %v2634_v9 = vpop.xlane.xlu0 %2633  ;;  %8718 = vrcp.f32 %v2636_v39 }
 0x7da   :  { %8146 = vmatpush3.bf16.xpose.msra.mxu0 %v8143_v30  ;;  %8720 = vrcp.f32 %v2634_v9 }
 0x7db   :  { %v8711_v29 = vpop.eup %8710  ;;  %v8147_v56 = vpack.c.bf16 %v2668_v32, %v2667_v27 }
 0x7dc   :  { %v8713_v19 = vpop.eup %8712  ;;  %v2670_v24 = vmul.f32 %v8711_v29, %v10740_v49  ;;  %v2640_v40 = vpop.xlane.xlu1 %2639 }
 0x7dd   :  { %8148 = vmatprep.subr.bf16.mxu0 %v8147_v56  ;;  %v2669_v55 = vmul.f32 %v8713_v19, %v10742_v8  ;;  %v2638_v34 = vpop.xlane.xlu0 %2637  ;;  %8722 = vrcp.f32 %v2640_v40 }
 0x7de   :  { %8724 = vrcp.f32 %v2638_v34  ;;  %v2773_v34 = vld [vmem:[#allocation2 + $0x98] sm:$0xff] }
 0x7df   :  { %v8715_v28 = vpop.eup %8714  ;;  %v8151_v54 = vpack.c.bf16 %v2670_v24, %v2669_v55 }
 0x7e0   :  { %v8717_v36 = vpop.eup %8716  ;;  %v2672_v4 = vmul.f32 %v8715_v28, %v10748_v20  ;;  %v2644_v49 = vpop.xlane.xlu1 %2643 }
 0x7e1   :  { %v2671_v6 = vmul.f32 %v8717_v36, %v10750_v23  ;;  %v2642_v44 = vpop.xlane.xlu0 %2641  ;;  %8726 = vrcp.f32 %v2644_v49  ;;  %v2771_v36 = vld [vmem:[#allocation2 + $0x88] sm:$0xff]  ;;  %v3196_v49 = vld [vmem:[#allocation2 + $0xb0] sm:$0xff] }
 0x7e2   :  { %8150 = vmatpush3.bf16.xpose.msra.mxu0 %v8147_v56  ;;  %8728 = vrcp.f32 %v2642_v44  ;;  %v3197_v44 = vld [vmem:[#allocation2 + $0xb8] sm:$0xff] }
 0x7e3   :  { %8152 = vmatprep.subr.bf16.mxu0 %v8151_v54  ;;  %v8719_v15 = vpop.eup %8718  ;;  %v8155_v12 = vpack.c.bf16 %v2672_v4, %v2671_v6  ;;  %v2369_v6 = vld [vmem:[#allocation2 + $0x1f0] sm:$0xff] }
 0x7e4   :  { %v8721_v8 = vpop.eup %8720  ;;  %v2674_v46 = vmul.f32 %v8719_v15, %v10756_v11  ;;  %v2648_v20 = vpop.xlane.xlu1 %2647  ;;  %v3194_v15 = vld [vmem:[#allocation2 + $0xa0] sm:$0xff] }
 0x7e5   :  { %v2673_v48 = vmul.f32 %v8721_v8, %v10758_v33  ;;  %v2646_v32 = vpop.xlane.xlu0 %2645  ;;  %8730 = vrcp.f32 %v2648_v20  ;;  %v10879_v8 = vld [vmem:[%s13226_s1] sm:$0xff]  ;;  %v10900_v20 = vld [vmem:[%s13226_s1 + $0x18] sm:$0xff] }
 0x7e6   :  { %8732 = vrcp.f32 %v2646_v32 }
 0x7e7   :  { %v8723_v30 = vpop.eup %8722  ;;  %v8159_v41 = vpack.c.bf16 %v2674_v46, %v2673_v48  ;;  %v10886_v48 = vld [vmem:[%s13226_s1 + $0x8] sm:$0xff]  ;;  %v8219_v46 = vpack.c.bf16 %v3197_v44, %v3196_v49 }
 0x7e8   :  { %v8725_v23 = vpop.eup %8724  ;;  %v2676_v29 = vmul.f32 %v8723_v30, %v10762_v61  ;;  %v10893_v30 = vld [vmem:[%s13226_s1 + $0x10] sm:$0xff]  ;;  %v5247_v49 = vld [vmem:[#allocation2 + $0x148] sm:$0xff] }
 0x7e9   :  { %v2675_v27 = vmul.f32 %v8725_v23, %v10764_v35  ;;  %v3602_v23 = vld [vmem:[#allocation2 + $0xc8] sm:$0xff] }
 0x7ea   :  { %8154 = vmatpush3.bf16.xpose.msra.mxu0 %v8151_v54  ;;  %v2770_v54 = vld [vmem:[#allocation2 + $0x80] sm:$0xff] }
 0x7eb   :  { %8156 = vmatprep.subr.bf16.mxu0 %v8155_v12  ;;  %v8727_v56 = vpop.eup %8726  ;;  %v8163_v19 = vpack.c.bf16 %v2676_v29, %v2675_v27  ;;  %v8175_v40 = vpack.c.bf16 %v2771_v36, %v2770_v54  ;;  %v10907_v27 = vld [vmem:[%s13226_s1 + $0x20] sm:$0xff]  ;;  %v10914_v29 = vld [vmem:[%s13226_s1 + $0x28] sm:$0xff] }
 0x7ec   :  { %v8729_v33 = vpop.eup %8728  ;;  %v2678_v39 = vmul.f32 %v8727_v56, %v10768_v17  ;;  %v2368_v17 = vld [vmem:[#allocation2 + $0x1e8] sm:$0xff]  ;;  %v10921_v56 = vld [vmem:[%s13226_s1 + $0x30] sm:$0xff] }
 0x7ed   :  { %v2677_v11 = vmul.f32 %v8729_v33, %v10770_v31  ;;  %v2772_v31 = vld [vmem:[#allocation2 + $0x90] sm:$0xff]  ;;  %v3604_v33 = vld [vmem:[#allocation2 + $0xd8] sm:$0xff]  ;;  %v4416_v54 = vld [vmem:[#allocation2 + $0x108] sm:$0xff] }
 0x7ee   :  { %v8179_v4 = vpack.c.bf16 %v2773_v34, %v2772_v31  ;;  %v4418_v31 = vld [vmem:[#allocation2 + $0x118] sm:$0xff] }
 0x7ef   :  { %v8731_v9 = vpop.eup %8730  ;;  %v8167_v55 = vpack.c.bf16 %v2678_v39, %v2677_v11  ;;  %v4008_v39 = vld [vmem:[#allocation2 + $0xe0] sm:$0xff] }
 0x7f0   :  { %v8733_v24 = vpop.eup %8732  ;;  %v2680_v61 = vmul.f32 %v8731_v9, %v10775_v58  ;;  %v2370_v58 = vld [vmem:[#allocation2 + $0x1f8] sm:$0xff]  ;;  %v4009_v9 = vld [vmem:[#allocation2 + $0xe8] sm:$0xff] }
 0x7f1   :  { %v2679_v35 = vmul.f32 %v8733_v24, %v10778_v26  ;;  %v3195_v26 = vld [vmem:[#allocation2 + $0xa8] sm:$0xff]  ;;  %v4010_v24 = vld [vmem:[#allocation2 + $0xf0] sm:$0xff] }
 0x7f2   :  { %8158 = vmatpush3.bf16.xpose.msra.mxu0 %v8155_v12  ;;  %v8215_v12 = vpack.c.bf16 %v3195_v26, %v3194_v15  ;;  %v4841_v15 = vld [vmem:[#allocation2 + $0x130] sm:$0xff]  ;;  %v4842_v26 = vld [vmem:[#allocation2 + $0x138] sm:$0xff] }
 0x7f3   :  { %8160 = vmatprep.subr.bf16.mxu0 %v8159_v41  ;;  %v8171_v28 = vpack.c.bf16 %v2680_v61, %v2679_v35  ;;  %v4011_v35 = vld [vmem:[#allocation2 + $0xf8] sm:$0xff] }
 0x7f4   :  { %v8299_v61 = vpack.c.bf16 %v4011_v35, %v4010_v24 }
 0x7fa   :  { %8162 = vmatpush3.bf16.xpose.msra.mxu0 %v8159_v41  ;;  %v3601_v41 = vld [vmem:[#allocation2 + $0xc0] sm:$0xff] }
 0x7fb   :  { %8164 = vmatprep.subr.bf16.mxu0 %v8163_v19  ;;  %v8255_v32 = vpack.c.bf16 %v3602_v23, %v3601_v41  ;;  %v5249_v41 = vld [vmem:[#allocation2 + $0x158] sm:$0xff] }
 0x802   :  { %8166 = vmatpush3.bf16.xpose.msra.mxu0 %v8163_v19  ;;  %v3603_v19 = vld [vmem:[#allocation2 + $0xd0] sm:$0xff] }
 0x803   :  { %8168 = vmatprep.subr.bf16.mxu0 %v8167_v55  ;;  %v8259_v11 = vpack.c.bf16 %v3604_v33, %v3603_v19  ;;  %v5654_v19 = vld [vmem:[#allocation2 + $0x168] sm:$0xff] }
 0x80a   :  { %8170 = vmatpush3.bf16.xpose.msra.mxu0 %v8167_v55  ;;  %v8295_v55 = vpack.c.bf16 %v4009_v9, %v4008_v39  ;;  %v5656_v39 = vld [vmem:[#allocation2 + $0x178] sm:$0xff] }
 0x80b   :  { %8172 = vmatprep.subr.bf16.mxu0 %v8171_v28 }
 0x812   :  { %8174 = vmatpush3.bf16.xpose.msra.mxu0 %v8171_v28  ;;  %v4415_v28 = vld [vmem:[#allocation2 + $0x100] sm:$0xff] }
 0x813   :  { %8176 = vmatprep.subr.bf16.mxu0 %v8175_v40  ;;  %v8335_v36 = vpack.c.bf16 %v4416_v54, %v4415_v28 }
 0x819   :  { %7442 = vmatmul.mubr.f32.vlgmr.msra.gmra.mrb[118].mxu0 %v2368_v17  ;;  %v4839_v17 = vld [vmem:[#allocation2 + $0x120] sm:$0xff] }
 0x81a   :  { %7444 = vmatprep.mubr.f32.mxu0 %v2369_v6  ;;  %8178 = vmatpush3.bf16.msra.mxu0 %v8175_v40  ;;  %v4417_v40 = vld [vmem:[#allocation2 + $0x110] sm:$0xff]  ;;  %v4840_v6 = vld [vmem:[#allocation2 + $0x128] sm:$0xff] }
 0x81b   :  { %8180 = vmatprep.subr.bf16.mxu0 %v8179_v4  ;;  %v8339_v34 = vpack.c.bf16 %v4418_v31, %v4417_v40 }
 0x81d   :  { %7445 = vmatmul.mubr.f32.gmra.mrb[120].mxu0 %v2370_v58  ;;  %v8379_v58 = vpack.c.bf16 %v4842_v26, %v4841_v15  ;;  %v11172_v15 = vld [vmem:[%s13227_s3 + $0x98] sm:$0xff] }
 0x81e   :  { %8182 = vmatpush3.bf16.msra.mxu0 %v8179_v4  ;;  %7455 = vmatprep.mubr.msk.f32.mxu0 %vm122_vm0, %v10879_v8  ;;  %v8375_v4 = vpack.c.bf16 %v4840_v6, %v4839_v17 }
 0x81f   :  { %8216 = vmatprep.subr.bf16.mxu0 %v8215_v12 }
 0x821   :  { %7456 = vmatmul.mubr.msk.f32.vlgmr.msra.gmra.mrb[138].mxu0 %vm122_vm0, %v10886_v48 }
 0x822   :  { %8218 = vmatpush3.bf16.msra.mxu0 %v8215_v12  ;;  %7458 = vmatprep.mubr.msk.f32.mxu0 %vm122_vm0, %v10893_v30  ;;  %v5246_v12 = vld [vmem:[#allocation2 + $0x140] sm:$0xff] }
 0x823   :  { %8220 = vmatprep.subr.bf16.mxu0 %v8219_v46  ;;  %v8415_v44 = vpack.c.bf16 %v5247_v49, %v5246_v12  ;;  %v11178_v12 = vld [vmem:[%s13227_s3 + $0x90] sm:$0xff]  ;;  %v11183_v49 = vld [vmem:[%s13226_s1 + $0x68] sm:$0xff] }
 0x825   :  { %7459 = vmatmul.mubr.msk.f32.gmra.mrb[140].mxu0 %vm122_vm0, %v10900_v20 }
 0x826   :  { %8222 = vmatpush3.bf16.msra.mxu0 %v8219_v46  ;;  %7461 = vmatprep.mubr.msk.f32.mxu0 %vm122_vm0, %v10907_v27  ;;  %v5248_v46 = vld [vmem:[#allocation2 + $0x150] sm:$0xff] }
 0x827   :  { %8256 = vmatprep.subr.bf16.mxu0 %v8255_v32  ;;  %v8419_v23 = vpack.c.bf16 %v5249_v41, %v5248_v46  ;;  %v11194_v41 = vld [vmem:[%s13226_s1 + $0x70] sm:$0xff] }
 0x829   :  { %7462 = vmatmul.mubr.msk.f32.gmra.mrb[142].mxu0 %vm122_vm0, %v10914_v29 }
 0x82a   :  { %7464 = vmatprep.mubr.msk.f32.mxu0 %vm122_vm0, %v10921_v56 }
 0x82d   :  { %7465 = vmatmul.mubr.msk.f32.gmra.mrb[144].mxu0 %vm122_vm0, %v10494_v1 }
 0x82e   :  { %7467 = vmatprep.mubr.msk.f32.mxu0 %vm122_vm0, %v10501_v50 }
 0x831   :  { %7468 = vmatmul.mubr.msk.f32.gmra.mrb[146].mxu0 %vm122_vm0, %v10508_v62 }
 0x832   :  { %7470 = vmatprep.mubr.msk.f32.mxu0 %vm122_vm0, %v10515_v3 }
 0x835   :  { %7471 = vmatmul.mubr.msk.f32.gmra.mrb[148].mxu0 %vm122_vm0, %v10522_v52 }
 0x836   :  { %7473 = vmatprep.mubr.msk.f32.mxu0 %vm122_vm0, %v10529_v53 }
 0x839   :  { %7474 = vmatmul.mubr.msk.f32.gmra.mrb[150].mxu0 %vm122_vm0, %v10536_v60 }
 0x83a   :  { %7476 = vmatprep.mubr.msk.f32.mxu0 %vm122_vm0, %v10543_v18 }
 0x83d   :  { %7477 = vmatmul.mubr.msk.f32.gmra.mrb[152].mxu0 %vm122_vm0, %v10550_v57 }
 0x83e   :  { %7525 = vmatprep.mubr.msk.f32.mxu0 %vm122_vm0, %v10879_v8 }
 0x841   :  { %7526 = vmatmul.mubr.msk.f32.vlgmr.msra.gmra.mrb[154].mxu0 %vm122_vm0, %v10886_v48 }
 0x842   :  { %8258 = vmatpush3.bf16.msra.mxu0 %v8255_v32  ;;  %7528 = vmatprep.mubr.msk.f32.mxu0 %vm122_vm0, %v10893_v30  ;;  %v5653_v32 = vld [vmem:[#allocation2 + $0x160] sm:$0xff] }
 0x843   :  { %8260 = vmatprep.subr.bf16.mxu0 %v8259_v11  ;;  %v8455_v33 = vpack.c.bf16 %v5654_v19, %v5653_v32 }
 0x845   :  { %7529 = vmatmul.mubr.msk.f32.gmra.mrb[156].mxu0 %vm122_vm0, %v10900_v20 }
 0x846   :  { %8262 = vmatpush3.bf16.msra.mxu0 %v8259_v11  ;;  %7531 = vmatprep.mubr.msk.f32.mxu0 %vm122_vm0, %v10907_v27  ;;  %v5655_v11 = vld [vmem:[#allocation2 + $0x170] sm:$0xff] }
 0x847   :  { %8296 = vmatprep.subr.bf16.mxu0 %v8295_v55 }
 0x849   :  { %7532 = vmatmul.mubr.msk.f32.gmra.mrb[158].mxu0 %vm122_vm0, %v10914_v29 }
 0x84a   :  { %7534 = vmatprep.mubr.msk.f32.mxu0 %vm122_vm0, %v10921_v56 }
 0x84d   :  { %7535 = vmatmul.mubr.msk.f32.gmra.mrb[160].mxu0 %vm122_vm0, %v10494_v1 }
 0x84e   :  { %7537 = vmatprep.mubr.msk.f32.mxu0 %vm122_vm0, %v10501_v50 }
 0x851   :  { %7538 = vmatmul.mubr.msk.f32.gmra.mrb[162].mxu0 %vm122_vm0, %v10508_v62 }
 0x852   :  { %7540 = vmatprep.mubr.msk.f32.mxu0 %vm122_vm0, %v10515_v3 }
 0x855   :  { %7541 = vmatmul.mubr.msk.f32.gmra.mrb[164].mxu0 %vm122_vm0, %v10522_v52 }
 0x856   :  { %7543 = vmatprep.mubr.msk.f32.mxu0 %vm122_vm0, %v10529_v53 }
 0x859   :  { %7544 = vmatmul.mubr.msk.f32.gmra.mrb[166].mxu0 %vm122_vm0, %v10536_v60 }
 0x85a   :  { %7546 = vmatprep.mubr.msk.f32.mxu0 %vm122_vm0, %v10543_v18 }
 0x85d   :  { %7547 = vmatmul.mubr.msk.f32.gmra.mrb[168].mxu0 %vm122_vm0, %v10550_v57 }
 0x85e   :  { %7595 = vmatprep.mubr.msk.f32.mxu0 %vm122_vm0, %v10879_v8 }
 0x861   :  { %7596 = vmatmul.mubr.msk.f32.vlgmr.msra.gmra.mrb[170].mxu0 %vm122_vm0, %v10886_v48 }
 0x862   :  { %8298 = vmatpush3.bf16.msra.mxu0 %v8295_v55  ;;  %7598 = vmatprep.mubr.msk.f32.mxu0 %vm122_vm0, %v10893_v30 }
 0x863   :  { %8300 = vmatprep.subr.bf16.mxu0 %v8299_v61 }
 0x865   :  { %7599 = vmatmul.mubr.msk.f32.gmra.mrb[172].mxu0 %vm122_vm0, %v10900_v20 }
 0x866   :  { %8302 = vmatpush3.bf16.msra.mxu0 %v8299_v61  ;;  %7601 = vmatprep.mubr.msk.f32.mxu0 %vm122_vm0, %v10907_v27 }
 0x867   :  { %8336 = vmatprep.subr.bf16.mxu0 %v8335_v36 }
 0x869   :  { %7602 = vmatmul.mubr.msk.f32.gmra.mrb[174].mxu0 %vm122_vm0, %v10914_v29 }
 0x86a   :  { %7604 = vmatprep.mubr.msk.f32.mxu0 %vm122_vm0, %v10921_v56 }
 0x86d   :  { %7605 = vmatmul.mubr.msk.f32.gmra.mrb[176].mxu0 %vm122_vm0, %v10494_v1 }
 0x86e   :  { %7607 = vmatprep.mubr.msk.f32.mxu0 %vm122_vm0, %v10501_v50 }
 0x871   :  { %7608 = vmatmul.mubr.msk.f32.gmra.mrb[178].mxu0 %vm122_vm0, %v10508_v62 }
 0x872   :  { %7610 = vmatprep.mubr.msk.f32.mxu0 %vm122_vm0, %v10515_v3 }
 0x875   :  { %7611 = vmatmul.mubr.msk.f32.gmra.mrb[180].mxu0 %vm122_vm0, %v10522_v52 }
 0x876   :  { %7613 = vmatprep.mubr.msk.f32.mxu0 %vm122_vm0, %v10529_v53 }
 0x879   :  { %7614 = vmatmul.mubr.msk.f32.gmra.mrb[182].mxu0 %vm122_vm0, %v10536_v60 }
 0x87a   :  { %7616 = vmatprep.mubr.msk.f32.mxu0 %vm122_vm0, %v10543_v18 }
 0x87d   :  { %7617 = vmatmul.mubr.msk.f32.gmra.mrb[184].mxu0 %vm122_vm0, %v10550_v57 }
 0x87e   :  { %7665 = vmatprep.mubr.msk.f32.mxu0 %vm122_vm0, %v10879_v8 }
 0x881   :  { %7666 = vmatmul.mubr.msk.f32.vlgmr.msra.gmra.mrb[186].mxu0 %vm122_vm0, %v10886_v48 }
 0x882   :  { %8338 = vmatpush3.bf16.msra.mxu0 %v8335_v36  ;;  %7668 = vmatprep.mubr.msk.f32.mxu0 %vm122_vm0, %v10893_v30  ;;  %v11159_v36 = vld [vmem:[%s13226_s1 + $0x60] sm:$0xff] }
 0x883   :  { %8340 = vmatprep.subr.bf16.mxu0 %v8339_v34 }
 0x885   :  { %7669 = vmatmul.mubr.msk.f32.gmra.mrb[188].mxu0 %vm122_vm0, %v10900_v20 }
 0x886   :  { %8342 = vmatpush3.bf16.msra.mxu0 %v8339_v34  ;;  %7671 = vmatprep.mubr.msk.f32.mxu0 %vm122_vm0, %v10907_v27 }
 0x887   :  { %8376 = vmatprep.subr.bf16.mxu0 %v8375_v4 }
 0x889   :  { %7672 = vmatmul.mubr.msk.f32.gmra.mrb[190].mxu0 %vm122_vm0, %v10914_v29 }
 0x88a   :  { %7674 = vmatprep.mubr.msk.f32.mxu0 %vm122_vm0, %v10921_v56 }
 0x88d   :  { %7675 = vmatmul.mubr.msk.f32.gmra.mrb[192].mxu0 %vm122_vm0, %v10494_v1 }
 0x88e   :  { %7677 = vmatprep.mubr.msk.f32.mxu0 %vm122_vm0, %v10501_v50 }
 0x891   :  { %7678 = vmatmul.mubr.msk.f32.gmra.mrb[194].mxu0 %vm122_vm0, %v10508_v62 }
 0x892   :  { %7680 = vmatprep.mubr.msk.f32.mxu0 %vm122_vm0, %v10515_v3 }
 0x895   :  { %7681 = vmatmul.mubr.msk.f32.gmra.mrb[196].mxu0 %vm122_vm0, %v10522_v52 }
 0x896   :  { %7683 = vmatprep.mubr.msk.f32.mxu0 %vm122_vm0, %v10529_v53 }
 0x899   :  { %7684 = vmatmul.mubr.msk.f32.gmra.mrb[198].mxu0 %vm122_vm0, %v10536_v60 }
 0x89a   :  { %7686 = vmatprep.mubr.msk.f32.mxu0 %vm122_vm0, %v10543_v18 }
 0x89d   :  { %7687 = vmatmul.mubr.msk.f32.gmra.mrb[200].mxu0 %vm122_vm0, %v10550_v57 }
 0x89e   :  { %7735 = vmatprep.mubr.msk.f32.mxu0 %vm122_vm0, %v10879_v8 }
 0x8a1   :  { %7736 = vmatmul.mubr.msk.f32.vlgmr.msra.gmra.mrb[202].mxu0 %vm122_vm0, %v10886_v48 }
 0x8a2   :  { %8378 = vmatpush3.bf16.msra.mxu0 %v8375_v4  ;;  %7738 = vmatprep.mubr.msk.f32.mxu0 %vm122_vm0, %v10893_v30 }
 0x8a3   :  { %8380 = vmatprep.subr.bf16.mxu0 %v8379_v58 }
 0x8a5   :  { %7739 = vmatmul.mubr.msk.f32.gmra.mrb[204].mxu0 %vm122_vm0, %v10900_v20 }
 0x8a6   :  { %8382 = vmatpush3.bf16.msra.mxu0 %v8379_v58  ;;  %7741 = vmatprep.mubr.msk.f32.mxu0 %vm122_vm0, %v10907_v27 }
 0x8a7   :  { %8416 = vmatprep.subr.bf16.mxu0 %v8415_v44 }
 0x8a9   :  { %7742 = vmatmul.mubr.msk.f32.gmra.mrb[206].mxu0 %vm122_vm0, %v10914_v29 }
 0x8aa   :  { %7744 = vmatprep.mubr.msk.f32.mxu0 %vm122_vm0, %v10921_v56 }
 0x8ad   :  { %7745 = vmatmul.mubr.msk.f32.gmra.mrb[208].mxu0 %vm122_vm0, %v10494_v1 }
 0x8ae   :  { %7747 = vmatprep.mubr.msk.f32.mxu0 %vm122_vm0, %v10501_v50 }
 0x8b1   :  { %7748 = vmatmul.mubr.msk.f32.gmra.mrb[210].mxu0 %vm122_vm0, %v10508_v62 }
 0x8b2   :  { %7750 = vmatprep.mubr.msk.f32.mxu0 %vm122_vm0, %v10515_v3 }
 0x8b5   :  { %7751 = vmatmul.mubr.msk.f32.gmra.mrb[212].mxu0 %vm122_vm0, %v10522_v52 }
 0x8b6   :  { %7753 = vmatprep.mubr.msk.f32.mxu0 %vm122_vm0, %v10529_v53 }
 0x8b9   :  { %7754 = vmatmul.mubr.msk.f32.gmra.mrb[214].mxu0 %vm122_vm0, %v10536_v60 }
 0x8ba   :  { %7756 = vmatprep.mubr.msk.f32.mxu0 %vm122_vm0, %v10543_v18 }
 0x8bd   :  { %7757 = vmatmul.mubr.msk.f32.gmra.mrb[216].mxu0 %vm122_vm0, %v10550_v57 }
 0x8be   :  { %7805 = vmatprep.mubr.msk.f32.mxu0 %vm122_vm0, %v10879_v8 }
 0x8c1   :  { %7806 = vmatmul.mubr.msk.f32.vlgmr.msra.gmra.mrb[218].mxu0 %vm122_vm0, %v10886_v48 }
 0x8c2   :  { %8418 = vmatpush3.bf16.msra.mxu0 %v8415_v44  ;;  %7808 = vmatprep.mubr.msk.f32.mxu0 %vm122_vm0, %v10893_v30 }
 0x8c3   :  { %8420 = vmatprep.subr.bf16.mxu0 %v8419_v23 }
 0x8c5   :  { %7809 = vmatmul.mubr.msk.f32.gmra.mrb[220].mxu0 %vm122_vm0, %v10900_v20 }
 0x8c6   :  { %8422 = vmatpush3.bf16.msra.mxu0 %v8419_v23  ;;  %7811 = vmatprep.mubr.msk.f32.mxu0 %vm122_vm0, %v10907_v27 }
 0x8c7   :  { %8456 = vmatprep.subr.bf16.mxu0 %v8455_v33 }
 0x8c9   :  { %7812 = vmatmul.mubr.msk.f32.gmra.mrb[222].mxu0 %vm122_vm0, %v10914_v29 }
 0x8ca   :  { %7814 = vmatprep.mubr.msk.f32.mxu0 %vm122_vm0, %v10921_v56 }
 0x8cd   :  { %7815 = vmatmul.mubr.msk.f32.gmra.mrb[224].mxu0 %vm122_vm0, %v10494_v1 }
 0x8ce   :  { %7817 = vmatprep.mubr.msk.f32.mxu0 %vm122_vm0, %v10501_v50 }
 0x8d1   :  { %7818 = vmatmul.mubr.msk.f32.gmra.mrb[226].mxu0 %vm122_vm0, %v10508_v62 }
 0x8d2   :  { %7820 = vmatprep.mubr.msk.f32.mxu0 %vm122_vm0, %v10515_v3 }
 0x8d5   :  { %7821 = vmatmul.mubr.msk.f32.gmra.mrb[228].mxu0 %vm122_vm0, %v10522_v52  ;;  %v8459_v52 = vpack.c.bf16 %v5656_v39, %v5655_v11 }
 0x8d6   :  { %7823 = vmatprep.mubr.msk.f32.mxu0 %vm122_vm0, %v10529_v53 }
 0x8d9   :  { %7824 = vmatmul.mubr.msk.f32.gmra.mrb[230].mxu0 %vm122_vm0, %v10536_v60 }
 0x8da   :  { %7826 = vmatprep.mubr.msk.f32.mxu0 %vm122_vm0, %v10543_v18  ;;  %v1327_v18 = vpop.xlane.xlu1 %1326 }
 0x8db   :  { %v1357_v24 = vsub.f32 %v10784_v47, %v1327_v18 }
 0x8dd   :  { %7827 = vmatmul.mubr.msk.f32.gmra.mrb[232].mxu0 %vm122_vm0, %v10550_v57  ;;  %v1325_v57 = vpop.xlane.xlu0 %1324  ;;  %v1374_v47 = vmul.f32 1.442695, %v1357_v24 }
 0x8de   :  { %7875 = vmatprep.mubr.msk.f32.mxu0 %vm122_vm0, %v10879_v8  ;;  %v1356_v35 = vsub.f32 %v10788_v51, %v1325_v57  ;;  %v1331_v31 = vpop.xlane.xlu1 %1330 }
 0x8df   :  { %8734 = vpow2.f32 %v1374_v47  ;;  %v1359_v44 = vsub.f32 %v10793_v43, %v1331_v31 }
 0x8e0   :  { %v1372_v40 = vmul.f32 1.442695, %v1356_v35 }
 0x8e1   :  { %7876 = vmatmul.mubr.msk.f32.vlgmr.msra.gmra.mrb[234].mxu0 %vm122_vm0, %v10886_v48  ;;  %v1329_v17 = vpop.xlane.xlu0 %1328  ;;  %v1378_v18 = vmul.f32 1.442695, %v1359_v44 }
 0x8e2   :  { %8458 = vmatpush3.bf16.msra.mxu0 %v8455_v33  ;;  %7878 = vmatprep.mubr.msk.f32.mxu0 %vm122_vm0, %v10893_v30  ;;  %8736 = vpow2.f32 %v1372_v40  ;;  %v1358_v23 = vsub.f32 %v10797_v37, %v1329_v17  ;;  %v11208_v33 = vld [vmem:[%s13227_s3 + $0xa8] sm:$0xff]  ;;  %v11219_v37 = vld [vmem:[%s13226_s1 + $0x78] sm:$0xff]  ;;  %v1335_v35 = vpop.xlane.xlu1 %1334 }
 0x8e3   :  { %8460 = vmatprep.subr.bf16.mxu0 %v8459_v52  ;;  %8738 = vpow2.f32 %v1378_v18  ;;  %v1361_v40 = vsub.f32 %v10803_v42, %v1335_v35 }
 0x8e4   :  { %v1376_v24 = vmul.f32 1.442695, %v1358_v23 }
 0x8e5   :  { %7879 = vmatmul.mubr.msk.f32.gmra.mrb[236].mxu0 %vm122_vm0, %v10900_v20 }
 0x8e6   :  { %8462 = vmatpush3.bf16.msra.mxu0 %v8459_v52  ;;  %7881 = vmatprep.mubr.msk.f32.mxu0 %vm122_vm0, %v10907_v27  ;;  %v11214_v52 = vld [vmem:[%s13227_s3 + $0xa0] sm:$0xff]  ;;  %8740 = vpow2.f32 %v1376_v24 }
 0x8e9   :  { %7882 = vmatmul.mubr.msk.f32.gmra.mrb[238].mxu0 %vm122_vm0, %v10914_v29  ;;  %v11243_v17 = vpop.eup %8734 }
 0x8ea   :  { %7884 = vmatprep.mubr.msk.f32.mxu0 %vm122_vm0, %v10921_v56 }
 0x8ec   :  { %v11117_v53 = vpop.f32.mrb[118].mxu0 }
 0x8ed   :  { %13298 = vst [vmem:[#allocation3_spill] sm:$0xff] %v11117_v53  ;;  %v11119_v60 = vpop.f32.mrb[119].mxu0  ;;  %7885 = vmatmul.mubr.msk.f32.gmra.mrb[240].mxu0 %vm122_vm0, %v10494_v1  ;;  %v11135_v1 = vld [vmem:[#allocation2 + $0x304] ss:$0 sm:$0xff] }
 0x8ee   :  { %13299 = vst [vmem:[#allocation4_spill] sm:$0xff] %v11119_v60  ;;  %7887 = vmatprep.mubr.msk.f32.mxu0 %vm122_vm0, %v10501_v50  ;;  %v11140_v50 = vld [vmem:[%s13227_s3 + $0x88] sm:$0xff] }
 0x8f0   :  { %v11125_v9 = vpop.f32.mrb[120].mxu0 }
 0x8f1   :  { %13300 = vst [vmem:[#allocation5_spill] sm:$0xff] %v11125_v9  ;;  %v11127_v55 = vpop.f32.mrb[121].mxu0  ;;  %7888 = vmatmul.mubr.msk.f32.gmra.mrb[242].mxu0 %vm122_vm0, %v10508_v62  ;;  %v11146_v62 = vld [vmem:[%s13227_s3 + $0x80] sm:$0xff] }
 0x8f2   :  { %13301 = vst [vmem:[#allocation6_spill] sm:$0xff] %v11127_v55  ;;  %7890 = vmatprep.mubr.msk.f32.mxu0 %vm122_vm0, %v10515_v3  ;;  %v11151_v3 = vld [vmem:[%s13226_s1 + $0x58] sm:$0xff] }
 0x8f4   :  { %v7457_v61 = vpop.f32.mrb[138].mxu0 }
 0x8f5   :  { %v2855_v28 = vadd.f32 %v7457_v61, %v11135_v1  ;;  %v2849_v54 = vpop.f32.mrb[139].mxu0  ;;  %7891 = vmatmul.mubr.msk.f32.gmra.mrb[244].mxu0 %vm122_vm0, %v11151_v3 }
 0x8f6   :  { %v2850_v51 = vadd.f32 %v11135_v1, %v2849_v54  ;;  %7893 = vmatprep.mubr.msk.f32.mxu0 %vm122_vm0, %v11159_v36 }
 0x8f7   :  { %v11164_v34 = vadd.f32 %v11140_v50, %v2855_v28  ;;  %v1333_v28 = vpop.xlane.xlu0 %1332 }
 0x8f8   :  { %v11167_v6 = vadd.f32 %v11146_v62, %v2850_v51  ;;  %v7460_v4 = vpop.f32.mrb[140].mxu0 }
 0x8f9   :  { %v2865_v26 = vadd.f32 %v7460_v4, %v11135_v1  ;;  %v2859_v58 = vpop.f32.mrb[141].mxu0  ;;  %7894 = vmatmul.mubr.msk.f32.gmra.mrb[246].mxu0 %vm122_vm0, %v11183_v49  ;;  %2963 = vmax.xlane.f32.xlu1 %v11164_v34 }
 0x8fa   :  { %v2860_v46 = vadd.f32 %v11135_v1, %v2859_v58  ;;  %2961 = vmax.xlane.f32.xlu0 %v11167_v6  ;;  %7896 = vmatprep.mubr.msk.f32.mxu0 %vm122_vm0, %v11194_v41  ;;  %v1382_v58 = vmul.f32 1.442695, %v1361_v40  ;;  %v9355_v40 = vld [vmem:[%s13226_s1 + $0x40] sm:$0xff] }
 0x8fb   :  { %v11200_v32 = vadd.f32 %v11172_v15, %v2865_v26  ;;  %v11251_v26 = vpop.eup %8736 }
 0x8fc   :  { %v11203_v43 = vadd.f32 %v11178_v12, %v2860_v46  ;;  %v7463_v19 = vpop.f32.mrb[142].mxu0  ;;  %v1339_v46 = vpop.xlane.xlu1 %1338  ;;  %8742 = vpow2.f32 %v1382_v58 }
 0x8fd   :  { %v2875_v11 = vadd.f32 %v7463_v19, %v11135_v1  ;;  %v2869_v39 = vpop.f32.mrb[143].mxu0  ;;  %7897 = vmatmul.mubr.msk.f32.gmra.mrb[248].mxu0 %vm122_vm0, %v11219_v37  ;;  %2967 = vmax.xlane.f32.xlu1 %v11200_v32  ;;  %v1337_v19 = vpop.xlane.xlu0 %1336 }
 0x8fe   :  { %v2870_v57 = vadd.f32 %v11135_v1, %v2869_v39  ;;  %2965 = vmax.xlane.f32.xlu0 %v11203_v43  ;;  %7945 = vmatprep.mubr.msk.f32.mxu0 %vm122_vm0, %v10879_v8  ;;  %v1360_v8 = vsub.f32 %v10807_v38, %v1333_v28  ;;  %v11279_v24 = vpop.eup %8738 }
 0x8ff   :  { %v11229_v61 = vadd.f32 %v11208_v33, %v2875_v11  ;;  %v11287_v28 = vpop.eup %8740 }
 0x900   :  { %v11232_v54 = vadd.f32 %v11214_v52, %v2870_v57  ;;  %v7466_v47 = vpop.f32.mrb[144].mxu0  ;;  %v1380_v44 = vmul.f32 1.442695, %v1360_v8 }
 0x901   :  { %v2879_v51 = vpop.f32.mrb[145].mxu0  ;;  %7946 = vmatmul.mubr.msk.f32.vlgmr.msra.gmra.mrb[250].mxu0 %vm122_vm0, %v10886_v48  ;;  %2971 = vmax.xlane.f32.xlu1 %v11229_v61  ;;  %v2885_v31 = vadd.f32 %v7466_v47, %v11135_v1  ;;  %v11248_v48 = vld [vmem:[%s13227_s3 + $0xb8] sm:$0xff] }
 0x902   :  { %2969 = vmax.xlane.f32.xlu0 %v11232_v54  ;;  %7948 = vmatprep.mubr.msk.f32.mxu0 %vm122_vm0, %v10893_v30  ;;  %v2880_v4 = vadd.f32 %v11135_v1, %v2879_v51  ;;  %v11256_v30 = vld [vmem:[%s13227_s3 + $0xb0] sm:$0xff]  ;;  %8744 = vpow2.f32 %v1380_v44  ;;  %v9354_v47 = vld [vmem:[%s13226_s1 + $0x38] sm:$0xff] }
 0x903   :  { %v11265_v23 = vadd.f32 %v11248_v48, %v2885_v31  ;;  %v1343_v31 = vpop.xlane.xlu1 %1342 }
 0x904   :  { %v7469_v42 = vpop.f32.mrb[146].mxu0  ;;  %v11268_v11 = vadd.f32 %v11256_v30, %v2880_v4 }
 0x905   :  { %v2889_v38 = vpop.f32.mrb[147].mxu0  ;;  %7949 = vmatmul.mubr.msk.f32.gmra.mrb[252].mxu0 %vm122_vm0, %v10900_v20  ;;  %1406 = vadd.xlane.f32.xlu1 %v11243_v17  ;;  %v1363_v20 = vsub.f32 %v10813_v10, %v1339_v46  ;;  %v2895_v57 = vadd.f32 %v7469_v42, %v11135_v1  ;;  %v1341_v42 = vpop.xlane.xlu0 %1340  ;;  %v9356_v46 = vld [vmem:[%s13226_s1 + $0x48] sm:$0xff] }
 0x906   :  { %1404 = vadd.xlane.f32.xlu0 %v11251_v26  ;;  %7951 = vmatprep.mubr.msk.f32.mxu0 %vm122_vm0, %v10907_v27  ;;  %v1362_v27 = vsub.f32 %v10817_v45, %v1337_v19  ;;  %v2890_v35 = vadd.f32 %v11135_v1, %v2889_v38  ;;  %v1365_v19 = vsub.f32 %v10823_v63, %v1343_v31 }
 0x907   :  { %v1386_v51 = vmul.f32 1.442695, %v1363_v20  ;;  %v9357_v20 = vld [vmem:[%s13226_s1 + $0x50] sm:$0xff]  ;;  %v1347_v31 = vpop.xlane.xlu1 %1346 }
 0x908   :  { %v7472_v39 = vpop.f32.mrb[148].mxu0  ;;  %v1384_v8 = vmul.f32 1.442695, %v1362_v27  ;;  %v1364_v27 = vsub.f32 %v10827_v59, %v1341_v42 }
 0x909   :  { %v2899_v18 = vpop.f32.mrb[149].mxu0  ;;  %7952 = vmatmul.mubr.msk.f32.gmra.mrb[254].mxu0 %vm122_vm0, %v10914_v29  ;;  %2975 = vmax.xlane.f32.xlu1 %v11265_v23  ;;  %v11284_v29 = vld [vmem:[%s13227_s3 + $0xc8] sm:$0xff]  ;;  %8746 = vpow2.f32 %v1386_v51 }
 0x90a   :  { %2973 = vmax.xlane.f32.xlu0 %v11268_v11  ;;  %7954 = vmatprep.mubr.msk.f32.mxu0 %vm122_vm0, %v10921_v56  ;;  %v11292_v56 = vld [vmem:[%s13227_s3 + $0xc0] sm:$0xff]  ;;  %v11305_v4 = vadd.f32 %v11284_v29, %v2895_v57  ;;  %8748 = vpow2.f32 %v1384_v8  ;;  %v2905_v57 = vadd.f32 %v7472_v39, %v11135_v1  ;;  %v2900_v63 = vadd.f32 %v11135_v1, %v2899_v18  ;;  %v11342_v8 = vld [vmem:[%s13227_s3 + $0xd0] sm:$0xff] }
 0x90b   :  { %v11308_v38 = vadd.f32 %v11292_v56, %v2890_v35  ;;  %v11327_v35 = vpop.eup %8742  ;;  %v1390_v39 = vmul.f32 1.442695, %v1365_v19  ;;  %v1388_v18 = vmul.f32 1.442695, %v1364_v27 }
 0x90c   :  { %v7475_v10 = vpop.f32.mrb[150].mxu0 }
 0x90d   :  { %v2909_v45 = vpop.f32.mrb[151].mxu0  ;;  %7955 = vmatmul.mubr.msk.f32.gmra.mrb[0].mxu0 %vm122_vm0, %v9354_v47  ;;  %1410 = vadd.xlane.f32.xlu1 %v11279_v24  ;;  %v11332_v47 = vld [vmem:[%s13227_s3 + $0xd8] sm:$0xff]  ;;  %8750 = vpow2.f32 %v1390_v39  ;;  %v2915_v27 = vadd.f32 %v7475_v10, %v11135_v1 }
 0x90e   :  { %1408 = vadd.xlane.f32.xlu0 %v11287_v28  ;;  %7957 = vmatprep.mubr.msk.f32.mxu0 %vm122_vm0, %v9355_v40  ;;  %v11337_v40 = vpop.eup %8744  ;;  %v11353_v42 = vadd.f32 %v11332_v47, %v2905_v57  ;;  %8752 = vpow2.f32 %v1388_v18  ;;  %v1351_v18 = vpop.xlane.xlu1 %1350 }
 0x910   :  { %v11310_v58 = vpop.f32.mrb[152].mxu0 }
 0x911   :  { %v11312_v44 = vpop.f32.mrb[153].mxu0  ;;  %7958 = vmatmul.mubr.msk.f32.gmra.mrb[2].mxu0 %vm122_vm0, %v9356_v46  ;;  %2979 = vmax.xlane.f32.xlu1 %v11305_v4  ;;  %v1345_v46 = vpop.xlane.xlu0 %1344 }
 0x912   :  { %2977 = vmax.xlane.f32.xlu0 %v11308_v38  ;;  %7960 = vmatprep.mubr.msk.f32.mxu0 %vm122_vm0, %v9357_v20  ;;  %v11356_v20 = vadd.f32 %v11342_v8, %v2900_v63  ;;  %v1366_v19 = vsub.f32 %v10837_v21, %v1345_v46  ;;  %v2910_v63 = vadd.f32 %v11135_v1, %v2909_v45  ;;  %v11397_v46 = vld [vmem:[#allocation2 + $0x305] ss:$0 sm:$0xff] }
 0x913   :  { %v11371_v57 = vpop.eup %8746 }
 0x914   :  { %v11335_v51 = vpop.f32.mrb[154].mxu0  ;;  %13302 = vst [vmem:[#allocation7_spill] sm:$0xff] %v11371_v57  ;;  %v11381_v39 = vpop.eup %8748  ;;  %v1392_v45 = vmul.f32 1.442695, %v1366_v19 }
 0x915   :  { %v11344_v59 = vpop.f32.mrb[155].mxu0  ;;  %7961 = vmatmul.mubr.msk.f32.gmra.mrb[4].mxu0 %vm122_vm0, %v11151_v3  ;;  %1414 = vadd.xlane.f32.xlu1 %v11327_v35  ;;  %13303 = vst [vmem:[#allocation8_spill] sm:$0xff] %v11381_v39  ;;  %v1349_v9 = vpop.xlane.xlu0 %1348 }
 0x916   :  { %1412 = vadd.xlane.f32.xlu0 %v11337_v40  ;;  %7963 = vmatprep.mubr.msk.f32.mxu0 %vm122_vm0, %v11159_v36  ;;  %v1367_v36 = vsub.f32 %v10833_v16, %v1347_v31 }
 0x917   :  { %v11414_v53 = vpop.eup %8750 }
 0x918   :  { %v11358_v55 = vpop.f32.mrb[156].mxu0  ;;  %v1394_v10 = vmul.f32 1.442695, %v1367_v36  ;;  %v1369_v36 = vsub.f32 %v10843_v14, %v1351_v18  ;;  %13304 = vst [vmem:[#allocation9_spill] sm:$0xff] %v11414_v53  ;;  %v2920_v14 = vadd.f32 %v11135_v1, %v11312_v44  ;;  %v11423_v18 = vpop.eup %8752 }
 0x919   :  { %v11360_v3 = vpop.f32.mrb[157].mxu0  ;;  %7964 = vmatmul.mubr.msk.f32.gmra.mrb[6].mxu0 %vm122_vm0, %v11183_v49  ;;  %2983 = vmax.xlane.f32.xlu1 %v11353_v42  ;;  %v11376_v49 = vld [vmem:[%s13227_s3 + $0xe8] sm:$0xff]  ;;  %13305 = vst [vmem:[#allocation10_spill] sm:$0xff] %v11423_v18  ;;  %v1355_v44 = vpop.xlane.xlu1 %1354 }
 0x91a   :  { %2981 = vmax.xlane.f32.xlu0 %v11356_v20  ;;  %7966 = vmatprep.mubr.msk.f32.mxu0 %vm122_vm0, %v11194_v41  ;;  %v11386_v41 = vld [vmem:[%s13227_s3 + $0xe0] sm:$0xff]  ;;  %v11395_v31 = vadd.f32 %v11376_v49, %v2915_v27  ;;  %8754 = vpow2.f32 %v1394_v10  ;;  %v1368_v27 = vsub.f32 %v10847_v13, %v1349_v9  ;;  %v11428_v13 = vld [vmem:[%s13227_s3 + $0xf0] sm:$0xff]  ;;  %v1353_v0 = vpop.xlane.xlu0 %1352 }
 0x91b   :  { %v11400_v7 = vadd.f32 %v11386_v41, %v2910_v63  ;;  %8756 = vpow2.f32 %v1392_v45  ;;  %v2925_v63 = vadd.f32 %v11310_v58, %v11135_v1  ;;  %v1398_v45 = vmul.f32 1.442695, %v1369_v36 }
 0x91c   :  { %v11379_v16 = vpop.f32.mrb[158].mxu0  ;;  %v1396_v1 = vmul.f32 1.442695, %v1368_v27  ;;  %v1371_v36 = vsub.f32 %v10853_v25, %v1355_v44 }
 0x91d   :  { %v11388_v21 = vpop.f32.mrb[159].mxu0  ;;  %7967 = vmatmul.mubr.msk.f32.gmra.mrb[8].mxu0 %vm122_vm0, %v11219_v37  ;;  %1418 = vadd.xlane.f32.xlu1 %v11371_v57  ;;  %8758 = vpow2.f32 %v1398_v45 }
 0x91e   :  { %1416 = vadd.xlane.f32.xlu0 %v11381_v39  ;;  %v11442_v39 = vadd.f32 %v11428_v13, %v2920_v14  ;;  %8760 = vpow2.f32 %v1396_v1  ;;  %v3279_v14 = vadd.f32 %v11335_v51, %v11397_v46  ;;  %v1402_v1 = vmul.f32 1.442695, %v1371_v36 }
 0x920   :  { %v7536_v5 = vpop.f32.mrb[160].mxu0  ;;  %13306 = vst [vmem:[#allocation11_spill] sm:$0xff] %v11442_v39  ;;  %v11471_v51 = vadd.f32 %v11140_v50, %v3279_v14  ;;  %8762 = vpow2.f32 %v1402_v1 }
 0x921   :  { %v11403_v60 = vadd.f32 %v7536_v5, %v11397_v46  ;;  %v3303_v37 = vpop.f32.mrb[161].mxu0  ;;  %2987 = vmax.xlane.f32.xlu1 %v11395_v31  ;;  %v11419_v5 = vld [vmem:[%s13227_s3 + $0xf8] sm:$0xff] }
 0x922   :  { %v11408_v19 = vadd.f32 %v11397_v46, %v3303_v37  ;;  %2985 = vmax.xlane.f32.xlu0 %v11400_v7  ;;  %v11439_v2 = vadd.f32 %v11419_v5, %v2925_v63  ;;  %v1370_v63 = vsub.f32 %v10856_v22, %v1353_v0 }
 0x924   :  { %v7539_v10 = vpop.f32.mrb[162].mxu0  ;;  %v1400_v22 = vmul.f32 1.442695, %v1370_v63  ;;  %v3289_v63 = vadd.f32 %v11358_v55, %v11397_v46 }
 0x925   :  { %v11431_v9 = vadd.f32 %v7539_v10, %v11397_v46  ;;  %v3313_v58 = vpop.f32.mrb[163].mxu0  ;;  %1422 = vadd.xlane.f32.xlu1 %v11414_v53 }
 0x926   :  { %v11435_v37 = vadd.f32 %v11397_v46, %v3313_v58  ;;  %1420 = vadd.xlane.f32.xlu0 %v11423_v18  ;;  %v11456_v58 = vpop.eup %8754  ;;  %8764 = vpow2.f32 %v1400_v22 }
 0x927   :  { %13307 = vst [vmem:[#allocation12_spill] sm:$0xff] %v11456_v58  ;;  %v11460_v45 = vpop.eup %8756 }
 0x928   :  { %v7542_v10 = vpop.f32.mrb[164].mxu0  ;;  %13308 = vst [vmem:[#allocation13_spill] sm:$0xff] %v11460_v45  ;;  %v11486_v14 = vpop.eup %8758 }
 0x929   :  { %v11445_v57 = vadd.f32 %v7542_v10, %v11397_v46  ;;  %v3323_v53 = vpop.f32.mrb[165].mxu0  ;;  %2991 = vmax.xlane.f32.xlu1 %v11439_v2  ;;  %v3274_v10 = vadd.f32 %v11397_v46, %v11344_v59  ;;  %13310 = vst [vmem:[#allocation15_spill] sm:$0xff] %v11486_v14 }
 0x92a   :  { %v11450_v27 = vadd.f32 %v11397_v46, %v3323_v53  ;;  %2989 = vmax.xlane.f32.xlu0 %v11442_v39 }
 0x92b   :  { %v11474_v59 = vadd.f32 %v11146_v62, %v3274_v10  ;;  %v3284_v10 = vadd.f32 %v11397_v46, %v11360_v3  ;;  %v3299_v3 = vadd.f32 %v11379_v16, %v11397_v46 }
 0x92c   :  { %v7545_v18 = vpop.f32.mrb[166].mxu0 }
 0x92d   :  { %v11463_v25 = vadd.f32 %v7545_v18, %v11397_v46  ;;  %v3333_v53 = vpop.f32.mrb[167].mxu0  ;;  %1426 = vadd.xlane.f32.xlu1 %v11456_v58  ;;  %13309 = vst [vmem:[#allocation14_spill] sm:$0xff] %v11474_v59  ;;  %v11502_v55 = vadd.f32 %v11178_v12, %v3284_v10 }
 0x92e   :  { %v11467_v0 = vadd.f32 %v11397_v46, %v3333_v53  ;;  %1424 = vadd.xlane.f32.xlu0 %v11460_v45 }
 0x92f   :  { %13313 = vst [vmem:[#allocation22_spill] sm:$0xff] %v11502_v55 }
 0x930   :  { %v7548_v44 = vpop.f32.mrb[168].mxu0 }
 0x931   :  { %v11477_v18 = vadd.f32 %v7548_v44, %v11397_v46  ;;  %v3343_v39 = vpop.f32.mrb[169].mxu0  ;;  %3370 = vmax.xlane.f32.xlu1 %v11471_v51  ;;  %v11492_v44 = vpop.eup %8760 }
 0x932   :  { %v11481_v36 = vadd.f32 %v11397_v46, %v3343_v39  ;;  %3368 = vmax.xlane.f32.xlu0 %v11474_v59  ;;  %13311 = vst [vmem:[#allocation16_spill] sm:$0xff] %v11492_v44  ;;  %v11499_v39 = vadd.f32 %v11172_v15, %v3289_v63  ;;  %v3294_v15 = vadd.f32 %v11397_v46, %v11388_v21 }
 0x934   :  { %v11490_v53 = vpop.f32.mrb[170].mxu0  ;;  %13312 = vst [vmem:[#allocation21_spill] sm:$0xff] %v11499_v39  ;;  %v11528_v16 = vadd.f32 %v11214_v52, %v3294_v15 }
 0x935   :  { %v11494_v45 = vpop.f32.mrb[171].mxu0  ;;  %1430 = vadd.xlane.f32.xlu1 %v11486_v14  ;;  %v11512_v14 = vpop.eup %8762 }
 0x936   :  { %1428 = vadd.xlane.f32.xlu0 %v11492_v44  ;;  %13315 = vst [vmem:[#allocation24_spill] sm:$0xff] %v11512_v14  ;;  %v11518_v12 = vpop.eup %8764  ;;  %v11525_v44 = vadd.f32 %v11208_v33, %v3299_v3  ;;  %13320 = vst [vmem:[#allocation29_spill] sm:$0xff] %v11528_v16  ;;  %v11544_v33 = vld [vmem:[#allocation2 + $0x306] ss:$0 sm:$0xff] }
 0x937   :  { %13317 = vst [vmem:[#allocation26_spill] sm:$0xff] %v11518_v12 }
 0x938   :  { %v11504_v1 = vpop.f32.mrb[172].mxu0  ;;  %13319 = vst [vmem:[#allocation28_spill] sm:$0xff] %v11525_v44 }
 0x939   :  { %v11506_v22 = vpop.f32.mrb[173].mxu0  ;;  %3374 = vmax.xlane.f32.xlu1 %v11499_v39 }
 0x93a   :  { %13314 = vst [vmem:[#allocation23_spill] sm:$0xff] %v11506_v22  ;;  %3372 = vmax.xlane.f32.xlu0 %v11502_v55 }
 0x93c   :  { %v11516_v63 = vpop.f32.mrb[174].mxu0 }
 0x93d   :  { %13316 = vst [vmem:[#allocation25_spill] sm:$0xff] %v11516_v63  ;;  %v11520_v10 = vpop.f32.mrb[175].mxu0  ;;  %1434 = vadd.xlane.f32.xlu1 %v11512_v14 }
 0x93e   :  { %13318 = vst [vmem:[#allocation27_spill] sm:$0xff] %v11520_v10  ;;  %1432 = vadd.xlane.f32.xlu0 %v11518_v12 }
 0x940   :  { %v11530_v55 = vpop.f32.mrb[176].mxu0 }
 0x941   :  { %13321 = vst [vmem:[#allocation30_spill] sm:$0xff] %v11530_v55  ;;  %v11532_v39 = vpop.f32.mrb[177].mxu0  ;;  %3378 = vmax.xlane.f32.xlu1 %v11525_v44 }
 0x942   :  { %13322 = vst [vmem:[#allocation31_spill] sm:$0xff] %v11532_v39  ;;  %3376 = vmax.xlane.f32.xlu0 %v11528_v16 }
 0x944   :  { %v11536_v21 = vpop.f32.mrb[178].mxu0 }
 0x945   :  { %13323 = vst [vmem:[#allocation32_spill] sm:$0xff] %v11536_v21  ;;  %v11538_v46 = vpop.f32.mrb[179].mxu0 }
 0x946   :  { %13324 = vst [vmem:[#allocation33_spill] sm:$0xff] %v11538_v46 }
 0x948   :  { %v11540_v14 = vpop.f32.mrb[180].mxu0 }
 0x949   :  { %13325 = vst [vmem:[#allocation34_spill] sm:$0xff] %v11540_v14  ;;  %v11542_v12 = vpop.f32.mrb[181].mxu0 }
 0x94a   :  { %13326 = vst [vmem:[#allocation35_spill] sm:$0xff] %v11542_v12 }
 0x94c   :  { %v7615_v52 = vpop.f32.mrb[182].mxu0 }
 0x94d   :  { %v11547_v3 = vadd.f32 %v7615_v52, %v11544_v33  ;;  %v3740_v15 = vpop.f32.mrb[183].mxu0 }
 0x94e   :  { %v11550_v39 = vadd.f32 %v11544_v33, %v3740_v15 }
 0x94f   :  { %13327 = vst [vmem:[#allocation36_spill] sm:$0xff] %v11547_v3 }
 0x950   :  { %13328 = vst [vmem:[#allocation37_spill] sm:$0xff] %v11550_v39  ;;  %v7618_v55 = vpop.f32.mrb[184].mxu0 }
 0x951   :  { %v11553_v16 = vadd.f32 %v7618_v55, %v11544_v33  ;;  %v3750_v21 = vpop.f32.mrb[185].mxu0 }
 0x952   :  { %v11556_v46 = vadd.f32 %v11544_v33, %v3750_v21 }
 0x953   :  { %13329 = vst [vmem:[#allocation38_spill] sm:$0xff] %v11553_v16 }
 0x954   :  { %13330 = vst [vmem:[#allocation39_spill] sm:$0xff] %v11556_v46  ;;  %v11558_v14 = vpop.f32.mrb[186].mxu0 }
 0x955   :  { %13331 = vst [vmem:[#allocation40_spill] sm:$0xff] %v11558_v14  ;;  %v11560_v12 = vpop.f32.mrb[187].mxu0 }
 0x956   :  { %13332 = vst [vmem:[#allocation41_spill] sm:$0xff] %v11560_v12 }
 0x958   :  { %v11562_v44 = vpop.f32.mrb[188].mxu0 }
 0x959   :  { %13333 = vst [vmem:[#allocation42_spill] sm:$0xff] %v11562_v44  ;;  %v11564_v52 = vpop.f32.mrb[189].mxu0 }
 0x95a   :  { %13334 = vst [vmem:[#allocation43_spill] sm:$0xff] %v11564_v52 }
 0x95c   :  { %v11566_v3 = vpop.f32.mrb[190].mxu0 }
 0x95d   :  { %13335 = vst [vmem:[#allocation44_spill] sm:$0xff] %v11566_v3  ;;  %v11568_v15 = vpop.f32.mrb[191].mxu0 }
 0x95e   :  { %13336 = vst [vmem:[#allocation45_spill] sm:$0xff] %v11568_v15 }
 0x960   :  { %v11570_v39 = vpop.f32.mrb[192].mxu0 }
 0x961   :  { %13337 = vst [vmem:[#allocation46_spill] sm:$0xff] %v11570_v39  ;;  %v11572_v55 = vpop.f32.mrb[193].mxu0 }
 0x962   :  { %13338 = vst [vmem:[#allocation47_spill] sm:$0xff] %v11572_v55  ;;  %v6346_v55 = vld [vmem:[#allocation2 + $0x308] ss:$0 sm:$0xff] }
 0x964   :  { %v11574_v16 = vpop.f32.mrb[194].mxu0 }
 0x965   :  { %13339 = vst [vmem:[#allocation48_spill] sm:$0xff] %v11574_v16  ;;  %v11576_v21 = vpop.f32.mrb[195].mxu0 }
 0x966   :  { %13340 = vst [vmem:[#allocation49_spill] sm:$0xff] %v11576_v21 }
 0x968   :  { %v11578_v46 = vpop.f32.mrb[196].mxu0 }
 0x969   :  { %13341 = vst [vmem:[#allocation50_spill] sm:$0xff] %v11578_v46  ;;  %v11580_v14 = vpop.f32.mrb[197].mxu0 }
 0x96a   :  { %13342 = vst [vmem:[#allocation51_spill] sm:$0xff] %v11580_v14 }
 0x96c   :  { %v11582_v12 = vpop.f32.mrb[198].mxu0 }
 0x96d   :  { %13343 = vst [vmem:[#allocation52_spill] sm:$0xff] %v11582_v12  ;;  %v11584_v44 = vpop.f32.mrb[199].mxu0 }
 0x96e   :  { %13344 = vst [vmem:[#allocation53_spill] sm:$0xff] %v11584_v44 }
 0x970   :  { %v11586_v52 = vpop.f32.mrb[200].mxu0 }
 0x971   :  { %13345 = vst [vmem:[#allocation54_spill] sm:$0xff] %v11586_v52  ;;  %v11588_v3 = vpop.f32.mrb[201].mxu0 }
 0x972   :  { %13346 = vst [vmem:[#allocation55_spill] sm:$0xff] %v11588_v3 }
 0x974   :  { %v11590_v15 = vpop.f32.mrb[202].mxu0 }
 0x975   :  { %13347 = vst [vmem:[#allocation56_spill] sm:$0xff] %v11590_v15  ;;  %v11592_v39 = vpop.f32.mrb[203].mxu0 }
 0x976   :  { %13348 = vst [vmem:[#allocation57_spill] sm:$0xff] %v11592_v39 }
 0x978   :  { %v7740_v16 = vpop.f32.mrb[204].mxu0 }
 0x979   :  { %v11594_v10 = vadd.f32 %v7740_v16, %v6346_v55  ;;  %v4504_v21 = vpop.f32.mrb[205].mxu0 }
 0x97a   :  { %v11596_v46 = vadd.f32 %v6346_v55, %v4504_v21 }
 0x97b   :  { %13349 = vst [vmem:[#allocation58_spill] sm:$0xff] %v11594_v10 }
 0x97c   :  { %13350 = vst [vmem:[#allocation59_spill] sm:$0xff] %v11596_v46  ;;  %v7743_v14 = vpop.f32.mrb[206].mxu0 }
 0x97d   :  { %v11598_v63 = vadd.f32 %v7743_v14, %v6346_v55  ;;  %v4514_v12 = vpop.f32.mrb[207].mxu0 }
 0x97e   :  { %v11600_v44 = vadd.f32 %v6346_v55, %v4514_v12 }
 0x97f   :  { %13351 = vst [vmem:[#allocation60_spill] sm:$0xff] %v11598_v63 }
 0x980   :  { %13352 = vst [vmem:[#allocation61_spill] sm:$0xff] %v11600_v44  ;;  %v7746_v52 = vpop.f32.mrb[208].mxu0 }
 0x981   :  { %v11602_v58 = vadd.f32 %v7746_v52, %v6346_v55  ;;  %v4524_v3 = vpop.f32.mrb[209].mxu0 }
 0x982   :  { %v11604_v15 = vadd.f32 %v6346_v55, %v4524_v3 }
 0x983   :  { %13353 = vst [vmem:[#allocation62_spill] sm:$0xff] %v11602_v58 }
 0x984   :  { %13354 = vst [vmem:[#allocation63_spill] sm:$0xff] %v11604_v15  ;;  %v7749_v39 = vpop.f32.mrb[210].mxu0 }
 0x985   :  { %v11606_v22 = vadd.f32 %v7749_v39, %v6346_v55  ;;  %v4534_v16 = vpop.f32.mrb[211].mxu0 }
 0x986   :  { %v11608_v10 = vadd.f32 %v6346_v55, %v4534_v16  ;;  %v2964_v21 = vpop.xlane.xlu1 %2963 }
 0x987   :  { %13355 = vst [vmem:[#allocation64_spill] sm:$0xff] %v11606_v22  ;;  %v2994_v46 = vsub.f32 %v11164_v34, %v2964_v21  ;;  %v2962_v14 = vpop.xlane.xlu0 %2961 }
 0x988   :  { %13356 = vst [vmem:[#allocation65_spill] sm:$0xff] %v11608_v10  ;;  %v2993_v63 = vsub.f32 %v11167_v6, %v2962_v14  ;;  %v7752_v12 = vpop.f32.mrb[212].mxu0 }
 0x989   :  { %v3011_v44 = vmul.f32 1.442695, %v2994_v46  ;;  %v11612_v59 = vadd.f32 %v7752_v12, %v6346_v55  ;;  %v4544_v52 = vpop.f32.mrb[213].mxu0 }
 0x98a   :  { %v3009_v58 = vmul.f32 1.442695, %v2993_v63  ;;  %v11614_v3 = vadd.f32 %v6346_v55, %v4544_v52  ;;  %v2968_v15 = vpop.xlane.xlu1 %2967 }
 0x98b   :  { %13357 = vst [vmem:[#allocation66_spill] sm:$0xff] %v11612_v59  ;;  %8766 = vpow2.f32 %v3011_v44  ;;  %v2996_v39 = vsub.f32 %v11200_v32, %v2968_v15  ;;  %v2966_v16 = vpop.xlane.xlu0 %2965 }
 0x98c   :  { %13358 = vst [vmem:[#allocation67_spill] sm:$0xff] %v11614_v3  ;;  %8768 = vpow2.f32 %v3009_v58  ;;  %v2995_v10 = vsub.f32 %v11203_v43, %v2966_v16  ;;  %v7755_v34 = vpop.f32.mrb[214].mxu0 }
 0x98d   :  { %v11618_v21 = vadd.f32 %v7755_v34, %v6346_v55  ;;  %v4554_v6 = vpop.f32.mrb[215].mxu0  ;;  %v3015_v12 = vmul.f32 1.442695, %v2996_v39 }
 0x98e   :  { %v11620_v14 = vadd.f32 %v6346_v55, %v4554_v6  ;;  %v2972_v46 = vpop.xlane.xlu1 %2971  ;;  %v3013_v63 = vmul.f32 1.442695, %v2995_v10 }
 0x98f   :  { %13359 = vst [vmem:[#allocation68_spill] sm:$0xff] %v11618_v21  ;;  %v2970_v59 = vpop.xlane.xlu0 %2969  ;;  %8770 = vpow2.f32 %v3015_v12  ;;  %v2998_v43 = vsub.f32 %v11229_v61, %v2972_v46  ;;  %v11646_v12 = vadd.f32 %v11256_v30, %v11408_v19 }
 0x990   :  { %13360 = vst [vmem:[#allocation69_spill] sm:$0xff] %v11620_v14  ;;  %v7758_v52 = vpop.f32.mrb[216].mxu0  ;;  %8772 = vpow2.f32 %v3013_v63  ;;  %v2997_v15 = vsub.f32 %v11232_v54, %v2970_v59  ;;  %v11640_v54 = vadd.f32 %v11248_v48, %v11403_v60 }
 0x991   :  { %v11622_v3 = vadd.f32 %v7758_v52, %v6346_v55  ;;  %v4564_v44 = vpop.f32.mrb[217].mxu0  ;;  %v3019_v6 = vmul.f32 1.442695, %v2998_v43 }
 0x992   :  { %v11624_v22 = vadd.f32 %v6346_v55, %v4564_v44  ;;  %v1407_v32 = vpop.xlane.xlu1 %1406  ;;  %v3017_v59 = vmul.f32 1.442695, %v2997_v15 }
 0x993   :  { %13361 = vst [vmem:[#allocation70_spill] sm:$0xff] %v11622_v3  ;;  %v1405_v58 = vpop.xlane.xlu0 %1404  ;;  %8774 = vrcp.f32 %v1407_v32 }
 0x994   :  { %13362 = vst [vmem:[#allocation71_spill] sm:$0xff] %v11624_v22  ;;  %v11628_v16 = vpop.f32.mrb[218].mxu0  ;;  %8776 = vrcp.f32 %v1405_v58 }
 0x995   :  { %13363 = vst [vmem:[#allocation72_spill] sm:$0xff] %v11628_v16  ;;  %v11630_v34 = vpop.eup %8766  ;;  %v11632_v10 = vpop.f32.mrb[219].mxu0  ;;  %8778 = vpow2.f32 %v3019_v6 }
 0x996   :  { %13364 = vst [vmem:[#allocation73_spill] sm:$0xff] %v11632_v10  ;;  %v11634_v39 = vpop.eup %8768  ;;  %3043 = vadd.xlane.f32.xlu1 %v11630_v34  ;;  %v2976_v55 = vpop.xlane.xlu1 %2975  ;;  %8780 = vpow2.f32 %v3017_v59 }
 0x997   :  { %3041 = vadd.xlane.f32.xlu0 %v11634_v39  ;;  %v2974_v61 = vpop.xlane.xlu0 %2973  ;;  %v3000_v44 = vsub.f32 %v11265_v23, %v2976_v55 }
 0x998   :  { %v11642_v46 = vpop.f32.mrb[220].mxu0  ;;  %v2999_v60 = vsub.f32 %v11268_v11, %v2974_v61  ;;  %v11666_v11 = vadd.f32 %v11284_v29, %v11431_v9 }
 0x999   :  { %13365 = vst [vmem:[#allocation74_spill] sm:$0xff] %v11642_v46  ;;  %v11648_v63 = vpop.f32.mrb[221].mxu0  ;;  %v11656_v43 = vpop.eup %8770  ;;  %v3023_v15 = vmul.f32 1.442695, %v3000_v44 }
 0x99a   :  { %13366 = vst [vmem:[#allocation75_spill] sm:$0xff] %v11648_v63  ;;  %3382 = vmax.xlane.f32.xlu1 %v11640_v54  ;;  %v1411_v52 = vpop.xlane.xlu1 %1410  ;;  %v11660_v19 = vpop.eup %8772  ;;  %v3021_v61 = vmul.f32 1.442695, %v2999_v60 }
 0x99b   :  { %3380 = vmax.xlane.f32.xlu0 %v11646_v12  ;;  %v1409_v32 = vpop.xlane.xlu0 %1408  ;;  %8782 = vrcp.f32 %v1411_v52 }
 0x99c   :  { %v11654_v48 = vpop.f32.mrb[222].mxu0  ;;  %8784 = vrcp.f32 %v1409_v32  ;;  %v11673_v32 = vadd.f32 %v11292_v56, %v11435_v37 }
 0x99d   :  { %13367 = vst [vmem:[#allocation76_spill] sm:$0xff] %v11654_v48  ;;  %v11658_v30 = vpop.f32.mrb[223].mxu0  ;;  %v8775_v23 = vpop.eup %8774  ;;  %8786 = vpow2.f32 %v3023_v15 }
 0x99e   :  { %13368 = vst [vmem:[#allocation77_spill] sm:$0xff] %v11658_v30  ;;  %3047 = vadd.xlane.f32.xlu1 %v11656_v43  ;;  %v2980_v58 = vpop.xlane.xlu1 %2979  ;;  %v8777_v6 = vpop.eup %8776  ;;  %v1453_v52 = vmul.f32 %v8775_v23, %v11243_v17  ;;  %8788 = vpow2.f32 %v3021_v61  ;;  %v11698_v61 = vadd.f32 %v11332_v47, %v11445_v57 }
 0x99f   :  { %3045 = vadd.xlane.f32.xlu0 %v11660_v19  ;;  %v2978_v55 = vpop.xlane.xlu0 %2977  ;;  %v1452_v44 = vmul.f32 %v8777_v6, %v11251_v26  ;;  %v3002_v29 = vsub.f32 %v11305_v4, %v2980_v58  ;;  %v11684_v37 = vpop.eup %8778 }
 0x9a0   :  { %v11668_v59 = vpop.f32.mrb[224].mxu0  ;;  %v3001_v17 = vsub.f32 %v11308_v38, %v2978_v55  ;;  %v11689_v15 = vpop.eup %8780 }
 0x9a1   :  { %13369 = vst [vmem:[#allocation78_spill] sm:$0xff] %v11668_v59  ;;  %v11675_v30 = vpop.f32.mrb[225].mxu0  ;;  %v8063_v9 = vpack.c.bf16 %v1453_v52, %v1452_v44  ;;  %v11681_v59 = vld [vmem:[#allocation2 + $0x309] ss:$0 sm:$0xff]  ;;  %v3027_v55 = vmul.f32 1.442695, %v3002_v29 }
 0x9a2   :  { %13370 = vst [vmem:[#allocation79_spill] sm:$0xff] %v11675_v30  ;;  %3386 = vmax.xlane.f32.xlu1 %v11666_v11  ;;  %v1415_v48 = vpop.xlane.xlu1 %1414  ;;  %v3025_v52 = vmul.f32 1.442695, %v3001_v17  ;;  %v13412_v30 = vld [vmem:[#allocation29_spill] sm:$0xff] }
 0x9a3   :  { %3384 = vmax.xlane.f32.xlu0 %v11673_v32  ;;  %v1413_v60 = vpop.xlane.xlu0 %1412  ;;  %8790 = vrcp.f32 %v1415_v48  ;;  %8064 = vmatprep.subr.bf16.mxu1 %v8063_v9 }
 0x9a4   :  { %v7819_v56 = vpop.f32.mrb[226].mxu0  ;;  %8792 = vrcp.f32 %v1413_v60  ;;  %8066 = vmatpush3.bf16.xpose.msra.mxu1 %v8063_v9  ;;  %v11703_v60 = vadd.f32 %v11342_v8, %v11450_v27 }
 0x9a5   :  { %v11687_v26 = vadd.f32 %v7819_v56, %v11681_v59  ;;  %v4958_v23 = vpop.f32.mrb[227].mxu0  ;;  %v8783_v38 = vpop.eup %8782  ;;  %8794 = vpow2.f32 %v3027_v55 }
 0x9a6   :  { %v11692_v4 = vadd.f32 %v11681_v59, %v4958_v23  ;;  %3051 = vadd.xlane.f32.xlu1 %v11684_v37  ;;  %v2984_v58 = vpop.xlane.xlu1 %2983  ;;  %v8785_v6 = vpop.eup %8784  ;;  %v1455_v9 = vmul.f32 %v8783_v38, %v11279_v24  ;;  %8796 = vpow2.f32 %v3025_v52 }
 0x9a7   :  { %13371 = vst [vmem:[#allocation80_spill] sm:$0xff] %v11687_v26  ;;  %3049 = vadd.xlane.f32.xlu0 %v11689_v15  ;;  %v2982_v48 = vpop.xlane.xlu0 %2981  ;;  %v1454_v23 = vmul.f32 %v8785_v6, %v11287_v28  ;;  %v3004_v57 = vsub.f32 %v11353_v42, %v2984_v58  ;;  %v11716_v38 = vpop.eup %8786  ;;  %v13411_v26 = vld [vmem:[#allocation30_spill] sm:$0xff] }
 0x9a8   :  { %13372 = vst [vmem:[#allocation81_spill] sm:$0xff] %v11692_v4  ;;  %v7822_v44 = vpop.f32.mrb[228].mxu0  ;;  %v3003_v27 = vsub.f32 %v11356_v20, %v2982_v48 }
 0x9a9   :  { %v11706_v56 = vadd.f32 %v7822_v44, %v11681_v59  ;;  %v4968_v29 = vpop.f32.mrb[229].mxu0  ;;  %v8067_v24 = vpack.c.bf16 %v1455_v9, %v1454_v23  ;;  %v11721_v44 = vpop.eup %8788  ;;  %v3031_v55 = vmul.f32 1.442695, %v3004_v57  ;;  %v11730_v9 = vadd.f32 %v11376_v49, %v11463_v25 }
 0x9aa   :  { %v11710_v4 = vadd.f32 %v11681_v59, %v4968_v29  ;;  %3390 = vmax.xlane.f32.xlu1 %v11698_v61  ;;  %v1419_v47 = vpop.xlane.xlu1 %1418  ;;  %v3029_v29 = vmul.f32 1.442695, %v3003_v27 }
 0x9ab   :  { %13373 = vst [vmem:[#allocation82_spill] sm:$0xff] %v11706_v56  ;;  %3388 = vmax.xlane.f32.xlu0 %v11703_v60  ;;  %v1417_v8 = vpop.xlane.xlu0 %1416  ;;  %8798 = vrcp.f32 %v1419_v47  ;;  %8068 = vmatprep.subr.bf16.mxu1 %v8067_v24 }
 0x9ac   :  { %13374 = vst [vmem:[#allocation83_spill] sm:$0xff] %v11710_v4  ;;  %v7825_v17 = vpop.f32.mrb[230].mxu0  ;;  %8800 = vrcp.f32 %v1417_v8  ;;  %8070 = vmatpush3.bf16.xpose.msra.mxu1 %v8067_v24  ;;  %v11735_v24 = vadd.f32 %v11386_v41, %v11467_v0  ;;  %v13408_v4 = vld [vmem:[#allocation16_spill] sm:$0xff] }
 0x9ad   :  { %v11719_v28 = vadd.f32 %v7825_v17, %v11681_v59  ;;  %v4978_v6 = vpop.f32.mrb[231].mxu0  ;;  %v8791_v20 = vpop.eup %8790  ;;  %8802 = vpow2.f32 %v3031_v55 }
 0x9ae   :  { %v11724_v42 = vadd.f32 %v11681_v59, %v4978_v6  ;;  %3055 = vadd.xlane.f32.xlu1 %v11716_v38  ;;  %v2988_v58 = vpop.xlane.xlu1 %2987  ;;  %v8793_v52 = vpop.eup %8792  ;;  %v1457_v47 = vmul.f32 %v8791_v20, %v11327_v35  ;;  %8804 = vpow2.f32 %v3029_v29 }
 0x9af   :  { %13375 = vst [vmem:[#allocation84_spill] sm:$0xff] %v11719_v28  ;;  %3053 = vadd.xlane.f32.xlu0 %v11721_v44  ;;  %v2986_v48 = vpop.xlane.xlu0 %2985  ;;  %v1456_v17 = vmul.f32 %v8793_v52, %v11337_v40  ;;  %v3006_v25 = vsub.f32 %v11395_v31, %v2988_v58  ;;  %v11750_v20 = vpop.eup %8794  ;;  %v11760_v52 = vadd.f32 %v11419_v5, %v11477_v18 }
 0x9b0   :  { %13376 = vst [vmem:[#allocation85_spill] sm:$0xff] %v11724_v42  ;;  %v7828_v23 = vpop.f32.mrb[232].mxu0  ;;  %v3005_v0 = vsub.f32 %v11400_v7, %v2986_v48 }
 0x9b1   :  { %v11738_v8 = vadd.f32 %v7828_v23, %v11681_v59  ;;  %v4988_v57 = vpop.f32.mrb[233].mxu0  ;;  %v8071_v35 = vpack.c.bf16 %v1457_v47, %v1456_v17  ;;  %v3035_v55 = vmul.f32 1.442695, %v3006_v25  ;;  %v13382_v47 = vld [vmem:[#allocation7_spill] sm:$0xff]  ;;  %v11767_v17 = vadd.f32 %v11428_v13, %v11481_v36  ;;  %v13384_v25 = vld [vmem:[#allocation8_spill] sm:$0xff] }
 0x9b2   :  { %v11742_v6 = vadd.f32 %v11681_v59, %v4988_v57  ;;  %3394 = vmax.xlane.f32.xlu1 %v11730_v9  ;;  %v1423_v49 = vpop.xlane.xlu1 %1422  ;;  %v11754_v59 = vpop.eup %8796  ;;  %v3033_v29 = vmul.f32 1.442695, %v3005_v0  ;;  %v13385_v13 = vld [vmem:[#allocation11_spill] sm:$0xff] }
 0x9b3   :  { %13377 = vst [vmem:[#allocation86_spill] sm:$0xff] %v11738_v8  ;;  %3392 = vmax.xlane.f32.xlu0 %v11735_v24  ;;  %v1421_v41 = vpop.xlane.xlu0 %1420  ;;  %8806 = vrcp.f32 %v1423_v49  ;;  %8072 = vmatprep.subr.bf16.mxu1 %v8071_v35 }
 0x9b4   :  { %13378 = vst [vmem:[#allocation87_spill] sm:$0xff] %v11742_v6  ;;  %v11748_v27 = vpop.f32.mrb[234].mxu0  ;;  %8808 = vrcp.f32 %v1421_v41  ;;  %8074 = vmatpush3.bf16.xpose.msra.mxu1 %v8071_v35 }
 0x9b5   :  { %13379 = vst [vmem:[#allocation88_spill] sm:$0xff] %v11748_v27  ;;  %v11752_v40 = vpop.f32.mrb[235].mxu0  ;;  %v8799_v58 = vpop.eup %8798  ;;  %8810 = vpow2.f32 %v3035_v55 }
 0x9b6   :  { %13380 = vst [vmem:[#allocation89_spill] sm:$0xff] %v11752_v40  ;;  %3059 = vadd.xlane.f32.xlu1 %v11750_v20  ;;  %v2992_v31 = vpop.xlane.xlu1 %2991  ;;  %v8801_v48 = vpop.eup %8800  ;;  %v1459_v57 = vmul.f32 %v8799_v58, %v13382_v47  ;;  %v3686_v58 = vadd.f32 %v11490_v53, %v11544_v33  ;;  %8812 = vpow2.f32 %v3033_v29  ;;  %v13401_v40 = vld [vmem:[#allocation25_spill] sm:$0xff] }
 0x9b7   :  { %3057 = vadd.xlane.f32.xlu0 %v11754_v59  ;;  %v2990_v7 = vpop.xlane.xlu0 %2989  ;;  %v1458_v35 = vmul.f32 %v8801_v48, %v13384_v25  ;;  %v3008_v5 = vsub.f32 %v11439_v2, %v2992_v31  ;;  %v3681_v48 = vadd.f32 %v11544_v33, %v11494_v45  ;;  %v3706_v27 = vadd.f32 %v13401_v40, %v11544_v33 }
 0x9b8   :  { %v11762_v23 = vpop.f32.mrb[236].mxu0  ;;  %v3007_v36 = vsub.f32 %v13385_v13, %v2990_v7  ;;  %v11791_v25 = vadd.f32 %v11140_v50, %v3686_v58 }
 0x9b9   :  { %13381 = vst [vmem:[#allocation90_spill] sm:$0xff] %v11762_v23  ;;  %v11769_v49 = vpop.f32.mrb[237].mxu0  ;;  %v8075_v18 = vpack.c.bf16 %v1459_v57, %v1458_v35  ;;  %v3039_v7 = vmul.f32 1.442695, %v3008_v5 }
 0x9ba   :  { %13383 = vst [vmem:[#allocation7_spill] sm:$0xff] %v11769_v49  ;;  %3398 = vmax.xlane.f32.xlu1 %v11760_v52  ;;  %v1427_v41 = vpop.xlane.xlu1 %1426  ;;  %v11780_v49 = vpop.eup %8802  ;;  %v3037_v45 = vmul.f32 1.442695, %v3007_v36  ;;  %v3696_v36 = vadd.f32 %v11504_v1, %v11544_v33 }
 0x9bb   :  { %3396 = vmax.xlane.f32.xlu0 %v11767_v17  ;;  %v1425_v0 = vpop.xlane.xlu0 %1424  ;;  %8814 = vrcp.f32 %v1427_v41  ;;  %8076 = vmatprep.subr.bf16.mxu1 %v8075_v18  ;;  %v11786_v31 = vpop.eup %8804  ;;  %v13389_v41 = vld [vmem:[#allocation9_spill] sm:$0xff] }
 0x9bc   :  { %v11778_v47 = vpop.f32.mrb[238].mxu0  ;;  %8816 = vrcp.f32 %v1425_v0  ;;  %8078 = vmatpush3.bf16.xpose.msra.mxu1 %v8075_v18  ;;  %v11797_v0 = vadd.f32 %v11146_v62, %v3681_v48  ;;  %v13392_v62 = vld [vmem:[#allocation14_spill] sm:$0xff] }
 0x9bd   :  { %13386 = vst [vmem:[#allocation8_spill] sm:$0xff] %v11778_v47  ;;  %v11784_v2 = vpop.f32.mrb[239].mxu0  ;;  %v8807_v55 = vpop.eup %8806  ;;  %8818 = vpow2.f32 %v3039_v7 }
 0x9be   :  { %13387 = vst [vmem:[#allocation11_spill] sm:$0xff] %v11784_v2  ;;  %3063 = vadd.xlane.f32.xlu1 %v11780_v49  ;;  %v3371_v53 = vpop.xlane.xlu1 %3370  ;;  %v8809_v57 = vpop.eup %8808  ;;  %v1461_v13 = vmul.f32 %v8807_v55, %v13389_v41  ;;  %v13391_v2 = vld [vmem:[#allocation10_spill] sm:$0xff]  ;;  %8820 = vpow2.f32 %v3037_v45 }
 0x9bf   :  { %3061 = vadd.xlane.f32.xlu0 %v11786_v31  ;;  %v3369_v29 = vpop.xlane.xlu0 %3368  ;;  %v1460_v47 = vmul.f32 %v8809_v57, %v13391_v2  ;;  %v3401_v23 = vsub.f32 %v11471_v51, %v3371_v53  ;;  %v11810_v41 = vpop.eup %8810  ;;  %v13394_v2 = vld [vmem:[#allocation23_spill] sm:$0xff] }
 0x9c0   :  { %v11793_v35 = vpop.f32.mrb[240].mxu0  ;;  %v3400_v48 = vsub.f32 %v13392_v62, %v3369_v29  ;;  %v3691_v57 = vadd.f32 %v11544_v33, %v13394_v2  ;;  %v11816_v53 = vpop.eup %8812 }
 0x9c1   :  { %13388 = vst [vmem:[#allocation91_spill] sm:$0xff] %v11793_v35  ;;  %v11799_v18 = vpop.f32.mrb[241].mxu0  ;;  %v8079_v50 = vpack.c.bf16 %v1461_v13, %v1460_v47  ;;  %v3418_v7 = vmul.f32 1.442695, %v3401_v23  ;;  %v11823_v13 = vld [vmem:[%s13227_s3 + $0x98] sm:$0xff]  ;;  %v11834_v23 = vld [vmem:[%s13227_s3 + $0x90] sm:$0xff] }
 0x9c2   :  { %13390 = vst [vmem:[#allocation9_spill] sm:$0xff] %v11799_v18  ;;  %3777 = vmax.xlane.f32.xlu1 %v11791_v25  ;;  %v1431_v5 = vpop.xlane.xlu1 %1430  ;;  %v3416_v62 = vmul.f32 1.442695, %v3400_v48  ;;  %v13399_v18 = vld [vmem:[#allocation13_spill] sm:$0xff] }
 0x9c3   :  { %3775 = vmax.xlane.f32.xlu0 %v11797_v0  ;;  %v1429_v58 = vpop.xlane.xlu0 %1428  ;;  %8822 = vrcp.f32 %v1431_v5  ;;  %8080 = vmatprep.subr.bf16.mxu1 %v8079_v50  ;;  %v11826_v5 = vadd.f32 %v11823_v13, %v3696_v36  ;;  %v13400_v48 = vld [vmem:[#allocation21_spill] sm:$0xff] }
 0x9c4   :  { %v11808_v55 = vpop.f32.mrb[242].mxu0  ;;  %8824 = vrcp.f32 %v1429_v58  ;;  %8082 = vmatpush3.bf16.xpose.msra.mxu1 %v8079_v50  ;;  %v13397_v50 = vld [vmem:[#allocation12_spill] sm:$0xff] }
 0x9c5   :  { %13393 = vst [vmem:[#allocation10_spill] sm:$0xff] %v11808_v55  ;;  %v11814_v51 = vpop.f32.mrb[243].mxu0  ;;  %v8815_v47 = vpop.eup %8814  ;;  %8826 = vpow2.f32 %v3418_v7 }
 0x9c6   :  { %13395 = vst [vmem:[#allocation14_spill] sm:$0xff] %v11814_v51  ;;  %3067 = vadd.xlane.f32.xlu1 %v11810_v41  ;;  %v3375_v1 = vpop.xlane.xlu1 %3374  ;;  %v8817_v45 = vpop.eup %8816  ;;  %v1463_v2 = vmul.f32 %v8815_v47, %v13397_v50  ;;  %v11837_v51 = vadd.f32 %v11834_v23, %v3691_v57  ;;  %8828 = vpow2.f32 %v3416_v62  ;;  %v13402_v57 = vld [vmem:[#allocation22_spill] sm:$0xff] }
 0x9c7   :  { %3065 = vadd.xlane.f32.xlu0 %v11816_v53  ;;  %v3373_v29 = vpop.xlane.xlu0 %3372  ;;  %v1462_v35 = vmul.f32 %v8817_v45, %v13399_v18  ;;  %v13404_v18 = vld [vmem:[#allocation27_spill] sm:$0xff]  ;;  %v6396_v62 = vld [vmem:[#allocation2 + $0x30a] ss:$0 sm:$0xff] }
 0x9c8   :  { %v11828_v58 = vpop.f32.mrb[244].mxu0  ;;  %v3402_v6 = vsub.f32 %v13402_v57, %v3373_v29  ;;  %v3701_v45 = vadd.f32 %v11544_v33, %v13404_v18 }
 0x9c9   :  { %13396 = vst [vmem:[#allocation23_spill] sm:$0xff] %v11828_v58  ;;  %v11839_v55 = vpop.f32.mrb[245].mxu0  ;;  %v3403_v58 = vsub.f32 %v13400_v48, %v3375_v1  ;;  %v8083_v47 = vpack.c.bf16 %v1463_v2, %v1462_v35  ;;  %v11863_v2 = vld [vmem:[%s13227_s3 + $0xa8] sm:$0xff] }
 0x9ca   :  { %13398 = vst [vmem:[#allocation12_spill] sm:$0xff] %v11839_v55  ;;  %3781 = vmax.xlane.f32.xlu1 %v11826_v5  ;;  %v1435_v36 = vpop.xlane.xlu1 %1434  ;;  %v11850_v55 = vpop.eup %8818  ;;  %v3420_v48 = vmul.f32 1.442695, %v3402_v6  ;;  %v13410_v6 = vld [vmem:[#allocation28_spill] sm:$0xff] }
 0x9cb   :  { %3779 = vmax.xlane.f32.xlu0 %v11837_v51  ;;  %v1433_v50 = vpop.xlane.xlu0 %1432  ;;  %8830 = vrcp.f32 %v1435_v36  ;;  %8084 = vmatprep.subr.bf16.mxu1 %v8083_v47  ;;  %v11856_v7 = vpop.eup %8820  ;;  %v3422_v35 = vmul.f32 1.442695, %v3403_v58  ;;  %v11866_v36 = vadd.f32 %v11863_v2, %v3706_v27  ;;  %v11872_v58 = vld [vmem:[%s13227_s3 + $0xa0] sm:$0xff] }
 0x9cc   :  { %v11848_v8 = vpop.f32.mrb[246].mxu0  ;;  %8832 = vrcp.f32 %v1433_v50  ;;  %8086 = vmatpush3.bf16.xpose.msra.mxu1 %v8083_v47  ;;  %v13406_v47 = vld [vmem:[#allocation15_spill] sm:$0xff] }
 0x9cd   :  { %13403 = vst [vmem:[#allocation13_spill] sm:$0xff] %v11848_v8  ;;  %v11854_v1 = vpop.f32.mrb[247].mxu0  ;;  %v8823_v40 = vpop.eup %8822  ;;  %8834 = vpow2.f32 %v3422_v35 }
 0x9ce   :  { %13405 = vst [vmem:[#allocation21_spill] sm:$0xff] %v11854_v1  ;;  %3071 = vadd.xlane.f32.xlu1 %v11850_v55  ;;  %v8825_v29 = vpop.eup %8824  ;;  %v3379_v57 = vpop.xlane.xlu1 %3378  ;;  %v1465_v18 = vmul.f32 %v8823_v40, %v13406_v47  ;;  %v11875_v1 = vadd.f32 %v11872_v58, %v3701_v45  ;;  %v3716_v45 = vadd.f32 %v13411_v26, %v11544_v33  ;;  %8836 = vpow2.f32 %v3420_v48 }
 0x9cf   :  { %3069 = vadd.xlane.f32.xlu0 %v11856_v7  ;;  %v3377_v8 = vpop.xlane.xlu0 %3376  ;;  %v1464_v27 = vmul.f32 %v8825_v29, %v13408_v4  ;;  %v3405_v40 = vsub.f32 %v13410_v6, %v3379_v57  ;;  %v11890_v63 = vpop.eup %8826  ;;  %v13414_v4 = vld [vmem:[#allocation31_spill] sm:$0xff] }
 0x9d0   :  { %v7898_v50 = vpop.f32.mrb[248].mxu0  ;;  %v11896_v29 = vpop.eup %8828 }
 0x9d1   :  { %v11877_v42 = vadd.f32 %v7898_v50, %v6396_v62  ;;  %v5395_v28 = vpop.f32.mrb[249].mxu0  ;;  %v8087_v47 = vpack.c.bf16 %v1465_v18, %v1464_v27  ;;  %v3404_v50 = vsub.f32 %v13412_v30, %v3377_v8  ;;  %v3426_v26 = vmul.f32 1.442695, %v3405_v40  ;;  %v11903_v8 = vld [vmem:[%s13227_s3 + $0xb8] sm:$0xff]  ;;  %v11914_v40 = vld [vmem:[%s13227_s3 + $0xb0] sm:$0xff] }
 0x9d2   :  { %v11880_v56 = vadd.f32 %v6396_v62, %v5395_v28  ;;  %3785 = vmax.xlane.f32.xlu1 %v11866_v36  ;;  %v3711_v28 = vadd.f32 %v11544_v33, %v13414_v4  ;;  %v11906_v48 = vadd.f32 %v11903_v8, %v3716_v45  ;;  %v13417_v27 = vld [vmem:[#allocation24_spill] sm:$0xff] }
 0x9d3   :  { %13407 = vst [vmem:[#allocation25_spill] sm:$0xff] %v11877_v42  ;;  %3783 = vmax.xlane.f32.xlu0 %v11875_v1  ;;  %8088 = vmatprep.subr.bf16.mxu1 %v8087_v47  ;;  %v3424_v57 = vmul.f32 1.442695, %v3404_v50  ;;  %8838 = vpow2.f32 %v3426_v26  ;;  %v13420_v50 = vld [vmem:[#allocation32_spill] sm:$0xff] }
 0x9d4   :  { %13409 = vst [vmem:[#allocation22_spill] sm:$0xff] %v11880_v56  ;;  %v11888_v42 = vpop.f32.mrb[250].mxu0  ;;  %8090 = vmatpush3.bf16.xpose.msra.mxu1 %v8087_v47  ;;  %v11917_v47 = vadd.f32 %v11914_v40, %v3711_v28  ;;  %v13423_v28 = vld [vmem:[#allocation33_spill] sm:$0xff] }
 0x9d5   :  { %13413 = vst [vmem:[#allocation27_spill] sm:$0xff] %v11888_v42  ;;  %v11894_v35 = vpop.f32.mrb[251].mxu0  ;;  %v8831_v62 = vpop.eup %8830  ;;  %8840 = vpow2.f32 %v3424_v57  ;;  %v3721_v56 = vadd.f32 %v11544_v33, %v13423_v28  ;;  %v11951_v57 = vld [vmem:[%s13227_s3 + $0xc0] sm:$0xff]  ;;  %v1075_v28 = vld [vmem:[#allocation2 + $0x188] sm:$0xff] }
 0x9d6   :  { %13415 = vst [vmem:[#allocation15_spill] sm:$0xff] %v11894_v35  ;;  %3450 = vadd.xlane.f32.xlu1 %v11890_v63  ;;  %v8833_v30 = vpop.eup %8832  ;;  %v1467_v6 = vmul.f32 %v8831_v62, %v13417_v27  ;;  %v13419_v35 = vld [vmem:[#allocation26_spill] sm:$0xff]  ;;  %v3726_v62 = vadd.f32 %v13420_v50, %v11544_v33 }
 0x9d7   :  { %3448 = vadd.xlane.f32.xlu0 %v11896_v29  ;;  %v1466_v42 = vmul.f32 %v8833_v30, %v13419_v35  ;;  %v13428_v50 = vld [vmem:[#allocation34_spill] sm:$0xff] }
 0x9d8   :  { %v11908_v18 = vpop.f32.mrb[252].mxu0 }
 0x9d9   :  { %13416 = vst [vmem:[#allocation16_spill] sm:$0xff] %v11908_v18  ;;  %v11919_v4 = vpop.f32.mrb[253].mxu0  ;;  %v8091_v45 = vpack.c.bf16 %v1467_v6, %v1466_v42  ;;  %v11928_v18 = vpop.eup %8834  ;;  %v11941_v42 = vld [vmem:[%s13227_s3 + $0xc8] sm:$0xff]  ;;  %v11954_v6 = vadd.f32 %v11951_v57, %v3721_v56  ;;  %v1076_v56 = vld [vmem:[#allocation2 + $0x190] sm:$0xff] }
 0x9da   :  { %13418 = vst [vmem:[#allocation28_spill] sm:$0xff] %v11919_v4  ;;  %3789 = vmax.xlane.f32.xlu1 %v11906_v48  ;;  %13422 = vst [vmem:[#allocation29_spill] sm:$0xff] %v11928_v18  ;;  %v11934_v35 = vpop.eup %8836  ;;  %v11944_v26 = vadd.f32 %v11941_v42, %v3726_v62  ;;  %v3736_v62 = vadd.f32 %v13428_v50, %v11544_v33  ;;  %v11977_v50 = vld [vmem:[%s13227_s3 + $0xd8] sm:$0xff] }
 0x9db   :  { %3787 = vmax.xlane.f32.xlu0 %v11917_v47  ;;  %8092 = vmatprep.subr.bf16.mxu1 %v8091_v45  ;;  %13425 = vst [vmem:[#allocation24_spill] sm:$0xff] %v11934_v35 }
 0x9dc   :  { %v11926_v27 = vpop.f32.mrb[254].mxu0  ;;  %8094 = vmatpush3.bf16.xpose.msra.mxu1 %v8091_v45 }
 0x9dd   :  { %13421 = vst [vmem:[#allocation30_spill] sm:$0xff] %v11926_v27  ;;  %v11932_v4 = vpop.f32.mrb[255].mxu0  ;;  %v13431_v27 = vld [vmem:[#allocation35_spill] sm:$0xff] }
 0x9de   :  { %13424 = vst [vmem:[#allocation31_spill] sm:$0xff] %v11932_v4  ;;  %3454 = vadd.xlane.f32.xlu1 %v11928_v18  ;;  %v3731_v46 = vadd.f32 %v11544_v33, %v13431_v27  ;;  %v1077_v33 = vld [vmem:[#allocation2 + $0x198] sm:$0xff] }
 0x9df   :  { %3452 = vadd.xlane.f32.xlu0 %v11934_v35 }
 0x9e0   :  { %v11946_v30 = vpop.f32.mrb[0].mxu0 }
 0x9e1   :  { %13426 = vst [vmem:[#allocation26_spill] sm:$0xff] %v11946_v30  ;;  %v11956_v45 = vpop.f32.mrb[1].mxu0  ;;  %v11964_v30 = vpop.eup %8838 }
 0x9e2   :  { %13427 = vst [vmem:[#allocation32_spill] sm:$0xff] %v11956_v45  ;;  %3793 = vmax.xlane.f32.xlu1 %v11944_v26  ;;  %13430 = vst [vmem:[#allocation34_spill] sm:$0xff] %v11964_v30  ;;  %v11970_v45 = vpop.eup %8840 }
 0x9e3   :  { %3791 = vmax.xlane.f32.xlu0 %v11954_v6  ;;  %7302 = vmatmul.mubr.f32.vlgmr.msra.gmra.mrb[32].mxu1 %v1075_v28  ;;  %13433 = vst [vmem:[#allocation92_spill] sm:$0xff] %v11970_v45  ;;  %v11987_v28 = vld [vmem:[%s13227_s3 + $0xd0] sm:$0xff] }
 0x9e4   :  { %v11962_v4 = vpop.f32.mrb[2].mxu0  ;;  %7304 = vmatprep.mubr.f32.mxu1 %v1076_v56  ;;  %v11990_v56 = vadd.f32 %v11987_v28, %v3731_v46 }
 0x9e5   :  { %13429 = vst [vmem:[#allocation33_spill] sm:$0xff] %v11962_v4  ;;  %v11968_v10 = vpop.f32.mrb[3].mxu0  ;;  %v11980_v4 = vadd.f32 %v11977_v50, %v3736_v62 }
 0x9e6   :  { %13432 = vst [vmem:[#allocation35_spill] sm:$0xff] %v11968_v10  ;;  %3458 = vadd.xlane.f32.xlu1 %v11964_v30  ;;  %v2774_v10 = vld [vmem:[#allocation2 + $0x200] sm:$0xff] }
 0x9e7   :  { %3456 = vadd.xlane.f32.xlu0 %v11970_v45  ;;  %7305 = vmatmul.mubr.f32.gmra.mrb[34].mxu1 %v1077_v33 }
 0x9e8   :  { %v11982_v27 = vpop.f32.mrb[4].mxu0  ;;  %7511 = vmatprep.mubr.f32.mxu1 %v2774_v10 }
 0x9e9   :  { %13434 = vst [vmem:[#allocation93_spill] sm:$0xff] %v11982_v27  ;;  %v11992_v16 = vpop.f32.mrb[5].mxu0 }
 0x9ea   :  { %13435 = vst [vmem:[#allocation94_spill] sm:$0xff] %v11992_v16  ;;  %3797 = vmax.xlane.f32.xlu1 %v11980_v4 }
 0x9eb   :  { %3795 = vmax.xlane.f32.xlu0 %v11990_v56 }
 0x9ec   :  { %v11996_v62 = vpop.f32.mrb[6].mxu0 }
 0x9ed   :  { %13436 = vst [vmem:[#allocation95_spill] sm:$0xff] %v11996_v62  ;;  %v11998_v27 = vpop.f32.mrb[7].mxu0 }
 0x9ee   :  { %13437 = vst [vmem:[#allocation96_spill] sm:$0xff] %v11998_v27 }
 0x9f0   :  { %v12000_v22 = vpop.f32.mrb[8].mxu0 }
 0x9f1   :  { %13438 = vst [vmem:[#allocation97_spill] sm:$0xff] %v12000_v22  ;;  %v12002_v3 = vpop.f32.mrb[9].mxu0 }
 0x9f2   :  { %13439 = vst [vmem:[#allocation98_spill] sm:$0xff] %v12002_v3 }
 0xa23   :  { %v3044_v14 = vpop.xlane.xlu1 %3043 }
 0xa24   :  { %8842 = vrcp.f32 %v3044_v14  ;;  %v3042_v46 = vpop.xlane.xlu0 %3041 }
 0xa25   :  { %8844 = vrcp.f32 %v3042_v46 }
 0xa27   :  { %v3383_v33 = vpop.xlane.xlu1 %3382 }
 0xa28   :  { %v3407_v16 = vsub.f32 %v11640_v54, %v3383_v33  ;;  %v3381_v10 = vpop.xlane.xlu0 %3380 }
 0xa29   :  { %v3406_v21 = vsub.f32 %v11646_v12, %v3381_v10 }
 0xa2a   :  { %v3430_v45 = vmul.f32 1.442695, %v3407_v16 }
 0xa2b   :  { %v3428_v30 = vmul.f32 1.442695, %v3406_v21  ;;  %v3048_v35 = vpop.xlane.xlu1 %3047 }
 0xa2c   :  { %8846 = vpow2.f32 %v3430_v45  ;;  %v3046_v62 = vpop.xlane.xlu0 %3045 }
 0xa2d   :  { %8848 = vpow2.f32 %v3428_v30 }
 0xa2e   :  { %v8843_v27 = vpop.eup %8842  ;;  %8850 = vrcp.f32 %v3048_v35 }
 0xa2f   :  { %v8845_v22 = vpop.eup %8844  ;;  %8852 = vrcp.f32 %v3046_v62  ;;  %v3387_v3 = vpop.xlane.xlu1 %3386  ;;  %v3090_v14 = vmul.f32 %v8843_v27, %v11630_v34  ;;  %v13440_v27 = vld [vmem:[#allocation36_spill] sm:$0xff] }
 0xa30   :  { %v3409_v46 = vsub.f32 %v11666_v11, %v3387_v3  ;;  %v3385_v18 = vpop.xlane.xlu0 %3384  ;;  %v3089_v54 = vmul.f32 %v8845_v22, %v11634_v39 }
 0xa31   :  { %v3408_v12 = vsub.f32 %v11673_v32, %v3385_v18  ;;  %v12020_v18 = vld [vmem:[%s13227_s3 + $0xe8] sm:$0xff] }
 0xa32   :  { %v3434_v16 = vmul.f32 1.442695, %v3409_v46  ;;  %v8183_v21 = vpack.c.bf16 %v3090_v14, %v3089_v54  ;;  %v12024_v62 = vadd.f32 %v12020_v18, %v13440_v27  ;;  %v13441_v46 = vld [vmem:[#allocation37_spill] sm:$0xff]  ;;  %v13442_v27 = vld [vmem:[#allocation38_spill] sm:$0xff] }
 0xa33   :  { %v3432_v33 = vmul.f32 1.442695, %v3408_v12  ;;  %v3052_v45 = vpop.xlane.xlu1 %3051 }
 0xa34   :  { %8854 = vpow2.f32 %v3434_v16  ;;  %8184 = vmatprep.subr.bf16.mxu1 %v8183_v21  ;;  %v3050_v30 = vpop.xlane.xlu0 %3049 }
 0xa35   :  { %8856 = vpow2.f32 %v3432_v33  ;;  %8186 = vmatpush3.bf16.xpose.msra.mxu1 %v8183_v21 }
 0xa36   :  { %v12010_v35 = vpop.eup %8846  ;;  %8858 = vrcp.f32 %v3052_v45 }
 0xa37   :  { %v12012_v34 = vpop.eup %8848  ;;  %8860 = vrcp.f32 %v3050_v30  ;;  %3462 = vadd.xlane.f32.xlu1 %v12010_v35  ;;  %v3391_v22 = vpop.xlane.xlu1 %3390 }
 0xa38   :  { %v8851_v3 = vpop.eup %8850  ;;  %v3411_v39 = vsub.f32 %v11698_v61, %v3391_v22  ;;  %3460 = vadd.xlane.f32.xlu0 %v12012_v34  ;;  %v3389_v11 = vpop.xlane.xlu0 %3388  ;;  %v12031_v61 = vld [vmem:[%s13227_s3 + $0xe0] sm:$0xff] }
 0xa39   :  { %v8853_v32 = vpop.eup %8852  ;;  %v3410_v10 = vsub.f32 %v11703_v60, %v3389_v11  ;;  %v3092_v14 = vmul.f32 %v8851_v3, %v11656_v43  ;;  %v12035_v54 = vadd.f32 %v12031_v61, %v13441_v46 }
 0xa3a   :  { %v3438_v12 = vmul.f32 1.442695, %v3411_v39  ;;  %v3091_v16 = vmul.f32 %v8853_v32, %v11660_v19  ;;  %v12050_v32 = vld [vmem:[%s13227_s3 + $0xf8] sm:$0xff] }
 0xa3b   :  { %v3436_v21 = vmul.f32 1.442695, %v3410_v10  ;;  %3801 = vmax.xlane.f32.xlu1 %v12024_v62  ;;  %v3056_v33 = vpop.xlane.xlu1 %3055  ;;  %v12054_v10 = vadd.f32 %v12050_v32, %v13442_v27 }
 0xa3c   :  { %8862 = vpow2.f32 %v3438_v12  ;;  %3799 = vmax.xlane.f32.xlu0 %v12035_v54  ;;  %v8187_v43 = vpack.c.bf16 %v3092_v14, %v3091_v16  ;;  %v3054_v60 = vpop.xlane.xlu0 %3053  ;;  %v13443_v12 = vld [vmem:[#allocation39_spill] sm:$0xff] }
 0xa3d   :  { %8864 = vpow2.f32 %v3436_v21 }
 0xa3e   :  { %v12040_v45 = vpop.eup %8854  ;;  %8866 = vrcp.f32 %v3056_v33  ;;  %8188 = vmatprep.subr.bf16.mxu1 %v8187_v43 }
 0xa3f   :  { %v12042_v30 = vpop.eup %8856  ;;  %8868 = vrcp.f32 %v3054_v60  ;;  %8190 = vmatpush3.bf16.xpose.msra.mxu1 %v8187_v43  ;;  %3466 = vadd.xlane.f32.xlu1 %v12040_v45  ;;  %v3395_v19 = vpop.xlane.xlu1 %3394 }
 0xa40   :  { %v8859_v22 = vpop.eup %8858  ;;  %v3413_v3 = vsub.f32 %v11730_v9, %v3395_v19  ;;  %3464 = vadd.xlane.f32.xlu0 %v12042_v30  ;;  %v3393_v39 = vpop.xlane.xlu0 %3392  ;;  %v12061_v9 = vld [vmem:[%s13227_s3 + $0xf0] sm:$0xff]  ;;  %v12069_v19 = vld [vmem:[#allocation2 + $0x307] ss:$0 sm:$0xff] }
 0xa41   :  { %v8861_v11 = vpop.eup %8860  ;;  %v3412_v14 = vsub.f32 %v11735_v24, %v3393_v39  ;;  %v3094_v46 = vmul.f32 %v8859_v22, %v11684_v37  ;;  %v12065_v16 = vadd.f32 %v12061_v9, %v13443_v12  ;;  %v13444_v22 = vld [vmem:[#allocation40_spill] sm:$0xff] }
 0xa42   :  { %v3442_v21 = vmul.f32 1.442695, %v3413_v3  ;;  %v3093_v33 = vmul.f32 %v8861_v11, %v11689_v15  ;;  %v4093_v39 = vadd.f32 %v13444_v22, %v12069_v19  ;;  %v13446_v3 = vld [vmem:[#allocation41_spill] sm:$0xff] }
 0xa43   :  { %v3440_v43 = vmul.f32 1.442695, %v3412_v14  ;;  %3805 = vmax.xlane.f32.xlu1 %v12054_v10  ;;  %v3060_v60 = vpop.xlane.xlu1 %3059  ;;  %v4088_v15 = vadd.f32 %v12069_v19, %v13446_v3 }
 0xa44   :  { %8870 = vpow2.f32 %v3442_v21  ;;  %3803 = vmax.xlane.f32.xlu0 %v12065_v16  ;;  %v8191_v37 = vpack.c.bf16 %v3094_v46, %v3093_v33  ;;  %v3058_v24 = vpop.xlane.xlu0 %3057 }
 0xa45   :  { %8872 = vpow2.f32 %v3440_v43  ;;  %v9372_v43 = vld [vmem:[%s13227_s3 + $0x88] sm:$0xff] }
 0xa46   :  { %v12074_v27 = vpop.eup %8862  ;;  %8874 = vrcp.f32 %v3060_v60  ;;  %8192 = vmatprep.subr.bf16.mxu1 %v8191_v37  ;;  %v12086_v60 = vadd.f32 %v9372_v43, %v4093_v39 }
 0xa47   :  { %13445 = vst [vmem:[#allocation36_spill] sm:$0xff] %v12074_v27  ;;  %v12078_v11 = vpop.eup %8864  ;;  %8876 = vrcp.f32 %v3058_v24  ;;  %8194 = vmatpush3.bf16.xpose.msra.mxu1 %v8191_v37  ;;  %3470 = vadd.xlane.f32.xlu1 %v12074_v27  ;;  %v3399_v14 = vpop.xlane.xlu1 %3398  ;;  %v9373_v24 = vld [vmem:[%s13227_s3 + $0x80] sm:$0xff] }
 0xa48   :  { %13447 = vst [vmem:[#allocation37_spill] sm:$0xff] %v12078_v11  ;;  %v8867_v46 = vpop.eup %8866  ;;  %v3415_v12 = vsub.f32 %v11760_v52, %v3399_v14  ;;  %3468 = vadd.xlane.f32.xlu0 %v12078_v11  ;;  %v3397_v21 = vpop.xlane.xlu0 %3396  ;;  %v12093_v3 = vadd.f32 %v9373_v24, %v4088_v15  ;;  %v13449_v15 = vld [vmem:[#allocation43_spill] sm:$0xff] }
 0xa49   :  { %v8869_v33 = vpop.eup %8868  ;;  %v3414_v22 = vsub.f32 %v11767_v17, %v3397_v21  ;;  %v3096_v37 = vmul.f32 %v8867_v46, %v11716_v38  ;;  %v13448_v38 = vld [vmem:[#allocation42_spill] sm:$0xff] }
 0xa4a   :  { %v3446_v52 = vmul.f32 1.442695, %v3415_v12  ;;  %v3095_v14 = vmul.f32 %v8869_v33, %v11721_v44  ;;  %v4103_v46 = vadd.f32 %v13448_v38, %v12069_v19  ;;  %v4098_v12 = vadd.f32 %v12069_v19, %v13449_v15 }
 0xa4b   :  { %v3444_v11 = vmul.f32 1.442695, %v3414_v22  ;;  %4184 = vmax.xlane.f32.xlu1 %v12086_v60  ;;  %v3064_v27 = vpop.xlane.xlu1 %3063 }
 0xa4c   :  { %8878 = vpow2.f32 %v3446_v52  ;;  %4182 = vmax.xlane.f32.xlu0 %v12093_v3  ;;  %v8195_v39 = vpack.c.bf16 %v3096_v37, %v3095_v14  ;;  %v3062_v17 = vpop.xlane.xlu0 %3061  ;;  %v12110_v24 = vadd.f32 %v11823_v13, %v4103_v46  ;;  %v12115_v14 = vadd.f32 %v11834_v23, %v4098_v12  ;;  %v13450_v46 = vld [vmem:[#allocation44_spill] sm:$0xff]  ;;  %v13451_v23 = vld [vmem:[#allocation45_spill] sm:$0xff] }
 0xa4d   :  { %8880 = vpow2.f32 %v3444_v11  ;;  %v4108_v12 = vadd.f32 %v12069_v19, %v13451_v23 }
 0xa4e   :  { %v12100_v21 = vpop.eup %8870  ;;  %8882 = vrcp.f32 %v3064_v27  ;;  %8196 = vmatprep.subr.bf16.mxu1 %v8195_v39 }
 0xa4f   :  { %v12104_v44 = vpop.eup %8872  ;;  %8884 = vrcp.f32 %v3062_v17  ;;  %8198 = vmatpush3.bf16.xpose.msra.mxu1 %v8195_v39  ;;  %3474 = vadd.xlane.f32.xlu1 %v12100_v21  ;;  %v3778_v33 = vpop.xlane.xlu1 %3777 }
 0xa50   :  { %v8875_v43 = vpop.eup %8874  ;;  %v3808_v22 = vsub.f32 %v11791_v25, %v3778_v33  ;;  %3472 = vadd.xlane.f32.xlu0 %v12104_v44  ;;  %v3776_v11 = vpop.xlane.xlu0 %3775 }
 0xa51   :  { %v8877_v37 = vpop.eup %8876  ;;  %v3807_v27 = vsub.f32 %v11797_v0, %v3776_v11  ;;  %v3098_v52 = vmul.f32 %v8875_v43, %v11750_v20  ;;  %v4113_v0 = vadd.f32 %v13450_v46, %v12069_v19  ;;  %v13452_v46 = vld [vmem:[#allocation46_spill] sm:$0xff] }
 0xa52   :  { %v3825_v39 = vmul.f32 1.442695, %v3808_v22  ;;  %v3097_v17 = vmul.f32 %v8877_v37, %v11754_v59 }
 0xa53   :  { %v3823_v38 = vmul.f32 1.442695, %v3807_v27  ;;  %4188 = vmax.xlane.f32.xlu1 %v12110_v24  ;;  %v3068_v25 = vpop.xlane.xlu1 %3067  ;;  %v12132_v27 = vadd.f32 %v11863_v2, %v4113_v0 }
 0xa54   :  { %8886 = vpow2.f32 %v3825_v39  ;;  %4186 = vmax.xlane.f32.xlu0 %v12115_v14  ;;  %v8199_v15 = vpack.c.bf16 %v3098_v52, %v3097_v17  ;;  %v3066_v13 = vpop.xlane.xlu0 %3065  ;;  %v12137_v17 = vadd.f32 %v11872_v58, %v4108_v12  ;;  %v13453_v58 = vld [vmem:[#allocation47_spill] sm:$0xff] }
 0xa55   :  { %8888 = vpow2.f32 %v3823_v38  ;;  %v4118_v0 = vadd.f32 %v12069_v19, %v13453_v58 }
 0xa56   :  { %v12122_v20 = vpop.eup %8878  ;;  %8890 = vrcp.f32 %v3068_v25  ;;  %8200 = vmatprep.subr.bf16.mxu1 %v8199_v15 }
 0xa57   :  { %v12126_v59 = vpop.eup %8880  ;;  %8892 = vrcp.f32 %v3066_v13  ;;  %8202 = vmatpush3.bf16.xpose.msra.mxu1 %v8199_v15  ;;  %3478 = vadd.xlane.f32.xlu1 %v12122_v20  ;;  %v3782_v33 = vpop.xlane.xlu1 %3781 }
 0xa58   :  { %v8883_v43 = vpop.eup %8882  ;;  %v3810_v22 = vsub.f32 %v11826_v5, %v3782_v33  ;;  %3476 = vadd.xlane.f32.xlu0 %v12126_v59  ;;  %v3780_v11 = vpop.xlane.xlu0 %3779 }
 0xa59   :  { %v8885_v37 = vpop.eup %8884  ;;  %v3809_v52 = vsub.f32 %v11837_v51, %v3780_v11  ;;  %v3100_v39 = vmul.f32 %v8883_v43, %v11780_v49  ;;  %v4123_v51 = vadd.f32 %v13452_v46, %v12069_v19 }
 0xa5a   :  { %v3829_v38 = vmul.f32 1.442695, %v3810_v22  ;;  %v3099_v25 = vmul.f32 %v8885_v37, %v11786_v31 }
 0xa5b   :  { %v3827_v15 = vmul.f32 1.442695, %v3809_v52  ;;  %4192 = vmax.xlane.f32.xlu1 %v12132_v27  ;;  %v3072_v5 = vpop.xlane.xlu1 %3071  ;;  %v12154_v11 = vadd.f32 %v11903_v8, %v4123_v51 }
 0xa5c   :  { %8894 = vpow2.f32 %v3829_v38  ;;  %4190 = vmax.xlane.f32.xlu0 %v12137_v17  ;;  %v8203_v13 = vpack.c.bf16 %v3100_v39, %v3099_v25  ;;  %v3070_v2 = vpop.xlane.xlu0 %3069  ;;  %v12159_v39 = vadd.f32 %v11914_v40, %v4118_v0  ;;  %v13455_v40 = vld [vmem:[#allocation49_spill] sm:$0xff] }
 0xa5d   :  { %8896 = vpow2.f32 %v3827_v15 }
 0xa5e   :  { %v12144_v49 = vpop.eup %8886  ;;  %8898 = vrcp.f32 %v3072_v5  ;;  %8204 = vmatprep.subr.bf16.mxu1 %v8203_v13 }
 0xa5f   :  { %v12148_v31 = vpop.eup %8888  ;;  %8900 = vrcp.f32 %v3070_v2  ;;  %8206 = vmatpush3.bf16.xpose.msra.mxu1 %v8203_v13  ;;  %3857 = vadd.xlane.f32.xlu1 %v12144_v49  ;;  %v3786_v23 = vpop.xlane.xlu1 %3785  ;;  %v13454_v13 = vld [vmem:[#allocation48_spill] sm:$0xff]  ;;  %v4128_v2 = vadd.f32 %v12069_v19, %v13455_v40 }
 0xa60   :  { %v8891_v12 = vpop.eup %8890  ;;  %v3812_v33 = vsub.f32 %v11866_v36, %v3786_v23  ;;  %3855 = vadd.xlane.f32.xlu0 %v12148_v31  ;;  %v3784_v43 = vpop.xlane.xlu0 %3783 }
 0xa61   :  { %v8893_v22 = vpop.eup %8892  ;;  %v3811_v37 = vsub.f32 %v11875_v1, %v3784_v43  ;;  %v3102_v52 = vmul.f32 %v8891_v12, %v11810_v41  ;;  %v4133_v1 = vadd.f32 %v13454_v13, %v12069_v19 }
 0xa62   :  { %v3833_v38 = vmul.f32 1.442695, %v3812_v33  ;;  %v3101_v25 = vmul.f32 %v8893_v22, %v11816_v53  ;;  %v12181_v22 = vadd.f32 %v11951_v57, %v4128_v2  ;;  %v13457_v57 = vld [vmem:[#allocation51_spill] sm:$0xff] }
 0xa63   :  { %v3831_v15 = vmul.f32 1.442695, %v3811_v37  ;;  %4196 = vmax.xlane.f32.xlu1 %v12154_v11  ;;  %v3451_v36 = vpop.xlane.xlu1 %3450  ;;  %v12176_v12 = vadd.f32 %v11941_v42, %v4133_v1 }
 0xa64   :  { %8902 = vpow2.f32 %v3833_v38  ;;  %4194 = vmax.xlane.f32.xlu0 %v12159_v39  ;;  %v8207_v5 = vpack.c.bf16 %v3102_v52, %v3101_v25  ;;  %v3449_v8 = vpop.xlane.xlu0 %3448 }
 0xa65   :  { %8904 = vpow2.f32 %v3831_v15  ;;  %v13456_v15 = vld [vmem:[#allocation50_spill] sm:$0xff] }
 0xa66   :  { %v12166_v41 = vpop.eup %8894  ;;  %8906 = vrcp.f32 %v3451_v36  ;;  %8208 = vmatprep.subr.bf16.mxu1 %v8207_v5  ;;  %v4138_v36 = vadd.f32 %v12069_v19, %v13457_v57 }
 0xa67   :  { %v12170_v53 = vpop.eup %8896  ;;  %8908 = vrcp.f32 %v3449_v8  ;;  %8210 = vmatpush3.bf16.xpose.msra.mxu1 %v8207_v5  ;;  %3861 = vadd.xlane.f32.xlu1 %v12166_v41  ;;  %v3790_v46 = vpop.xlane.xlu1 %3789 }
 0xa68   :  { %v8899_v51 = vpop.eup %8898  ;;  %v3814_v58 = vsub.f32 %v11906_v48, %v3790_v46  ;;  %3859 = vadd.xlane.f32.xlu0 %v12170_v53  ;;  %v3788_v0 = vpop.xlane.xlu0 %3787 }
 0xa69   :  { %v8901_v23 = vpop.eup %8900  ;;  %v3813_v33 = vsub.f32 %v11917_v47, %v3788_v0  ;;  %v3104_v43 = vmul.f32 %v8899_v51, %v11850_v55  ;;  %v4143_v47 = vadd.f32 %v13456_v15, %v12069_v19 }
 0xa6a   :  { %v3837_v37 = vmul.f32 1.442695, %v3814_v58  ;;  %v3103_v52 = vmul.f32 %v8901_v23, %v11856_v7  ;;  %v12203_v58 = vadd.f32 %v11987_v28, %v4138_v36  ;;  %v2777_v36 = vld [vmem:[#allocation2 + $0x218] sm:$0xff] }
 0xa6b   :  { %v3835_v38 = vmul.f32 1.442695, %v3813_v33  ;;  %4200 = vmax.xlane.f32.xlu1 %v12176_v12  ;;  %v3455_v48 = vpop.xlane.xlu1 %3454  ;;  %v12198_v2 = vadd.f32 %v11977_v50, %v4143_v47 }
 0xa6c   :  { %8910 = vpow2.f32 %v3837_v37  ;;  %4198 = vmax.xlane.f32.xlu0 %v12181_v22  ;;  %v8211_v25 = vpack.c.bf16 %v3104_v43, %v3103_v52  ;;  %v3453_v42 = vpop.xlane.xlu0 %3452  ;;  %v2775_v37 = vld [vmem:[#allocation2 + $0x208] sm:$0xff]  ;;  %v13459_v52 = vld [vmem:[#allocation53_spill] sm:$0xff] }
 0xa6d   :  { %8912 = vpow2.f32 %v3835_v38  ;;  %v4148_v38 = vadd.f32 %v12069_v19, %v13459_v52 }
 0xa6e   :  { %v12188_v55 = vpop.eup %8902  ;;  %8914 = vrcp.f32 %v3455_v48  ;;  %8212 = vmatprep.subr.bf16.mxu1 %v8211_v25 }
 0xa6f   :  { %v12192_v7 = vpop.eup %8904  ;;  %8916 = vrcp.f32 %v3453_v42  ;;  %8214 = vmatpush3.bf16.xpose.msra.mxu1 %v8211_v25  ;;  %3865 = vadd.xlane.f32.xlu1 %v12188_v55  ;;  %v3794_v5 = vpop.xlane.xlu1 %3793 }
 0xa70   :  { %v8907_v8 = vpop.eup %8906  ;;  %v3816_v13 = vsub.f32 %v11944_v26, %v3794_v5  ;;  %3863 = vadd.xlane.f32.xlu0 %v12192_v7  ;;  %v3792_v1 = vpop.xlane.xlu0 %3791 }
 0xa71   :  { %v8909_v40 = vpop.eup %8908  ;;  %v3815_v46 = vsub.f32 %v11954_v6, %v3792_v1  ;;  %v3497_v51 = vmul.f32 %v8907_v8, %v11890_v63  ;;  %v13458_v63 = vld [vmem:[#allocation52_spill] sm:$0xff]  ;;  %v13460_v8 = vld [vmem:[#allocation29_spill] sm:$0xff] }
 0xa72   :  { %v3841_v0 = vmul.f32 1.442695, %v3816_v13  ;;  %v3496_v23 = vmul.f32 %v8909_v40, %v11896_v29  ;;  %v4153_v28 = vadd.f32 %v13458_v63, %v12069_v19  ;;  %v2776_v29 = vld [vmem:[#allocation2 + $0x210] sm:$0xff]  ;;  %v12225_v40 = vadd.f32 %v12031_v61, %v4148_v38 }
 0xa73   :  { %v3839_v33 = vmul.f32 1.442695, %v3815_v46  ;;  %4204 = vmax.xlane.f32.xlu1 %v12198_v2  ;;  %v3459_v26 = vpop.xlane.xlu1 %3458 }
 0xa74   :  { %8918 = vpow2.f32 %v3841_v0  ;;  %4202 = vmax.xlane.f32.xlu0 %v12203_v58  ;;  %v8223_v43 = vpack.c.bf16 %v3497_v51, %v3496_v23  ;;  %v3457_v50 = vpop.xlane.xlu0 %3456  ;;  %v12222_v1 = vadd.f32 %v12020_v18, %v4153_v28  ;;  %v3198_v51 = vld [vmem:[#allocation2 + $0x220] sm:$0xff]  ;;  %v13461_v0 = vld [vmem:[#allocation24_spill] sm:$0xff]  ;;  %v13462_v18 = vld [vmem:[#allocation54_spill] sm:$0xff] }
 0xa75   :  { %8920 = vpow2.f32 %v3839_v33  ;;  %v4163_v61 = vadd.f32 %v13462_v18, %v12069_v19  ;;  %v13464_v28 = vld [vmem:[#allocation34_spill] sm:$0xff] }
 0xa76   :  { %v12208_v6 = vpop.eup %8910  ;;  %8922 = vrcp.f32 %v3459_v26  ;;  %7512 = vmatmul.mubr.f32.vlgmr.msra.gmra.mrb[36].mxu1 %v2775_v37  ;;  %8224 = vmatprep.subr.bf16.mxu1 %v8223_v43  ;;  %v13463_v26 = vld [vmem:[#allocation55_spill] sm:$0xff]  ;;  %v13469_v18 = vld [vmem:[#allocation18_spill] sm:$0xff] }
 0xa77   :  { %v12214_v48 = vpop.eup %8912  ;;  %8924 = vrcp.f32 %v3457_v50  ;;  %7514 = vmatprep.mubr.f32.mxu1 %v2776_v29  ;;  %8226 = vmatpush3.bf16.xpose.msra.mxu1 %v8223_v43  ;;  %v3798_v25 = vpop.xlane.xlu1 %3797  ;;  %v4158_v43 = vadd.f32 %v12069_v19, %v13463_v26  ;;  %v12242_v38 = vadd.f32 %v12050_v32, %v4163_v61  ;;  %v13470_v26 = vld [vmem:[#allocation3_spill] sm:$0xff] }
 0xa78   :  { %v8915_v42 = vpop.eup %8914  ;;  %3869 = vadd.xlane.f32.xlu1 %v12208_v6  ;;  %v3818_v15 = vsub.f32 %v11980_v4, %v3798_v25  ;;  %3867 = vadd.xlane.f32.xlu0 %v12214_v48  ;;  %v3796_v47 = vpop.xlane.xlu0 %3795  ;;  %v13465_v25 = vld [vmem:[#allocation92_spill] sm:$0xff] }
 0xa79   :  { %v8917_v57 = vpop.eup %8916  ;;  %v3817_v5 = vsub.f32 %v11990_v56, %v3796_v47  ;;  %v3499_v13 = vmul.f32 %v8915_v42, %v13460_v8  ;;  %v12245_v29 = vadd.f32 %v12061_v9, %v4158_v43  ;;  %v9374_v47 = vld [vmem:[#allocation2 + $0x308] ss:$0 sm:$0xff] }
 0xa7a   :  { %v3845_v46 = vmul.f32 1.442695, %v3818_v15  ;;  %7515 = vmatmul.mubr.f32.gmra.mrb[38].mxu1 %v2777_v36  ;;  %v3498_v4 = vmul.f32 %v8917_v57, %v13461_v0  ;;  %v13466_v57 = vld [vmem:[#allocation56_spill] sm:$0xff]  ;;  %v12259_v9 = vld [vmem:[%s13227_s3 + $0x108] sm:$0xff] }
 0xa7b   :  { %v3843_v23 = vmul.f32 1.442695, %v3817_v5  ;;  %7581 = vmatprep.mubr.f32.mxu1 %v3198_v51  ;;  %v4500_v36 = vadd.f32 %v9374_v47, %v13466_v57  ;;  %v13467_v5 = vld [vmem:[#allocation57_spill] sm:$0xff] }
 0xa7c   :  { %8926 = vpow2.f32 %v3845_v46  ;;  %4208 = vmax.xlane.f32.xlu1 %v12222_v1  ;;  %4206 = vmax.xlane.f32.xlu0 %v12225_v40  ;;  %v8227_v56 = vpack.c.bf16 %v3499_v13, %v3498_v4  ;;  %v4495_v8 = vadd.f32 %v9374_v47, %v13467_v5  ;;  %v12264_v13 = vld [vmem:[%s13227_s3 + $0x100] sm:$0xff]  ;;  %v13478_v5 = vld [vmem:[#allocation6_spill] sm:$0xff] }
 0xa7d   :  { %8928 = vpow2.f32 %v3843_v23  ;;  %v12269_v46 = vadd.f32 %v12259_v9, %v4500_v36  ;;  %v13468_v4 = vld [vmem:[#allocation17_spill] sm:$0xff] }
 0xa7e   :  { %v12230_v33 = vpop.eup %8918  ;;  %8228 = vmatprep.subr.bf16.mxu1 %v8227_v56  ;;  %v12272_v51 = vadd.f32 %v12264_v13, %v4495_v8  ;;  %v13476_v57 = vld [vmem:[#allocation5_spill] sm:$0xff] }
 0xa7f   :  { %v12236_v50 = vpop.eup %8920  ;;  %8230 = vmatpush3.bf16.xpose.msra.mxu1 %v8227_v56 }
 0xa80   :  { %v8923_v37 = vpop.eup %8922  ;;  %3873 = vadd.xlane.f32.xlu1 %v12230_v33  ;;  %3871 = vadd.xlane.f32.xlu0 %v12236_v50 }
 0xa81   :  { %v8925_v63 = vpop.eup %8924  ;;  %v3501_v52 = vmul.f32 %v8923_v37, %v13464_v28 }
 0xa82   :  { %v3500_v19 = vmul.f32 %v8925_v63, %v13465_v25  ;;  %v13472_v63 = vld [vmem:[#allocation4_spill] sm:$0xff] }
 0xa84   :  { %4212 = vmax.xlane.f32.xlu1 %v12242_v38  ;;  %4210 = vmax.xlane.f32.xlu0 %v12245_v29  ;;  %v8231_v42 = vpack.c.bf16 %v3501_v52, %v3500_v19  ;;  %v13474_v52 = vld [vmem:[#allocation19_spill] sm:$0xff] }
 0xa86   :  { %v12250_v15 = vpop.eup %8926  ;;  %8232 = vmatprep.subr.bf16.mxu1 %v8231_v42 }
 0xa87   :  { %v12254_v32 = vpop.eup %8928  ;;  %8234 = vmatpush3.bf16.xpose.msra.mxu1 %v8231_v42  ;;  %v13475_v42 = vld [vmem:[#allocation20_spill] sm:$0xff] }
 0xa88   :  { %3877 = vadd.xlane.f32.xlu1 %v12250_v15  ;;  %3875 = vadd.xlane.f32.xlu0 %v12254_v32 }
 0xa8c   :  { %4608 = vmax.xlane.f32.xlu1 %v12269_v46  ;;  %4606 = vmax.xlane.f32.xlu0 %v12272_v51 }
 0xab6   :  { %v7303_v0 = vpop.f32.mrb[32].mxu1 }
 0xab7   :  { %v1943_v23 = vadd.f32 %v7303_v0, %v13468_v4  ;;  %v1937_v56 = vpop.f32.mrb[33].mxu1 }
 0xab8   :  { %v1938_v61 = vadd.f32 %v1937_v56, %v13469_v18 }
 0xab9   :  { %v12279_v43 = vadd.f32 %v13470_v26, %v1943_v23 }
 0xaba   :  { %v7306_v37 = vpop.f32.mrb[34].mxu1  ;;  %v12282_v28 = vadd.f32 %v13472_v63, %v1938_v61 }
 0xabb   :  { %13471 = vst [vmem:[#allocation38_spill] sm:$0xff] %v12279_v43  ;;  %v1953_v25 = vadd.f32 %v7306_v37, %v13474_v52  ;;  %v1947_v19 = vpop.f32.mrb[35].mxu1 }
 0xabc   :  { %13473 = vst [vmem:[#allocation39_spill] sm:$0xff] %v12282_v28  ;;  %v1948_v47 = vadd.f32 %v1947_v19, %v13475_v42 }
 0xabd   :  { %v12287_v36 = vadd.f32 %v13476_v57, %v1953_v25 }
 0xabe   :  { %v12290_v8 = vadd.f32 %v13478_v5, %v1948_v47 }
 0xabf   :  { %13477 = vst [vmem:[#allocation40_spill] sm:$0xff] %v12287_v36 }
 0xac0   :  { %13479 = vst [vmem:[#allocation41_spill] sm:$0xff] %v12290_v8 }
 0xac4   :  { %v3463_v0 = vpop.xlane.xlu1 %3462 }
 0xac5   :  { %8930 = vrcp.f32 %v3463_v0  ;;  %v3461_v4 = vpop.xlane.xlu0 %3460 }
 0xac6   :  { %8932 = vrcp.f32 %v3461_v4 }
 0xac8   :  { %v3802_v23 = vpop.xlane.xlu1 %3801 }
 0xac9   :  { %v3820_v56 = vsub.f32 %v12024_v62, %v3802_v23  ;;  %v3800_v18 = vpop.xlane.xlu0 %3799 }
 0xaca   :  { %v3819_v61 = vsub.f32 %v12035_v54, %v3800_v18 }
 0xacb   :  { %v3849_v26 = vmul.f32 1.442695, %v3820_v56 }
 0xacc   :  { %v3847_v37 = vmul.f32 1.442695, %v3819_v61  ;;  %v3467_v63 = vpop.xlane.xlu1 %3466 }
 0xacd   :  { %8934 = vpow2.f32 %v3849_v26  ;;  %v3465_v52 = vpop.xlane.xlu0 %3464 }
 0xace   :  { %8936 = vpow2.f32 %v3847_v37 }
 0xacf   :  { %v8931_v25 = vpop.eup %8930  ;;  %8938 = vrcp.f32 %v3467_v63 }
 0xad0   :  { %v8933_v19 = vpop.eup %8932  ;;  %8940 = vrcp.f32 %v3465_v52  ;;  %v3806_v42 = vpop.xlane.xlu1 %3805  ;;  %v3503_v47 = vmul.f32 %v8931_v25, %v12010_v35  ;;  %v12303_v35 = vld [vmem:[%s13227_s3 + $0x118] sm:$0xff]  ;;  %v13480_v25 = vld [vmem:[#allocation58_spill] sm:$0xff] }
 0xad1   :  { %v3822_v57 = vsub.f32 %v12054_v10, %v3806_v42  ;;  %v3804_v5 = vpop.xlane.xlu0 %3803  ;;  %v3502_v62 = vmul.f32 %v8933_v19, %v12012_v34  ;;  %v12310_v10 = vld [vmem:[%s13227_s3 + $0x110] sm:$0xff]  ;;  %v12317_v19 = vadd.f32 %v12303_v35, %v13480_v25 }
 0xad2   :  { %v3821_v54 = vsub.f32 %v12065_v16, %v3804_v5 }
 0xad3   :  { %v3853_v0 = vmul.f32 1.442695, %v3822_v57  ;;  %v8235_v4 = vpack.c.bf16 %v3503_v47, %v3502_v62  ;;  %v13481_v57 = vld [vmem:[#allocation59_spill] sm:$0xff] }
 0xad4   :  { %v3851_v23 = vmul.f32 1.442695, %v3821_v54  ;;  %v3471_v56 = vpop.xlane.xlu1 %3470  ;;  %v12323_v5 = vadd.f32 %v12310_v10, %v13481_v57 }
 0xad5   :  { %8942 = vpow2.f32 %v3853_v0  ;;  %8236 = vmatprep.subr.bf16.mxu1 %v8235_v4  ;;  %v3469_v18 = vpop.xlane.xlu0 %3468 }
 0xad6   :  { %8944 = vpow2.f32 %v3851_v23  ;;  %8238 = vmatpush3.bf16.xpose.msra.mxu1 %v8235_v4 }
 0xad7   :  { %v12298_v61 = vpop.eup %8934  ;;  %8946 = vrcp.f32 %v3471_v56  ;;  %v12340_v56 = vld [vmem:[%s13227_s3 + $0x120] sm:$0xff] }
 0xad8   :  { %v12305_v34 = vpop.eup %8936  ;;  %8948 = vrcp.f32 %v3469_v18  ;;  %3881 = vadd.xlane.f32.xlu1 %v12298_v61  ;;  %v4185_v16 = vpop.xlane.xlu1 %4184 }
 0xad9   :  { %v8939_v26 = vpop.eup %8938  ;;  %v4215_v37 = vsub.f32 %v12086_v60, %v4185_v16  ;;  %3879 = vadd.xlane.f32.xlu0 %v12305_v34  ;;  %v4183_v63 = vpop.xlane.xlu0 %4182 }
 0xada   :  { %v8941_v52 = vpop.eup %8940  ;;  %v4214_v42 = vsub.f32 %v12093_v3, %v4183_v63  ;;  %v3505_v47 = vmul.f32 %v8939_v26, %v12040_v45  ;;  %v12333_v45 = vld [vmem:[%s13227_s3 + $0x128] sm:$0xff] }
 0xadb   :  { %v4232_v62 = vmul.f32 1.442695, %v4215_v37  ;;  %v3504_v54 = vmul.f32 %v8941_v52, %v12042_v30  ;;  %v13482_v52 = vld [vmem:[#allocation60_spill] sm:$0xff] }
 0xadc   :  { %v4230_v60 = vmul.f32 1.442695, %v4214_v42  ;;  %4612 = vmax.xlane.f32.xlu1 %v12317_v19  ;;  %v3475_v0 = vpop.xlane.xlu1 %3474  ;;  %v12347_v25 = vadd.f32 %v12333_v45, %v13482_v52 }
 0xadd   :  { %8950 = vpow2.f32 %v4232_v62  ;;  %4610 = vmax.xlane.f32.xlu0 %v12323_v5  ;;  %v8239_v4 = vpack.c.bf16 %v3505_v47, %v3504_v54  ;;  %v3473_v23 = vpop.xlane.xlu0 %3472  ;;  %v13483_v47 = vld [vmem:[#allocation36_spill] sm:$0xff]  ;;  %v13484_v62 = vld [vmem:[#allocation61_spill] sm:$0xff] }
 0xade   :  { %8952 = vpow2.f32 %v4230_v60  ;;  %v12353_v54 = vadd.f32 %v12340_v56, %v13484_v62 }
 0xadf   :  { %v12328_v3 = vpop.eup %8942  ;;  %8954 = vrcp.f32 %v3475_v0  ;;  %8240 = vmatprep.subr.bf16.mxu1 %v8239_v4  ;;  %v13485_v0 = vld [vmem:[#allocation37_spill] sm:$0xff] }
 0xae0   :  { %v12335_v30 = vpop.eup %8944  ;;  %8956 = vrcp.f32 %v3473_v23  ;;  %8242 = vmatpush3.bf16.xpose.msra.mxu1 %v8239_v4  ;;  %3885 = vadd.xlane.f32.xlu1 %v12328_v3  ;;  %v4189_v18 = vpop.xlane.xlu1 %4188 }
 0xae1   :  { %v8947_v16 = vpop.eup %8946  ;;  %v4217_v26 = vsub.f32 %v12110_v24, %v4189_v18  ;;  %3883 = vadd.xlane.f32.xlu0 %v12335_v30  ;;  %v4187_v37 = vpop.xlane.xlu0 %4186 }
 0xae2   :  { %v8949_v63 = vpop.eup %8948  ;;  %v4216_v42 = vsub.f32 %v12115_v14, %v4187_v37  ;;  %v3507_v57 = vmul.f32 %v8947_v16, %v13483_v47  ;;  %v12363_v16 = vld [vmem:[%s13227_s3 + $0x138] sm:$0xff]  ;;  %v12370_v37 = vld [vmem:[%s13227_s3 + $0x130] sm:$0xff] }
 0xae3   :  { %v4236_v60 = vmul.f32 1.442695, %v4217_v26  ;;  %v3506_v4 = vmul.f32 %v8949_v63, %v13485_v0 }
 0xae4   :  { %v4234_v24 = vmul.f32 1.442695, %v4216_v42  ;;  %4616 = vmax.xlane.f32.xlu1 %v12347_v25  ;;  %v3479_v23 = vpop.xlane.xlu1 %3478 }
 0xae5   :  { %8958 = vpow2.f32 %v4236_v60  ;;  %4614 = vmax.xlane.f32.xlu0 %v12353_v54  ;;  %v8243_v18 = vpack.c.bf16 %v3507_v57, %v3506_v4  ;;  %v3477_v52 = vpop.xlane.xlu0 %3476  ;;  %v13486_v60 = vld [vmem:[#allocation62_spill] sm:$0xff] }
 0xae6   :  { %8960 = vpow2.f32 %v4234_v24  ;;  %v12377_v0 = vadd.f32 %v12363_v16, %v13486_v60 }
 0xae7   :  { %v12358_v14 = vpop.eup %8950  ;;  %8962 = vrcp.f32 %v3479_v23  ;;  %8244 = vmatprep.subr.bf16.mxu1 %v8243_v18  ;;  %v13487_v23 = vld [vmem:[#allocation63_spill] sm:$0xff] }
 0xae8   :  { %v12365_v26 = vpop.eup %8952  ;;  %8964 = vrcp.f32 %v3477_v52  ;;  %8246 = vmatpush3.bf16.xpose.msra.mxu1 %v8243_v18  ;;  %4264 = vadd.xlane.f32.xlu1 %v12358_v14  ;;  %v4193_v63 = vpop.xlane.xlu1 %4192  ;;  %v12383_v18 = vadd.f32 %v12370_v37, %v13487_v23 }
 0xae9   :  { %v8955_v42 = vpop.eup %8954  ;;  %v4219_v47 = vsub.f32 %v12132_v27, %v4193_v63  ;;  %4262 = vadd.xlane.f32.xlu0 %v12365_v26  ;;  %v4191_v57 = vpop.xlane.xlu0 %4190 }
 0xaea   :  { %v8957_v62 = vpop.eup %8956  ;;  %v4218_v4 = vsub.f32 %v12137_v17, %v4191_v57  ;;  %v3509_v24 = vmul.f32 %v8955_v42, %v12100_v21  ;;  %v12393_v21 = vld [vmem:[%s13227_s3 + $0x148] sm:$0xff]  ;;  %v12400_v42 = vld [vmem:[%s13227_s3 + $0x140] sm:$0xff] }
 0xaeb   :  { %v4240_v52 = vmul.f32 1.442695, %v4219_v47  ;;  %v3508_v8 = vmul.f32 %v8957_v62, %v12104_v44 }
 0xaec   :  { %v4238_v27 = vmul.f32 1.442695, %v4218_v4  ;;  %4620 = vmax.xlane.f32.xlu1 %v12377_v0  ;;  %v3858_v63 = vpop.xlane.xlu1 %3857 }
 0xaed   :  { %8966 = vpow2.f32 %v4240_v52  ;;  %4618 = vmax.xlane.f32.xlu0 %v12383_v18  ;;  %v8247_v60 = vpack.c.bf16 %v3509_v24, %v3508_v8  ;;  %v3856_v36 = vpop.xlane.xlu0 %3855  ;;  %v13488_v24 = vld [vmem:[#allocation64_spill] sm:$0xff] }
 0xaee   :  { %8968 = vpow2.f32 %v4238_v27  ;;  %v12407_v23 = vadd.f32 %v12393_v21, %v13488_v24 }
 0xaef   :  { %v12388_v17 = vpop.eup %8958  ;;  %8970 = vrcp.f32 %v3858_v63  ;;  %8248 = vmatprep.subr.bf16.mxu1 %v8247_v60 }
 0xaf0   :  { %v12395_v44 = vpop.eup %8960  ;;  %8972 = vrcp.f32 %v3856_v36  ;;  %8250 = vmatpush3.bf16.xpose.msra.mxu1 %v8247_v60  ;;  %4268 = vadd.xlane.f32.xlu1 %v12388_v17  ;;  %v4197_v8 = vpop.xlane.xlu1 %4196  ;;  %v13489_v36 = vld [vmem:[#allocation65_spill] sm:$0xff] }
 0xaf1   :  { %v8963_v47 = vpop.eup %8962  ;;  %v4221_v57 = vsub.f32 %v12154_v11, %v4197_v8  ;;  %4266 = vadd.xlane.f32.xlu0 %v12395_v44  ;;  %v4195_v62 = vpop.xlane.xlu0 %4194  ;;  %v12413_v63 = vadd.f32 %v12400_v42, %v13489_v36 }
 0xaf2   :  { %v8965_v4 = vpop.eup %8964  ;;  %v4220_v52 = vsub.f32 %v12159_v39, %v4195_v62  ;;  %v3511_v27 = vmul.f32 %v8963_v47, %v12122_v20  ;;  %v12423_v20 = vld [vmem:[%s13227_s3 + $0x158] sm:$0xff]  ;;  %v12430_v47 = vld [vmem:[%s13227_s3 + $0x150] sm:$0xff] }
 0xaf3   :  { %v4244_v60 = vmul.f32 1.442695, %v4221_v57  ;;  %v3510_v28 = vmul.f32 %v8965_v4, %v12126_v59 }
 0xaf4   :  { %v4242_v11 = vmul.f32 1.442695, %v4220_v52  ;;  %4624 = vmax.xlane.f32.xlu1 %v12407_v23  ;;  %v3862_v8 = vpop.xlane.xlu1 %3861 }
 0xaf5   :  { %8974 = vpow2.f32 %v4244_v60  ;;  %4622 = vmax.xlane.f32.xlu0 %v12413_v63  ;;  %v8251_v24 = vpack.c.bf16 %v3511_v27, %v3510_v28  ;;  %v3860_v43 = vpop.xlane.xlu0 %3859  ;;  %v13492_v27 = vld [vmem:[#allocation66_spill] sm:$0xff] }
 0xaf6   :  { %8976 = vpow2.f32 %v4242_v11  ;;  %v12437_v36 = vadd.f32 %v12423_v20, %v13492_v27 }
 0xaf7   :  { %v12418_v39 = vpop.eup %8966  ;;  %8978 = vrcp.f32 %v3862_v8  ;;  %8252 = vmatprep.subr.bf16.mxu1 %v8251_v24 }
 0xaf8   :  { %13490 = vst [vmem:[#allocation42_spill] sm:$0xff] %v12418_v39  ;;  %v12425_v59 = vpop.eup %8968  ;;  %8980 = vrcp.f32 %v3860_v43  ;;  %8254 = vmatpush3.bf16.xpose.msra.mxu1 %v8251_v24  ;;  %4272 = vadd.xlane.f32.xlu1 %v12418_v39  ;;  %v4201_v28 = vpop.xlane.xlu1 %4200  ;;  %v13493_v43 = vld [vmem:[#allocation67_spill] sm:$0xff] }
 0xaf9   :  { %13491 = vst [vmem:[#allocation43_spill] sm:$0xff] %v12425_v59  ;;  %v8971_v57 = vpop.eup %8970  ;;  %v4223_v62 = vsub.f32 %v12176_v12, %v4201_v28  ;;  %4270 = vadd.xlane.f32.xlu0 %v12425_v59  ;;  %v4199_v4 = vpop.xlane.xlu0 %4198  ;;  %v12443_v8 = vadd.f32 %v12430_v47, %v13493_v43 }
 0xafa   :  { %v8973_v52 = vpop.eup %8972  ;;  %v4222_v60 = vsub.f32 %v12181_v22, %v4199_v4  ;;  %v3904_v11 = vmul.f32 %v8971_v57, %v12144_v49  ;;  %v3199_v22 = vld [vmem:[#allocation2 + $0x228] sm:$0xff]  ;;  %v3200_v49 = vld [vmem:[#allocation2 + $0x230] sm:$0xff] }
 0xafb   :  { %v4248_v24 = vmul.f32 1.442695, %v4223_v62  ;;  %v3903_v39 = vmul.f32 %v8973_v52, %v12148_v31  ;;  %v12455_v31 = vld [vmem:[%s13227_s3 + $0x168] sm:$0xff] }
 0xafc   :  { %v4246_v12 = vmul.f32 1.442695, %v4222_v60  ;;  %4628 = vmax.xlane.f32.xlu1 %v12437_v36  ;;  %v3866_v28 = vpop.xlane.xlu1 %3865 }
 0xafd   :  { %8982 = vpow2.f32 %v4248_v24  ;;  %4626 = vmax.xlane.f32.xlu0 %v12443_v8  ;;  %v8263_v27 = vpack.c.bf16 %v3904_v11, %v3903_v39  ;;  %v3864_v59 = vpop.xlane.xlu0 %3863  ;;  %v12460_v39 = vld [vmem:[%s13227_s3 + $0x160] sm:$0xff]  ;;  %v3201_v24 = vld [vmem:[#allocation2 + $0x238] sm:$0xff] }
 0xafe   :  { %8984 = vpow2.f32 %v4246_v12 }
 0xaff   :  { %v12448_v4 = vpop.eup %8974  ;;  %8986 = vrcp.f32 %v3866_v28  ;;  %7582 = vmatmul.mubr.f32.vlgmr.msra.gmra.mrb[36].mxu1 %v3199_v22  ;;  %8264 = vmatprep.subr.bf16.mxu1 %v8263_v27  ;;  %v13496_v22 = vld [vmem:[#allocation68_spill] sm:$0xff] }
 0xb00   :  { %13494 = vst [vmem:[#allocation44_spill] sm:$0xff] %v12448_v4  ;;  %v12450_v57 = vpop.eup %8976  ;;  %8988 = vrcp.f32 %v3864_v59  ;;  %7584 = vmatprep.mubr.f32.mxu1 %v3200_v49  ;;  %8266 = vmatpush3.bf16.xpose.msra.mxu1 %v8263_v27  ;;  %v4205_v62 = vpop.xlane.xlu1 %4204  ;;  %v12469_v59 = vadd.f32 %v12455_v31, %v13496_v22  ;;  %v13497_v27 = vld [vmem:[#allocation69_spill] sm:$0xff] }
 0xb01   :  { %13495 = vst [vmem:[#allocation45_spill] sm:$0xff] %v12450_v57  ;;  %v8979_v52 = vpop.eup %8978  ;;  %4276 = vadd.xlane.f32.xlu1 %v12448_v4  ;;  %v4225_v60 = vsub.f32 %v12198_v2, %v4205_v62  ;;  %4274 = vadd.xlane.f32.xlu0 %v12450_v57  ;;  %v4203_v11 = vpop.xlane.xlu0 %4202  ;;  %v12473_v49 = vadd.f32 %v12460_v39, %v13497_v27  ;;  %v3605_v2 = vld [vmem:[#allocation2 + $0x240] sm:$0xff] }
 0xb02   :  { %v8981_v43 = vpop.eup %8980  ;;  %v4224_v12 = vsub.f32 %v12203_v58, %v4203_v11  ;;  %v3906_v28 = vmul.f32 %v8979_v52, %v12166_v41 }
 0xb03   :  { %13498 = vst [vmem:[#allocation46_spill] sm:$0xff] %v12473_v49  ;;  %v4252_v4 = vmul.f32 1.442695, %v4225_v60  ;;  %7585 = vmatmul.mubr.f32.gmra.mrb[38].mxu1 %v3201_v24  ;;  %v3905_v62 = vmul.f32 %v8981_v43, %v12170_v53  ;;  %v12485_v53 = vld [vmem:[%s13227_s3 + $0x178] sm:$0xff] }
 0xb04   :  { %v4250_v57 = vmul.f32 1.442695, %v4224_v12  ;;  %7651 = vmatprep.mubr.f32.mxu1 %v3605_v2  ;;  %v13501_v2 = vld [vmem:[#allocation70_spill] sm:$0xff] }
 0xb05   :  { %8990 = vpow2.f32 %v4252_v4  ;;  %4632 = vmax.xlane.f32.xlu1 %v12469_v59  ;;  %v3870_v58 = vpop.xlane.xlu1 %3869  ;;  %4630 = vmax.xlane.f32.xlu0 %v12473_v49  ;;  %v8267_v41 = vpack.c.bf16 %v3906_v28, %v3905_v62  ;;  %v3868_v52 = vpop.xlane.xlu0 %3867  ;;  %v12490_v4 = vld [vmem:[%s13227_s3 + $0x170] sm:$0xff]  ;;  %v12499_v62 = vadd.f32 %v12485_v53, %v13501_v2  ;;  %v13504_v2 = vld [vmem:[#allocation73_spill] sm:$0xff] }
 0xb06   :  { %8992 = vpow2.f32 %v4250_v57 }
 0xb07   :  { %v12478_v11 = vpop.eup %8982  ;;  %8994 = vrcp.f32 %v3870_v58  ;;  %8268 = vmatprep.subr.bf16.mxu1 %v8267_v41  ;;  %v13502_v58 = vld [vmem:[#allocation71_spill] sm:$0xff] }
 0xb08   :  { %13499 = vst [vmem:[#allocation47_spill] sm:$0xff] %v12478_v11  ;;  %v12480_v60 = vpop.eup %8984  ;;  %8996 = vrcp.f32 %v3868_v52  ;;  %8270 = vmatpush3.bf16.xpose.msra.mxu1 %v8267_v41  ;;  %v12503_v41 = vadd.f32 %v12490_v4, %v13502_v58 }
 0xb09   :  { %13500 = vst [vmem:[#allocation48_spill] sm:$0xff] %v12480_v60  ;;  %v8987_v43 = vpop.eup %8986  ;;  %4280 = vadd.xlane.f32.xlu1 %v12478_v11  ;;  %v4209_v57 = vpop.xlane.xlu1 %4208  ;;  %4278 = vadd.xlane.f32.xlu0 %v12480_v60 }
 0xb0a   :  { %v4207_v24 = vpop.xlane.xlu0 %4206  ;;  %v8989_v12 = vpop.eup %8988  ;;  %v4227_v28 = vsub.f32 %v12222_v1, %v4209_v57  ;;  %v3908_v27 = vmul.f32 %v8987_v43, %v12188_v55  ;;  %v12510_v43 = vld [vmem:[#allocation2 + $0x309] ss:$0 sm:$0xff]  ;;  %v13503_v57 = vld [vmem:[#allocation72_spill] sm:$0xff] }
 0xb0b   :  { %v4226_v22 = vsub.f32 %v12225_v40, %v4207_v24  ;;  %v3907_v52 = vmul.f32 %v8989_v12, %v12192_v7  ;;  %v4924_v24 = vadd.f32 %v12510_v43, %v13503_v57  ;;  %v4919_v7 = vadd.f32 %v12510_v43, %v13504_v2 }
 0xb0c   :  { %v4256_v11 = vmul.f32 1.442695, %v4227_v28 }
 0xb0d   :  { %v4254_v60 = vmul.f32 1.442695, %v4226_v22  ;;  %4636 = vmax.xlane.f32.xlu1 %v12499_v62  ;;  %v3874_v49 = vpop.xlane.xlu1 %3873  ;;  %4634 = vmax.xlane.f32.xlu0 %v12503_v41  ;;  %v8271_v1 = vpack.c.bf16 %v3908_v27, %v3907_v52  ;;  %v12524_v57 = vadd.f32 %v12259_v9, %v4924_v24 }
 0xb0e   :  { %v3872_v40 = vpop.xlane.xlu0 %3871  ;;  %8998 = vpow2.f32 %v4256_v11 }
 0xb0f   :  { %v12508_v55 = vpop.eup %8990  ;;  %9000 = vpow2.f32 %v4254_v60  ;;  %8272 = vmatprep.subr.bf16.mxu1 %v8271_v1 }
 0xb10   :  { %v12516_v12 = vpop.eup %8992  ;;  %9002 = vrcp.f32 %v3874_v49  ;;  %8274 = vmatpush3.bf16.xpose.msra.mxu1 %v8271_v1  ;;  %v12527_v49 = vadd.f32 %v12264_v13, %v4919_v7  ;;  %v13507_v13 = vld [vmem:[#allocation75_spill] sm:$0xff] }
 0xb11   :  { %13505 = vst [vmem:[#allocation49_spill] sm:$0xff] %v12516_v12  ;;  %v8995_v28 = vpop.eup %8994  ;;  %9004 = vrcp.f32 %v3872_v40  ;;  %4284 = vadd.xlane.f32.xlu1 %v12508_v55  ;;  %v4213_v11 = vpop.xlane.xlu1 %4212  ;;  %4282 = vadd.xlane.f32.xlu0 %v12516_v12 }
 0xb12   :  { %v4211_v22 = vpop.xlane.xlu0 %4210  ;;  %v8997_v27 = vpop.eup %8996  ;;  %v4229_v58 = vsub.f32 %v12242_v38, %v4213_v11  ;;  %v3910_v60 = vmul.f32 %v8995_v28, %v12208_v6 }
 0xb13   :  { %v4228_v52 = vsub.f32 %v12245_v29, %v4211_v22  ;;  %v3909_v1 = vmul.f32 %v8997_v27, %v12214_v48  ;;  %v13506_v29 = vld [vmem:[#allocation74_spill] sm:$0xff]  ;;  %v4929_v48 = vadd.f32 %v12510_v43, %v13507_v13 }
 0xb14   :  { %v4260_v40 = vmul.f32 1.442695, %v4229_v58  ;;  %v4934_v6 = vadd.f32 %v12510_v43, %v13506_v29 }
 0xb15   :  { %v4258_v2 = vmul.f32 1.442695, %v4228_v52  ;;  %5015 = vmax.xlane.f32.xlu1 %v12524_v57  ;;  %v3878_v12 = vpop.xlane.xlu1 %3877  ;;  %5013 = vmax.xlane.f32.xlu0 %v12527_v49  ;;  %v8275_v38 = vpack.c.bf16 %v3910_v60, %v3909_v1  ;;  %v12549_v1 = vadd.f32 %v12310_v10, %v4929_v48 }
 0xb16   :  { %v3876_v11 = vpop.xlane.xlu0 %3875  ;;  %9006 = vpow2.f32 %v4260_v40  ;;  %v12545_v60 = vadd.f32 %v12303_v35, %v4934_v6 }
 0xb17   :  { %9008 = vpow2.f32 %v4258_v2  ;;  %8276 = vmatprep.subr.bf16.mxu1 %v8275_v38 }
 0xb18   :  { %v12534_v9 = vpop.eup %8998  ;;  %9010 = vrcp.f32 %v3878_v12  ;;  %8278 = vmatpush3.bf16.xpose.msra.mxu1 %v8275_v38 }
 0xb19   :  { %v12538_v24 = vpop.eup %9000  ;;  %9012 = vrcp.f32 %v3876_v11  ;;  %4288 = vadd.xlane.f32.xlu1 %v12534_v9  ;;  %v4609_v7 = vpop.xlane.xlu1 %4608 }
 0xb1a   :  { %v4607_v28 = vpop.xlane.xlu0 %4606  ;;  %v9003_v22 = vpop.eup %9002  ;;  %v4639_v27 = vsub.f32 %v12269_v46, %v4609_v7  ;;  %4286 = vadd.xlane.f32.xlu0 %v12538_v24 }
 0xb1b   :  { %v4638_v58 = vsub.f32 %v12272_v51, %v4607_v28  ;;  %v9005_v52 = vpop.eup %9004  ;;  %v3912_v12 = vmul.f32 %v9003_v22, %v12230_v33  ;;  %v13508_v51 = vld [vmem:[#allocation76_spill] sm:$0xff]  ;;  %v13509_v33 = vld [vmem:[#allocation77_spill] sm:$0xff] }
 0xb1c   :  { %v4656_v40 = vmul.f32 1.442695, %v4639_v27  ;;  %v3911_v38 = vmul.f32 %v9005_v52, %v12236_v50  ;;  %v4944_v11 = vadd.f32 %v12510_v43, %v13508_v51  ;;  %v4939_v6 = vadd.f32 %v12510_v43, %v13509_v33  ;;  %v13510_v52 = vld [vmem:[#allocation78_spill] sm:$0xff] }
 0xb1d   :  { %v4654_v2 = vmul.f32 1.442695, %v4638_v58  ;;  %5019 = vmax.xlane.f32.xlu1 %v12545_v60 }
 0xb1e   :  { %9014 = vpow2.f32 %v4656_v40  ;;  %5017 = vmax.xlane.f32.xlu0 %v12549_v1  ;;  %v8279_v46 = vpack.c.bf16 %v3912_v12, %v3911_v38  ;;  %v12565_v7 = vadd.f32 %v12333_v45, %v4944_v11  ;;  %v12569_v22 = vadd.f32 %v12340_v56, %v4939_v6 }
 0xb1f   :  { %9016 = vpow2.f32 %v4654_v2  ;;  %v4954_v12 = vadd.f32 %v12510_v43, %v13510_v52  ;;  %v13511_v2 = vld [vmem:[#allocation79_spill] sm:$0xff] }
 0xb20   :  { %v12556_v29 = vpop.eup %9006  ;;  %8280 = vmatprep.subr.bf16.mxu1 %v8279_v46  ;;  %v4949_v38 = vadd.f32 %v12510_v43, %v13511_v2 }
 0xb21   :  { %v12560_v13 = vpop.eup %9008  ;;  %8282 = vmatpush3.bf16.xpose.msra.mxu1 %v8279_v46  ;;  %4292 = vadd.xlane.f32.xlu1 %v12556_v29 }
 0xb22   :  { %v9011_v50 = vpop.eup %9010  ;;  %4290 = vadd.xlane.f32.xlu0 %v12560_v13  ;;  %v12588_v46 = vadd.f32 %v12370_v37, %v4949_v38 }
 0xb23   :  { %v9013_v48 = vpop.eup %9012  ;;  %v3914_v28 = vmul.f32 %v9011_v50, %v12250_v15 }
 0xb24   :  { %v3913_v27 = vmul.f32 %v9013_v48, %v12254_v32  ;;  %v12585_v32 = vadd.f32 %v12363_v16, %v4954_v12 }
 0xb25   :  { %5023 = vmax.xlane.f32.xlu1 %v12565_v7 }
 0xb26   :  { %5021 = vmax.xlane.f32.xlu0 %v12569_v22  ;;  %v8283_v58 = vpack.c.bf16 %v3914_v28, %v3913_v27 }
 0xb28   :  { %v12576_v40 = vpop.eup %9014  ;;  %8284 = vmatprep.subr.bf16.mxu1 %v8283_v58 }
 0xb29   :  { %v12580_v15 = vpop.eup %9016  ;;  %8286 = vmatpush3.bf16.xpose.msra.mxu1 %v8283_v58  ;;  %4688 = vadd.xlane.f32.xlu1 %v12576_v40 }
 0xb2a   :  { %4686 = vadd.xlane.f32.xlu0 %v12580_v15 }
 0xb2d   :  { %5027 = vmax.xlane.f32.xlu1 %v12585_v32 }
 0xb2e   :  { %5025 = vmax.xlane.f32.xlu0 %v12588_v46 }
 0xb65   :  { %v3882_v51 = vpop.xlane.xlu1 %3881 }
 0xb66   :  { %9018 = vrcp.f32 %v3882_v51  ;;  %v3880_v43 = vpop.xlane.xlu0 %3879 }
 0xb67   :  { %9020 = vrcp.f32 %v3880_v43 }
 0xb69   :  { %v4613_v11 = vpop.xlane.xlu1 %4612 }
 0xb6a   :  { %v4641_v33 = vsub.f32 %v12317_v19, %v4613_v11  ;;  %v4611_v6 = vpop.xlane.xlu0 %4610 }
 0xb6b   :  { %v4640_v50 = vsub.f32 %v12323_v5, %v4611_v6 }
 0xb6c   :  { %v4660_v48 = vmul.f32 1.442695, %v4641_v33 }
 0xb6d   :  { %v4658_v28 = vmul.f32 1.442695, %v4640_v50  ;;  %v3886_v27 = vpop.xlane.xlu1 %3885 }
 0xb6e   :  { %9022 = vpow2.f32 %v4660_v48  ;;  %v3884_v58 = vpop.xlane.xlu0 %3883 }
 0xb6f   :  { %9024 = vpow2.f32 %v4658_v28 }
 0xb70   :  { %v9019_v52 = vpop.eup %9018  ;;  %9026 = vrcp.f32 %v3886_v27 }
 0xb71   :  { %v9021_v12 = vpop.eup %9020  ;;  %9028 = vrcp.f32 %v3884_v58  ;;  %v4617_v2 = vpop.xlane.xlu1 %4616  ;;  %v3916_v38 = vmul.f32 %v9019_v52, %v12298_v61  ;;  %v13512_v52 = vld [vmem:[#allocation80_spill] sm:$0xff] }
 0xb72   :  { %v4643_v51 = vsub.f32 %v12347_v25, %v4617_v2  ;;  %v4615_v43 = vpop.xlane.xlu0 %4614  ;;  %v3915_v19 = vmul.f32 %v9021_v12, %v12305_v34  ;;  %v12607_v12 = vadd.f32 %v12393_v21, %v13512_v52 }
 0xb73   :  { %v4642_v5 = vsub.f32 %v12353_v54, %v4615_v43 }
 0xb74   :  { %v4664_v11 = vmul.f32 1.442695, %v4643_v51  ;;  %v8287_v33 = vpack.c.bf16 %v3916_v38, %v3915_v19  ;;  %v13513_v51 = vld [vmem:[#allocation81_spill] sm:$0xff] }
 0xb75   :  { %v4662_v6 = vmul.f32 1.442695, %v4642_v5  ;;  %v4265_v50 = vpop.xlane.xlu1 %4264  ;;  %v12613_v43 = vadd.f32 %v12400_v42, %v13513_v51 }
 0xb76   :  { %9030 = vpow2.f32 %v4664_v11  ;;  %8288 = vmatprep.subr.bf16.mxu1 %v8287_v33  ;;  %v4263_v48 = vpop.xlane.xlu0 %4262 }
 0xb77   :  { %9032 = vpow2.f32 %v4662_v6  ;;  %8290 = vmatpush3.bf16.xpose.msra.mxu1 %v8287_v33 }
 0xb78   :  { %v12598_v28 = vpop.eup %9022  ;;  %9034 = vrcp.f32 %v4265_v50 }
 0xb79   :  { %v12600_v61 = vpop.eup %9024  ;;  %9036 = vrcp.f32 %v4263_v48  ;;  %4692 = vadd.xlane.f32.xlu1 %v12598_v28  ;;  %v4621_v34 = vpop.xlane.xlu1 %4620 }
 0xb7a   :  { %v9027_v25 = vpop.eup %9026  ;;  %v4645_v54 = vsub.f32 %v12377_v0, %v4621_v34  ;;  %4690 = vadd.xlane.f32.xlu0 %v12600_v61  ;;  %v4619_v27 = vpop.xlane.xlu0 %4618 }
 0xb7b   :  { %v9029_v58 = vpop.eup %9028  ;;  %v4644_v2 = vsub.f32 %v12383_v18, %v4619_v27  ;;  %v3918_v38 = vmul.f32 %v9027_v25, %v12328_v3 }
 0xb7c   :  { %v4668_v19 = vmul.f32 1.442695, %v4645_v54  ;;  %v3917_v5 = vmul.f32 %v9029_v58, %v12335_v30  ;;  %v13514_v54 = vld [vmem:[#allocation82_spill] sm:$0xff] }
 0xb7d   :  { %v4666_v0 = vmul.f32 1.442695, %v4644_v2  ;;  %5031 = vmax.xlane.f32.xlu1 %v12607_v12  ;;  %v4269_v11 = vpop.xlane.xlu1 %4268  ;;  %v12627_v27 = vadd.f32 %v12423_v20, %v13514_v54  ;;  %v13515_v2 = vld [vmem:[#allocation83_spill] sm:$0xff] }
 0xb7e   :  { %9038 = vpow2.f32 %v4668_v19  ;;  %5029 = vmax.xlane.f32.xlu0 %v12613_v43  ;;  %v8291_v33 = vpack.c.bf16 %v3918_v38, %v3917_v5  ;;  %v4267_v6 = vpop.xlane.xlu0 %4266  ;;  %v12633_v38 = vadd.f32 %v12430_v47, %v13515_v2 }
 0xb7f   :  { %9040 = vpow2.f32 %v4666_v0 }
 0xb80   :  { %v12618_v18 = vpop.eup %9030  ;;  %9042 = vrcp.f32 %v4269_v11  ;;  %8292 = vmatprep.subr.bf16.mxu1 %v8291_v33 }
 0xb81   :  { %v12620_v3 = vpop.eup %9032  ;;  %9044 = vrcp.f32 %v4267_v6  ;;  %8294 = vmatpush3.bf16.xpose.msra.mxu1 %v8291_v33  ;;  %4696 = vadd.xlane.f32.xlu1 %v12618_v18  ;;  %v4625_v30 = vpop.xlane.xlu1 %4624 }
 0xb82   :  { %v9035_v50 = vpop.eup %9034  ;;  %v4647_v48 = vsub.f32 %v12407_v23, %v4625_v30  ;;  %4694 = vadd.xlane.f32.xlu0 %v12620_v3  ;;  %v4623_v34 = vpop.xlane.xlu0 %4622 }
 0xb83   :  { %v9037_v25 = vpop.eup %9036  ;;  %v4646_v58 = vsub.f32 %v12413_v63, %v4623_v34  ;;  %v4311_v52 = vmul.f32 %v9035_v50, %v12358_v14  ;;  %v3606_v63 = vld [vmem:[#allocation2 + $0x248] sm:$0xff]  ;;  %v3607_v14 = vld [vmem:[#allocation2 + $0x250] sm:$0xff] }
 0xb84   :  { %v4672_v51 = vmul.f32 1.442695, %v4647_v48  ;;  %v4310_v19 = vmul.f32 %v9037_v25, %v12365_v26  ;;  %v3608_v25 = vld [vmem:[#allocation2 + $0x258] sm:$0xff] }
 0xb85   :  { %v4670_v23 = vmul.f32 1.442695, %v4646_v58  ;;  %5035 = vmax.xlane.f32.xlu1 %v12627_v27  ;;  %v4273_v5 = vpop.xlane.xlu1 %4272 }
 0xb86   :  { %9046 = vpow2.f32 %v4672_v51  ;;  %5033 = vmax.xlane.f32.xlu0 %v12633_v38  ;;  %v8303_v0 = vpack.c.bf16 %v4311_v52, %v4310_v19  ;;  %v4271_v11 = vpop.xlane.xlu0 %4270  ;;  %v13516_v52 = vld [vmem:[#allocation84_spill] sm:$0xff]  ;;  %v13517_v51 = vld [vmem:[#allocation85_spill] sm:$0xff] }
 0xb87   :  { %9048 = vpow2.f32 %v4670_v23  ;;  %v12649_v2 = vadd.f32 %v12455_v31, %v13516_v52  ;;  %v12653_v19 = vadd.f32 %v12460_v39, %v13517_v51  ;;  %v13522_v52 = vld [vmem:[#allocation86_spill] sm:$0xff] }
 0xb88   :  { %v12638_v33 = vpop.eup %9038  ;;  %9050 = vrcp.f32 %v4273_v5  ;;  %7652 = vmatmul.mubr.f32.vlgmr.msra.gmra.mrb[36].mxu1 %v3606_v63  ;;  %8304 = vmatprep.subr.bf16.mxu1 %v8303_v0  ;;  %v12669_v51 = vadd.f32 %v12485_v53, %v13522_v52  ;;  %v13527_v52 = vld [vmem:[#allocation89_spill] sm:$0xff] }
 0xb89   :  { %v12640_v6 = vpop.eup %9040  ;;  %9052 = vrcp.f32 %v4271_v11  ;;  %7654 = vmatprep.mubr.f32.mxu1 %v3607_v14  ;;  %8306 = vmatpush3.bf16.xpose.msra.mxu1 %v8303_v0  ;;  %v4629_v26 = vpop.xlane.xlu1 %4628 }
 0xb8a   :  { %v9043_v30 = vpop.eup %9042  ;;  %4700 = vadd.xlane.f32.xlu1 %v12638_v33  ;;  %v4649_v50 = vsub.f32 %v12437_v36, %v4629_v26  ;;  %4698 = vadd.xlane.f32.xlu0 %v12640_v6  ;;  %v4627_v48 = vpop.xlane.xlu0 %4626  ;;  %v4012_v36 = vld [vmem:[#allocation2 + $0x260] sm:$0xff] }
 0xb8b   :  { %v9045_v34 = vpop.eup %9044  ;;  %v4648_v54 = vsub.f32 %v12443_v8, %v4627_v48  ;;  %v4313_v58 = vmul.f32 %v9043_v30, %v12388_v17 }
 0xb8c   :  { %v4676_v23 = vmul.f32 1.442695, %v4649_v50  ;;  %7655 = vmatmul.mubr.f32.gmra.mrb[38].mxu1 %v3608_v25  ;;  %v4312_v5 = vmul.f32 %v9045_v34, %v12395_v44  ;;  %v13520_v34 = vld [vmem:[#allocation46_spill] sm:$0xff] }
 0xb8d   :  { %v4674_v0 = vmul.f32 1.442695, %v4648_v54  ;;  %7721 = vmatprep.mubr.f32.mxu1 %v4012_v36  ;;  %v13521_v54 = vld [vmem:[#allocation42_spill] sm:$0xff] }
 0xb8e   :  { %9054 = vpow2.f32 %v4676_v23  ;;  %5039 = vmax.xlane.f32.xlu1 %v12649_v2  ;;  %v4277_v8 = vpop.xlane.xlu1 %4276  ;;  %5037 = vmax.xlane.f32.xlu0 %v12653_v19  ;;  %v8307_v17 = vpack.c.bf16 %v4313_v58, %v4312_v5  ;;  %v4275_v11 = vpop.xlane.xlu0 %4274  ;;  %v13523_v23 = vld [vmem:[#allocation87_spill] sm:$0xff] }
 0xb8f   :  { %9056 = vpow2.f32 %v4674_v0  ;;  %v12673_v36 = vadd.f32 %v12490_v4, %v13523_v23  ;;  %v13524_v5 = vld [vmem:[#allocation43_spill] sm:$0xff] }
 0xb90   :  { %v12658_v63 = vpop.eup %9046  ;;  %9058 = vrcp.f32 %v4277_v8  ;;  %8308 = vmatprep.subr.bf16.mxu1 %v8307_v17 }
 0xb91   :  { %13518 = vst [vmem:[#allocation50_spill] sm:$0xff] %v12658_v63  ;;  %v12660_v14 = vpop.eup %9048  ;;  %9060 = vrcp.f32 %v4275_v11  ;;  %8310 = vmatpush3.bf16.xpose.msra.mxu1 %v8307_v17 }
 0xb92   :  { %13519 = vst [vmem:[#allocation51_spill] sm:$0xff] %v12660_v14  ;;  %v9051_v44 = vpop.eup %9050  ;;  %4704 = vadd.xlane.f32.xlu1 %v12658_v63  ;;  %v4633_v26 = vpop.xlane.xlu1 %4632  ;;  %4702 = vadd.xlane.f32.xlu0 %v12660_v14  ;;  %v13536_v63 = vld [vmem:[#allocation48_spill] sm:$0xff] }
 0xb93   :  { %v4631_v30 = vpop.xlane.xlu0 %4630  ;;  %v9053_v50 = vpop.eup %9052  ;;  %v4651_v48 = vsub.f32 %v12469_v59, %v4633_v26  ;;  %v4315_v58 = vmul.f32 %v9051_v44, %v13521_v54 }
 0xb94   :  { %v4650_v25 = vsub.f32 %v13520_v34, %v4631_v30  ;;  %v4314_v0 = vmul.f32 %v9053_v50, %v13524_v5  ;;  %v12680_v30 = vld [vmem:[#allocation2 + $0x30a] ss:$0 sm:$0xff]  ;;  %v13526_v34 = vld [vmem:[#allocation88_spill] sm:$0xff] }
 0xb95   :  { %v4680_v8 = vmul.f32 1.442695, %v4651_v48  ;;  %v5331_v54 = vadd.f32 %v12680_v30, %v13526_v34  ;;  %v5326_v50 = vadd.f32 %v12680_v30, %v13527_v52  ;;  %v13529_v34 = vld [vmem:[#allocation44_spill] sm:$0xff] }
 0xb96   :  { %v4678_v17 = vmul.f32 1.442695, %v4650_v25  ;;  %5043 = vmax.xlane.f32.xlu1 %v12669_v51  ;;  %v4281_v11 = vpop.xlane.xlu1 %4280  ;;  %5041 = vmax.xlane.f32.xlu0 %v12673_v36  ;;  %v8311_v59 = vpack.c.bf16 %v4315_v58, %v4314_v0 }
 0xb97   :  { %v4279_v26 = vpop.xlane.xlu0 %4278  ;;  %9062 = vpow2.f32 %v4680_v8 }
 0xb98   :  { %v12678_v44 = vpop.eup %9054  ;;  %9064 = vpow2.f32 %v4678_v17  ;;  %8312 = vmatprep.subr.bf16.mxu1 %v8311_v59 }
 0xb99   :  { %13525 = vst [vmem:[#allocation52_spill] sm:$0xff] %v12678_v44  ;;  %v12686_v48 = vpop.eup %9056  ;;  %9066 = vrcp.f32 %v4281_v11  ;;  %8314 = vmatpush3.bf16.xpose.msra.mxu1 %v8311_v59  ;;  %v12696_v11 = vld [vmem:[%s13227_s3 + $0x108] sm:$0xff] }
 0xb9a   :  { %13528 = vst [vmem:[#allocation53_spill] sm:$0xff] %v12686_v48  ;;  %v9059_v25 = vpop.eup %9058  ;;  %9068 = vrcp.f32 %v4279_v26  ;;  %4708 = vadd.xlane.f32.xlu1 %v12678_v44  ;;  %v4637_v58 = vpop.xlane.xlu1 %4636  ;;  %4706 = vadd.xlane.f32.xlu0 %v12686_v48  ;;  %v12699_v59 = vadd.f32 %v12696_v11, %v5331_v54  ;;  %v12704_v26 = vld [vmem:[%s13227_s3 + $0x100] sm:$0xff]  ;;  %v13532_v48 = vld [vmem:[#allocation90_spill] sm:$0xff] }
 0xb9b   :  { %v4635_v23 = vpop.xlane.xlu0 %4634  ;;  %v9061_v5 = vpop.eup %9060  ;;  %v4653_v0 = vsub.f32 %v12499_v62, %v4637_v58  ;;  %v4317_v17 = vmul.f32 %v9059_v25, %v13529_v34  ;;  %v12707_v52 = vadd.f32 %v12704_v26, %v5326_v50  ;;  %v13531_v62 = vld [vmem:[#allocation45_spill] sm:$0xff]  ;;  %v5341_v44 = vadd.f32 %v12680_v30, %v13532_v48  ;;  %v13534_v50 = vld [vmem:[#allocation7_spill] sm:$0xff] }
 0xb9c   :  { %v4652_v8 = vsub.f32 %v12503_v41, %v4635_v23  ;;  %v4316_v41 = vmul.f32 %v9061_v5, %v13531_v62  ;;  %v5336_v5 = vadd.f32 %v12680_v30, %v13534_v50 }
 0xb9d   :  { %13530 = vst [vmem:[#allocation29_spill] sm:$0xff] %v12707_v52  ;;  %v4684_v58 = vmul.f32 1.442695, %v4653_v0 }
 0xb9e   :  { %v4682_v25 = vmul.f32 1.442695, %v4652_v8  ;;  %5422 = vmax.xlane.f32.xlu1 %v12699_v59  ;;  %v4285_v23 = vpop.xlane.xlu1 %4284  ;;  %5420 = vmax.xlane.f32.xlu0 %v12707_v52  ;;  %v8315_v34 = vpack.c.bf16 %v4317_v17, %v4316_v41  ;;  %v12729_v50 = vadd.f32 %v12310_v10, %v5336_v5  ;;  %v13538_v10 = vld [vmem:[#allocation11_spill] sm:$0xff] }
 0xb9f   :  { %v4283_v54 = vpop.xlane.xlu0 %4282  ;;  %9070 = vpow2.f32 %v4684_v58  ;;  %v5346_v5 = vadd.f32 %v12680_v30, %v13538_v10 }
 0xba0   :  { %9072 = vpow2.f32 %v4682_v25  ;;  %8316 = vmatprep.subr.bf16.mxu1 %v8315_v34  ;;  %v12725_v25 = vadd.f32 %v12303_v35, %v5341_v44 }
 0xba1   :  { %v12714_v14 = vpop.eup %9062  ;;  %9074 = vrcp.f32 %v4285_v23  ;;  %8318 = vmatpush3.bf16.xpose.msra.mxu1 %v8315_v34  ;;  %v13535_v23 = vld [vmem:[#allocation47_spill] sm:$0xff] }
 0xba2   :  { %13533 = vst [vmem:[#allocation24_spill] sm:$0xff] %v12714_v14  ;;  %v12718_v0 = vpop.eup %9064  ;;  %9076 = vrcp.f32 %v4283_v54  ;;  %4712 = vadd.xlane.f32.xlu1 %v12714_v14  ;;  %v5016_v8 = vpop.xlane.xlu1 %5015 }
 0xba3   :  { %v5014_v17 = vpop.xlane.xlu0 %5013  ;;  %v9067_v62 = vpop.eup %9066  ;;  %v5046_v41 = vsub.f32 %v12524_v57, %v5016_v8  ;;  %4710 = vadd.xlane.f32.xlu0 %v12718_v0 }
 0xba4   :  { %v5045_v48 = vsub.f32 %v12527_v49, %v5014_v17  ;;  %v9069_v58 = vpop.eup %9068  ;;  %v4319_v34 = vmul.f32 %v9067_v62, %v13535_v23  ;;  %v13537_v17 = vld [vmem:[#allocation8_spill] sm:$0xff] }
 0xba5   :  { %v5063_v54 = vmul.f32 1.442695, %v5046_v41  ;;  %v4318_v52 = vmul.f32 %v9069_v58, %v13536_v63  ;;  %v5351_v35 = vadd.f32 %v12680_v30, %v13537_v17 }
 0xba6   :  { %v5061_v14 = vmul.f32 1.442695, %v5045_v48  ;;  %5426 = vmax.xlane.f32.xlu1 %v12725_v25  ;;  %v4289_v57 = vpop.xlane.xlu1 %4288 }
 0xba7   :  { %9078 = vpow2.f32 %v5063_v54  ;;  %5424 = vmax.xlane.f32.xlu0 %v12729_v50  ;;  %v8319_v49 = vpack.c.bf16 %v4319_v34, %v4318_v52  ;;  %v4287_v8 = vpop.xlane.xlu0 %4286  ;;  %v12746_v58 = vadd.f32 %v12333_v45, %v5351_v35  ;;  %v12751_v54 = vadd.f32 %v12340_v56, %v5346_v5  ;;  %v13540_v35 = vld [vmem:[#allocation91_spill] sm:$0xff]  ;;  %v13541_v56 = vld [vmem:[#allocation9_spill] sm:$0xff] }
 0xba8   :  { %9080 = vpow2.f32 %v5061_v14  ;;  %v5356_v5 = vadd.f32 %v12680_v30, %v13541_v56 }
 0xba9   :  { %v12736_v44 = vpop.eup %9070  ;;  %9082 = vrcp.f32 %v4289_v57  ;;  %8320 = vmatprep.subr.bf16.mxu1 %v8319_v49 }
 0xbaa   :  { %v12740_v63 = vpop.eup %9072  ;;  %9084 = vrcp.f32 %v4287_v8  ;;  %8322 = vmatpush3.bf16.xpose.msra.mxu1 %v8319_v49  ;;  %4716 = vadd.xlane.f32.xlu1 %v12736_v44  ;;  %v5020_v62 = vpop.xlane.xlu1 %5019  ;;  %v13539_v49 = vld [vmem:[#allocation49_spill] sm:$0xff] }
 0xbab   :  { %v9075_v52 = vpop.eup %9074  ;;  %v5048_v41 = vsub.f32 %v12545_v60, %v5020_v62  ;;  %4714 = vadd.xlane.f32.xlu0 %v12740_v63  ;;  %v5018_v14 = vpop.xlane.xlu0 %5017 }
 0xbac   :  { %v9077_v48 = vpop.eup %9076  ;;  %v5047_v23 = vsub.f32 %v12549_v1, %v5018_v14  ;;  %v4321_v34 = vmul.f32 %v9075_v52, %v12508_v55  ;;  %v5361_v1 = vadd.f32 %v12680_v30, %v13540_v35  ;;  %v13542_v35 = vld [vmem:[#allocation10_spill] sm:$0xff] }
 0xbad   :  { %v5067_v57 = vmul.f32 1.442695, %v5048_v41  ;;  %v4320_v8 = vmul.f32 %v9077_v48, %v13539_v49 }
 0xbae   :  { %v5065_v17 = vmul.f32 1.442695, %v5047_v23  ;;  %5430 = vmax.xlane.f32.xlu1 %v12746_v58  ;;  %v4293_v60 = vpop.xlane.xlu1 %4292 }
 0xbaf   :  { %9086 = vpow2.f32 %v5067_v57  ;;  %5428 = vmax.xlane.f32.xlu0 %v12751_v54  ;;  %v8323_v10 = vpack.c.bf16 %v4321_v34, %v4320_v8  ;;  %v4291_v45 = vpop.xlane.xlu0 %4290  ;;  %v12768_v34 = vadd.f32 %v12363_v16, %v5361_v1  ;;  %v12773_v8 = vadd.f32 %v12370_v37, %v5356_v5  ;;  %v13543_v37 = vld [vmem:[#allocation14_spill] sm:$0xff] }
 0xbb0   :  { %9088 = vpow2.f32 %v5065_v17  ;;  %v5366_v1 = vadd.f32 %v12680_v30, %v13543_v37 }
 0xbb1   :  { %v12758_v55 = vpop.eup %9078  ;;  %9090 = vrcp.f32 %v4293_v60  ;;  %8324 = vmatprep.subr.bf16.mxu1 %v8323_v10 }
 0xbb2   :  { %v12762_v62 = vpop.eup %9080  ;;  %9092 = vrcp.f32 %v4291_v45  ;;  %8326 = vmatpush3.bf16.xpose.msra.mxu1 %v8323_v10  ;;  %5095 = vadd.xlane.f32.xlu1 %v12758_v55  ;;  %v5024_v52 = vpop.xlane.xlu1 %5023 }
 0xbb3   :  { %v9083_v41 = vpop.eup %9082  ;;  %v5050_v14 = vsub.f32 %v12565_v7, %v5024_v52  ;;  %5093 = vadd.xlane.f32.xlu0 %v12762_v62  ;;  %v5022_v48 = vpop.xlane.xlu0 %5021 }
 0xbb4   :  { %v9085_v23 = vpop.eup %9084  ;;  %v5049_v57 = vsub.f32 %v12569_v22, %v5022_v48  ;;  %v4323_v49 = vmul.f32 %v9083_v41, %v12534_v9  ;;  %v5371_v22 = vadd.f32 %v12680_v30, %v13542_v35 }
 0xbb5   :  { %v5071_v17 = vmul.f32 1.442695, %v5050_v14  ;;  %v4322_v60 = vmul.f32 %v9085_v23, %v12538_v24 }
 0xbb6   :  { %v5069_v10 = vmul.f32 1.442695, %v5049_v57  ;;  %5434 = vmax.xlane.f32.xlu1 %v12768_v34  ;;  %v4689_v7 = vpop.xlane.xlu1 %4688  ;;  %v12790_v48 = vadd.f32 %v12393_v21, %v5371_v22 }
 0xbb7   :  { %9094 = vpow2.f32 %v5071_v17  ;;  %5432 = vmax.xlane.f32.xlu0 %v12773_v8  ;;  %v8327_v45 = vpack.c.bf16 %v4323_v49, %v4322_v60  ;;  %v4687_v16 = vpop.xlane.xlu0 %4686  ;;  %v12795_v49 = vadd.f32 %v12400_v42, %v5366_v1 }
 0xbb8   :  { %9096 = vpow2.f32 %v5069_v10 }
 0xbb9   :  { %v12780_v9 = vpop.eup %9086  ;;  %9098 = vrcp.f32 %v4689_v7  ;;  %8328 = vmatprep.subr.bf16.mxu1 %v8327_v45  ;;  %v13544_v7 = vld [vmem:[#allocation23_spill] sm:$0xff] }
 0xbba   :  { %v12784_v24 = vpop.eup %9088  ;;  %9100 = vrcp.f32 %v4687_v16  ;;  %8330 = vmatpush3.bf16.xpose.msra.mxu1 %v8327_v45  ;;  %5099 = vadd.xlane.f32.xlu1 %v12780_v9  ;;  %v5028_v56 = vpop.xlane.xlu1 %5027  ;;  %v5381_v21 = vadd.f32 %v12680_v30, %v13544_v7 }
 0xbbb   :  { %v9091_v5 = vpop.eup %9090  ;;  %v5052_v52 = vsub.f32 %v12585_v32, %v5028_v56  ;;  %5097 = vadd.xlane.f32.xlu0 %v12784_v24  ;;  %v5026_v41 = vpop.xlane.xlu0 %5025 }
 0xbbc   :  { %v9093_v14 = vpop.eup %9092  ;;  %v5051_v23 = vsub.f32 %v12588_v46, %v5026_v41  ;;  %v4325_v57 = vmul.f32 %v9091_v5, %v12556_v29  ;;  %v13545_v29 = vld [vmem:[#allocation12_spill] sm:$0xff]  ;;  %v12811_v35 = vadd.f32 %v12423_v20, %v5381_v21  ;;  %v4013_v5 = vld [vmem:[#allocation2 + $0x268] sm:$0xff]  ;;  %v13546_v41 = vld [vmem:[#allocation13_spill] sm:$0xff] }
 0xbbd   :  { %v5075_v17 = vmul.f32 1.442695, %v5052_v52  ;;  %v4324_v60 = vmul.f32 %v9093_v14, %v12560_v13  ;;  %v5376_v42 = vadd.f32 %v12680_v30, %v13545_v29  ;;  %v5391_v14 = vadd.f32 %v12680_v30, %v13546_v41  ;;  %v13547_v20 = vld [vmem:[#allocation21_spill] sm:$0xff] }
 0xbbe   :  { %v5073_v10 = vmul.f32 1.442695, %v5051_v23  ;;  %5438 = vmax.xlane.f32.xlu1 %v12790_v48  ;;  %v5386_v23 = vadd.f32 %v12680_v30, %v13547_v20  ;;  %v4419_v30 = vld [vmem:[#allocation2 + $0x280] sm:$0xff] }
 0xbbf   :  { %9102 = vpow2.f32 %v5075_v17  ;;  %5436 = vmax.xlane.f32.xlu0 %v12795_v49  ;;  %v8331_v32 = vpack.c.bf16 %v4325_v57, %v4324_v60  ;;  %v12815_v37 = vadd.f32 %v12430_v47, %v5376_v42  ;;  %v4014_v47 = vld [vmem:[#allocation2 + $0x270] sm:$0xff]  ;;  %v12831_v57 = vadd.f32 %v12455_v31, %v5391_v14 }
 0xbc0   :  { %9104 = vpow2.f32 %v5073_v10  ;;  %v12834_v17 = vadd.f32 %v12460_v39, %v5386_v23 }
 0xbc1   :  { %v12802_v46 = vpop.eup %9094  ;;  %8332 = vmatprep.subr.bf16.mxu1 %v8331_v32 }
 0xbc2   :  { %v12806_v45 = vpop.eup %9096  ;;  %8334 = vmatpush3.bf16.xpose.msra.mxu1 %v8331_v32  ;;  %5103 = vadd.xlane.f32.xlu1 %v12802_v46 }
 0xbc3   :  { %v9099_v13 = vpop.eup %9098  ;;  %5101 = vadd.xlane.f32.xlu0 %v12806_v45 }
 0xbc4   :  { %v9101_v16 = vpop.eup %9100  ;;  %v4735_v22 = vmul.f32 %v9099_v13, %v12576_v40 }
 0xbc5   :  { %v4734_v1 = vmul.f32 %v9101_v16, %v12580_v15  ;;  %v4015_v15 = vld [vmem:[#allocation2 + $0x278] sm:$0xff] }
 0xbc6   :  { %5442 = vmax.xlane.f32.xlu1 %v12811_v35 }
 0xbc7   :  { %5440 = vmax.xlane.f32.xlu0 %v12815_v37  ;;  %v8343_v56 = vpack.c.bf16 %v4735_v22, %v4734_v1 }
 0xbc9   :  { %v12820_v52 = vpop.eup %9102  ;;  %7722 = vmatmul.mubr.f32.vlgmr.msra.gmra.mrb[36].mxu1 %v4013_v5  ;;  %8344 = vmatprep.subr.bf16.mxu1 %v8343_v56 }
 0xbca   :  { %v12826_v40 = vpop.eup %9104  ;;  %7724 = vmatprep.mubr.f32.mxu1 %v4014_v47  ;;  %8346 = vmatpush3.bf16.xpose.msra.mxu1 %v8343_v56 }
 0xbcb   :  { %5107 = vadd.xlane.f32.xlu1 %v12820_v52  ;;  %5105 = vadd.xlane.f32.xlu0 %v12826_v40 }
 0xbcd   :  { %7725 = vmatmul.mubr.f32.gmra.mrb[38].mxu1 %v4015_v15 }
 0xbce   :  { %7791 = vmatprep.mubr.f32.mxu1 %v4419_v30 }
 0xbcf   :  { %5446 = vmax.xlane.f32.xlu1 %v12831_v57  ;;  %5444 = vmax.xlane.f32.xlu0 %v12834_v17 }
 0xc06   :  { %v4693_v60 = vpop.xlane.xlu1 %4692 }
 0xc07   :  { %9106 = vrcp.f32 %v4693_v60  ;;  %v4691_v10 = vpop.xlane.xlu0 %4690 }
 0xc08   :  { %9108 = vrcp.f32 %v4691_v10  ;;  %v13548_v10 = vld [vmem:[#allocation25_spill] sm:$0xff] }
 0xc0a   :  { %v5032_v32 = vpop.xlane.xlu1 %5031 }
 0xc0b   :  { %v5054_v7 = vsub.f32 %v12607_v12, %v5032_v32  ;;  %v5030_v21 = vpop.xlane.xlu0 %5029  ;;  %v12852_v32 = vadd.f32 %v12485_v53, %v13548_v10 }
 0xc0c   :  { %v5053_v31 = vsub.f32 %v12613_v43, %v5030_v21 }
 0xc0d   :  { %v5079_v29 = vmul.f32 1.442695, %v5054_v7 }
 0xc0e   :  { %v5077_v39 = vmul.f32 1.442695, %v5053_v31  ;;  %v4697_v42 = vpop.xlane.xlu1 %4696 }
 0xc0f   :  { %9110 = vpow2.f32 %v5079_v29  ;;  %v4695_v13 = vpop.xlane.xlu0 %4694  ;;  %v13549_v29 = vld [vmem:[#allocation22_spill] sm:$0xff] }
 0xc10   :  { %9112 = vpow2.f32 %v5077_v39  ;;  %v12859_v39 = vadd.f32 %v12490_v4, %v13549_v29  ;;  %v13551_v4 = vld [vmem:[#allocation15_spill] sm:$0xff] }
 0xc11   :  { %v9107_v16 = vpop.eup %9106  ;;  %9114 = vrcp.f32 %v4697_v42 }
 0xc12   :  { %v9109_v22 = vpop.eup %9108  ;;  %9116 = vrcp.f32 %v4695_v13  ;;  %v5036_v1 = vpop.xlane.xlu1 %5035  ;;  %v4737_v56 = vmul.f32 %v9107_v16, %v12598_v28 }
 0xc13   :  { %v5056_v5 = vsub.f32 %v12627_v27, %v5036_v1  ;;  %v5034_v41 = vpop.xlane.xlu0 %5033  ;;  %v4736_v12 = vmul.f32 %v9109_v22, %v12600_v61  ;;  %v12863_v22 = vld [vmem:[#allocation2 + $0x30b] ss:$0 sm:$0xff] }
 0xc14   :  { %v5055_v43 = vsub.f32 %v12633_v38, %v5034_v41 }
 0xc15   :  { %v5083_v14 = vmul.f32 1.442695, %v5056_v5  ;;  %v8347_v20 = vpack.c.bf16 %v4737_v56, %v4736_v12 }
 0xc16   :  { %v5081_v23 = vmul.f32 1.442695, %v5055_v43 }
 0xc17   :  { %9118 = vpow2.f32 %v5083_v14  ;;  %v4701_v47 = vpop.xlane.xlu1 %4700  ;;  %8348 = vmatprep.subr.bf16.mxu1 %v8347_v20  ;;  %v4699_v15 = vpop.xlane.xlu0 %4698 }
 0xc18   :  { %9120 = vpow2.f32 %v5081_v23  ;;  %8350 = vmatpush3.bf16.xpose.msra.mxu1 %v8347_v20 }
 0xc19   :  { %v12844_v30 = vpop.eup %9110  ;;  %9122 = vrcp.f32 %v4701_v47 }
 0xc1a   :  { %v12846_v28 = vpop.eup %9112  ;;  %9124 = vrcp.f32 %v4699_v15  ;;  %5111 = vadd.xlane.f32.xlu1 %v12844_v30 }
 0xc1b   :  { %v9115_v61 = vpop.eup %9114  ;;  %v5040_v27 = vpop.xlane.xlu1 %5039  ;;  %5109 = vadd.xlane.f32.xlu0 %v12846_v28 }
 0xc1c   :  { %v5038_v38 = vpop.xlane.xlu0 %5037  ;;  %v9117_v60 = vpop.eup %9116  ;;  %v5058_v7 = vsub.f32 %v12649_v2, %v5040_v27  ;;  %v4739_v31 = vmul.f32 %v9115_v61, %v12618_v18 }
 0xc1d   :  { %v5057_v21 = vsub.f32 %v12653_v19, %v5038_v38  ;;  %v4738_v42 = vmul.f32 %v9117_v60, %v12620_v3  ;;  %v13550_v19 = vld [vmem:[#allocation27_spill] sm:$0xff]  ;;  %v5733_v3 = vadd.f32 %v12863_v22, %v13551_v4 }
 0xc1e   :  { %v5087_v13 = vmul.f32 1.442695, %v5058_v7  ;;  %5450 = vmax.xlane.f32.xlu1 %v12852_v32  ;;  %v5738_v18 = vadd.f32 %v13550_v19, %v12863_v22 }
 0xc1f   :  { %v5085_v16 = vmul.f32 1.442695, %v5057_v21  ;;  %v4705_v53 = vpop.xlane.xlu1 %4704  ;;  %5448 = vmax.xlane.f32.xlu0 %v12859_v39  ;;  %v8351_v2 = vpack.c.bf16 %v4739_v31, %v4738_v42  ;;  %v12883_v61 = vadd.f32 %v12704_v26, %v5733_v3  ;;  %v13553_v26 = vld [vmem:[#allocation28_spill] sm:$0xff]  ;;  %v9380_v3 = vld [vmem:[%s13227_s3 + $0x110] sm:$0xff] }
 0xc20   :  { %v4703_v1 = vpop.xlane.xlu0 %4702  ;;  %9126 = vpow2.f32 %v5087_v13  ;;  %v12877_v20 = vadd.f32 %v12696_v11, %v5738_v18  ;;  %v13555_v18 = vld [vmem:[#allocation50_spill] sm:$0xff] }
 0xc21   :  { %v12868_v56 = vpop.eup %9118  ;;  %9128 = vpow2.f32 %v5085_v16  ;;  %8352 = vmatprep.subr.bf16.mxu1 %v8351_v2  ;;  %v13554_v16 = vld [vmem:[#allocation29_spill] sm:$0xff] }
 0xc22   :  { %v12872_v5 = vpop.eup %9120  ;;  %9130 = vrcp.f32 %v4705_v53  ;;  %8354 = vmatpush3.bf16.xpose.msra.mxu1 %v8351_v2  ;;  %5115 = vadd.xlane.f32.xlu1 %v12868_v56 }
 0xc23   :  { %v9123_v41 = vpop.eup %9122  ;;  %9132 = vrcp.f32 %v4703_v1  ;;  %v5044_v12 = vpop.xlane.xlu1 %5043  ;;  %5113 = vadd.xlane.f32.xlu0 %v12872_v5  ;;  %v9379_v1 = vld [vmem:[%s13227_s3 + $0x118] sm:$0xff] }
 0xc24   :  { %v5042_v43 = vpop.xlane.xlu0 %5041  ;;  %v9125_v14 = vpop.eup %9124  ;;  %v5060_v23 = vsub.f32 %v12669_v51, %v5044_v12  ;;  %v4741_v15 = vmul.f32 %v9123_v41, %v12638_v33  ;;  %v13552_v51 = vld [vmem:[#allocation16_spill] sm:$0xff] }
 0xc25   :  { %v5059_v47 = vsub.f32 %v12673_v36, %v5042_v43  ;;  %v4740_v27 = vmul.f32 %v9125_v14, %v12640_v6  ;;  %v5748_v36 = vadd.f32 %v13552_v51, %v12863_v22  ;;  %v5743_v6 = vadd.f32 %v12863_v22, %v13553_v26  ;;  %v13556_v43 = vld [vmem:[#allocation51_spill] sm:$0xff] }
 0xc26   :  { %v5091_v38 = vmul.f32 1.442695, %v5060_v23  ;;  %5829 = vmax.xlane.f32.xlu1 %v12877_v20 }
 0xc27   :  { %v5089_v60 = vmul.f32 1.442695, %v5059_v47  ;;  %v4709_v10 = vpop.xlane.xlu1 %4708  ;;  %5827 = vmax.xlane.f32.xlu0 %v12883_v61  ;;  %v8355_v11 = vpack.c.bf16 %v4741_v15, %v4740_v27  ;;  %v12903_v19 = vadd.f32 %v9379_v1, %v5748_v36  ;;  %v12909_v41 = vadd.f32 %v9380_v3, %v5743_v6  ;;  %v13557_v27 = vld [vmem:[#allocation30_spill] sm:$0xff] }
 0xc28   :  { %v4707_v7 = vpop.xlane.xlu0 %4706  ;;  %9134 = vpow2.f32 %v5091_v38  ;;  %v5758_v38 = vadd.f32 %v13557_v27, %v12863_v22 }
 0xc29   :  { %9136 = vpow2.f32 %v5089_v60  ;;  %8356 = vmatprep.subr.bf16.mxu1 %v8355_v11 }
 0xc2a   :  { %v12890_v33 = vpop.eup %9126  ;;  %9138 = vrcp.f32 %v4709_v10  ;;  %8358 = vmatpush3.bf16.xpose.msra.mxu1 %v8355_v11  ;;  %v13558_v10 = vld [vmem:[#allocation31_spill] sm:$0xff] }
 0xc2b   :  { %v12894_v21 = vpop.eup %9128  ;;  %9140 = vrcp.f32 %v4707_v7  ;;  %5119 = vadd.xlane.f32.xlu1 %v12890_v33  ;;  %v5423_v31 = vpop.xlane.xlu1 %5422  ;;  %v5753_v11 = vadd.f32 %v12863_v22, %v13558_v10 }
 0xc2c   :  { %v5421_v29 = vpop.xlane.xlu0 %5420  ;;  %v9131_v42 = vpop.eup %9130  ;;  %v5453_v13 = vsub.f32 %v12699_v59, %v5423_v31  ;;  %5117 = vadd.xlane.f32.xlu0 %v12894_v21 }
 0xc2d   :  { %v5452_v53 = vsub.f32 %v13554_v16, %v5421_v29  ;;  %v9133_v2 = vpop.eup %9132  ;;  %v4743_v4 = vmul.f32 %v9131_v42, %v13555_v18  ;;  %v9381_v29 = vld [vmem:[%s13227_s3 + $0x128] sm:$0xff]  ;;  %v13559_v16 = vld [vmem:[#allocation52_spill] sm:$0xff]  ;;  %v13560_v18 = vld [vmem:[#allocation53_spill] sm:$0xff] }
 0xc2e   :  { %v5470_v59 = vmul.f32 1.442695, %v5453_v13  ;;  %v4742_v14 = vmul.f32 %v9133_v2, %v13556_v43  ;;  %v12928_v42 = vadd.f32 %v9381_v29, %v5758_v38  ;;  %v9382_v2 = vld [vmem:[%s13227_s3 + $0x120] sm:$0xff]  ;;  %v13561_v43 = vld [vmem:[#allocation26_spill] sm:$0xff]  ;;  %v13563_v29 = vld [vmem:[#allocation24_spill] sm:$0xff] }
 0xc2f   :  { %v5468_v12 = vmul.f32 1.442695, %v5452_v53  ;;  %5833 = vmax.xlane.f32.xlu1 %v12903_v19  ;;  %v4713_v23 = vpop.xlane.xlu1 %4712  ;;  %v12935_v1 = vadd.f32 %v9382_v2, %v5753_v11 }
 0xc30   :  { %9142 = vpow2.f32 %v5470_v59  ;;  %5831 = vmax.xlane.f32.xlu0 %v12909_v41  ;;  %v8359_v47 = vpack.c.bf16 %v4743_v4, %v4742_v14  ;;  %v4711_v15 = vpop.xlane.xlu0 %4710  ;;  %v5768_v14 = vadd.f32 %v13561_v43, %v12863_v22 }
 0xc31   :  { %9144 = vpow2.f32 %v5468_v12 }
 0xc32   :  { %v12916_v60 = vpop.eup %9134  ;;  %9146 = vrcp.f32 %v4713_v23  ;;  %8360 = vmatprep.subr.bf16.mxu1 %v8359_v47 }
 0xc33   :  { %v12920_v7 = vpop.eup %9136  ;;  %9148 = vrcp.f32 %v4711_v15  ;;  %8362 = vmatpush3.bf16.xpose.msra.mxu1 %v8359_v47  ;;  %5123 = vadd.xlane.f32.xlu1 %v12916_v60  ;;  %v5427_v51 = vpop.xlane.xlu1 %5426  ;;  %v13562_v47 = vld [vmem:[#allocation32_spill] sm:$0xff] }
 0xc34   :  { %v9139_v36 = vpop.eup %9138  ;;  %v5455_v26 = vsub.f32 %v12725_v25, %v5427_v51  ;;  %5121 = vadd.xlane.f32.xlu0 %v12920_v7  ;;  %v5425_v6 = vpop.xlane.xlu0 %5424  ;;  %v5763_v15 = vadd.f32 %v12863_v22, %v13562_v47 }
 0xc35   :  { %v9141_v31 = vpop.eup %9140  ;;  %v5454_v13 = vsub.f32 %v12729_v50, %v5425_v6  ;;  %v4745_v53 = vmul.f32 %v9139_v36, %v13559_v16  ;;  %v9384_v16 = vld [vmem:[%s13227_s3 + $0x130] sm:$0xff] }
 0xc36   :  { %v5474_v25 = vmul.f32 1.442695, %v5455_v26  ;;  %v4744_v4 = vmul.f32 %v9141_v31, %v13560_v18  ;;  %v9383_v26 = vld [vmem:[%s13227_s3 + $0x138] sm:$0xff] }
 0xc37   :  { %v5472_v3 = vmul.f32 1.442695, %v5454_v13  ;;  %5837 = vmax.xlane.f32.xlu1 %v12928_v42  ;;  %v4717_v59 = vpop.xlane.xlu1 %4716  ;;  %v12954_v6 = vadd.f32 %v9383_v26, %v5768_v14 }
 0xc38   :  { %9150 = vpow2.f32 %v5474_v25  ;;  %5835 = vmax.xlane.f32.xlu0 %v12935_v1  ;;  %v8363_v12 = vpack.c.bf16 %v4745_v53, %v4744_v4  ;;  %v4715_v50 = vpop.xlane.xlu0 %4714  ;;  %v12961_v53 = vadd.f32 %v9384_v16, %v5763_v15 }
 0xc39   :  { %9152 = vpow2.f32 %v5472_v3  ;;  %v13564_v3 = vld [vmem:[#allocation33_spill] sm:$0xff] }
 0xc3a   :  { %v12942_v23 = vpop.eup %9142  ;;  %9154 = vrcp.f32 %v4717_v59  ;;  %8364 = vmatprep.subr.bf16.mxu1 %v8363_v12  ;;  %v5778_v59 = vadd.f32 %v13564_v3, %v12863_v22 }
 0xc3b   :  { %v12946_v27 = vpop.eup %9144  ;;  %9156 = vrcp.f32 %v4715_v50  ;;  %8366 = vmatpush3.bf16.xpose.msra.mxu1 %v8363_v12  ;;  %5502 = vadd.xlane.f32.xlu1 %v12942_v23  ;;  %v5431_v38 = vpop.xlane.xlu1 %5430  ;;  %v13565_v50 = vld [vmem:[#allocation35_spill] sm:$0xff] }
 0xc3c   :  { %v9147_v10 = vpop.eup %9146  ;;  %v5457_v11 = vsub.f32 %v12746_v58, %v5431_v38  ;;  %5500 = vadd.xlane.f32.xlu0 %v12946_v27  ;;  %v5429_v51 = vpop.xlane.xlu0 %5428  ;;  %v5773_v43 = vadd.f32 %v12863_v22, %v13565_v50 }
 0xc3d   :  { %v9149_v36 = vpop.eup %9148  ;;  %v5456_v31 = vsub.f32 %v12751_v54, %v5429_v51  ;;  %v4747_v13 = vmul.f32 %v9147_v10, %v13563_v29 }
 0xc3e   :  { %v5478_v58 = vmul.f32 1.442695, %v5457_v11  ;;  %v4746_v2 = vmul.f32 %v9149_v36, %v12718_v0  ;;  %v9385_v11 = vld [vmem:[%s13227_s3 + $0x148] sm:$0xff] }
 0xc3f   :  { %v5476_v25 = vmul.f32 1.442695, %v5456_v31  ;;  %5841 = vmax.xlane.f32.xlu1 %v12954_v6  ;;  %v5096_v18 = vpop.xlane.xlu1 %5095  ;;  %v12980_v51 = vadd.f32 %v9385_v11, %v5778_v59  ;;  %v9386_v31 = vld [vmem:[%s13227_s3 + $0x140] sm:$0xff]  ;;  %v9388_v11 = vld [vmem:[%s13227_s3 + $0x150] sm:$0xff] }
 0xc40   :  { %9158 = vpow2.f32 %v5478_v58  ;;  %5839 = vmax.xlane.f32.xlu0 %v12961_v53  ;;  %v8367_v4 = vpack.c.bf16 %v4747_v13, %v4746_v2  ;;  %v5094_v54 = vpop.xlane.xlu0 %5093  ;;  %v12987_v29 = vadd.f32 %v9386_v31, %v5773_v43 }
 0xc41   :  { %9160 = vpow2.f32 %v5476_v25 }
 0xc42   :  { %v12968_v12 = vpop.eup %9150  ;;  %9162 = vrcp.f32 %v5096_v18  ;;  %8368 = vmatprep.subr.bf16.mxu1 %v8367_v4 }
 0xc43   :  { %v12972_v0 = vpop.eup %9152  ;;  %9164 = vrcp.f32 %v5094_v54  ;;  %8370 = vmatpush3.bf16.xpose.msra.mxu1 %v8367_v4  ;;  %5506 = vadd.xlane.f32.xlu1 %v12968_v12  ;;  %v5435_v14 = vpop.xlane.xlu1 %5434  ;;  %v13567_v4 = vld [vmem:[#allocation94_spill] sm:$0xff] }
 0xc44   :  { %v9155_v47 = vpop.eup %9154  ;;  %v5459_v15 = vsub.f32 %v12768_v34, %v5435_v14  ;;  %5504 = vadd.xlane.f32.xlu0 %v12972_v0  ;;  %v5433_v38 = vpop.xlane.xlu0 %5432  ;;  %v5783_v54 = vadd.f32 %v12863_v22, %v13567_v4 }
 0xc45   :  { %v9157_v10 = vpop.eup %9156  ;;  %v5458_v36 = vsub.f32 %v12773_v8, %v5433_v38  ;;  %v4749_v26 = vmul.f32 %v9155_v47, %v12736_v44  ;;  %v13566_v44 = vld [vmem:[#allocation93_spill] sm:$0xff]  ;;  %v9387_v47 = vld [vmem:[%s13227_s3 + $0x158] sm:$0xff] }
 0xc46   :  { %v5482_v34 = vmul.f32 1.442695, %v5459_v15  ;;  %v4748_v13 = vmul.f32 %v9157_v10, %v12740_v63  ;;  %v5788_v25 = vadd.f32 %v13566_v44, %v12863_v22 }
 0xc47   :  { %v5480_v16 = vmul.f32 1.442695, %v5458_v36  ;;  %5845 = vmax.xlane.f32.xlu1 %v12980_v51  ;;  %v5100_v58 = vpop.xlane.xlu1 %5099  ;;  %v13013_v36 = vadd.f32 %v9388_v11, %v5783_v54  ;;  %v9390_v11 = vld [vmem:[%s13227_s3 + $0x160] sm:$0xff] }
 0xc48   :  { %9166 = vpow2.f32 %v5482_v34  ;;  %5843 = vmax.xlane.f32.xlu0 %v12987_v29  ;;  %v8371_v2 = vpack.c.bf16 %v4749_v26, %v4748_v13  ;;  %v5098_v8 = vpop.xlane.xlu0 %5097  ;;  %v13006_v15 = vadd.f32 %v9387_v47, %v5788_v25 }
 0xc49   :  { %9168 = vpow2.f32 %v5480_v16 }
 0xc4a   :  { %v12994_v18 = vpop.eup %9158  ;;  %9170 = vrcp.f32 %v5100_v58  ;;  %8372 = vmatprep.subr.bf16.mxu1 %v8371_v2  ;;  %v13568_v58 = vld [vmem:[#allocation95_spill] sm:$0xff] }
 0xc4b   :  { %v12998_v63 = vpop.eup %9160  ;;  %9172 = vrcp.f32 %v5098_v8  ;;  %8374 = vmatpush3.bf16.xpose.msra.mxu1 %v8371_v2  ;;  %5510 = vadd.xlane.f32.xlu1 %v12994_v18  ;;  %v5439_v3 = vpop.xlane.xlu1 %5438  ;;  %v5798_v2 = vadd.f32 %v13568_v58, %v12863_v22  ;;  %v13569_v8 = vld [vmem:[#allocation96_spill] sm:$0xff] }
 0xc4c   :  { %v9163_v59 = vpop.eup %9162  ;;  %v5461_v50 = vsub.f32 %v12790_v48, %v5439_v3  ;;  %5508 = vadd.xlane.f32.xlu0 %v12998_v63  ;;  %v5437_v43 = vpop.xlane.xlu0 %5436  ;;  %v5793_v44 = vadd.f32 %v12863_v22, %v13569_v8 }
 0xc4d   :  { %v9165_v14 = vpop.eup %9164  ;;  %v5460_v38 = vsub.f32 %v12795_v49, %v5437_v43  ;;  %v5142_v10 = vmul.f32 %v9163_v59, %v12758_v55  ;;  %v4420_v55 = vld [vmem:[#allocation2 + $0x288] sm:$0xff]  ;;  %v4422_v43 = vld [vmem:[#allocation2 + $0x298] sm:$0xff] }
 0xc4e   :  { %v5486_v48 = vmul.f32 1.442695, %v5461_v50  ;;  %v5141_v26 = vmul.f32 %v9165_v14, %v12762_v62  ;;  %v4421_v62 = vld [vmem:[#allocation2 + $0x290] sm:$0xff] }
 0xc4f   :  { %v5484_v31 = vmul.f32 1.442695, %v5460_v38  ;;  %5849 = vmax.xlane.f32.xlu1 %v13006_v15  ;;  %v5104_v34 = vpop.xlane.xlu1 %5103  ;;  %v9389_v38 = vld [vmem:[%s13227_s3 + $0x168] sm:$0xff] }
 0xc50   :  { %9174 = vpow2.f32 %v5486_v48  ;;  %5847 = vmax.xlane.f32.xlu0 %v13013_v36  ;;  %v8383_v13 = vpack.c.bf16 %v5142_v10, %v5141_v26  ;;  %v5102_v49 = vpop.xlane.xlu0 %5101  ;;  %v13034_v10 = vadd.f32 %v9389_v38, %v5798_v2  ;;  %v4843_v26 = vld [vmem:[#allocation2 + $0x2a0] sm:$0xff]  ;;  %v13571_v2 = vld [vmem:[#allocation98_spill] sm:$0xff] }
 0xc51   :  { %9176 = vpow2.f32 %v5484_v31  ;;  %v5803_v8 = vadd.f32 %v12863_v22, %v13571_v2 }
 0xc52   :  { %v13018_v16 = vpop.eup %9166  ;;  %9178 = vrcp.f32 %v5104_v34  ;;  %7792 = vmatmul.mubr.f32.vlgmr.msra.gmra.mrb[36].mxu1 %v4420_v55  ;;  %8384 = vmatprep.subr.bf16.mxu1 %v8383_v13  ;;  %v13570_v55 = vld [vmem:[#allocation97_spill] sm:$0xff] }
 0xc53   :  { %v13024_v25 = vpop.eup %9168  ;;  %9180 = vrcp.f32 %v5102_v49  ;;  %7794 = vmatprep.mubr.f32.mxu1 %v4421_v62  ;;  %8386 = vmatpush3.bf16.xpose.msra.mxu1 %v8383_v13  ;;  %v5443_v4 = vpop.xlane.xlu1 %5442  ;;  %v5808_v58 = vadd.f32 %v13570_v55, %v12863_v22 }
 0xc54   :  { %v9171_v54 = vpop.eup %9170  ;;  %5514 = vadd.xlane.f32.xlu1 %v13018_v16  ;;  %v5463_v3 = vsub.f32 %v12811_v35, %v5443_v4  ;;  %5512 = vadd.xlane.f32.xlu0 %v13024_v25  ;;  %v5441_v59 = vpop.xlane.xlu0 %5440  ;;  %v13039_v35 = vadd.f32 %v9390_v11, %v5793_v44 }
 0xc55   :  { %v9173_v50 = vpop.eup %9172  ;;  %v5462_v14 = vsub.f32 %v12815_v37, %v5441_v59  ;;  %v5144_v47 = vmul.f32 %v9171_v54, %v12780_v9 }
 0xc56   :  { %v5490_v48 = vmul.f32 1.442695, %v5463_v3  ;;  %7795 = vmatmul.mubr.f32.gmra.mrb[38].mxu1 %v4422_v43  ;;  %v5143_v31 = vmul.f32 %v9173_v50, %v12784_v24  ;;  %v9391_v50 = vld [vmem:[%s13227_s3 + $0x178] sm:$0xff] }
 0xc57   :  { %v5488_v37 = vmul.f32 1.442695, %v5462_v14  ;;  %7861 = vmatprep.mubr.f32.mxu1 %v4843_v26  ;;  %v13060_v43 = vadd.f32 %v9391_v50, %v5808_v58  ;;  %v9392_v14 = vld [vmem:[%s13227_s3 + $0x170] sm:$0xff] }
 0xc58   :  { %9182 = vpow2.f32 %v5490_v48  ;;  %5853 = vmax.xlane.f32.xlu1 %v13034_v10  ;;  %v5108_v9 = vpop.xlane.xlu1 %5107  ;;  %5851 = vmax.xlane.f32.xlu0 %v13039_v35  ;;  %v8387_v34 = vpack.c.bf16 %v5144_v47, %v5143_v31  ;;  %v5106_v13 = vpop.xlane.xlu0 %5105  ;;  %v13065_v47 = vadd.f32 %v9392_v14, %v5803_v8 }
 0xc59   :  { %9184 = vpow2.f32 %v5488_v37 }
 0xc5a   :  { %v13044_v49 = vpop.eup %9174  ;;  %9186 = vrcp.f32 %v5108_v9  ;;  %8388 = vmatprep.subr.bf16.mxu1 %v8387_v34 }
 0xc5b   :  { %v13050_v24 = vpop.eup %9176  ;;  %9188 = vrcp.f32 %v5106_v13  ;;  %8390 = vmatpush3.bf16.xpose.msra.mxu1 %v8387_v34 }
 0xc5c   :  { %v9179_v44 = vpop.eup %9178  ;;  %5518 = vadd.xlane.f32.xlu1 %v13044_v49  ;;  %v5447_v62 = vpop.xlane.xlu1 %5446  ;;  %5516 = vadd.xlane.f32.xlu0 %v13050_v24 }
 0xc5d   :  { %v5445_v4 = vpop.xlane.xlu0 %5444  ;;  %v9181_v54 = vpop.eup %9180  ;;  %v5465_v3 = vsub.f32 %v12831_v57, %v5447_v62  ;;  %v5146_v22 = vmul.f32 %v9179_v44, %v12802_v46 }
 0xc5e   :  { %v5464_v59 = vsub.f32 %v12834_v17, %v5445_v4  ;;  %v5145_v38 = vmul.f32 %v9181_v54, %v12806_v45 }
 0xc5f   :  { %v5494_v11 = vmul.f32 1.442695, %v5465_v3 }
 0xc60   :  { %v5492_v57 = vmul.f32 1.442695, %v5464_v59  ;;  %5857 = vmax.xlane.f32.xlu1 %v13060_v43  ;;  %5855 = vmax.xlane.f32.xlu0 %v13065_v47  ;;  %v8391_v46 = vpack.c.bf16 %v5146_v22, %v5145_v38 }
 0xc61   :  { %9190 = vpow2.f32 %v5494_v11 }
 0xc62   :  { %v13070_v17 = vpop.eup %9182  ;;  %9192 = vpow2.f32 %v5492_v57  ;;  %8392 = vmatprep.subr.bf16.mxu1 %v8391_v46 }
 0xc63   :  { %v13072_v48 = vpop.eup %9184  ;;  %8394 = vmatpush3.bf16.xpose.msra.mxu1 %v8391_v46 }
 0xc64   :  { %v9187_v26 = vpop.eup %9186  ;;  %5522 = vadd.xlane.f32.xlu1 %v13070_v17  ;;  %5520 = vadd.xlane.f32.xlu0 %v13072_v48 }
 0xc65   :  { %v9189_v45 = vpop.eup %9188  ;;  %v5148_v31 = vmul.f32 %v9187_v26, %v12820_v52 }
 0xc66   :  { %v5147_v37 = vmul.f32 %v9189_v45, %v12826_v40 }
 0xc68   :  { %v8395_v9 = vpack.c.bf16 %v5148_v31, %v5147_v37 }
 0xc6a   :  { %8396 = vmatprep.subr.bf16.mxu1 %v8395_v9 }
 0xc6b   :  { %v13078_v34 = vpop.eup %9190  ;;  %8398 = vmatpush3.bf16.xpose.msra.mxu1 %v8395_v9 }
 0xc6c   :  { %v13080_v13 = vpop.eup %9192  ;;  %5526 = vadd.xlane.f32.xlu1 %v13078_v34 }
 0xc6d   :  { %5524 = vadd.xlane.f32.xlu0 %v13080_v13 }
 0xca7   :  { %v5112_v55 = vpop.xlane.xlu1 %5111 }
 0xca8   :  { %9194 = vrcp.f32 %v5112_v55  ;;  %v5110_v58 = vpop.xlane.xlu0 %5109 }
 0xca9   :  { %9196 = vrcp.f32 %v5110_v58 }
 0xcab   :  { %v5451_v2 = vpop.xlane.xlu1 %5450 }
 0xcac   :  { %v5467_v52 = vsub.f32 %v12852_v32, %v5451_v2  ;;  %v5449_v8 = vpop.xlane.xlu0 %5448 }
 0xcad   :  { %v5466_v40 = vsub.f32 %v12859_v39, %v5449_v8 }
 0xcae   :  { %v5498_v44 = vmul.f32 1.442695, %v5467_v52 }
 0xcaf   :  { %v5496_v62 = vmul.f32 1.442695, %v5466_v40  ;;  %v5116_v4 = vpop.xlane.xlu1 %5115 }
 0xcb0   :  { %9198 = vpow2.f32 %v5498_v44  ;;  %v5114_v54 = vpop.xlane.xlu0 %5113 }
 0xcb1   :  { %9200 = vpow2.f32 %v5496_v62 }
 0xcb2   :  { %v9195_v3 = vpop.eup %9194  ;;  %9202 = vrcp.f32 %v5116_v4 }
 0xcb3   :  { %v9197_v59 = vpop.eup %9196  ;;  %9204 = vrcp.f32 %v5114_v54  ;;  %v5830_v22 = vpop.xlane.xlu1 %5829  ;;  %v5150_v50 = vmul.f32 %v9195_v3, %v12844_v30 }
 0xcb4   :  { %v5860_v14 = vsub.f32 %v12877_v20, %v5830_v22  ;;  %v5828_v38 = vpop.xlane.xlu0 %5827  ;;  %v5149_v32 = vmul.f32 %v9197_v59, %v12846_v28 }
 0xcb5   :  { %v5859_v39 = vsub.f32 %v12883_v61, %v5828_v38 }
 0xcb6   :  { %v5877_v11 = vmul.f32 1.442695, %v5860_v14  ;;  %v8399_v57 = vpack.c.bf16 %v5150_v50, %v5149_v32 }
 0xcb7   :  { %v5875_v46 = vmul.f32 1.442695, %v5859_v39 }
 0xcb8   :  { %9206 = vpow2.f32 %v5877_v11  ;;  %v5120_v26 = vpop.xlane.xlu1 %5119  ;;  %8400 = vmatprep.subr.bf16.mxu1 %v8399_v57 }
 0xcb9   :  { %9208 = vpow2.f32 %v5875_v46  ;;  %v5118_v45 = vpop.xlane.xlu0 %5117  ;;  %8402 = vmatpush3.bf16.xpose.msra.mxu1 %v8399_v57 }
 0xcba   :  { %v13090_v31 = vpop.eup %9198  ;;  %9210 = vrcp.f32 %v5120_v26 }
 0xcbb   :  { %v13092_v30 = vpop.eup %9200  ;;  %9212 = vrcp.f32 %v5118_v45  ;;  %5530 = vadd.xlane.f32.xlu1 %v13090_v31 }
 0xcbc   :  { %v9203_v28 = vpop.eup %9202  ;;  %v5834_v20 = vpop.xlane.xlu1 %5833  ;;  %5528 = vadd.xlane.f32.xlu0 %v13092_v30 }
 0xcbd   :  { %v9205_v61 = vpop.eup %9204  ;;  %v5862_v37 = vsub.f32 %v12903_v19, %v5834_v20  ;;  %v5832_v9 = vpop.xlane.xlu0 %5831  ;;  %v5152_v55 = vmul.f32 %v9203_v28, %v12868_v56 }
 0xcbe   :  { %v5861_v58 = vsub.f32 %v12909_v41, %v5832_v9  ;;  %v5151_v2 = vmul.f32 %v9205_v61, %v12872_v5 }
 0xcbf   :  { %v5881_v52 = vmul.f32 1.442695, %v5862_v37 }
 0xcc0   :  { %v5879_v8 = vmul.f32 1.442695, %v5861_v58  ;;  %v5124_v40 = vpop.xlane.xlu1 %5123  ;;  %v8403_v44 = vpack.c.bf16 %v5152_v55, %v5151_v2 }
 0xcc1   :  { %9214 = vpow2.f32 %v5881_v52  ;;  %v5122_v62 = vpop.xlane.xlu0 %5121 }
 0xcc2   :  { %v13100_v4 = vpop.eup %9206  ;;  %9216 = vpow2.f32 %v5879_v8  ;;  %8404 = vmatprep.subr.bf16.mxu1 %v8403_v44 }
 0xcc3   :  { %v13102_v54 = vpop.eup %9208  ;;  %9218 = vrcp.f32 %v5124_v40  ;;  %8406 = vmatpush3.bf16.xpose.msra.mxu1 %v8403_v44  ;;  %5909 = vadd.xlane.f32.xlu1 %v13100_v4 }
 0xcc4   :  { %v9211_v56 = vpop.eup %9210  ;;  %9220 = vrcp.f32 %v5122_v62  ;;  %v5838_v19 = vpop.xlane.xlu1 %5837  ;;  %5907 = vadd.xlane.f32.xlu0 %v13102_v54 }
 0xcc5   :  { %v9213_v5 = vpop.eup %9212  ;;  %v5864_v41 = vsub.f32 %v12928_v42, %v5838_v19  ;;  %v5836_v3 = vpop.xlane.xlu0 %5835  ;;  %v5154_v59 = vmul.f32 %v9211_v56, %v12890_v33 }
 0xcc6   :  { %v5863_v22 = vsub.f32 %v12935_v1, %v5836_v3  ;;  %v5153_v50 = vmul.f32 %v9213_v5, %v12894_v21 }
 0xcc7   :  { %v5885_v14 = vmul.f32 1.442695, %v5864_v41 }
 0xcc8   :  { %v5883_v38 = vmul.f32 1.442695, %v5863_v22  ;;  %v5503_v32 = vpop.xlane.xlu1 %5502  ;;  %v8407_v39 = vpack.c.bf16 %v5154_v59, %v5153_v50  ;;  %v4844_v59 = vld [vmem:[#allocation2 + $0x2a8] sm:$0xff] }
 0xcc9   :  { %9222 = vpow2.f32 %v5885_v14  ;;  %v5501_v11 = vpop.xlane.xlu0 %5500 }
 0xcca   :  { %9224 = vpow2.f32 %v5883_v38  ;;  %8408 = vmatprep.subr.bf16.mxu1 %v8407_v39 }
 0xccb   :  { %v13110_v57 = vpop.eup %9214  ;;  %9226 = vrcp.f32 %v5503_v32  ;;  %8410 = vmatpush3.bf16.xpose.msra.mxu1 %v8407_v39  ;;  %v4846_v32 = vld [vmem:[#allocation2 + $0x2b8] sm:$0xff] }
 0xccc   :  { %v13112_v42 = vpop.eup %9216  ;;  %9228 = vrcp.f32 %v5501_v11  ;;  %5913 = vadd.xlane.f32.xlu1 %v13110_v57  ;;  %v5842_v33 = vpop.xlane.xlu1 %5841 }
 0xccd   :  { %v9219_v1 = vpop.eup %9218  ;;  %v5866_v21 = vsub.f32 %v12954_v6, %v5842_v33  ;;  %5911 = vadd.xlane.f32.xlu0 %v13112_v42  ;;  %v5840_v46 = vpop.xlane.xlu0 %5839 }
 0xcce   :  { %v9221_v26 = vpop.eup %9220  ;;  %v5865_v45 = vsub.f32 %v12961_v53, %v5840_v46  ;;  %v5156_v28 = vmul.f32 %v9219_v1, %v12916_v60  ;;  %v5250_v1 = vld [vmem:[#allocation2 + $0x2c0] sm:$0xff] }
 0xccf   :  { %v5889_v20 = vmul.f32 1.442695, %v5866_v21  ;;  %v5155_v61 = vmul.f32 %v9221_v26, %v12920_v7 }
 0xcd0   :  { %v5887_v37 = vmul.f32 1.442695, %v5865_v45  ;;  %v5507_v9 = vpop.xlane.xlu1 %5506 }
 0xcd1   :  { %9230 = vpow2.f32 %v5889_v20  ;;  %v8411_v55 = vpack.c.bf16 %v5156_v28, %v5155_v61  ;;  %v5505_v58 = vpop.xlane.xlu0 %5504 }
 0xcd2   :  { %9232 = vpow2.f32 %v5887_v37 }
 0xcd3   :  { %v13120_v2 = vpop.eup %9222  ;;  %9234 = vrcp.f32 %v5507_v9  ;;  %8412 = vmatprep.subr.bf16.mxu1 %v8411_v55 }
 0xcd4   :  { %v13122_v6 = vpop.eup %9224  ;;  %9236 = vrcp.f32 %v5505_v58  ;;  %8414 = vmatpush3.bf16.xpose.msra.mxu1 %v8411_v55  ;;  %5917 = vadd.xlane.f32.xlu1 %v13120_v2  ;;  %v5846_v60 = vpop.xlane.xlu1 %5845 }
 0xcd5   :  { %v9227_v53 = vpop.eup %9226  ;;  %v5868_v7 = vsub.f32 %v12980_v51, %v5846_v60  ;;  %5915 = vadd.xlane.f32.xlu0 %v13122_v6  ;;  %v5844_v52 = vpop.xlane.xlu0 %5843  ;;  %v4845_v51 = vld [vmem:[#allocation2 + $0x2b0] sm:$0xff] }
 0xcd6   :  { %v9229_v8 = vpop.eup %9228  ;;  %v5867_v40 = vsub.f32 %v12987_v29, %v5844_v52  ;;  %v5549_v44 = vmul.f32 %v9227_v53, %v12942_v23 }
 0xcd7   :  { %v5893_v62 = vmul.f32 1.442695, %v5868_v7  ;;  %v5548_v56 = vmul.f32 %v9229_v8, %v12946_v27 }
 0xcd8   :  { %v5891_v19 = vmul.f32 1.442695, %v5867_v40  ;;  %v5511_v5 = vpop.xlane.xlu1 %5510 }
 0xcd9   :  { %9238 = vpow2.f32 %v5893_v62  ;;  %v8423_v41 = vpack.c.bf16 %v5549_v44, %v5548_v56  ;;  %v5509_v3 = vpop.xlane.xlu0 %5508 }
 0xcda   :  { %9240 = vpow2.f32 %v5891_v19 }
 0xcdb   :  { %v13130_v22 = vpop.eup %9230  ;;  %9242 = vrcp.f32 %v5511_v5  ;;  %7862 = vmatmul.mubr.f32.vlgmr.msra.gmra.mrb[36].mxu1 %v4844_v59  ;;  %8424 = vmatprep.subr.bf16.mxu1 %v8423_v41 }
 0xcdc   :  { %v13132_v50 = vpop.eup %9232  ;;  %9244 = vrcp.f32 %v5509_v3  ;;  %7864 = vmatprep.mubr.f32.mxu1 %v4845_v51  ;;  %8426 = vmatpush3.bf16.xpose.msra.mxu1 %v8423_v41  ;;  %v5850_v23 = vpop.xlane.xlu1 %5849 }
 0xcdd   :  { %v9235_v27 = vpop.eup %9234  ;;  %5921 = vadd.xlane.f32.xlu1 %v13130_v22  ;;  %v5870_v29 = vsub.f32 %v13006_v15, %v5850_v23  ;;  %5919 = vadd.xlane.f32.xlu0 %v13132_v50  ;;  %v5848_v14 = vpop.xlane.xlu0 %5847 }
 0xcde   :  { %v9237_v38 = vpop.eup %9236  ;;  %v5869_v39 = vsub.f32 %v13013_v36, %v5848_v14  ;;  %v5551_v11 = vmul.f32 %v9235_v27, %v12968_v12 }
 0xcdf   :  { %v5897_v33 = vmul.f32 1.442695, %v5870_v29  ;;  %7865 = vmatmul.mubr.f32.gmra.mrb[38].mxu1 %v4846_v32  ;;  %v5550_v21 = vmul.f32 %v9237_v38, %v12972_v0 }
 0xce0   :  { %v5895_v46 = vmul.f32 1.442695, %v5869_v39  ;;  %7931 = vmatprep.mubr.f32.mxu1 %v5250_v1 }
 0xce1   :  { %9246 = vpow2.f32 %v5897_v33  ;;  %v5515_v26 = vpop.xlane.xlu1 %5514  ;;  %v8427_v45 = vpack.c.bf16 %v5551_v11, %v5550_v21  ;;  %v5513_v15 = vpop.xlane.xlu0 %5512 }
 0xce2   :  { %9248 = vpow2.f32 %v5895_v46 }
 0xce3   :  { %v13140_v28 = vpop.eup %9238  ;;  %9250 = vrcp.f32 %v5515_v26  ;;  %8428 = vmatprep.subr.bf16.mxu1 %v8427_v45 }
 0xce4   :  { %v13142_v20 = vpop.eup %9240  ;;  %9252 = vrcp.f32 %v5513_v15  ;;  %8430 = vmatpush3.bf16.xpose.msra.mxu1 %v8427_v45  ;;  %5925 = vadd.xlane.f32.xlu1 %v13140_v28 }
 0xce5   :  { %v9243_v12 = vpop.eup %9242  ;;  %v5854_v36 = vpop.xlane.xlu1 %5853  ;;  %5923 = vadd.xlane.f32.xlu0 %v13142_v20 }
 0xce6   :  { %v5852_v0 = vpop.xlane.xlu0 %5851  ;;  %v9245_v61 = vpop.eup %9244  ;;  %v5872_v37 = vsub.f32 %v13034_v10, %v5854_v36  ;;  %v5553_v55 = vmul.f32 %v9243_v12, %v12994_v18  ;;  %v9393_v36 = vmov 0  }
 0xce7   :  { %v5871_v9 = vsub.f32 %v13039_v35, %v5852_v0  ;;  %v5552_v58 = vmul.f32 %v9245_v61, %v12998_v63  ;;  %8541 = vset.pattern.permute.xlu1 %v9393_v36  ;;  %8540 = vset.pattern.permute.xlu0 %v9393_v36 }
 0xce8   :  { %v5901_v60 = vmul.f32 1.442695, %v5872_v37 }
 0xce9   :  { %v5899_v53 = vmul.f32 1.442695, %v5871_v9  ;;  %v5519_v7 = vpop.xlane.xlu1 %5518  ;;  %v8431_v52 = vpack.c.bf16 %v5553_v55, %v5552_v58 }
 0xcea   :  { %v5517_v8 = vpop.xlane.xlu0 %5516  ;;  %9254 = vpow2.f32 %v5901_v60 }
 0xceb   :  { %v13150_v40 = vpop.eup %9246  ;;  %9256 = vpow2.f32 %v5899_v53  ;;  %8432 = vmatprep.subr.bf16.mxu1 %v8431_v52 }
 0xcec   :  { %v13152_v44 = vpop.eup %9248  ;;  %9258 = vrcp.f32 %v5519_v7  ;;  %8434 = vmatpush3.bf16.xpose.msra.mxu1 %v8431_v52  ;;  %5929 = vadd.xlane.f32.xlu1 %v13150_v40 }
 0xced   :  { %v9251_v10 = vpop.eup %9250  ;;  %9260 = vrcp.f32 %v5517_v8  ;;  %v5858_v18 = vpop.xlane.xlu1 %5857  ;;  %5927 = vadd.xlane.f32.xlu0 %v13152_v44 }
 0xcee   :  { %v5856_v63 = vpop.xlane.xlu0 %5855  ;;  %v9253_v35 = vpop.eup %9252  ;;  %v5874_v62 = vsub.f32 %v13060_v43, %v5858_v18  ;;  %v5555_v19 = vmul.f32 %v9251_v10, %v13018_v16 }
 0xcef   :  { %v5873_v56 = vsub.f32 %v13065_v47, %v5856_v63  ;;  %v5554_v5 = vmul.f32 %v9253_v35, %v13024_v25 }
 0xcf0   :  { %v5905_v41 = vmul.f32 1.442695, %v5874_v62 }
 0xcf1   :  { %v5903_v3 = vmul.f32 1.442695, %v5873_v56  ;;  %v5523_v59 = vpop.xlane.xlu1 %5522  ;;  %v8435_v51 = vpack.c.bf16 %v5555_v19, %v5554_v5  ;;  %v5251_v56 = vld [vmem:[#allocation2 + $0x2c8] sm:$0xff] }
 0xcf2   :  { %9262 = vpow2.f32 %v5905_v41  ;;  %v5521_v23 = vpop.xlane.xlu0 %5520  ;;  %v5253_v41 = vld [vmem:[#allocation2 + $0x2d8] sm:$0xff] }
 0xcf3   :  { %9264 = vpow2.f32 %v5903_v3  ;;  %8436 = vmatprep.subr.bf16.mxu1 %v8435_v51 }
 0xcf4   :  { %v13160_v27 = vpop.eup %9254  ;;  %9266 = vrcp.f32 %v5523_v59  ;;  %8438 = vmatpush3.bf16.xpose.msra.mxu1 %v8435_v51  ;;  %v5657_v59 = vld [vmem:[#allocation2 + $0x2e0] sm:$0xff] }
 0xcf5   :  { %v13162_v29 = vpop.eup %9256  ;;  %9268 = vrcp.f32 %v5521_v23  ;;  %5933 = vadd.xlane.f32.xlu1 %v13160_v27 }
 0xcf6   :  { %v9259_v16 = vpop.eup %9258  ;;  %5931 = vadd.xlane.f32.xlu0 %v13162_v29 }
 0xcf7   :  { %v9261_v25 = vpop.eup %9260  ;;  %v5557_v43 = vmul.f32 %v9259_v16, %v13044_v49 }
 0xcf8   :  { %v5556_v47 = vmul.f32 %v9261_v25, %v13050_v24 }
 0xcf9   :  { %v5527_v14 = vpop.xlane.xlu1 %5526 }
 0xcfa   :  { %9270 = vrcp.f32 %v5527_v14  ;;  %v8439_v38 = vpack.c.bf16 %v5557_v43, %v5556_v47  ;;  %v5525_v32 = vpop.xlane.xlu0 %5524 }
 0xcfb   :  { %9272 = vrcp.f32 %v5525_v32 }
 0xcfc   :  { %v13168_v39 = vpop.eup %9262  ;;  %8440 = vmatprep.subr.bf16.mxu1 %v8439_v38 }
 0xcfd   :  { %v13170_v11 = vpop.eup %9264  ;;  %8442 = vmatpush3.bf16.xpose.msra.mxu1 %v8439_v38  ;;  %5937 = vadd.xlane.f32.xlu1 %v13168_v39 }
 0xcfe   :  { %v9267_v33 = vpop.eup %9266  ;;  %5935 = vadd.xlane.f32.xlu0 %v13170_v11 }
 0xcff   :  { %v9269_v1 = vpop.eup %9268  ;;  %v5559_v49 = vmul.f32 %v9267_v33, %v13070_v17  ;;  %v6061_v17 = vld [vmem:[%s13228_s4 + $0x8] sm:$0xff] }
 0xd00   :  { %v5558_v24 = vmul.f32 %v9269_v1, %v13072_v48  ;;  %v6060_v48 = vld [vmem:[%s13228_s4] sm:$0xff] }
 0xd02   :  { %v8443_v21 = vpack.c.bf16 %v5559_v49, %v5558_v24 }
 0xd04   :  { %v9271_v46 = vpop.eup %9270  ;;  %8444 = vmatprep.subr.bf16.mxu1 %v8443_v21 }
 0xd05   :  { %v9273_v26 = vpop.eup %9272  ;;  %8446 = vmatpush3.bf16.xpose.msra.mxu1 %v8443_v21  ;;  %v5561_v45 = vmul.f32 %v9271_v46, %v13078_v34  ;;  %v6062_v34 = vld [vmem:[%s13228_s4 + $0x10] sm:$0xff] }
 0xd06   :  { %v5560_v15 = vmul.f32 %v9273_v26, %v13080_v13  ;;  %v6063_v13 = vld [vmem:[%s13228_s4 + $0x18] sm:$0xff] }
 0xd08   :  { %v8447_v12 = vpack.c.bf16 %v5561_v45, %v5560_v15 }
 0xd0a   :  { %8448 = vmatprep.subr.bf16.mxu1 %v8447_v12 }
 0xd0d   :  { %8450 = vmatpush3.bf16.xpose.msra.mxu1 %v8447_v12 }
 0xd0e   :  { %6071 = vperm.xlu1 %8541, %v6061_v17  }
 0xd12   :  { %6076 = vperm.xlu1 %8541, %v6062_v34  }
 0xd14   :  { %6066 = vperm.xlu0 %8540, %v6060_v48  }
 0xd16   :  { %6081 = vperm.xlu1 %8541, %v6063_v13  }
 0xd48   :  { %v5531_v0 = vpop.xlane.xlu1 %5530 }
 0xd49   :  { %9274 = vrcp.f32 %v5531_v0  ;;  %v5529_v61 = vpop.xlane.xlu0 %5528 }
 0xd4a   :  { %9276 = vrcp.f32 %v5529_v61 }
 0xd50   :  { %v5910_v37 = vpop.xlane.xlu1 %5909 }
 0xd51   :  { %9278 = vrcp.f32 %v5910_v37  ;;  %v5908_v9 = vpop.xlane.xlu0 %5907 }
 0xd52   :  { %9280 = vrcp.f32 %v5908_v9 }
 0xd53   :  { %v9275_v55 = vpop.eup %9274 }
 0xd54   :  { %v9277_v58 = vpop.eup %9276  ;;  %v5563_v60 = vmul.f32 %v9275_v55, %v13090_v31  ;;  %v5252_v31 = vld [vmem:[#allocation2 + $0x2d0] sm:$0xff] }
 0xd55   :  { %v5562_v53 = vmul.f32 %v9277_v58, %v13092_v30 }
 0xd57   :  { %v8451_v7 = vpack.c.bf16 %v5563_v60, %v5562_v53  ;;  %v5658_v53 = vld [vmem:[#allocation2 + $0x2e8] sm:$0xff] }
 0xd59   :  { %v5914_v52 = vpop.xlane.xlu1 %5913  ;;  %8452 = vmatprep.subr.bf16.mxu1 %v8451_v7 }
 0xd5a   :  { %9282 = vrcp.f32 %v5914_v52  ;;  %v5912_v8 = vpop.xlane.xlu0 %5911  ;;  %8454 = vmatpush3.bf16.xpose.msra.mxu1 %v8451_v7  ;;  %v5659_v7 = vld [vmem:[#allocation2 + $0x2f0] sm:$0xff]  ;;  %v5660_v52 = vld [vmem:[#allocation2 + $0x2f8] sm:$0xff] }
 0xd5b   :  { %v9279_v10 = vpop.eup %9278  ;;  %9284 = vrcp.f32 %v5912_v8 }
 0xd5c   :  { %v9281_v18 = vpop.eup %9280  ;;  %v5956_v63 = vmul.f32 %v9279_v10, %v13100_v4  ;;  %v13572_v10 = vld [vmem:[#allocation38_spill] sm:$0xff] }
 0xd5d   :  { %v5955_v35 = vmul.f32 %v9281_v18, %v13102_v54 }
 0xd5f   :  { %v8463_v62 = vpack.c.bf16 %v5956_v63, %v5955_v35 }
 0xd61   :  { %v5918_v19 = vpop.xlane.xlu1 %5917  ;;  %7932 = vmatmul.mubr.f32.vlgmr.msra.gmra.mrb[36].mxu1 %v5251_v56  ;;  %8464 = vmatprep.subr.bf16.mxu1 %v8463_v62 }
 0xd62   :  { %9286 = vrcp.f32 %v5918_v19  ;;  %v5916_v30 = vpop.xlane.xlu0 %5915  ;;  %7934 = vmatprep.mubr.f32.mxu1 %v5252_v31  ;;  %8466 = vmatpush3.bf16.xpose.msra.mxu1 %v8463_v62  ;;  %v13573_v62 = vld [vmem:[#allocation39_spill] sm:$0xff]  ;;  %v13574_v31 = vld [vmem:[#allocation40_spill] sm:$0xff] }
 0xd63   :  { %9288 = vrcp.f32 %v5916_v30 }
 0xd64   :  { %v9283_v5 = vpop.eup %9282 }
 0xd65   :  { %v9285_v3 = vpop.eup %9284  ;;  %7935 = vmatmul.mubr.f32.gmra.mrb[38].mxu1 %v5253_v41  ;;  %v5958_v4 = vmul.f32 %v9283_v5, %v13110_v57  ;;  %v13575_v41 = vld [vmem:[#allocation41_spill] sm:$0xff] }
 0xd66   :  { %8001 = vmatprep.mubr.f32.mxu1 %v5657_v59  ;;  %v5957_v54 = vmul.f32 %v9285_v3, %v13112_v42 }
 0xd68   :  { %v8467_v51 = vpack.c.bf16 %v5958_v4, %v5957_v54 }
 0xd6a   :  { %v5922_v23 = vpop.xlane.xlu1 %5921  ;;  %8468 = vmatprep.subr.bf16.mxu1 %v8467_v51  ;;  %v5920_v16 = vpop.xlane.xlu0 %5919 }
 0xd6b   :  { %9290 = vrcp.f32 %v5922_v23  ;;  %8470 = vmatpush3.bf16.xpose.msra.mxu1 %v8467_v51 }
 0xd6c   :  { %v9287_v25 = vpop.eup %9286  ;;  %9292 = vrcp.f32 %v5920_v16 }
 0xd6d   :  { %v9289_v43 = vpop.eup %9288  ;;  %v5960_v47 = vmul.f32 %v9287_v25, %v13120_v2 }
 0xd6e   :  { %v5959_v14 = vmul.f32 %v9289_v43, %v13122_v6 }
 0xd70   :  { %v8471_v38 = vpack.c.bf16 %v5960_v47, %v5959_v14 }
 0xd71   :  { %v5926_v32 = vpop.xlane.xlu1 %5925 }
 0xd72   :  { %9294 = vrcp.f32 %v5926_v32  ;;  %8472 = vmatprep.subr.bf16.mxu1 %v8471_v38  ;;  %v5924_v57 = vpop.xlane.xlu0 %5923 }
 0xd73   :  { %9296 = vrcp.f32 %v5924_v57  ;;  %8474 = vmatpush3.bf16.xpose.msra.mxu1 %v8471_v38 }
 0xd75   :  { %v9291_v42 = vpop.eup %9290 }
 0xd76   :  { %v9293_v33 = vpop.eup %9292  ;;  %v5962_v1 = vmul.f32 %v9291_v42, %v13130_v22 }
 0xd77   :  { %v5961_v49 = vmul.f32 %v9293_v33, %v13132_v50 }
 0xd79   :  { %v5930_v24 = vpop.xlane.xlu1 %5929  ;;  %v8475_v21 = vpack.c.bf16 %v5962_v1, %v5961_v49 }
 0xd7a   :  { %9298 = vrcp.f32 %v5930_v24  ;;  %v5928_v46 = vpop.xlane.xlu0 %5927 }
 0xd7b   :  { %8476 = vmatprep.subr.bf16.mxu1 %v8475_v21  ;;  %9300 = vrcp.f32 %v5928_v46 }
 0xd7c   :  { %v9295_v2 = vpop.eup %9294  ;;  %8478 = vmatpush3.bf16.xpose.msra.mxu1 %v8475_v21 }
 0xd7d   :  { %v9297_v6 = vpop.eup %9296  ;;  %v5964_v26 = vmul.f32 %v9295_v2, %v13140_v28 }
 0xd7e   :  { %v5963_v45 = vmul.f32 %v9297_v6, %v13142_v20 }
 0xd80   :  { %v8479_v15 = vpack.c.bf16 %v5964_v26, %v5963_v45 }
 0xd82   :  { %v5934_v12 = vpop.xlane.xlu1 %5933  ;;  %8480 = vmatprep.subr.bf16.mxu1 %v8479_v15 }
 0xd83   :  { %9302 = vrcp.f32 %v5934_v12  ;;  %v5932_v22 = vpop.xlane.xlu0 %5931 }
 0xd84   :  { %v9299_v36 = vpop.eup %9298  ;;  %9304 = vrcp.f32 %v5932_v22  ;;  %8482 = vmatpush3.bf16.xpose.msra.mxu1 %v8479_v15 }
 0xd85   :  { %v9301_v50 = vpop.eup %9300  ;;  %v5966_v17 = vmul.f32 %v9299_v36, %v13150_v40 }
 0xd86   :  { %v5965_v48 = vmul.f32 %v9301_v50, %v13152_v44 }
 0xd88   :  { %v8483_v34 = vpack.c.bf16 %v5966_v17, %v5965_v48 }
 0xd8a   :  { %v5938_v13 = vpop.xlane.xlu1 %5937  ;;  %8484 = vmatprep.subr.bf16.mxu1 %v8483_v34 }
 0xd8b   :  { %9306 = vrcp.f32 %v5938_v13  ;;  %v5936_v28 = vpop.xlane.xlu0 %5935 }
 0xd8c   :  { %9308 = vrcp.f32 %v5936_v28  ;;  %8486 = vmatpush3.bf16.xpose.msra.mxu1 %v8483_v34 }
 0xd8d   :  { %v9303_v20 = vpop.eup %9302 }
 0xd8e   :  { %v9305_v0 = vpop.eup %9304  ;;  %v5968_v61 = vmul.f32 %v9303_v20, %v13160_v27  ;;  %v6072_v27 = vpop.permute.xlu1 %6071 }
 0xd8f   :  { %v5967_v37 = vmul.f32 %v9305_v0, %v13162_v29 }
 0xd91   :  { %v8487_v9 = vpack.c.bf16 %v5968_v61, %v5967_v37 }
 0xd92   :  { %v6077_v8 = vpop.permute.xlu1 %6076 }
 0xd93   :  { %8488 = vmatprep.subr.bf16.mxu1 %v8487_v9  ;;  %v6067_v35 = vpop.permute.xlu0 %6066 }
 0xd94   :  { %8490 = vmatpush3.bf16.xpose.msra.mxu1 %v8487_v9 }
 0xd95   :  { %v9307_v55 = vpop.eup %9306 }
 0xd96   :  { %v9309_v40 = vpop.eup %9308  ;;  %v5970_v44 = vmul.f32 %v9307_v55, %v13168_v39  ;;  %v6082_v59 = vpop.permute.xlu1 %6081 }
 0xd97   :  { %v5969_v58 = vmul.f32 %v9309_v40, %v13170_v11 }
 0xd99   :  { %v8491_v60 = vpack.c.bf16 %v5970_v44, %v5969_v58 }
 0xd9b   :  { %8492 = vmatprep.subr.bf16.mxu1 %v8491_v60 }
 0xd9c   :  { %8494 = vmatpush3.bf16.xpose.msra.mxu1 %v8491_v60 }
 0xda3   :  { %8002 = vmatmul.mubr.f32.vlgmr.msra.gmra.mrb[36].mxu1 %v5658_v53 }
 0xda4   :  { %8004 = vmatprep.mubr.f32.mxu1 %v5659_v7 }
 0xda7   :  { %8005 = vmatmul.mubr.f32.gmra.mrb[38].mxu1 %v5660_v52 }
 0xe76   :  { %v8003_v29 = vpop.f32.mrb[36].mxu1 }
 0xe77   :  { %v8497_v18 = vadd.f32 %v13572_v10, %v8003_v29  ;;  %v6037_v63 = vpop.f32.mrb[37].mxu1 }
 0xe78   :  { %v8500_v39 = vadd.f32 %v13573_v62, %v6037_v63 }
 0xe79   :  { %v6085_v56 = vadd.f32 %v8497_v18, %v6072_v27 }
 0xe7a   :  { %v6084_v11 = vadd.f32 %v8500_v39, %v6067_v35  ;;  %v8006_v19 = vpop.f32.mrb[38].mxu1 }
 0xe7b   :  { %6089 = vst [vmem:[%s13229_s5 + $0x8] sm:$0xff] %v6085_v56  ;;  %v8503_v30 = vadd.f32 %v13574_v31, %v8006_v19  ;;  %v6047_v5 = vpop.f32.mrb[39].mxu1 }
 0xe7c   :  { %6088 = vst [vmem:[%s13229_s5] sm:$0xff] %v6084_v11  ;;  %v8506_v3 = vadd.f32 %v13575_v41, %v6047_v5 }
 0xe7d   :  { %v6087_v4 = vadd.f32 %v8503_v30, %v6082_v59 }
 0xe7e   :  { %v6086_v54 = vadd.f32 %v8506_v3, %v6077_v8 }
 0xe7f   :  { %6091 = vst [vmem:[%s13229_s5 + $0x18] sm:$0xff] %v6087_v4 }
 0xe80   :  { %6090 = vst [vmem:[%s13229_s5 + $0x10] sm:$0xff] %v6086_v54 }

</bundles_post_ra>
